<compile_context>
chip_gen: v7x
topology: tpu7x:2x2x1
jax: 0.10.0
libtpu: 0.0.40
codegen_flags: <defaults>
</compile_context>

<pallas_src>
import functools

import jax
import jax.numpy as jnp
from jax.experimental import pallas as pl
from jax.experimental.pallas import tpu as pltpu


# ----------------------------------------------------------------------------
# Fused kernel (one batch element per grid step)
# ----------------------------------------------------------------------------
def _upconv_fused_kernel(x_ref, wd_ref, s_ref, b_ref, w1_ref, mask_ref, w2_ref,
                         o_ref, u_scr, p1_scr, a1p_scr, p2_scr,
                         *, cin, cout, h_in, w_in, h2, w2, wp, l1):
    # Layout: channels on sublanes (matmul M), flattened spatial on the 128-lane axis.
    # "Frame" = zero-padded image stored row-major with lane-aligned row pitch wp (wp % 128 == 0):
    #   frame row r+2 holds image row r in columns 0..w2-1; rows 0,1 and h2+2,h2+3 are zero pads;
    #   columns >= w2 are zero slack, so the left pad of a row is the previous row's zero slack.
    # Conv taps: output pixel base q = h*wp + w reads frame[q + (kh+1)*wp + kw - 1].
    f32 = jnp.float32
    x = x_ref[0]                                                    # (Cin, H*W)

    # --- per-step re-init of the zero pad rows / bias rows (keeps steps independent) ------------
    zc = jnp.zeros((cin, 2 * wp), f32)
    u_scr[:, 0:2 * wp] = zc
    u_scr[:, (h2 + 2) * wp:(h2 + 4) * wp] = zc
    zo = jnp.zeros((cout, 2 * wp), f32)
    a1p_scr[:, 0:2 * wp] = zo
    a1p_scr[:, (h2 + 2) * wp:(h2 + 4) * wp] = zo
    p1_scr[9 * cin:9 * cin + 1, :] = jnp.ones((1, l1), f32)         # bias column (BN shift fold)
    p2_scr[9 * cout:9 * cout + 1, :] = jnp.ones((1, l1), f32)

    # --- stage 1: ConvTranspose2d(k=2,s=2) -------------------------------------------------------
    # Channel mixing for all 4 (di,dj) phases in one matmul, then per up-sampled row a tiny
    # width-interleave one-hot matmul and ONE contiguous lane-aligned store into the frame scratch.
    y = jnp.dot(wd_ref[...], x, preferred_element_type=f32)         # (4*Cin, H*W)
    s0 = s_ref[0]                                                   # (W, WP): j -> col 2j
    s1 = s_ref[1]                                                   # (W, WP): j -> col 2j+1
    brow = b_ref[...]                                               # (Cin, WP) deconv bias, 0 on slack
    for i in range(h_in):
        ysl = y[:, i * w_in:(i + 1) * w_in]                         # (4*Cin, W), low-res row i
        for di in range(2):
            t0 = (2 * di) * cin
            row = (jnp.dot(ysl[t0:t0 + cin, :], s0, preferred_element_type=f32) +
                   jnp.dot(ysl[t0 + cin:t0 + 2 * cin, :], s1, preferred_element_type=f32) +
                   brow)                                            # (Cin, WP)
            base = (2 * i + di + 2) * wp                            # lane-aligned row base
            u_scr[:, base:base + wp] = row

    # --- stage 2: Conv3x3 (no bias) + BN + ReLU as a single im2col matmul ------------------------
    for t in range(9):
        off = (t // 3 + 1) * wp + (t % 3) - 1                       # static tap offset
        p1_scr[t * cin:(t + 1) * cin, :] = u_scr[:, off:off + l1]   # ref-sliced load, aligned store
    a1 = jnp.dot(w1_ref[...], p1_scr[...], preferred_element_type=f32)   # (Cout, L1), bias folded
    a1 = jnp.maximum(a1, 0.0) * mask_ref[...]                       # ReLU, zero the wrap columns
    a1p_scr[:, 2 * wp:2 * wp + l1] = a1                             # single aligned re-embedding

    # --- stage 3: Conv3x3 (no bias) + BN + ReLU as a single im2col matmul ------------------------
    for t in range(9):
        off = (t // 3 + 1) * wp + (t % 3) - 1
        p2_scr[t * cout:(t + 1) * cout, :] = a1p_scr[:, off:off + l1]
    a2 = jnp.maximum(jnp.dot(w2_ref[...], p2_scr[...], preferred_element_type=f32), 0.0)

    # --- output: lane-aligned crop (pitch WP -> W2) into one dense (Cout, H2*W2) slab ------------
    rows = [a2[:, h * wp:h * wp + w2] for h in range(h2)]           # aligned single-vreg slices
    o_ref[0, :, :] = jnp.concatenate(rows, axis=1).astype(o_ref.dtype)


# ----------------------------------------------------------------------------
# Wrapper: trace-time parameter folding + pallas_call (NCHW in / NCHW out)
# ----------------------------------------------------------------------------
def upconv_forward(x_nchw, params):
    N, Cin, H, W = x_nchw.shape
    Cout = params["c1_w"].shape[0]
    H2, W2 = 2 * H, 2 * W
    HW = H * W
    WP = ((W2 + 2 + 127) // 128) * 128       # lane-aligned frame row pitch (>= W2 + 2)
    L1 = H2 * WP                             # conv-output flat length (multiple of 128)
    FLAT = (H2 + 4) * WP                     # frame: 2 top pads + H2 data rows + 2 bottom pads
    f32 = jnp.float32

    # deconv weights (Cin, Cin, 2, 2) -> (4*Cin, Cin), rows ordered (di, dj, co)
    wd = jnp.transpose(params["up_w"], (2, 3, 1, 0)).reshape(4 * Cin, Cin).astype(f32)

    # width-interleave one-hots shared by all rows: j -> column 2j+dj of a frame row
    j = jnp.arange(W)
    s = jnp.stack([jax.nn.one_hot(2 * j + dj, WP, dtype=f32) for dj in (0, 1)], axis=0)  # (2,W,WP)

    # deconv bias over the data columns of a frame row (zero on the slack columns)
    bias_row = params["up_b"][:, None] * (jnp.arange(WP) < W2).astype(f32)[None, :]      # (Cin,WP)

    # conv weights with BN scale folded, columns ordered (kh, kw, ci), plus a BN-shift bias column
    w1 = jnp.transpose(params["c1_w"], (0, 2, 3, 1)).reshape(Cout, 9 * Cin)
    w1 = jnp.concatenate([w1 * params["bn1_scale"][:, None],
                          params["bn1_shift"][:, None]], axis=1).astype(f32)             # (Cout,9Cin+1)
    w2 = jnp.transpose(params["c2_w"], (0, 2, 3, 1)).reshape(Cout, 9 * Cout)
    w2 = jnp.concatenate([w2 * params["bn2_scale"][:, None],
                          params["bn2_shift"][:, None]], axis=1).astype(f32)             # (Cout,9Cout+1)

    # valid-column mask over conv-output base positions (zero the wrap columns)
    mask = ((jnp.arange(L1) % WP) < W2).astype(f32)[None, :]                             # (1, L1)

    x_flat = x_nchw.reshape(N, Cin, HW)                                                  # free reshape

    kernel = functools.partial(
        _upconv_fused_kernel,
        cin=Cin, cout=Cout, h_in=H, w_in=W, h2=H2, w2=W2, wp=WP, l1=L1)

    out_flat = pl.pallas_call(
        kernel,
        out_shape=jax.ShapeDtypeStruct((N, Cout, H2 * W2), x_nchw.dtype),
        grid_spec=pltpu.PrefetchScalarGridSpec(
            num_scalar_prefetch=0,
            grid=(N,),
            in_specs=[
                pl.BlockSpec((1, Cin, HW), lambda n: (n, 0, 0)),
                pl.BlockSpec((4 * Cin, Cin), lambda n: (0, 0)),
                pl.BlockSpec((2, W, WP), lambda n: (0, 0, 0)),
                pl.BlockSpec((Cin, WP), lambda n: (0, 0)),
                pl.BlockSpec((Cout, 9 * Cin + 1), lambda n: (0, 0)),
                pl.BlockSpec((1, L1), lambda n: (0, 0)),
                pl.BlockSpec((Cout, 9 * Cout + 1), lambda n: (0, 0)),
            ],
            out_specs=pl.BlockSpec((1, Cout, H2 * W2), lambda n: (n, 0, 0)),
            scratch_shapes=[
                pltpu.VMEM((Cin, FLAT), f32),            # up-sampled frame
                pltpu.VMEM((9 * Cin + 1, L1), f32),      # im2col patch + bias row, conv1
                pltpu.VMEM((Cout, FLAT), f32),           # conv1-output frame
                pltpu.VMEM((9 * Cout + 1, L1), f32),     # im2col patch + bias row, conv2
            ],
        ),
        compiler_params=pltpu.CompilerParams(
            dimension_semantics=("parallel",),
            vmem_limit_bytes=64 * 1024 * 1024,
        ),
    )(x_flat, wd, s, bias_row, w1, mask, w2)

    return out_flat.reshape(N, Cout, H2, W2)                                             # free reshape


# ----------------------------------------------------------------------------
# Pure-JAX reference (same math, no Pallas) for verification
# ----------------------------------------------------------------------------
def _ref_forward(x_nchw, params):
    x = jnp.transpose(x_nchw, (0, 2, 3, 1))                         # NHWC
    N, H, W, Cin = x.shape
    wt = params["up_w"]                                             # (Cin, Cout, 2, 2)
    y = jnp.einsum("nijc,coab->niajbo", x, wt)
    y = y.reshape(N, 2 * H, 2 * W, wt.shape[1]) + params["up_b"]

    def conv_bn_relu(z, w_torch, scale, shift):
        w = jnp.transpose(w_torch, (2, 3, 1, 0))                    # HWIO
        z = jax.lax.conv_general_dilated(
            z, w, (1, 1), "SAME", dimension_numbers=("NHWC", "HWIO", "NHWC"))
        return jnp.maximum(z * scale + shift, 0.0)

    y = conv_bn_relu(y, params["c1_w"], params["bn1_scale"], params["bn1_shift"])
    y = conv_bn_relu(y, params["c2_w"], params["bn2_scale"], params["bn2_shift"])
    return jnp.transpose(y, (0, 3, 1, 2))


# ----------------------------------------------------------------------------
# Deterministic parameter init + run
# ----------------------------------------------------------------------------
def make_params(key, in_channels, out_channels):
    ks = jax.random.split(key, 10)
    eps = 1e-5

    def fold_bn(gamma, beta, mean, var):
        scale = gamma / jnp.sqrt(var + eps)
        return scale, beta - mean * scale

    up_w = 0.1 * jax.random.normal(ks[0], (in_channels, in_channels, 2, 2), jnp.float32)
    up_b = 0.1 * jax.random.normal(ks[1], (in_channels,), jnp.float32)
    c1_w = 0.1 * jax.random.normal(ks[2], (out_channels, in_channels, 3, 3), jnp.float32)
    c2_w = 0.1 * jax.random.normal(ks[3], (out_channels, out_channels, 3, 3), jnp.float32)

    g1 = 1.0 + 0.1 * jax.random.normal(ks[4], (out_channels,), jnp.float32)
    b1 = 0.1 * jax.random.normal(ks[5], (out_channels,), jnp.float32)
    m1 = 0.1 * jax.random.normal(ks[6], (out_channels,), jnp.float32)
    v1 = 0.5 + jnp.abs(jax.random.normal(ks[7], (out_channels,), jnp.float32))
    s1, sh1 = fold_bn(g1, b1, m1, v1)

    g2 = 1.0 + 0.1 * jax.random.normal(ks[8], (out_channels,), jnp.float32)
    b2 = 0.1 * jax.random.normal(ks[9], (out_channels,), jnp.float32)
    m2 = jnp.zeros((out_channels,), jnp.float32)
    v2 = jnp.ones((out_channels,), jnp.float32)
    s2, sh2 = fold_bn(g2, b2, m2, v2)

    return dict(up_w=up_w, up_b=up_b, c1_w=c1_w, c2_w=c2_w,
                bn1_scale=s1, bn1_shift=sh1, bn2_scale=s2, bn2_shift=sh2)


if __name__ == "__main__":
    in_channels, out_channels = 4, 8
    N, H, W = 2, 16, 16

    key = jax.random.PRNGKey(0)
    kx, kp = jax.random.split(key)
    x = jax.random.normal(kx, (N, in_channels, H, W), jnp.float32)   # NCHW input
    params = make_params(kp, in_channels, out_channels)

    out = jax.jit(upconv_forward)(x, params)
    out = jax.block_until_ready(out)

    ref = _ref_forward(x, params)
    assert out.shape == (N, out_channels, 2 * H, 2 * W), out.shape
    assert jnp.allclose(out, ref, atol=1e-4, rtol=1e-4), float(jnp.max(jnp.abs(out - ref)))

    print("KERNEL_OK")
</pallas_src>

<mosaic_0001>
module attributes {stable_mosaic.version = 11 : i64} {
  func.func @_upconv_fused_kernel(%arg0: i32, %arg1: memref<1x4x256xf32, #tpu.memory_space<vmem>>, %arg2: memref<16x4xf32, #tpu.memory_space<vmem>>, %arg3: memref<2x16x128xf32, #tpu.memory_space<vmem>>, %arg4: memref<4x128xf32, #tpu.memory_space<vmem>>, %arg5: memref<8x37xf32, #tpu.memory_space<vmem>>, %arg6: memref<1x4096xf32, #tpu.memory_space<vmem>>, %arg7: memref<8x73xf32, #tpu.memory_space<vmem>>, %arg8: memref<1x8x1024xf32, #tpu.memory_space<vmem>>, %arg9: memref<4x4608xf32, #tpu.memory_space<vmem>>, %arg10: memref<37x4096xf32, #tpu.memory_space<vmem>>, %arg11: memref<8x4608xf32, #tpu.memory_space<vmem>>, %arg12: memref<73x4096xf32, #tpu.memory_space<vmem>>) attributes {dimension_semantics = [#tpu.dimension_semantics<parallel>], iteration_bounds = array<i64: 2>, scalar_prefetch = 0 : i64, scratch_operands = 4 : i64, tpu.core_type = #tpu.core_type<tc>, window_params = [{transform_indices = @transform_0, window_bounds = array<i64: 1, 4, 256>}, {pipeline_mode = #tpu.pipeline_mode<synchronous>, transform_indices = @transform_1, window_bounds = array<i64: 16, 4>}, {pipeline_mode = #tpu.pipeline_mode<synchronous>, transform_indices = @transform_2, window_bounds = array<i64: 2, 16, 128>}, {pipeline_mode = #tpu.pipeline_mode<synchronous>, transform_indices = @transform_3, window_bounds = array<i64: 4, 128>}, {pipeline_mode = #tpu.pipeline_mode<synchronous>, transform_indices = @transform_4, window_bounds = array<i64: 8, 37>}, {pipeline_mode = #tpu.pipeline_mode<synchronous>, transform_indices = @transform_5, window_bounds = array<i64: 1, 4096>}, {pipeline_mode = #tpu.pipeline_mode<synchronous>, transform_indices = @transform_6, window_bounds = array<i64: 8, 73>}, {transform_indices = @transform_7, window_bounds = array<i64: 1, 8, 1024>}]} {
    %c0 = arith.constant 0 : index
    %c0_0 = arith.constant 0 : index
    %c0_1 = arith.constant 0 : index
    %0 = vector.load %arg1[%c0, %c0_0, %c0_1] : memref<1x4x256xf32, #tpu.memory_space<vmem>>, vector<1x4x256xf32>
    %1 = vector.shape_cast %0 : vector<1x4x256xf32> to vector<4x256xf32>
    %cst = arith.constant 0.000000e+00 : f32
    %2 = vector.broadcast %cst : f32 to vector<4x256xf32>
    %c0_2 = arith.constant 0 : index
    %c0_3 = arith.constant 0 : index
    %3 = vector.load %arg9[%c0_2, %c0_3] : memref<4x4608xf32, #tpu.memory_space<vmem>>, vector<4x256xf32>
    tpu.vector_store %arg9[%c0_2, %c0_3], %2 {strides = array<i32>} : memref<4x4608xf32, #tpu.memory_space<vmem>>, vector<4x256xf32>,
    %c0_4 = arith.constant 0 : index
    %c4352 = arith.constant 4352 : index
    %4 = vector.load %arg9[%c0_4, %c4352] : memref<4x4608xf32, #tpu.memory_space<vmem>>, vector<4x256xf32>
    tpu.vector_store %arg9[%c0_4, %c4352], %2 {strides = array<i32>} : memref<4x4608xf32, #tpu.memory_space<vmem>>, vector<4x256xf32>,
    %cst_5 = arith.constant 0.000000e+00 : f32
    %5 = vector.broadcast %cst_5 : f32 to vector<8x256xf32>
    %c0_6 = arith.constant 0 : index
    %c0_7 = arith.constant 0 : index
    %6 = vector.load %arg11[%c0_6, %c0_7] : memref<8x4608xf32, #tpu.memory_space<vmem>>, vector<8x256xf32>
    tpu.vector_store %arg11[%c0_6, %c0_7], %5 {strides = array<i32>} : memref<8x4608xf32, #tpu.memory_space<vmem>>, vector<8x256xf32>,
    %c0_8 = arith.constant 0 : index
    %c4352_9 = arith.constant 4352 : index
    %7 = vector.load %arg11[%c0_8, %c4352_9] : memref<8x4608xf32, #tpu.memory_space<vmem>>, vector<8x256xf32>
    tpu.vector_store %arg11[%c0_8, %c4352_9], %5 {strides = array<i32>} : memref<8x4608xf32, #tpu.memory_space<vmem>>, vector<8x256xf32>,
    %cst_10 = arith.constant 1.000000e+00 : f32
    %8 = vector.broadcast %cst_10 : f32 to vector<1x4096xf32>
    %c36 = arith.constant 36 : index
    %c0_11 = arith.constant 0 : index
    %9 = vector.load %arg10[%c36, %c0_11] : memref<37x4096xf32, #tpu.memory_space<vmem>>, vector<1x4096xf32>
    tpu.vector_store %arg10[%c36, %c0_11], %8 {strides = array<i32>} : memref<37x4096xf32, #tpu.memory_space<vmem>>, vector<1x4096xf32>,
    %cst_12 = arith.constant 1.000000e+00 : f32
    %10 = vector.broadcast %cst_12 : f32 to vector<1x4096xf32>
    %c72 = arith.constant 72 : index
    %c0_13 = arith.constant 0 : index
    %11 = vector.load %arg12[%c72, %c0_13] : memref<73x4096xf32, #tpu.memory_space<vmem>>, vector<1x4096xf32>
    tpu.vector_store %arg12[%c72, %c0_13], %10 {strides = array<i32>} : memref<73x4096xf32, #tpu.memory_space<vmem>>, vector<1x4096xf32>,
    %c0_14 = arith.constant 0 : index
    %c0_15 = arith.constant 0 : index
    %12 = vector.load %arg2[%c0_14, %c0_15] : memref<16x4xf32, #tpu.memory_space<vmem>>, vector<16x4xf32>
    %cst_16 = arith.constant dense<0.000000e+00> : vector<16x256xf32>
    %13 = tpu.matmul %12, %1, %cst_16 {dimension_numbers = #tpu.dot_dimension_numbers<[1], [0], [0], [1], [0, 0, 1, 1], [], []>} : vector<16x4xf32>, vector<4x256xf32>, vector<16x256xf32> -> vector<16x256xf32>
    %c0_17 = arith.constant 0 : index
    %c0_18 = arith.constant 0 : index
    %c0_19 = arith.constant 0 : index
    %14 = vector.load %arg3[%c0_17, %c0_18, %c0_19] : memref<2x16x128xf32, #tpu.memory_space<vmem>>, vector<1x16x128xf32>
    %15 = vector.shape_cast %14 : vector<1x16x128xf32> to vector<16x128xf32>
    %c1 = arith.constant 1 : index
    %c0_20 = arith.constant 0 : index
    %c0_21 = arith.constant 0 : index
    %16 = vector.load %arg3[%c1, %c0_20, %c0_21] : memref<2x16x128xf32, #tpu.memory_space<vmem>>, vector<1x16x128xf32>
    %17 = vector.shape_cast %16 : vector<1x16x128xf32> to vector<16x128xf32>
    %c0_22 = arith.constant 0 : index
    %c0_23 = arith.constant 0 : index
    %18 = vector.load %arg4[%c0_22, %c0_23] : memref<4x128xf32, #tpu.memory_space<vmem>>, vector<4x128xf32>
    %19 = vector.extract_strided_slice %13 {offsets = [0, 0], sizes = [16, 16], strides = [1, 1]} : vector<16x256xf32> to vector<16x16xf32>
    %20 = vector.extract_strided_slice %19 {offsets = [0, 0], sizes = [4, 16], strides = [1, 1]} : vector<16x16xf32> to vector<4x16xf32>
    %cst_24 = arith.constant dense<0.000000e+00> : vector<4x128xf32>
    %21 = tpu.matmul %20, %15, %cst_24 {dimension_numbers = #tpu.dot_dimension_numbers<[1], [0], [0], [1], [0, 0, 1, 1], [], []>} : vector<4x16xf32>, vector<16x128xf32>, vector<4x128xf32> -> vector<4x128xf32>
    %22 = vector.extract_strided_slice %19 {offsets = [4, 0], sizes = [4, 16], strides = [1, 1]} : vector<16x16xf32> to vector<4x16xf32>
    %cst_25 = arith.constant dense<0.000000e+00> : vector<4x128xf32>
    %23 = tpu.matmul %22, %17, %cst_25 {dimension_numbers = #tpu.dot_dimension_numbers<[1], [0], [0], [1], [0, 0, 1, 1], [], []>} : vector<4x16xf32>, vector<16x128xf32>, vector<4x128xf32> -> vector<4x128xf32>
    %24 = arith.addf %21, %23 : vector<4x128xf32>
    %25 = arith.addf %24, %18 : vector<4x128xf32>
    %c0_26 = arith.constant 0 : index
    %c256 = arith.constant 256 : index
    %26 = vector.load %arg9[%c0_26, %c256] : memref<4x4608xf32, #tpu.memory_space<vmem>>, vector<4x128xf32>
    tpu.vector_store %arg9[%c0_26, %c256], %25 {strides = array<i32>} : memref<4x4608xf32, #tpu.memory_space<vmem>>, vector<4x128xf32>,
    %27 = vector.extract_strided_slice %19 {offsets = [8, 0], sizes = [4, 16], strides = [1, 1]} : vector<16x16xf32> to vector<4x16xf32>
    %cst_27 = arith.constant dense<0.000000e+00> : vector<4x128xf32>
    %28 = tpu.matmul %27, %15, %cst_27 {dimension_numbers = #tpu.dot_dimension_numbers<[1], [0], [0], [1], [0, 0, 1, 1], [], []>} : vector<4x16xf32>, vector<16x128xf32>, vector<4x128xf32> -> vector<4x128xf32>
    %29 = vector.extract_strided_slice %19 {offsets = [12, 0], sizes = [4, 16], strides = [1, 1]} : vector<16x16xf32> to vector<4x16xf32>
    %cst_28 = arith.constant dense<0.000000e+00> : vector<4x128xf32>
    %30 = tpu.matmul %29, %17, %cst_28 {dimension_numbers = #tpu.dot_dimension_numbers<[1], [0], [0], [1], [0, 0, 1, 1], [], []>} : vector<4x16xf32>, vector<16x128xf32>, vector<4x128xf32> -> vector<4x128xf32>
    %31 = arith.addf %28, %30 : vector<4x128xf32>
    %32 = arith.addf %31, %18 : vector<4x128xf32>
    %c0_29 = arith.constant 0 : index
    %c384 = arith.constant 384 : index
    %33 = vector.load %arg9[%c0_29, %c384] : memref<4x4608xf32, #tpu.memory_space<vmem>>, vector<4x128xf32>
    tpu.vector_store %arg9[%c0_29, %c384], %32 {strides = array<i32>} : memref<4x4608xf32, #tpu.memory_space<vmem>>, vector<4x128xf32>,
    %34 = vector.extract_strided_slice %13 {offsets = [0, 16], sizes = [16, 16], strides = [1, 1]} : vector<16x256xf32> to vector<16x16xf32>
    %35 = vector.extract_strided_slice %34 {offsets = [0, 0], sizes = [4, 16], strides = [1, 1]} : vector<16x16xf32> to vector<4x16xf32>
    %cst_30 = arith.constant dense<0.000000e+00> : vector<4x128xf32>
    %36 = tpu.matmul %35, %15, %cst_30 {dimension_numbers = #tpu.dot_dimension_numbers<[1], [0], [0], [1], [0, 0, 1, 1], [], []>} : vector<4x16xf32>, vector<16x128xf32>, vector<4x128xf32> -> vector<4x128xf32>
    %37 = vector.extract_strided_slice %34 {offsets = [4, 0], sizes = [4, 16], strides = [1, 1]} : vector<16x16xf32> to vector<4x16xf32>
    %cst_31 = arith.constant dense<0.000000e+00> : vector<4x128xf32>
    %38 = tpu.matmul %37, %17, %cst_31 {dimension_numbers = #tpu.dot_dimension_numbers<[1], [0], [0], [1], [0, 0, 1, 1], [], []>} : vector<4x16xf32>, vector<16x128xf32>, vector<4x128xf32> -> vector<4x128xf32>
    %39 = arith.addf %36, %38 : vector<4x128xf32>
    %40 = arith.addf %39, %18 : vector<4x128xf32>
    %c0_32 = arith.constant 0 : index
    %c512 = arith.constant 512 : index
    %41 = vector.load %arg9[%c0_32, %c512] : memref<4x4608xf32, #tpu.memory_space<vmem>>, vector<4x128xf32>
    tpu.vector_store %arg9[%c0_32, %c512], %40 {strides = array<i32>} : memref<4x4608xf32, #tpu.memory_space<vmem>>, vector<4x128xf32>,
    %42 = vector.extract_strided_slice %34 {offsets = [8, 0], sizes = [4, 16], strides = [1, 1]} : vector<16x16xf32> to vector<4x16xf32>
    %cst_33 = arith.constant dense<0.000000e+00> : vector<4x128xf32>
    %43 = tpu.matmul %42, %15, %cst_33 {dimension_numbers = #tpu.dot_dimension_numbers<[1], [0], [0], [1], [0, 0, 1, 1], [], []>} : vector<4x16xf32>, vector<16x128xf32>, vector<4x128xf32> -> vector<4x128xf32>
    %44 = vector.extract_strided_slice %34 {offsets = [12, 0], sizes = [4, 16], strides = [1, 1]} : vector<16x16xf32> to vector<4x16xf32>
    %cst_34 = arith.constant dense<0.000000e+00> : vector<4x128xf32>
    %45 = tpu.matmul %44, %17, %cst_34 {dimension_numbers = #tpu.dot_dimension_numbers<[1], [0], [0], [1], [0, 0, 1, 1], [], []>} : vector<4x16xf32>, vector<16x128xf32>, vector<4x128xf32> -> vector<4x128xf32>
    %46 = arith.addf %43, %45 : vector<4x128xf32>
    %47 = arith.addf %46, %18 : vector<4x128xf32>
    %c0_35 = arith.constant 0 : index
    %c640 = arith.constant 640 : index
    %48 = vector.load %arg9[%c0_35, %c640] : memref<4x4608xf32, #tpu.memory_space<vmem>>, vector<4x128xf32>
    tpu.vector_store %arg9[%c0_35, %c640], %47 {strides = array<i32>} : memref<4x4608xf32, #tpu.memory_space<vmem>>, vector<4x128xf32>,
    %49 = vector.extract_strided_slice %13 {offsets = [0, 32], sizes = [16, 16], strides = [1, 1]} : vector<16x256xf32> to vector<16x16xf32>
    %50 = vector.extract_strided_slice %49 {offsets = [0, 0], sizes = [4, 16], strides = [1, 1]} : vector<16x16xf32> to vector<4x16xf32>
    %cst_36 = arith.constant dense<0.000000e+00> : vector<4x128xf32>
    %51 = tpu.matmul %50, %15, %cst_36 {dimension_numbers = #tpu.dot_dimension_numbers<[1], [0], [0], [1], [0, 0, 1, 1], [], []>} : vector<4x16xf32>, vector<16x128xf32>, vector<4x128xf32> -> vector<4x128xf32>
    %52 = vector.extract_strided_slice %49 {offsets = [4, 0], sizes = [4, 16], strides = [1, 1]} : vector<16x16xf32> to vector<4x16xf32>
    %cst_37 = arith.constant dense<0.000000e+00> : vector<4x128xf32>
    %53 = tpu.matmul %52, %17, %cst_37 {dimension_numbers = #tpu.dot_dimension_numbers<[1], [0], [0], [1], [0, 0, 1, 1], [], []>} : vector<4x16xf32>, vector<16x128xf32>, vector<4x128xf32> -> vector<4x128xf32>
    %54 = arith.addf %51, %53 : vector<4x128xf32>
    %55 = arith.addf %54, %18 : vector<4x128xf32>
    %c0_38 = arith.constant 0 : index
    %c768 = arith.constant 768 : index
    %56 = vector.load %arg9[%c0_38, %c768] : memref<4x4608xf32, #tpu.memory_space<vmem>>, vector<4x128xf32>
    tpu.vector_store %arg9[%c0_38, %c768], %55 {strides = array<i32>} : memref<4x4608xf32, #tpu.memory_space<vmem>>, vector<4x128xf32>,
    %57 = vector.extract_strided_slice %49 {offsets = [8, 0], sizes = [4, 16], strides = [1, 1]} : vector<16x16xf32> to vector<4x16xf32>
    %cst_39 = arith.constant dense<0.000000e+00> : vector<4x128xf32>
    %58 = tpu.matmul %57, %15, %cst_39 {dimension_numbers = #tpu.dot_dimension_numbers<[1], [0], [0], [1], [0, 0, 1, 1], [], []>} : vector<4x16xf32>, vector<16x128xf32>, vector<4x128xf32> -> vector<4x128xf32>
    %59 = vector.extract_strided_slice %49 {offsets = [12, 0], sizes = [4, 16], strides = [1, 1]} : vector<16x16xf32> to vector<4x16xf32>
    %cst_40 = arith.constant dense<0.000000e+00> : vector<4x128xf32>
    %60 = tpu.matmul %59, %17, %cst_40 {dimension_numbers = #tpu.dot_dimension_numbers<[1], [0], [0], [1], [0, 0, 1, 1], [], []>} : vector<4x16xf32>, vector<16x128xf32>, vector<4x128xf32> -> vector<4x128xf32>
    %61 = arith.addf %58, %60 : vector<4x128xf32>
    %62 = arith.addf %61, %18 : vector<4x128xf32>
    %c0_41 = arith.constant 0 : index
    %c896 = arith.constant 896 : index
    %63 = vector.load %arg9[%c0_41, %c896] : memref<4x4608xf32, #tpu.memory_space<vmem>>, vector<4x128xf32>
    tpu.vector_store %arg9[%c0_41, %c896], %62 {strides = array<i32>} : memref<4x4608xf32, #tpu.memory_space<vmem>>, vector<4x128xf32>,
    %64 = vector.extract_strided_slice %13 {offsets = [0, 48], sizes = [16, 16], strides = [1, 1]} : vector<16x256xf32> to vector<16x16xf32>
    %65 = vector.extract_strided_slice %64 {offsets = [0, 0], sizes = [4, 16], strides = [1, 1]} : vector<16x16xf32> to vector<4x16xf32>
    %cst_42 = arith.constant dense<0.000000e+00> : vector<4x128xf32>
    %66 = tpu.matmul %65, %15, %cst_42 {dimension_numbers = #tpu.dot_dimension_numbers<[1], [0], [0], [1], [0, 0, 1, 1], [], []>} : vector<4x16xf32>, vector<16x128xf32>, vector<4x128xf32> -> vector<4x128xf32>
    %67 = vector.extract_strided_slice %64 {offsets = [4, 0], sizes = [4, 16], strides = [1, 1]} : vector<16x16xf32> to vector<4x16xf32>
    %cst_43 = arith.constant dense<0.000000e+00> : vector<4x128xf32>
    %68 = tpu.matmul %67, %17, %cst_43 {dimension_numbers = #tpu.dot_dimension_numbers<[1], [0], [0], [1], [0, 0, 1, 1], [], []>} : vector<4x16xf32>, vector<16x128xf32>, vector<4x128xf32> -> vector<4x128xf32>
    %69 = arith.addf %66, %68 : vector<4x128xf32>
    %70 = arith.addf %69, %18 : vector<4x128xf32>
    %c0_44 = arith.constant 0 : index
    %c1024 = arith.constant 1024 : index
    %71 = vector.load %arg9[%c0_44, %c1024] : memref<4x4608xf32, #tpu.memory_space<vmem>>, vector<4x128xf32>
    tpu.vector_store %arg9[%c0_44, %c1024], %70 {strides = array<i32>} : memref<4x4608xf32, #tpu.memory_space<vmem>>, vector<4x128xf32>,
    %72 = vector.extract_strided_slice %64 {offsets = [8, 0], sizes = [4, 16], strides = [1, 1]} : vector<16x16xf32> to vector<4x16xf32>
    %cst_45 = arith.constant dense<0.000000e+00> : vector<4x128xf32>
    %73 = tpu.matmul %72, %15, %cst_45 {dimension_numbers = #tpu.dot_dimension_numbers<[1], [0], [0], [1], [0, 0, 1, 1], [], []>} : vector<4x16xf32>, vector<16x128xf32>, vector<4x128xf32> -> vector<4x128xf32>
    %74 = vector.extract_strided_slice %64 {offsets = [12, 0], sizes = [4, 16], strides = [1, 1]} : vector<16x16xf32> to vector<4x16xf32>
    %cst_46 = arith.constant dense<0.000000e+00> : vector<4x128xf32>
    %75 = tpu.matmul %74, %17, %cst_46 {dimension_numbers = #tpu.dot_dimension_numbers<[1], [0], [0], [1], [0, 0, 1, 1], [], []>} : vector<4x16xf32>, vector<16x128xf32>, vector<4x128xf32> -> vector<4x128xf32>
    %76 = arith.addf %73, %75 : vector<4x128xf32>
    %77 = arith.addf %76, %18 : vector<4x128xf32>
    %c0_47 = arith.constant 0 : index
    %c1152 = arith.constant 1152 : index
    %78 = vector.load %arg9[%c0_47, %c1152] : memref<4x4608xf32, #tpu.memory_space<vmem>>, vector<4x128xf32>
    tpu.vector_store %arg9[%c0_47, %c1152], %77 {strides = array<i32>} : memref<4x4608xf32, #tpu.memory_space<vmem>>, vector<4x128xf32>,
    %79 = vector.extract_strided_slice %13 {offsets = [0, 64], sizes = [16, 16], strides = [1, 1]} : vector<16x256xf32> to vector<16x16xf32>
    %80 = vector.extract_strided_slice %79 {offsets = [0, 0], sizes = [4, 16], strides = [1, 1]} : vector<16x16xf32> to vector<4x16xf32>
    %cst_48 = arith.constant dense<0.000000e+00> : vector<4x128xf32>
    %81 = tpu.matmul %80, %15, %cst_48 {dimension_numbers = #tpu.dot_dimension_numbers<[1], [0], [0], [1], [0, 0, 1, 1], [], []>} : vector<4x16xf32>, vector<16x128xf32>, vector<4x128xf32> -> vector<4x128xf32>
    %82 = vector.extract_strided_slice %79 {offsets = [4, 0], sizes = [4, 16], strides = [1, 1]} : vector<16x16xf32> to vector<4x16xf32>
    %cst_49 = arith.constant dense<0.000000e+00> : vector<4x128xf32>
    %83 = tpu.matmul %82, %17, %cst_49 {dimension_numbers = #tpu.dot_dimension_numbers<[1], [0], [0], [1], [0, 0, 1, 1], [], []>} : vector<4x16xf32>, vector<16x128xf32>, vector<4x128xf32> -> vector<4x128xf32>
    %84 = arith.addf %81, %83 : vector<4x128xf32>
    %85 = arith.addf %84, %18 : vector<4x128xf32>
    %c0_50 = arith.constant 0 : index
    %c1280 = arith.constant 1280 : index
    %86 = vector.load %arg9[%c0_50, %c1280] : memref<4x4608xf32, #tpu.memory_space<vmem>>, vector<4x128xf32>
    tpu.vector_store %arg9[%c0_50, %c1280], %85 {strides = array<i32>} : memref<4x4608xf32, #tpu.memory_space<vmem>>, vector<4x128xf32>,
    %87 = vector.extract_strided_slice %79 {offsets = [8, 0], sizes = [4, 16], strides = [1, 1]} : vector<16x16xf32> to vector<4x16xf32>
    %cst_51 = arith.constant dense<0.000000e+00> : vector<4x128xf32>
    %88 = tpu.matmul %87, %15, %cst_51 {dimension_numbers = #tpu.dot_dimension_numbers<[1], [0], [0], [1], [0, 0, 1, 1], [], []>} : vector<4x16xf32>, vector<16x128xf32>, vector<4x128xf32> -> vector<4x128xf32>
    %89 = vector.extract_strided_slice %79 {offsets = [12, 0], sizes = [4, 16], strides = [1, 1]} : vector<16x16xf32> to vector<4x16xf32>
    %cst_52 = arith.constant dense<0.000000e+00> : vector<4x128xf32>
    %90 = tpu.matmul %89, %17, %cst_52 {dimension_numbers = #tpu.dot_dimension_numbers<[1], [0], [0], [1], [0, 0, 1, 1], [], []>} : vector<4x16xf32>, vector<16x128xf32>, vector<4x128xf32> -> vector<4x128xf32>
    %91 = arith.addf %88, %90 : vector<4x128xf32>
    %92 = arith.addf %91, %18 : vector<4x128xf32>
    %c0_53 = arith.constant 0 : index
    %c1408 = arith.constant 1408 : index
    %93 = vector.load %arg9[%c0_53, %c1408] : memref<4x4608xf32, #tpu.memory_space<vmem>>, vector<4x128xf32>
    tpu.vector_store %arg9[%c0_53, %c1408], %92 {strides = array<i32>} : memref<4x4608xf32, #tpu.memory_space<vmem>>, vector<4x128xf32>,
    %94 = vector.extract_strided_slice %13 {offsets = [0, 80], sizes = [16, 16], strides = [1, 1]} : vector<16x256xf32> to vector<16x16xf32>
    %95 = vector.extract_strided_slice %94 {offsets = [0, 0], sizes = [4, 16], strides = [1, 1]} : vector<16x16xf32> to vector<4x16xf32>
    %cst_54 = arith.constant dense<0.000000e+00> : vector<4x128xf32>
    %96 = tpu.matmul %95, %15, %cst_54 {dimension_numbers = #tpu.dot_dimension_numbers<[1], [0], [0], [1], [0, 0, 1, 1], [], []>} : vector<4x16xf32>, vector<16x128xf32>, vector<4x128xf32> -> vector<4x128xf32>
    %97 = vector.extract_strided_slice %94 {offsets = [4, 0], sizes = [4, 16], strides = [1, 1]} : vector<16x16xf32> to vector<4x16xf32>
    %cst_55 = arith.constant dense<0.000000e+00> : vector<4x128xf32>
    %98 = tpu.matmul %97, %17, %cst_55 {dimension_numbers = #tpu.dot_dimension_numbers<[1], [0], [0], [1], [0, 0, 1, 1], [], []>} : vector<4x16xf32>, vector<16x128xf32>, vector<4x128xf32> -> vector<4x128xf32>
    %99 = arith.addf %96, %98 : vector<4x128xf32>
    %100 = arith.addf %99, %18 : vector<4x128xf32>
    %c0_56 = arith.constant 0 : index
    %c1536 = arith.constant 1536 : index
    %101 = vector.load %arg9[%c0_56, %c1536] : memref<4x4608xf32, #tpu.memory_space<vmem>>, vector<4x128xf32>
    tpu.vector_store %arg9[%c0_56, %c1536], %100 {strides = array<i32>} : memref<4x4608xf32, #tpu.memory_space<vmem>>, vector<4x128xf32>,
    %102 = vector.extract_strided_slice %94 {offsets = [8, 0], sizes = [4, 16], strides = [1, 1]} : vector<16x16xf32> to vector<4x16xf32>
    %cst_57 = arith.constant dense<0.000000e+00> : vector<4x128xf32>
    %103 = tpu.matmul %102, %15, %cst_57 {dimension_numbers = #tpu.dot_dimension_numbers<[1], [0], [0], [1], [0, 0, 1, 1], [], []>} : vector<4x16xf32>, vector<16x128xf32>, vector<4x128xf32> -> vector<4x128xf32>
    %104 = vector.extract_strided_slice %94 {offsets = [12, 0], sizes = [4, 16], strides = [1, 1]} : vector<16x16xf32> to vector<4x16xf32>
    %cst_58 = arith.constant dense<0.000000e+00> : vector<4x128xf32>
    %105 = tpu.matmul %104, %17, %cst_58 {dimension_numbers = #tpu.dot_dimension_numbers<[1], [0], [0], [1], [0, 0, 1, 1], [], []>} : vector<4x16xf32>, vector<16x128xf32>, vector<4x128xf32> -> vector<4x128xf32>
    %106 = arith.addf %103, %105 : vector<4x128xf32>
    %107 = arith.addf %106, %18 : vector<4x128xf32>
    %c0_59 = arith.constant 0 : index
    %c1664 = arith.constant 1664 : index
    %108 = vector.load %arg9[%c0_59, %c1664] : memref<4x4608xf32, #tpu.memory_space<vmem>>, vector<4x128xf32>
    tpu.vector_store %arg9[%c0_59, %c1664], %107 {strides = array<i32>} : memref<4x4608xf32, #tpu.memory_space<vmem>>, vector<4x128xf32>,
    %109 = vector.extract_strided_slice %13 {offsets = [0, 96], sizes = [16, 16], strides = [1, 1]} : vector<16x256xf32> to vector<16x16xf32>
    %110 = vector.extract_strided_slice %109 {offsets = [0, 0], sizes = [4, 16], strides = [1, 1]} : vector<16x16xf32> to vector<4x16xf32>
    %cst_60 = arith.constant dense<0.000000e+00> : vector<4x128xf32>
    %111 = tpu.matmul %110, %15, %cst_60 {dimension_numbers = #tpu.dot_dimension_numbers<[1], [0], [0], [1], [0, 0, 1, 1], [], []>} : vector<4x16xf32>, vector<16x128xf32>, vector<4x128xf32> -> vector<4x128xf32>
    %112 = vector.extract_strided_slice %109 {offsets = [4, 0], sizes = [4, 16], strides = [1, 1]} : vector<16x16xf32> to vector<4x16xf32>
    %cst_61 = arith.constant dense<0.000000e+00> : vector<4x128xf32>
    %113 = tpu.matmul %112, %17, %cst_61 {dimension_numbers = #tpu.dot_dimension_numbers<[1], [0], [0], [1], [0, 0, 1, 1], [], []>} : vector<4x16xf32>, vector<16x128xf32>, vector<4x128xf32> -> vector<4x128xf32>
    %114 = arith.addf %111, %113 : vector<4x128xf32>
    %115 = arith.addf %114, %18 : vector<4x128xf32>
    %c0_62 = arith.constant 0 : index
    %c1792 = arith.constant 1792 : index
    %116 = vector.load %arg9[%c0_62, %c1792] : memref<4x4608xf32, #tpu.memory_space<vmem>>, vector<4x128xf32>
    tpu.vector_store %arg9[%c0_62, %c1792], %115 {strides = array<i32>} : memref<4x4608xf32, #tpu.memory_space<vmem>>, vector<4x128xf32>,
    %117 = vector.extract_strided_slice %109 {offsets = [8, 0], sizes = [4, 16], strides = [1, 1]} : vector<16x16xf32> to vector<4x16xf32>
    %cst_63 = arith.constant dense<0.000000e+00> : vector<4x128xf32>
    %118 = tpu.matmul %117, %15, %cst_63 {dimension_numbers = #tpu.dot_dimension_numbers<[1], [0], [0], [1], [0, 0, 1, 1], [], []>} : vector<4x16xf32>, vector<16x128xf32>, vector<4x128xf32> -> vector<4x128xf32>
    %119 = vector.extract_strided_slice %109 {offsets = [12, 0], sizes = [4, 16], strides = [1, 1]} : vector<16x16xf32> to vector<4x16xf32>
    %cst_64 = arith.constant dense<0.000000e+00> : vector<4x128xf32>
    %120 = tpu.matmul %119, %17, %cst_64 {dimension_numbers = #tpu.dot_dimension_numbers<[1], [0], [0], [1], [0, 0, 1, 1], [], []>} : vector<4x16xf32>, vector<16x128xf32>, vector<4x128xf32> -> vector<4x128xf32>
    %121 = arith.addf %118, %120 : vector<4x128xf32>
    %122 = arith.addf %121, %18 : vector<4x128xf32>
    %c0_65 = arith.constant 0 : index
    %c1920 = arith.constant 1920 : index
    %123 = vector.load %arg9[%c0_65, %c1920] : memref<4x4608xf32, #tpu.memory_space<vmem>>, vector<4x128xf32>
    tpu.vector_store %arg9[%c0_65, %c1920], %122 {strides = array<i32>} : memref<4x4608xf32, #tpu.memory_space<vmem>>, vector<4x128xf32>,
    %124 = vector.extract_strided_slice %13 {offsets = [0, 112], sizes = [16, 16], strides = [1, 1]} : vector<16x256xf32> to vector<16x16xf32>
    %125 = vector.extract_strided_slice %124 {offsets = [0, 0], sizes = [4, 16], strides = [1, 1]} : vector<16x16xf32> to vector<4x16xf32>
    %cst_66 = arith.constant dense<0.000000e+00> : vector<4x128xf32>
    %126 = tpu.matmul %125, %15, %cst_66 {dimension_numbers = #tpu.dot_dimension_numbers<[1], [0], [0], [1], [0, 0, 1, 1], [], []>} : vector<4x16xf32>, vector<16x128xf32>, vector<4x128xf32> -> vector<4x128xf32>
    %127 = vector.extract_strided_slice %124 {offsets = [4, 0], sizes = [4, 16], strides = [1, 1]} : vector<16x16xf32> to vector<4x16xf32>
    %cst_67 = arith.constant dense<0.000000e+00> : vector<4x128xf32>
    %128 = tpu.matmul %127, %17, %cst_67 {dimension_numbers = #tpu.dot_dimension_numbers<[1], [0], [0], [1], [0, 0, 1, 1], [], []>} : vector<4x16xf32>, vector<16x128xf32>, vector<4x128xf32> -> vector<4x128xf32>
    %129 = arith.addf %126, %128 : vector<4x128xf32>
    %130 = arith.addf %129, %18 : vector<4x128xf32>
    %c0_68 = arith.constant 0 : index
    %c2048 = arith.constant 2048 : index
    %131 = vector.load %arg9[%c0_68, %c2048] : memref<4x4608xf32, #tpu.memory_space<vmem>>, vector<4x128xf32>
    tpu.vector_store %arg9[%c0_68, %c2048], %130 {strides = array<i32>} : memref<4x4608xf32, #tpu.memory_space<vmem>>, vector<4x128xf32>,
    %132 = vector.extract_strided_slice %124 {offsets = [8, 0], sizes = [4, 16], strides = [1, 1]} : vector<16x16xf32> to vector<4x16xf32>
    %cst_69 = arith.constant dense<0.000000e+00> : vector<4x128xf32>
    %133 = tpu.matmul %132, %15, %cst_69 {dimension_numbers = #tpu.dot_dimension_numbers<[1], [0], [0], [1], [0, 0, 1, 1], [], []>} : vector<4x16xf32>, vector<16x128xf32>, vector<4x128xf32> -> vector<4x128xf32>
    %134 = vector.extract_strided_slice %124 {offsets = [12, 0], sizes = [4, 16], strides = [1, 1]} : vector<16x16xf32> to vector<4x16xf32>
    %cst_70 = arith.constant dense<0.000000e+00> : vector<4x128xf32>
    %135 = tpu.matmul %134, %17, %cst_70 {dimension_numbers = #tpu.dot_dimension_numbers<[1], [0], [0], [1], [0, 0, 1, 1], [], []>} : vector<4x16xf32>, vector<16x128xf32>, vector<4x128xf32> -> vector<4x128xf32>
    %136 = arith.addf %133, %135 : vector<4x128xf32>
    %137 = arith.addf %136, %18 : vector<4x128xf32>
    %c0_71 = arith.constant 0 : index
    %c2176 = arith.constant 2176 : index
    %138 = vector.load %arg9[%c0_71, %c2176] : memref<4x4608xf32, #tpu.memory_space<vmem>>, vector<4x128xf32>
    tpu.vector_store %arg9[%c0_71, %c2176], %137 {strides = array<i32>} : memref<4x4608xf32, #tpu.memory_space<vmem>>, vector<4x128xf32>,
    %139 = vector.extract_strided_slice %13 {offsets = [0, 128], sizes = [16, 16], strides = [1, 1]} : vector<16x256xf32> to vector<16x16xf32>
    %140 = vector.extract_strided_slice %139 {offsets = [0, 0], sizes = [4, 16], strides = [1, 1]} : vector<16x16xf32> to vector<4x16xf32>
    %cst_72 = arith.constant dense<0.000000e+00> : vector<4x128xf32>
    %141 = tpu.matmul %140, %15, %cst_72 {dimension_numbers = #tpu.dot_dimension_numbers<[1], [0], [0], [1], [0, 0, 1, 1], [], []>} : vector<4x16xf32>, vector<16x128xf32>, vector<4x128xf32> -> vector<4x128xf32>
    %142 = vector.extract_strided_slice %139 {offsets = [4, 0], sizes = [4, 16], strides = [1, 1]} : vector<16x16xf32> to vector<4x16xf32>
    %cst_73 = arith.constant dense<0.000000e+00> : vector<4x128xf32>
    %143 = tpu.matmul %142, %17, %cst_73 {dimension_numbers = #tpu.dot_dimension_numbers<[1], [0], [0], [1], [0, 0, 1, 1], [], []>} : vector<4x16xf32>, vector<16x128xf32>, vector<4x128xf32> -> vector<4x128xf32>
    %144 = arith.addf %141, %143 : vector<4x128xf32>
    %145 = arith.addf %144, %18 : vector<4x128xf32>
    %c0_74 = arith.constant 0 : index
    %c2304 = arith.constant 2304 : index
    %146 = vector.load %arg9[%c0_74, %c2304] : memref<4x4608xf32, #tpu.memory_space<vmem>>, vector<4x128xf32>
    tpu.vector_store %arg9[%c0_74, %c2304], %145 {strides = array<i32>} : memref<4x4608xf32, #tpu.memory_space<vmem>>, vector<4x128xf32>,
    %147 = vector.extract_strided_slice %139 {offsets = [8, 0], sizes = [4, 16], strides = [1, 1]} : vector<16x16xf32> to vector<4x16xf32>
    %cst_75 = arith.constant dense<0.000000e+00> : vector<4x128xf32>
    %148 = tpu.matmul %147, %15, %cst_75 {dimension_numbers = #tpu.dot_dimension_numbers<[1], [0], [0], [1], [0, 0, 1, 1], [], []>} : vector<4x16xf32>, vector<16x128xf32>, vector<4x128xf32> -> vector<4x128xf32>
    %149 = vector.extract_strided_slice %139 {offsets = [12, 0], sizes = [4, 16], strides = [1, 1]} : vector<16x16xf32> to vector<4x16xf32>
    %cst_76 = arith.constant dense<0.000000e+00> : vector<4x128xf32>
    %150 = tpu.matmul %149, %17, %cst_76 {dimension_numbers = #tpu.dot_dimension_numbers<[1], [0], [0], [1], [0, 0, 1, 1], [], []>} : vector<4x16xf32>, vector<16x128xf32>, vector<4x128xf32> -> vector<4x128xf32>
    %151 = arith.addf %148, %150 : vector<4x128xf32>
    %152 = arith.addf %151, %18 : vector<4x128xf32>
    %c0_77 = arith.constant 0 : index
    %c2432 = arith.constant 2432 : index
    %153 = vector.load %arg9[%c0_77, %c2432] : memref<4x4608xf32, #tpu.memory_space<vmem>>, vector<4x128xf32>
    tpu.vector_store %arg9[%c0_77, %c2432], %152 {strides = array<i32>} : memref<4x4608xf32, #tpu.memory_space<vmem>>, vector<4x128xf32>,
    %154 = vector.extract_strided_slice %13 {offsets = [0, 144], sizes = [16, 16], strides = [1, 1]} : vector<16x256xf32> to vector<16x16xf32>
    %155 = vector.extract_strided_slice %154 {offsets = [0, 0], sizes = [4, 16], strides = [1, 1]} : vector<16x16xf32> to vector<4x16xf32>
    %cst_78 = arith.constant dense<0.000000e+00> : vector<4x128xf32>
    %156 = tpu.matmul %155, %15, %cst_78 {dimension_numbers = #tpu.dot_dimension_numbers<[1], [0], [0], [1], [0, 0, 1, 1], [], []>} : vector<4x16xf32>, vector<16x128xf32>, vector<4x128xf32> -> vector<4x128xf32>
    %157 = vector.extract_strided_slice %154 {offsets = [4, 0], sizes = [4, 16], strides = [1, 1]} : vector<16x16xf32> to vector<4x16xf32>
    %cst_79 = arith.constant dense<0.000000e+00> : vector<4x128xf32>
    %158 = tpu.matmul %157, %17, %cst_79 {dimension_numbers = #tpu.dot_dimension_numbers<[1], [0], [0], [1], [0, 0, 1, 1], [], []>} : vector<4x16xf32>, vector<16x128xf32>, vector<4x128xf32> -> vector<4x128xf32>
    %159 = arith.addf %156, %158 : vector<4x128xf32>
    %160 = arith.addf %159, %18 : vector<4x128xf32>
    %c0_80 = arith.constant 0 : index
    %c2560 = arith.constant 2560 : index
    %161 = vector.load %arg9[%c0_80, %c2560] : memref<4x4608xf32, #tpu.memory_space<vmem>>, vector<4x128xf32>
    tpu.vector_store %arg9[%c0_80, %c2560], %160 {strides = array<i32>} : memref<4x4608xf32, #tpu.memory_space<vmem>>, vector<4x128xf32>,
    %162 = vector.extract_strided_slice %154 {offsets = [8, 0], sizes = [4, 16], strides = [1, 1]} : vector<16x16xf32> to vector<4x16xf32>
    %cst_81 = arith.constant dense<0.000000e+00> : vector<4x128xf32>
    %163 = tpu.matmul %162, %15, %cst_81 {dimension_numbers = #tpu.dot_dimension_numbers<[1], [0], [0], [1], [0, 0, 1, 1], [], []>} : vector<4x16xf32>, vector<16x128xf32>, vector<4x128xf32> -> vector<4x128xf32>
    %164 = vector.extract_strided_slice %154 {offsets = [12, 0], sizes = [4, 16], strides = [1, 1]} : vector<16x16xf32> to vector<4x16xf32>
    %cst_82 = arith.constant dense<0.000000e+00> : vector<4x128xf32>
    %165 = tpu.matmul %164, %17, %cst_82 {dimension_numbers = #tpu.dot_dimension_numbers<[1], [0], [0], [1], [0, 0, 1, 1], [], []>} : vector<4x16xf32>, vector<16x128xf32>, vector<4x128xf32> -> vector<4x128xf32>
    %166 = arith.addf %163, %165 : vector<4x128xf32>
    %167 = arith.addf %166, %18 : vector<4x128xf32>
    %c0_83 = arith.constant 0 : index
    %c2688 = arith.constant 2688 : index
    %168 = vector.load %arg9[%c0_83, %c2688] : memref<4x4608xf32, #tpu.memory_space<vmem>>, vector<4x128xf32>
    tpu.vector_store %arg9[%c0_83, %c2688], %167 {strides = array<i32>} : memref<4x4608xf32, #tpu.memory_space<vmem>>, vector<4x128xf32>,
    %169 = vector.extract_strided_slice %13 {offsets = [0, 160], sizes = [16, 16], strides = [1, 1]} : vector<16x256xf32> to vector<16x16xf32>
    %170 = vector.extract_strided_slice %169 {offsets = [0, 0], sizes = [4, 16], strides = [1, 1]} : vector<16x16xf32> to vector<4x16xf32>
    %cst_84 = arith.constant dense<0.000000e+00> : vector<4x128xf32>
    %171 = tpu.matmul %170, %15, %cst_84 {dimension_numbers = #tpu.dot_dimension_numbers<[1], [0], [0], [1], [0, 0, 1, 1], [], []>} : vector<4x16xf32>, vector<16x128xf32>, vector<4x128xf32> -> vector<4x128xf32>
    %172 = vector.extract_strided_slice %169 {offsets = [4, 0], sizes = [4, 16], strides = [1, 1]} : vector<16x16xf32> to vector<4x16xf32>
    %cst_85 = arith.constant dense<0.000000e+00> : vector<4x128xf32>
    %173 = tpu.matmul %172, %17, %cst_85 {dimension_numbers = #tpu.dot_dimension_numbers<[1], [0], [0], [1], [0, 0, 1, 1], [], []>} : vector<4x16xf32>, vector<16x128xf32>, vector<4x128xf32> -> vector<4x128xf32>
    %174 = arith.addf %171, %173 : vector<4x128xf32>
    %175 = arith.addf %174, %18 : vector<4x128xf32>
    %c0_86 = arith.constant 0 : index
    %c2816 = arith.constant 2816 : index
    %176 = vector.load %arg9[%c0_86, %c2816] : memref<4x4608xf32, #tpu.memory_space<vmem>>, vector<4x128xf32>
    tpu.vector_store %arg9[%c0_86, %c2816], %175 {strides = array<i32>} : memref<4x4608xf32, #tpu.memory_space<vmem>>, vector<4x128xf32>,
    %177 = vector.extract_strided_slice %169 {offsets = [8, 0], sizes = [4, 16], strides = [1, 1]} : vector<16x16xf32> to vector<4x16xf32>
    %cst_87 = arith.constant dense<0.000000e+00> : vector<4x128xf32>
    %178 = tpu.matmul %177, %15, %cst_87 {dimension_numbers = #tpu.dot_dimension_numbers<[1], [0], [0], [1], [0, 0, 1, 1], [], []>} : vector<4x16xf32>, vector<16x128xf32>, vector<4x128xf32> -> vector<4x128xf32>
    %179 = vector.extract_strided_slice %169 {offsets = [12, 0], sizes = [4, 16], strides = [1, 1]} : vector<16x16xf32> to vector<4x16xf32>
    %cst_88 = arith.constant dense<0.000000e+00> : vector<4x128xf32>
    %180 = tpu.matmul %179, %17, %cst_88 {dimension_numbers = #tpu.dot_dimension_numbers<[1], [0], [0], [1], [0, 0, 1, 1], [], []>} : vector<4x16xf32>, vector<16x128xf32>, vector<4x128xf32> -> vector<4x128xf32>
    %181 = arith.addf %178, %180 : vector<4x128xf32>
    %182 = arith.addf %181, %18 : vector<4x128xf32>
    %c0_89 = arith.constant 0 : index
    %c2944 = arith.constant 2944 : index
    %183 = vector.load %arg9[%c0_89, %c2944] : memref<4x4608xf32, #tpu.memory_space<vmem>>, vector<4x128xf32>
    tpu.vector_store %arg9[%c0_89, %c2944], %182 {strides = array<i32>} : memref<4x4608xf32, #tpu.memory_space<vmem>>, vector<4x128xf32>,
    %184 = vector.extract_strided_slice %13 {offsets = [0, 176], sizes = [16, 16], strides = [1, 1]} : vector<16x256xf32> to vector<16x16xf32>
    %185 = vector.extract_strided_slice %184 {offsets = [0, 0], sizes = [4, 16], strides = [1, 1]} : vector<16x16xf32> to vector<4x16xf32>
    %cst_90 = arith.constant dense<0.000000e+00> : vector<4x128xf32>
    %186 = tpu.matmul %185, %15, %cst_90 {dimension_numbers = #tpu.dot_dimension_numbers<[1], [0], [0], [1], [0, 0, 1, 1], [], []>} : vector<4x16xf32>, vector<16x128xf32>, vector<4x128xf32> -> vector<4x128xf32>
    %187 = vector.extract_strided_slice %184 {offsets = [4, 0], sizes = [4, 16], strides = [1, 1]} : vector<16x16xf32> to vector<4x16xf32>
    %cst_91 = arith.constant dense<0.000000e+00> : vector<4x128xf32>
    %188 = tpu.matmul %187, %17, %cst_91 {dimension_numbers = #tpu.dot_dimension_numbers<[1], [0], [0], [1], [0, 0, 1, 1], [], []>} : vector<4x16xf32>, vector<16x128xf32>, vector<4x128xf32> -> vector<4x128xf32>
    %189 = arith.addf %186, %188 : vector<4x128xf32>
    %190 = arith.addf %189, %18 : vector<4x128xf32>
    %c0_92 = arith.constant 0 : index
    %c3072 = arith.constant 3072 : index
    %191 = vector.load %arg9[%c0_92, %c3072] : memref<4x4608xf32, #tpu.memory_space<vmem>>, vector<4x128xf32>
    tpu.vector_store %arg9[%c0_92, %c3072], %190 {strides = array<i32>} : memref<4x4608xf32, #tpu.memory_space<vmem>>, vector<4x128xf32>,
    %192 = vector.extract_strided_slice %184 {offsets = [8, 0], sizes = [4, 16], strides = [1, 1]} : vector<16x16xf32> to vector<4x16xf32>
    %cst_93 = arith.constant dense<0.000000e+00> : vector<4x128xf32>
    %193 = tpu.matmul %192, %15, %cst_93 {dimension_numbers = #tpu.dot_dimension_numbers<[1], [0], [0], [1], [0, 0, 1, 1], [], []>} : vector<4x16xf32>, vector<16x128xf32>, vector<4x128xf32> -> vector<4x128xf32>
    %194 = vector.extract_strided_slice %184 {offsets = [12, 0], sizes = [4, 16], strides = [1, 1]} : vector<16x16xf32> to vector<4x16xf32>
    %cst_94 = arith.constant dense<0.000000e+00> : vector<4x128xf32>
    %195 = tpu.matmul %194, %17, %cst_94 {dimension_numbers = #tpu.dot_dimension_numbers<[1], [0], [0], [1], [0, 0, 1, 1], [], []>} : vector<4x16xf32>, vector<16x128xf32>, vector<4x128xf32> -> vector<4x128xf32>
    %196 = arith.addf %193, %195 : vector<4x128xf32>
    %197 = arith.addf %196, %18 : vector<4x128xf32>
    %c0_95 = arith.constant 0 : index
    %c3200 = arith.constant 3200 : index
    %198 = vector.load %arg9[%c0_95, %c3200] : memref<4x4608xf32, #tpu.memory_space<vmem>>, vector<4x128xf32>
    tpu.vector_store %arg9[%c0_95, %c3200], %197 {strides = array<i32>} : memref<4x4608xf32, #tpu.memory_space<vmem>>, vector<4x128xf32>,
    %199 = vector.extract_strided_slice %13 {offsets = [0, 192], sizes = [16, 16], strides = [1, 1]} : vector<16x256xf32> to vector<16x16xf32>
    %200 = vector.extract_strided_slice %199 {offsets = [0, 0], sizes = [4, 16], strides = [1, 1]} : vector<16x16xf32> to vector<4x16xf32>
    %cst_96 = arith.constant dense<0.000000e+00> : vector<4x128xf32>
    %201 = tpu.matmul %200, %15, %cst_96 {dimension_numbers = #tpu.dot_dimension_numbers<[1], [0], [0], [1], [0, 0, 1, 1], [], []>} : vector<4x16xf32>, vector<16x128xf32>, vector<4x128xf32> -> vector<4x128xf32>
    %202 = vector.extract_strided_slice %199 {offsets = [4, 0], sizes = [4, 16], strides = [1, 1]} : vector<16x16xf32> to vector<4x16xf32>
    %cst_97 = arith.constant dense<0.000000e+00> : vector<4x128xf32>
    %203 = tpu.matmul %202, %17, %cst_97 {dimension_numbers = #tpu.dot_dimension_numbers<[1], [0], [0], [1], [0, 0, 1, 1], [], []>} : vector<4x16xf32>, vector<16x128xf32>, vector<4x128xf32> -> vector<4x128xf32>
    %204 = arith.addf %201, %203 : vector<4x128xf32>
    %205 = arith.addf %204, %18 : vector<4x128xf32>
    %c0_98 = arith.constant 0 : index
    %c3328 = arith.constant 3328 : index
    %206 = vector.load %arg9[%c0_98, %c3328] : memref<4x4608xf32, #tpu.memory_space<vmem>>, vector<4x128xf32>
    tpu.vector_store %arg9[%c0_98, %c3328], %205 {strides = array<i32>} : memref<4x4608xf32, #tpu.memory_space<vmem>>, vector<4x128xf32>,
    %207 = vector.extract_strided_slice %199 {offsets = [8, 0], sizes = [4, 16], strides = [1, 1]} : vector<16x16xf32> to vector<4x16xf32>
    %cst_99 = arith.constant dense<0.000000e+00> : vector<4x128xf32>
    %208 = tpu.matmul %207, %15, %cst_99 {dimension_numbers = #tpu.dot_dimension_numbers<[1], [0], [0], [1], [0, 0, 1, 1], [], []>} : vector<4x16xf32>, vector<16x128xf32>, vector<4x128xf32> -> vector<4x128xf32>
    %209 = vector.extract_strided_slice %199 {offsets = [12, 0], sizes = [4, 16], strides = [1, 1]} : vector<16x16xf32> to vector<4x16xf32>
    %cst_100 = arith.constant dense<0.000000e+00> : vector<4x128xf32>
    %210 = tpu.matmul %209, %17, %cst_100 {dimension_numbers = #tpu.dot_dimension_numbers<[1], [0], [0], [1], [0, 0, 1, 1], [], []>} : vector<4x16xf32>, vector<16x128xf32>, vector<4x128xf32> -> vector<4x128xf32>
    %211 = arith.addf %208, %210 : vector<4x128xf32>
    %212 = arith.addf %211, %18 : vector<4x128xf32>
    %c0_101 = arith.constant 0 : index
    %c3456 = arith.constant 3456 : index
    %213 = vector.load %arg9[%c0_101, %c3456] : memref<4x4608xf32, #tpu.memory_space<vmem>>, vector<4x128xf32>
    tpu.vector_store %arg9[%c0_101, %c3456], %212 {strides = array<i32>} : memref<4x4608xf32, #tpu.memory_space<vmem>>, vector<4x128xf32>,
    %214 = vector.extract_strided_slice %13 {offsets = [0, 208], sizes = [16, 16], strides = [1, 1]} : vector<16x256xf32> to vector<16x16xf32>
    %215 = vector.extract_strided_slice %214 {offsets = [0, 0], sizes = [4, 16], strides = [1, 1]} : vector<16x16xf32> to vector<4x16xf32>
    %cst_102 = arith.constant dense<0.000000e+00> : vector<4x128xf32>
    %216 = tpu.matmul %215, %15, %cst_102 {dimension_numbers = #tpu.dot_dimension_numbers<[1], [0], [0], [1], [0, 0, 1, 1], [], []>} : vector<4x16xf32>, vector<16x128xf32>, vector<4x128xf32> -> vector<4x128xf32>
    %217 = vector.extract_strided_slice %214 {offsets = [4, 0], sizes = [4, 16], strides = [1, 1]} : vector<16x16xf32> to vector<4x16xf32>
    %cst_103 = arith.constant dense<0.000000e+00> : vector<4x128xf32>
    %218 = tpu.matmul %217, %17, %cst_103 {dimension_numbers = #tpu.dot_dimension_numbers<[1], [0], [0], [1], [0, 0, 1, 1], [], []>} : vector<4x16xf32>, vector<16x128xf32>, vector<4x128xf32> -> vector<4x128xf32>
    %219 = arith.addf %216, %218 : vector<4x128xf32>
    %220 = arith.addf %219, %18 : vector<4x128xf32>
    %c0_104 = arith.constant 0 : index
    %c3584 = arith.constant 3584 : index
    %221 = vector.load %arg9[%c0_104, %c3584] : memref<4x4608xf32, #tpu.memory_space<vmem>>, vector<4x128xf32>
    tpu.vector_store %arg9[%c0_104, %c3584], %220 {strides = array<i32>} : memref<4x4608xf32, #tpu.memory_space<vmem>>, vector<4x128xf32>,
    %222 = vector.extract_strided_slice %214 {offsets = [8, 0], sizes = [4, 16], strides = [1, 1]} : vector<16x16xf32> to vector<4x16xf32>
    %cst_105 = arith.constant dense<0.000000e+00> : vector<4x128xf32>
    %223 = tpu.matmul %222, %15, %cst_105 {dimension_numbers = #tpu.dot_dimension_numbers<[1], [0], [0], [1], [0, 0, 1, 1], [], []>} : vector<4x16xf32>, vector<16x128xf32>, vector<4x128xf32> -> vector<4x128xf32>
    %224 = vector.extract_strided_slice %214 {offsets = [12, 0], sizes = [4, 16], strides = [1, 1]} : vector<16x16xf32> to vector<4x16xf32>
    %cst_106 = arith.constant dense<0.000000e+00> : vector<4x128xf32>
    %225 = tpu.matmul %224, %17, %cst_106 {dimension_numbers = #tpu.dot_dimension_numbers<[1], [0], [0], [1], [0, 0, 1, 1], [], []>} : vector<4x16xf32>, vector<16x128xf32>, vector<4x128xf32> -> vector<4x128xf32>
    %226 = arith.addf %223, %225 : vector<4x128xf32>
    %227 = arith.addf %226, %18 : vector<4x128xf32>
    %c0_107 = arith.constant 0 : index
    %c3712 = arith.constant 3712 : index
    %228 = vector.load %arg9[%c0_107, %c3712] : memref<4x4608xf32, #tpu.memory_space<vmem>>, vector<4x128xf32>
    tpu.vector_store %arg9[%c0_107, %c3712], %227 {strides = array<i32>} : memref<4x4608xf32, #tpu.memory_space<vmem>>, vector<4x128xf32>,
    %229 = vector.extract_strided_slice %13 {offsets = [0, 224], sizes = [16, 16], strides = [1, 1]} : vector<16x256xf32> to vector<16x16xf32>
    %230 = vector.extract_strided_slice %229 {offsets = [0, 0], sizes = [4, 16], strides = [1, 1]} : vector<16x16xf32> to vector<4x16xf32>
    %cst_108 = arith.constant dense<0.000000e+00> : vector<4x128xf32>
    %231 = tpu.matmul %230, %15, %cst_108 {dimension_numbers = #tpu.dot_dimension_numbers<[1], [0], [0], [1], [0, 0, 1, 1], [], []>} : vector<4x16xf32>, vector<16x128xf32>, vector<4x128xf32> -> vector<4x128xf32>
    %232 = vector.extract_strided_slice %229 {offsets = [4, 0], sizes = [4, 16], strides = [1, 1]} : vector<16x16xf32> to vector<4x16xf32>
    %cst_109 = arith.constant dense<0.000000e+00> : vector<4x128xf32>
    %233 = tpu.matmul %232, %17, %cst_109 {dimension_numbers = #tpu.dot_dimension_numbers<[1], [0], [0], [1], [0, 0, 1, 1], [], []>} : vector<4x16xf32>, vector<16x128xf32>, vector<4x128xf32> -> vector<4x128xf32>
    %234 = arith.addf %231, %233 : vector<4x128xf32>
    %235 = arith.addf %234, %18 : vector<4x128xf32>
    %c0_110 = arith.constant 0 : index
    %c3840 = arith.constant 3840 : index
    %236 = vector.load %arg9[%c0_110, %c3840] : memref<4x4608xf32, #tpu.memory_space<vmem>>, vector<4x128xf32>
    tpu.vector_store %arg9[%c0_110, %c3840], %235 {strides = array<i32>} : memref<4x4608xf32, #tpu.memory_space<vmem>>, vector<4x128xf32>,
    %237 = vector.extract_strided_slice %229 {offsets = [8, 0], sizes = [4, 16], strides = [1, 1]} : vector<16x16xf32> to vector<4x16xf32>
    %cst_111 = arith.constant dense<0.000000e+00> : vector<4x128xf32>
    %238 = tpu.matmul %237, %15, %cst_111 {dimension_numbers = #tpu.dot_dimension_numbers<[1], [0], [0], [1], [0, 0, 1, 1], [], []>} : vector<4x16xf32>, vector<16x128xf32>, vector<4x128xf32> -> vector<4x128xf32>
    %239 = vector.extract_strided_slice %229 {offsets = [12, 0], sizes = [4, 16], strides = [1, 1]} : vector<16x16xf32> to vector<4x16xf32>
    %cst_112 = arith.constant dense<0.000000e+00> : vector<4x128xf32>
    %240 = tpu.matmul %239, %17, %cst_112 {dimension_numbers = #tpu.dot_dimension_numbers<[1], [0], [0], [1], [0, 0, 1, 1], [], []>} : vector<4x16xf32>, vector<16x128xf32>, vector<4x128xf32> -> vector<4x128xf32>
    %241 = arith.addf %238, %240 : vector<4x128xf32>
    %242 = arith.addf %241, %18 : vector<4x128xf32>
    %c0_113 = arith.constant 0 : index
    %c3968 = arith.constant 3968 : index
    %243 = vector.load %arg9[%c0_113, %c3968] : memref<4x4608xf32, #tpu.memory_space<vmem>>, vector<4x128xf32>
    tpu.vector_store %arg9[%c0_113, %c3968], %242 {strides = array<i32>} : memref<4x4608xf32, #tpu.memory_space<vmem>>, vector<4x128xf32>,
    %244 = vector.extract_strided_slice %13 {offsets = [0, 240], sizes = [16, 16], strides = [1, 1]} : vector<16x256xf32> to vector<16x16xf32>
    %245 = vector.extract_strided_slice %244 {offsets = [0, 0], sizes = [4, 16], strides = [1, 1]} : vector<16x16xf32> to vector<4x16xf32>
    %cst_114 = arith.constant dense<0.000000e+00> : vector<4x128xf32>
    %246 = tpu.matmul %245, %15, %cst_114 {dimension_numbers = #tpu.dot_dimension_numbers<[1], [0], [0], [1], [0, 0, 1, 1], [], []>} : vector<4x16xf32>, vector<16x128xf32>, vector<4x128xf32> -> vector<4x128xf32>
    %247 = vector.extract_strided_slice %244 {offsets = [4, 0], sizes = [4, 16], strides = [1, 1]} : vector<16x16xf32> to vector<4x16xf32>
    %cst_115 = arith.constant dense<0.000000e+00> : vector<4x128xf32>
    %248 = tpu.matmul %247, %17, %cst_115 {dimension_numbers = #tpu.dot_dimension_numbers<[1], [0], [0], [1], [0, 0, 1, 1], [], []>} : vector<4x16xf32>, vector<16x128xf32>, vector<4x128xf32> -> vector<4x128xf32>
    %249 = arith.addf %246, %248 : vector<4x128xf32>
    %250 = arith.addf %249, %18 : vector<4x128xf32>
    %c0_116 = arith.constant 0 : index
    %c4096 = arith.constant 4096 : index
    %251 = vector.load %arg9[%c0_116, %c4096] : memref<4x4608xf32, #tpu.memory_space<vmem>>, vector<4x128xf32>
    tpu.vector_store %arg9[%c0_116, %c4096], %250 {strides = array<i32>} : memref<4x4608xf32, #tpu.memory_space<vmem>>, vector<4x128xf32>,
    %252 = vector.extract_strided_slice %244 {offsets = [8, 0], sizes = [4, 16], strides = [1, 1]} : vector<16x16xf32> to vector<4x16xf32>
    %cst_117 = arith.constant dense<0.000000e+00> : vector<4x128xf32>
    %253 = tpu.matmul %252, %15, %cst_117 {dimension_numbers = #tpu.dot_dimension_numbers<[1], [0], [0], [1], [0, 0, 1, 1], [], []>} : vector<4x16xf32>, vector<16x128xf32>, vector<4x128xf32> -> vector<4x128xf32>
    %254 = vector.extract_strided_slice %244 {offsets = [12, 0], sizes = [4, 16], strides = [1, 1]} : vector<16x16xf32> to vector<4x16xf32>
    %cst_118 = arith.constant dense<0.000000e+00> : vector<4x128xf32>
    %255 = tpu.matmul %254, %17, %cst_118 {dimension_numbers = #tpu.dot_dimension_numbers<[1], [0], [0], [1], [0, 0, 1, 1], [], []>} : vector<4x16xf32>, vector<16x128xf32>, vector<4x128xf32> -> vector<4x128xf32>
    %256 = arith.addf %253, %255 : vector<4x128xf32>
    %257 = arith.addf %256, %18 : vector<4x128xf32>
    %c0_119 = arith.constant 0 : index
    %c4224 = arith.constant 4224 : index
    %258 = vector.load %arg9[%c0_119, %c4224] : memref<4x4608xf32, #tpu.memory_space<vmem>>, vector<4x128xf32>
    tpu.vector_store %arg9[%c0_119, %c4224], %257 {strides = array<i32>} : memref<4x4608xf32, #tpu.memory_space<vmem>>, vector<4x128xf32>,
    %c0_120 = arith.constant 0 : index
    %c127 = arith.constant 127 : index
    %259 = vector.load %arg9[%c0_120, %c127] : memref<4x4608xf32, #tpu.memory_space<vmem>>, vector<4x4096xf32>
    %c0_121 = arith.constant 0 : index
    %c0_122 = arith.constant 0 : index
    %260 = vector.load %arg10[%c0_121, %c0_122] : memref<37x4096xf32, #tpu.memory_space<vmem>>, vector<4x4096xf32>
    tpu.vector_store %arg10[%c0_121, %c0_122], %259 {strides = array<i32>} : memref<37x4096xf32, #tpu.memory_space<vmem>>, vector<4x4096xf32>,
    %c0_123 = arith.constant 0 : index
    %c128 = arith.constant 128 : index
    %261 = vector.load %arg9[%c0_123, %c128] : memref<4x4608xf32, #tpu.memory_space<vmem>>, vector<4x4096xf32>
    %c4 = arith.constant 4 : index
    %c0_124 = arith.constant 0 : index
    %262 = vector.load %arg10[%c4, %c0_124] : memref<37x4096xf32, #tpu.memory_space<vmem>>, vector<4x4096xf32>
    tpu.vector_store %arg10[%c4, %c0_124], %261 {strides = array<i32>} : memref<37x4096xf32, #tpu.memory_space<vmem>>, vector<4x4096xf32>,
    %c0_125 = arith.constant 0 : index
    %c129 = arith.constant 129 : index
    %263 = vector.load %arg9[%c0_125, %c129] : memref<4x4608xf32, #tpu.memory_space<vmem>>, vector<4x4096xf32>
    %c8 = arith.constant 8 : index
    %c0_126 = arith.constant 0 : index
    %264 = vector.load %arg10[%c8, %c0_126] : memref<37x4096xf32, #tpu.memory_space<vmem>>, vector<4x4096xf32>
    tpu.vector_store %arg10[%c8, %c0_126], %263 {strides = array<i32>} : memref<37x4096xf32, #tpu.memory_space<vmem>>, vector<4x4096xf32>,
    %c0_127 = arith.constant 0 : index
    %c255 = arith.constant 255 : index
    %265 = vector.load %arg9[%c0_127, %c255] : memref<4x4608xf32, #tpu.memory_space<vmem>>, vector<4x4096xf32>
    %c12 = arith.constant 12 : index
    %c0_128 = arith.constant 0 : index
    %266 = vector.load %arg10[%c12, %c0_128] : memref<37x4096xf32, #tpu.memory_space<vmem>>, vector<4x4096xf32>
    tpu.vector_store %arg10[%c12, %c0_128], %265 {strides = array<i32>} : memref<37x4096xf32, #tpu.memory_space<vmem>>, vector<4x4096xf32>,
    %c0_129 = arith.constant 0 : index
    %c256_130 = arith.constant 256 : index
    %267 = vector.load %arg9[%c0_129, %c256_130] : memref<4x4608xf32, #tpu.memory_space<vmem>>, vector<4x4096xf32>
    %c16 = arith.constant 16 : index
    %c0_131 = arith.constant 0 : index
    %268 = vector.load %arg10[%c16, %c0_131] : memref<37x4096xf32, #tpu.memory_space<vmem>>, vector<4x4096xf32>
    tpu.vector_store %arg10[%c16, %c0_131], %267 {strides = array<i32>} : memref<37x4096xf32, #tpu.memory_space<vmem>>, vector<4x4096xf32>,
    %c0_132 = arith.constant 0 : index
    %c257 = arith.constant 257 : index
    %269 = vector.load %arg9[%c0_132, %c257] : memref<4x4608xf32, #tpu.memory_space<vmem>>, vector<4x4096xf32>
    %c20 = arith.constant 20 : index
    %c0_133 = arith.constant 0 : index
    %270 = vector.load %arg10[%c20, %c0_133] : memref<37x4096xf32, #tpu.memory_space<vmem>>, vector<4x4096xf32>
    tpu.vector_store %arg10[%c20, %c0_133], %269 {strides = array<i32>} : memref<37x4096xf32, #tpu.memory_space<vmem>>, vector<4x4096xf32>,
    %c0_134 = arith.constant 0 : index
    %c383 = arith.constant 383 : index
    %271 = vector.load %arg9[%c0_134, %c383] : memref<4x4608xf32, #tpu.memory_space<vmem>>, vector<4x4096xf32>
    %c24 = arith.constant 24 : index
    %c0_135 = arith.constant 0 : index
    %272 = vector.load %arg10[%c24, %c0_135] : memref<37x4096xf32, #tpu.memory_space<vmem>>, vector<4x4096xf32>
    tpu.vector_store %arg10[%c24, %c0_135], %271 {strides = array<i32>} : memref<37x4096xf32, #tpu.memory_space<vmem>>, vector<4x4096xf32>,
    %c0_136 = arith.constant 0 : index
    %c384_137 = arith.constant 384 : index
    %273 = vector.load %arg9[%c0_136, %c384_137] : memref<4x4608xf32, #tpu.memory_space<vmem>>, vector<4x4096xf32>
    %c28 = arith.constant 28 : index
    %c0_138 = arith.constant 0 : index
    %274 = vector.load %arg10[%c28, %c0_138] : memref<37x4096xf32, #tpu.memory_space<vmem>>, vector<4x4096xf32>
    tpu.vector_store %arg10[%c28, %c0_138], %273 {strides = array<i32>} : memref<37x4096xf32, #tpu.memory_space<vmem>>, vector<4x4096xf32>,
    %c0_139 = arith.constant 0 : index
    %c385 = arith.constant 385 : index
    %275 = vector.load %arg9[%c0_139, %c385] : memref<4x4608xf32, #tpu.memory_space<vmem>>, vector<4x4096xf32>
    %c32 = arith.constant 32 : index
    %c0_140 = arith.constant 0 : index
    %276 = vector.load %arg10[%c32, %c0_140] : memref<37x4096xf32, #tpu.memory_space<vmem>>, vector<4x4096xf32>
    tpu.vector_store %arg10[%c32, %c0_140], %275 {strides = array<i32>} : memref<37x4096xf32, #tpu.memory_space<vmem>>, vector<4x4096xf32>,
    %c0_141 = arith.constant 0 : index
    %c0_142 = arith.constant 0 : index
    %277 = vector.load %arg5[%c0_141, %c0_142] : memref<8x37xf32, #tpu.memory_space<vmem>>, vector<8x37xf32>
    %c0_143 = arith.constant 0 : index
    %c0_144 = arith.constant 0 : index
    %278 = vector.load %arg10[%c0_143, %c0_144] : memref<37x4096xf32, #tpu.memory_space<vmem>>, vector<37x4096xf32>
    %cst_145 = arith.constant dense<0.000000e+00> : vector<8x4096xf32>
    %279 = tpu.matmul %277, %278, %cst_145 {dimension_numbers = #tpu.dot_dimension_numbers<[1], [0], [0], [1], [0, 0, 1, 1], [], []>} : vector<8x37xf32>, vector<37x4096xf32>, vector<8x4096xf32> -> vector<8x4096xf32>
    %cst_146 = arith.constant 0.000000e+00 : f32
    %280 = vector.broadcast %cst_146 : f32 to vector<8x4096xf32>
    %281 = arith.maximumf %279, %280 : vector<8x4096xf32>
    %c0_147 = arith.constant 0 : index
    %c0_148 = arith.constant 0 : index
    %282 = vector.load %arg6[%c0_147, %c0_148] : memref<1x4096xf32, #tpu.memory_space<vmem>>, vector<1x4096xf32>
    %283 = vector.broadcast %282 : vector<1x4096xf32> to vector<8x4096xf32>
    %284 = arith.mulf %281, %283 : vector<8x4096xf32>
    %c0_149 = arith.constant 0 : index
    %c256_150 = arith.constant 256 : index
    %285 = vector.load %arg11[%c0_149, %c256_150] : memref<8x4608xf32, #tpu.memory_space<vmem>>, vector<8x4096xf32>
    tpu.vector_store %arg11[%c0_149, %c256_150], %284 {strides = array<i32>} : memref<8x4608xf32, #tpu.memory_space<vmem>>, vector<8x4096xf32>,
    %c0_151 = arith.constant 0 : index
    %c127_152 = arith.constant 127 : index
    %286 = vector.load %arg11[%c0_151, %c127_152] : memref<8x4608xf32, #tpu.memory_space<vmem>>, vector<8x4096xf32>
    %c0_153 = arith.constant 0 : index
    %c0_154 = arith.constant 0 : index
    %287 = vector.load %arg12[%c0_153, %c0_154] : memref<73x4096xf32, #tpu.memory_space<vmem>>, vector<8x4096xf32>
    tpu.vector_store %arg12[%c0_153, %c0_154], %286 {strides = array<i32>} : memref<73x4096xf32, #tpu.memory_space<vmem>>, vector<8x4096xf32>,
    %c0_155 = arith.constant 0 : index
    %c128_156 = arith.constant 128 : index
    %288 = vector.load %arg11[%c0_155, %c128_156] : memref<8x4608xf32, #tpu.memory_space<vmem>>, vector<8x4096xf32>
    %c8_157 = arith.constant 8 : index
    %c0_158 = arith.constant 0 : index
    %289 = vector.load %arg12[%c8_157, %c0_158] : memref<73x4096xf32, #tpu.memory_space<vmem>>, vector<8x4096xf32>
    tpu.vector_store %arg12[%c8_157, %c0_158], %288 {strides = array<i32>} : memref<73x4096xf32, #tpu.memory_space<vmem>>, vector<8x4096xf32>,
    %c0_159 = arith.constant 0 : index
    %c129_160 = arith.constant 129 : index
    %290 = vector.load %arg11[%c0_159, %c129_160] : memref<8x4608xf32, #tpu.memory_space<vmem>>, vector<8x4096xf32>
    %c16_161 = arith.constant 16 : index
    %c0_162 = arith.constant 0 : index
    %291 = vector.load %arg12[%c16_161, %c0_162] : memref<73x4096xf32, #tpu.memory_space<vmem>>, vector<8x4096xf32>
    tpu.vector_store %arg12[%c16_161, %c0_162], %290 {strides = array<i32>} : memref<73x4096xf32, #tpu.memory_space<vmem>>, vector<8x4096xf32>,
    %c0_163 = arith.constant 0 : index
    %c255_164 = arith.constant 255 : index
    %292 = vector.load %arg11[%c0_163, %c255_164] : memref<8x4608xf32, #tpu.memory_space<vmem>>, vector<8x4096xf32>
    %c24_165 = arith.constant 24 : index
    %c0_166 = arith.constant 0 : index
    %293 = vector.load %arg12[%c24_165, %c0_166] : memref<73x4096xf32, #tpu.memory_space<vmem>>, vector<8x4096xf32>
    tpu.vector_store %arg12[%c24_165, %c0_166], %292 {strides = array<i32>} : memref<73x4096xf32, #tpu.memory_space<vmem>>, vector<8x4096xf32>,
    %c0_167 = arith.constant 0 : index
    %c256_168 = arith.constant 256 : index
    %294 = vector.load %arg11[%c0_167, %c256_168] : memref<8x4608xf32, #tpu.memory_space<vmem>>, vector<8x4096xf32>
    %c32_169 = arith.constant 32 : index
    %c0_170 = arith.constant 0 : index
    %295 = vector.load %arg12[%c32_169, %c0_170] : memref<73x4096xf32, #tpu.memory_space<vmem>>, vector<8x4096xf32>
    tpu.vector_store %arg12[%c32_169, %c0_170], %294 {strides = array<i32>} : memref<73x4096xf32, #tpu.memory_space<vmem>>, vector<8x4096xf32>,
    %c0_171 = arith.constant 0 : index
    %c257_172 = arith.constant 257 : index
    %296 = vector.load %arg11[%c0_171, %c257_172] : memref<8x4608xf32, #tpu.memory_space<vmem>>, vector<8x4096xf32>
    %c40 = arith.constant 40 : index
    %c0_173 = arith.constant 0 : index
    %297 = vector.load %arg12[%c40, %c0_173] : memref<73x4096xf32, #tpu.memory_space<vmem>>, vector<8x4096xf32>
    tpu.vector_store %arg12[%c40, %c0_173], %296 {strides = array<i32>} : memref<73x4096xf32, #tpu.memory_space<vmem>>, vector<8x4096xf32>,
    %c0_174 = arith.constant 0 : index
    %c383_175 = arith.constant 383 : index
    %298 = vector.load %arg11[%c0_174, %c383_175] : memref<8x4608xf32, #tpu.memory_space<vmem>>, vector<8x4096xf32>
    %c48 = arith.constant 48 : index
    %c0_176 = arith.constant 0 : index
    %299 = vector.load %arg12[%c48, %c0_176] : memref<73x4096xf32, #tpu.memory_space<vmem>>, vector<8x4096xf32>
    tpu.vector_store %arg12[%c48, %c0_176], %298 {strides = array<i32>} : memref<73x4096xf32, #tpu.memory_space<vmem>>, vector<8x4096xf32>,
    %c0_177 = arith.constant 0 : index
    %c384_178 = arith.constant 384 : index
    %300 = vector.load %arg11[%c0_177, %c384_178] : memref<8x4608xf32, #tpu.memory_space<vmem>>, vector<8x4096xf32>
    %c56 = arith.constant 56 : index
    %c0_179 = arith.constant 0 : index
    %301 = vector.load %arg12[%c56, %c0_179] : memref<73x4096xf32, #tpu.memory_space<vmem>>, vector<8x4096xf32>
    tpu.vector_store %arg12[%c56, %c0_179], %300 {strides = array<i32>} : memref<73x4096xf32, #tpu.memory_space<vmem>>, vector<8x4096xf32>,
    %c0_180 = arith.constant 0 : index
    %c385_181 = arith.constant 385 : index
    %302 = vector.load %arg11[%c0_180, %c385_181] : memref<8x4608xf32, #tpu.memory_space<vmem>>, vector<8x4096xf32>
    %c64 = arith.constant 64 : index
    %c0_182 = arith.constant 0 : index
    %303 = vector.load %arg12[%c64, %c0_182] : memref<73x4096xf32, #tpu.memory_space<vmem>>, vector<8x4096xf32>
    tpu.vector_store %arg12[%c64, %c0_182], %302 {strides = array<i32>} : memref<73x4096xf32, #tpu.memory_space<vmem>>, vector<8x4096xf32>,
    %c0_183 = arith.constant 0 : index
    %c0_184 = arith.constant 0 : index
    %304 = vector.load %arg7[%c0_183, %c0_184] : memref<8x73xf32, #tpu.memory_space<vmem>>, vector<8x73xf32>
    %c0_185 = arith.constant 0 : index
    %c0_186 = arith.constant 0 : index
    %305 = vector.load %arg12[%c0_185, %c0_186] : memref<73x4096xf32, #tpu.memory_space<vmem>>, vector<73x4096xf32>
    %cst_187 = arith.constant dense<0.000000e+00> : vector<8x4096xf32>
    %306 = tpu.matmul %304, %305, %cst_187 {dimension_numbers = #tpu.dot_dimension_numbers<[1], [0], [0], [1], [0, 0, 1, 1], [], []>} : vector<8x73xf32>, vector<73x4096xf32>, vector<8x4096xf32> -> vector<8x4096xf32>
    %cst_188 = arith.constant 0.000000e+00 : f32
    %307 = vector.broadcast %cst_188 : f32 to vector<8x4096xf32>
    %308 = arith.maximumf %306, %307 : vector<8x4096xf32>
    %309 = vector.extract_strided_slice %308 {offsets = [0, 0], sizes = [8, 32], strides = [1, 1]} : vector<8x4096xf32> to vector<8x32xf32>
    %310 = vector.extract_strided_slice %308 {offsets = [0, 128], sizes = [8, 32], strides = [1, 1]} : vector<8x4096xf32> to vector<8x32xf32>
    %311 = vector.extract_strided_slice %308 {offsets = [0, 256], sizes = [8, 32], strides = [1, 1]} : vector<8x4096xf32> to vector<8x32xf32>
    %312 = vector.extract_strided_slice %308 {offsets = [0, 384], sizes = [8, 32], strides = [1, 1]} : vector<8x4096xf32> to vector<8x32xf32>
    %313 = vector.extract_strided_slice %308 {offsets = [0, 512], sizes = [8, 32], strides = [1, 1]} : vector<8x4096xf32> to vector<8x32xf32>
    %314 = vector.extract_strided_slice %308 {offsets = [0, 640], sizes = [8, 32], strides = [1, 1]} : vector<8x4096xf32> to vector<8x32xf32>
    %315 = vector.extract_strided_slice %308 {offsets = [0, 768], sizes = [8, 32], strides = [1, 1]} : vector<8x4096xf32> to vector<8x32xf32>
    %316 = vector.extract_strided_slice %308 {offsets = [0, 896], sizes = [8, 32], strides = [1, 1]} : vector<8x4096xf32> to vector<8x32xf32>
    %317 = vector.extract_strided_slice %308 {offsets = [0, 1024], sizes = [8, 32], strides = [1, 1]} : vector<8x4096xf32> to vector<8x32xf32>
    %318 = vector.extract_strided_slice %308 {offsets = [0, 1152], sizes = [8, 32], strides = [1, 1]} : vector<8x4096xf32> to vector<8x32xf32>
    %319 = vector.extract_strided_slice %308 {offsets = [0, 1280], sizes = [8, 32], strides = [1, 1]} : vector<8x4096xf32> to vector<8x32xf32>
    %320 = vector.extract_strided_slice %308 {offsets = [0, 1408], sizes = [8, 32], strides = [1, 1]} : vector<8x4096xf32> to vector<8x32xf32>
    %321 = vector.extract_strided_slice %308 {offsets = [0, 1536], sizes = [8, 32], strides = [1, 1]} : vector<8x4096xf32> to vector<8x32xf32>
    %322 = vector.extract_strided_slice %308 {offsets = [0, 1664], sizes = [8, 32], strides = [1, 1]} : vector<8x4096xf32> to vector<8x32xf32>
    %323 = vector.extract_strided_slice %308 {offsets = [0, 1792], sizes = [8, 32], strides = [1, 1]} : vector<8x4096xf32> to vector<8x32xf32>
    %324 = vector.extract_strided_slice %308 {offsets = [0, 1920], sizes = [8, 32], strides = [1, 1]} : vector<8x4096xf32> to vector<8x32xf32>
    %325 = vector.extract_strided_slice %308 {offsets = [0, 2048], sizes = [8, 32], strides = [1, 1]} : vector<8x4096xf32> to vector<8x32xf32>
    %326 = vector.extract_strided_slice %308 {offsets = [0, 2176], sizes = [8, 32], strides = [1, 1]} : vector<8x4096xf32> to vector<8x32xf32>
    %327 = vector.extract_strided_slice %308 {offsets = [0, 2304], sizes = [8, 32], strides = [1, 1]} : vector<8x4096xf32> to vector<8x32xf32>
    %328 = vector.extract_strided_slice %308 {offsets = [0, 2432], sizes = [8, 32], strides = [1, 1]} : vector<8x4096xf32> to vector<8x32xf32>
    %329 = vector.extract_strided_slice %308 {offsets = [0, 2560], sizes = [8, 32], strides = [1, 1]} : vector<8x4096xf32> to vector<8x32xf32>
    %330 = vector.extract_strided_slice %308 {offsets = [0, 2688], sizes = [8, 32], strides = [1, 1]} : vector<8x4096xf32> to vector<8x32xf32>
    %331 = vector.extract_strided_slice %308 {offsets = [0, 2816], sizes = [8, 32], strides = [1, 1]} : vector<8x4096xf32> to vector<8x32xf32>
    %332 = vector.extract_strided_slice %308 {offsets = [0, 2944], sizes = [8, 32], strides = [1, 1]} : vector<8x4096xf32> to vector<8x32xf32>
    %333 = vector.extract_strided_slice %308 {offsets = [0, 3072], sizes = [8, 32], strides = [1, 1]} : vector<8x4096xf32> to vector<8x32xf32>
    %334 = vector.extract_strided_slice %308 {offsets = [0, 3200], sizes = [8, 32], strides = [1, 1]} : vector<8x4096xf32> to vector<8x32xf32>
    %335 = vector.extract_strided_slice %308 {offsets = [0, 3328], sizes = [8, 32], strides = [1, 1]} : vector<8x4096xf32> to vector<8x32xf32>
    %336 = vector.extract_strided_slice %308 {offsets = [0, 3456], sizes = [8, 32], strides = [1, 1]} : vector<8x4096xf32> to vector<8x32xf32>
    %337 = vector.extract_strided_slice %308 {offsets = [0, 3584], sizes = [8, 32], strides = [1, 1]} : vector<8x4096xf32> to vector<8x32xf32>
    %338 = vector.extract_strided_slice %308 {offsets = [0, 3712], sizes = [8, 32], strides = [1, 1]} : vector<8x4096xf32> to vector<8x32xf32>
    %339 = vector.extract_strided_slice %308 {offsets = [0, 3840], sizes = [8, 32], strides = [1, 1]} : vector<8x4096xf32> to vector<8x32xf32>
    %340 = vector.extract_strided_slice %308 {offsets = [0, 3968], sizes = [8, 32], strides = [1, 1]} : vector<8x4096xf32> to vector<8x32xf32>
    %341 = tpu.concatenate %309, %310, %311, %312, %313, %314, %315, %316, %317, %318, %319, %320, %321, %322, %323, %324 in 1 : vector<8x32xf32>, vector<8x32xf32>, vector<8x32xf32>, vector<8x32xf32>, vector<8x32xf32>, vector<8x32xf32>, vector<8x32xf32>, vector<8x32xf32>, vector<8x32xf32>, vector<8x32xf32>, vector<8x32xf32>, vector<8x32xf32>, vector<8x32xf32>, vector<8x32xf32>, vector<8x32xf32>, vector<8x32xf32> -> vector<8x512xf32>
    %342 = tpu.concatenate %325, %326, %327, %328, %329, %330, %331, %332, %333, %334, %335, %336, %337, %338, %339, %340 in 1 : vector<8x32xf32>, vector<8x32xf32>, vector<8x32xf32>, vector<8x32xf32>, vector<8x32xf32>, vector<8x32xf32>, vector<8x32xf32>, vector<8x32xf32>, vector<8x32xf32>, vector<8x32xf32>, vector<8x32xf32>, vector<8x32xf32>, vector<8x32xf32>, vector<8x32xf32>, vector<8x32xf32>, vector<8x32xf32> -> vector<8x512xf32>
    %343 = tpu.concatenate %341, %342 in 1 : vector<8x512xf32>, vector<8x512xf32> -> vector<8x1024xf32>
    %c0_189 = arith.constant 0 : index
    %c0_190 = arith.constant 0 : index
    %c0_191 = arith.constant 0 : index
    %344 = vector.load %arg8[%c0_189, %c0_190, %c0_191] : memref<1x8x1024xf32, #tpu.memory_space<vmem>>, vector<1x8x1024xf32>
    %345 = vector.shape_cast %344 : vector<1x8x1024xf32> to vector<8x1024xf32>
    %346 = vector.shape_cast %343 : vector<8x1024xf32> to vector<1x8x1024xf32>
    tpu.vector_store %arg8[%c0_189, %c0_190, %c0_191], %346 {strides = array<i32>} : memref<1x8x1024xf32, #tpu.memory_space<vmem>>, vector<1x8x1024xf32>,
    return
  }
  func.func @transform_0(%arg0: i32) -> (i32, i32, i32) {
    %c0_i32 = arith.constant 0 : i32
    %c0_i32_0 = arith.constant 0 : i32
    %c0_i32_1 = arith.constant 0 : i32
    return %arg0, %c0_i32, %c0_i32_0 : i32, i32, i32
  }
  func.func @transform_1(%arg0: i32) -> (i32, i32) {
    %c0_i32 = arith.constant 0 : i32
    %c0_i32_0 = arith.constant 0 : i32
    %c0_i32_1 = arith.constant 0 : i32
    return %c0_i32, %c0_i32_0 : i32, i32
  }
  func.func @transform_2(%arg0: i32) -> (i32, i32, i32) {
    %c0_i32 = arith.constant 0 : i32
    %c0_i32_0 = arith.constant 0 : i32
    %c0_i32_1 = arith.constant 0 : i32
    %c0_i32_2 = arith.constant 0 : i32
    return %c0_i32, %c0_i32_0, %c0_i32_1 : i32, i32, i32
  }
  func.func @transform_3(%arg0: i32) -> (i32, i32) {
    %c0_i32 = arith.constant 0 : i32
    %c0_i32_0 = arith.constant 0 : i32
    %c0_i32_1 = arith.constant 0 : i32
    return %c0_i32, %c0_i32_0 : i32, i32
  }
  func.func @transform_4(%arg0: i32) -> (i32, i32) {
    %c0_i32 = arith.constant 0 : i32
    %c0_i32_0 = arith.constant 0 : i32
    %c0_i32_1 = arith.constant 0 : i32
    return %c0_i32, %c0_i32_0 : i32, i32
  }
  func.func @transform_5(%arg0: i32) -> (i32, i32) {
    %c0_i32 = arith.constant 0 : i32
    %c0_i32_0 = arith.constant 0 : i32
    %c0_i32_1 = arith.constant 0 : i32
    return %c0_i32, %c0_i32_0 : i32, i32
  }
  func.func @transform_6(%arg0: i32) -> (i32, i32) {
    %c0_i32 = arith.constant 0 : i32
    %c0_i32_0 = arith.constant 0 : i32
    %c0_i32_1 = arith.constant 0 : i32
    return %c0_i32, %c0_i32_0 : i32, i32
  }
  func.func @transform_7(%arg0: i32) -> (i32, i32, i32) {
    %c0_i32 = arith.constant 0 : i32
    %c0_i32_0 = arith.constant 0 : i32
    %c0_i32_1 = arith.constant 0 : i32
    return %arg0, %c0_i32, %c0_i32_0 : i32, i32, i32
  }
}

</mosaic_0001>

<bundles_post_ra>
// kernel: upconv_forward.1
= control target key start
LH: loop header
LB: loop body
LE: loop exit
PB: predicated region body
PF: predicated region fallthrough
CT: control target
= control target key end

     0   :  { %12 = vsyncpa [#allocation7], 0  ;;  %s17382_s0 = inlined_call_operand.hbm [shape: f32[2,4,256], index: 0, kind: input, shape index: {}]   ;;  %s17383_s1 = inlined_call_operand.hbm [shape: f32[16,4], index: 1, kind: input, shape index: {}]   ;;  %s17384_s2 = inlined_call_operand.hbm [shape: f32[2,16,128], index: 2, kind: input, shape index: {}]   ;;  %s17385_s3 = inlined_call_operand.hbm [shape: f32[4,128], index: 3, kind: input, shape index: {}]   ;;  %s17386_s4 = inlined_call_operand.hbm [shape: f32[8,37], index: 4, kind: input, shape index: {}]   ;;  %s17387_s5 = inlined_call_operand.hbm [shape: f32[1,4096], index: 5, kind: input, shape index: {}]   ;;  %s17388_s6 = inlined_call_operand.hbm [shape: f32[8,73], index: 6, kind: input, shape index: {}]   ;;  %s17389_s7 = inlined_call_operand.hbm [shape: f32[2,8,1024], index: 7, kind: output, shape index: {}]  }
   0x1   :  { %14 = vsyncpa [#allocation7 + $0x1], 0 }
   0x2   :  { %15 = vsyncpa [#allocation10], 0 }
   0x3   :  { %16 = vsyncpa [#allocation13], 0 }
   0x4   :  { %17 = vsyncpa [#allocation16], 0 }
   0x5   :  { %18 = vsyncpa [#allocation8], 0 }
   0x6   :  { %20 = vsyncpa [#allocation8 + $0x1], 0  ;;  %s14003_s24 = smov 0   ;;  %s14005_s25 = smov 0  }
   0x7   :  { %s14007_s26 = smov 0   ;;  %s14009_s27 = smov 0  }
   0x8 LB: > { %s13939_s28 = smov [#allocation9]   ;;  %s14024_s30 = sadd.s32 4294967295, %s13937_s27   ;;  %s13937_s27 = sphi %s14009_s27, %s17417_s27   ;;  %s13933_s26 = sphi %s14007_s26, %s17416_s26   ;;  %s13929_s25 = sphi %s14005_s25, %s17415_s25   ;;  %s13925_s24 = sphi %s14003_s24, %s17414_s24  }
   0x9   : > { %s221_s29 = sshll.u32 %s13939_s28, 4  ;;  %p11947_p0 = scmp.ge.s32.totalorder %s13937_s27, 1  ;;  %s14029_s29 = int_to_ptr.vmem [resolvable:$true] %s221_s29 }
   0xa   : > { %p17390_p1 = scmp.eq.s32.totalorder %s14024_s30, 0  ;;  %p209_p2 = scmp.lt.s32.totalorder %s13937_s27, 3 }
   0xb   : > { %s13940_s9 = smov [#allocation12]   ;;  %s13941_s12 = smov [#allocation15]  }
   0xc   : > { %p14031_p3 = pnand %p11947_p0, %p209_p2  ;;  %s248_s10 = sshll.u32 %s13940_s9, 4  ;;  %s14044_s10 = int_to_ptr.vmem [resolvable:$true] %s248_s10 }
   0xd   : > { %s270_s13 = sshll.u32 %s13941_s12, 4  ;;  %s13661_s16 = scalar_lea.hbm %s17383_s1, 256  ;;  %s14046_s13 = int_to_ptr.vmem [resolvable:$true] %s270_s13 }
   0xe   : > { %s17393_s8 = scalar_select %p14031_p3, 1, 0 }
   0xf   : > { %p13478_p5 = pneg %p14031_p3  ;;  %p13662_p7 = scmp.ne.s32.totalorder %s17383_s1, %s13661_s16 }
  0x10   : > { %p13668_p11 = scmp.lt.u32.totalorder %s13661_s16, %s17383_s1 }
  0x11   : > { %p14040_p6 = pnand %p13478_p5, %p17390_p1 }
  0x13   : > { %p14056_p8 = pneg %p14040_p6 }
  0x15   : > { %p13664_p9 = pnand %p14056_p8, %p13662_p7 }
  0x17   : > { %p13665_p10 = pneg %p13664_p9 }
  0x19   : > { %p13670_p12 = pnand %p13668_p11, %p13665_p10 }
  0x1b   : > { %13673 = shalt.err (!%p13670_p12)
}
  0x1c   : > { %s13674_s22 = scalar_lea.vmem %s14029_s29, 256  ;;  %p13682_p5 = scmp.lt.s32.totalorder %s14029_s29, %s14029_s29 }
  0x1d   : > { %p13675_p13 = scmp.ne.s32.totalorder %s14029_s29, %s13674_s22  ;;  %p13683_p4 = scmp.lt.s32.totalorder %s13674_s22, %s13674_s22 }
  0x1f   : > { %p13677_p0 = pnand %p13675_p13, %p14056_p8  ;;  %p13684_p7 = por %p13683_p4, %p13682_p5 }
  0x21   : > { %p13678_p2 = pneg %p13677_p0 }
  0x23   : > { %p13685_p9 = pnand %p13684_p7, %p13678_p2 }
  0x25   : > { %13688 = shalt.err (!%p13685_p9)
}
  0x26   : > { %s13942_s23 = smov 128   ;;  %s13943_s28 = smov 8  }
  0x27   : > { %13481 = dma.hbm_to_vmem [thread:$0]  (!%p14040_p6), %s17383_s1, 256, %s14029_s29, [#allocation10], %s13942_s23, %s13942_s23, %s13943_s28  }
  0x28   : > { %s13689_s16 = scalar_lea.hbm %s17385_s3, 64 }
  0x29   : > { %p13690_p4 = scmp.ne.s32.totalorder %s17385_s3, %s13689_s16  ;;  %p13696_p12 = scmp.lt.u32.totalorder %s13689_s16, %s17385_s3 }
  0x2b   : > { %p13692_p10 = pnand %p13690_p4, %p14056_p8 }
  0x2d   : > { %p13693_p11 = pneg %p13692_p10 }
  0x2f   : > { %p13698_p13 = pnand %p13696_p12, %p13693_p11 }
  0x31   : > { %13701 = shalt.err (!%p13698_p13)
}
  0x32   : > { %s13702_s29 = scalar_lea.vmem %s14044_s10, 64  ;;  %p13710_p7 = scmp.lt.s32.totalorder %s14044_s10, %s14044_s10 }
  0x33   : > { %p13703_p0 = scmp.ne.s32.totalorder %s14044_s10, %s13702_s29  ;;  %p13711_p9 = scmp.lt.s32.totalorder %s13702_s29, %s13702_s29 }
  0x35   : > { %p13705_p2 = pnand %p13703_p0, %p14056_p8  ;;  %p13712_p4 = por %p13711_p9, %p13710_p7 }
  0x37   : > { %p13706_p5 = pneg %p13705_p2 }
  0x39   : > { %p13713_p10 = pnand %p13712_p4, %p13706_p5 }
  0x3b   : > { %13716 = shalt.err (!%p13713_p10)
}
  0x3c   : > { %13487 = dma.hbm_to_vmem [thread:$0]  (!%p14040_p6), %s17385_s3, 64, %s14044_s10, [#allocation13]  }
  0x3d   : > { %s13717_s15 = scalar_lea.hbm %s17387_s5, 512 }
  0x3e   : > { %p13718_p11 = scmp.ne.s32.totalorder %s17387_s5, %s13717_s15  ;;  %p13724_p0 = scmp.lt.u32.totalorder %s13717_s15, %s17387_s5 }
  0x40   : > { %p13720_p12 = pnand %p13718_p11, %p14056_p8 }
  0x42   : > { %p13721_p13 = pneg %p13720_p12 }
  0x44   : > { %p13726_p2 = pnand %p13724_p0, %p13721_p13 }
  0x46   : > { %13729 = shalt.err (!%p13726_p2)
}
  0x47   : > { %s13730_s10 = scalar_lea.vmem %s14046_s13, 512  ;;  %p13738_p4 = scmp.lt.s32.totalorder %s14046_s13, %s14046_s13 }
  0x48   : > { %p13731_p5 = scmp.ne.s32.totalorder %s14046_s13, %s13730_s10  ;;  %p13739_p10 = scmp.lt.s32.totalorder %s13730_s10, %s13730_s10 }
  0x4a   : > { %p13733_p7 = pnand %p13731_p5, %p14056_p8  ;;  %p13740_p11 = por %p13739_p10, %p13738_p4 }
  0x4c   : > { %p13734_p9 = pneg %p13733_p7 }
  0x4e   : > { %p13741_p12 = pnand %p13740_p11, %p13734_p9 }
  0x50   : > { %13744 = shalt.err (!%p13741_p12)
}
  0x51   : > { %13493 = dma.hbm_to_vmem [thread:$0]  (!%p14040_p6), %s17387_s5, 512, %s14046_s13, [#allocation16]  }
  0x52   : > { %s13944_s22 = smov [#allocation11]   ;;  %s13945_s12 = smov [#allocation14]  }
  0x53   : > { %s234_s9 = sshll.u32 %s13944_s22, 4  ;;  %s259_s14 = sshll.u32 %s13945_s12, 4  ;;  %s235_s9 = int_to_ptr.vmem [resolvable:$true] %s234_s9  ;;  %s260_s14 = int_to_ptr.vmem [resolvable:$true] %s259_s14 }
  0x54   : > { %s13745_s17 = scalar_lea.hbm %s17384_s2, 512 }
  0x55   : > { %p13746_p13 = scmp.ne.s32.totalorder %s17384_s2, %s13745_s17  ;;  %p13752_p5 = scmp.lt.u32.totalorder %s13745_s17, %s17384_s2 }
  0x57   : > { %p13748_p0 = pnand %p13746_p13, %p14056_p8 }
  0x59   : > { %p13749_p2 = pneg %p13748_p0 }
  0x5b   : > { %p13754_p7 = pnand %p13752_p5, %p13749_p2 }
  0x5d   : > { %13757 = shalt.err (!%p13754_p7)
}
  0x5e   : > { %s13758_s13 = scalar_lea.vmem %s235_s9, 512  ;;  %p13766_p11 = scmp.lt.s32.totalorder %s235_s9, %s235_s9 }
  0x5f   : > { %p13759_p9 = scmp.ne.s32.totalorder %s235_s9, %s13758_s13  ;;  %p13767_p12 = scmp.lt.s32.totalorder %s13758_s13, %s13758_s13 }
  0x61   : > { %p13761_p4 = pnand %p13759_p9, %p14056_p8  ;;  %p13768_p1 = por %p13767_p12, %p13766_p11 }
  0x63   : > { %p13762_p10 = pneg %p13761_p4 }
  0x65   : > { %p13769_p3 = pnand %p13768_p1, %p13762_p10 }
  0x67   : > { %13772 = shalt.err (!%p13769_p3)
}
  0x68   : > { %13484 = dma.hbm_to_vmem [thread:$0]  (!%p14040_p6), %s17384_s2, 512, %s235_s9, [#allocation10], %s13942_s23, %s13942_s23, %s13943_s28  }
  0x69   : > { %s13773_s16 = scalar_lea.hbm %s17386_s4, 128 }
  0x6a   : > { %p13774_p1 = scmp.ne.s32.totalorder %s17386_s4, %s13773_s16  ;;  %p13780_p0 = scmp.lt.u32.totalorder %s13773_s16, %s17386_s4 }
  0x6c   : > { %p13776_p3 = pnand %p13774_p1, %p14056_p8 }
  0x6e   : > { %p13777_p13 = pneg %p13776_p3 }
  0x70   : > { %p13782_p2 = pnand %p13780_p0, %p13777_p13 }
  0x72   : > { %13785 = shalt.err (!%p13782_p2)
}
  0x73   : > { %s13786_s21 = scalar_lea.vmem %s260_s14, 128  ;;  %p13794_p4 = scmp.lt.s32.totalorder %s260_s14, %s260_s14 }
  0x74   : > { %p13787_p5 = scmp.ne.s32.totalorder %s260_s14, %s13786_s21  ;;  %p13795_p10 = scmp.lt.s32.totalorder %s13786_s21, %s13786_s21 }
  0x76   : > { %p13789_p7 = pnand %p13787_p5, %p14056_p8  ;;  %p13796_p11 = por %p13795_p10, %p13794_p4 }
  0x78   : > { %p13790_p9 = pneg %p13789_p7 }
  0x7a   : > { %p13797_p12 = pnand %p13796_p11, %p13790_p9 }
  0x7c   : > { %13800 = shalt.err (!%p13797_p12)
}
  0x7d   : > { %13490 = dma.hbm_to_vmem [thread:$0]  (!%p14040_p6), %s17386_s4, 128, %s260_s14, [#allocation13]  }
  0x7e   : > { %s13946_s9 = smov [#allocation17]   ;;  %s13801_s12 = scalar_lea.hbm %s17388_s6, 128 }
  0x7f   : > { %s281_s13 = sshll.u32 %s13946_s9, 4  ;;  %p13802_p1 = scmp.ne.s32.totalorder %s17388_s6, %s13801_s12  ;;  %s282_s13 = int_to_ptr.vmem [resolvable:$true] %s281_s13 }
  0x80   : > { %p13808_p0 = scmp.lt.u32.totalorder %s13801_s12, %s17388_s6 }
  0x81   : > { %p13804_p3 = pnand %p13802_p1, %p14056_p8 }
  0x83   : > { %p13805_p13 = pneg %p13804_p3 }
  0x85   : > { %p13810_p2 = pnand %p13808_p0, %p13805_p13 }
  0x87   : > { %13813 = shalt.err (!%p13810_p2)
}
  0x88   : > { %s13814_s14 = scalar_lea.vmem %s282_s13, 128  ;;  %p13822_p4 = scmp.lt.s32.totalorder %s282_s13, %s282_s13 }
  0x89   : > { %p13815_p5 = scmp.ne.s32.totalorder %s282_s13, %s13814_s14  ;;  %p13823_p10 = scmp.lt.s32.totalorder %s13814_s14, %s13814_s14 }
  0x8b   : > { %p13817_p7 = pnand %p13815_p5, %p14056_p8  ;;  %p13824_p11 = por %p13823_p10, %p13822_p4 }
  0x8d   : > { %p13818_p9 = pneg %p13817_p7 }
  0x8f   : > { %p13825_p12 = pnand %p13824_p11, %p13818_p9 }
  0x91   : > { %13828 = shalt.err (!%p13825_p12)
}
  0x92   : > { %13496 = dma.hbm_to_vmem [thread:$0]  (!%p14040_p6), %s17388_s6, 128, %s282_s13, [#allocation16]  }
  0x93   : > { %s11946_s19 = sadd.s32 4294967294, %s13937_s27   ;;  %s14185_s11 = sadd.s32 1, %s13937_s27  }
  0x94   : > { %s30_s21 = ssub.s32 %s13937_s27, %s14185_s11  ;;  %s33_s23 = sadd.s32 1, %s13933_s26 }
  0x95   : > { %p31_p8 = scmp.eq.s32.totalorder %s30_s21, 0  ;;  %p40_p1 = scmp.ne.s32.totalorder %s13933_s26, %s13929_s25 }
  0x96   : > { %p41_p3 = scmp.eq.s32.totalorder %s13937_s27, 0  ;;  %p46_p13 = scmp.ne.s32.totalorder %s13929_s25, %s13925_s24 }
  0x97   : > { %s14196_s28 = scalar_select %p31_p8, %s13933_s26, %s33_s23  }
  0x98   : > { %p14198_p0 = por %p41_p3, %p40_p1  ;;  %p17397_p2 = scmp.eq.s32.totalorder %s14024_s30, 0 }
  0x99   : > { %p196_p5 = scmp.eq.s32.totalorder %s14024_s30, 1  ;;  %p202_p7 = scmp.eq.s32.totalorder %s11946_s19, 1 }
  0x9a   : > { %p14204_p6 = por %p17397_p2, %p46_p13  ;;  %p13511_p9 = scmp.lt.s32.totalorder %s13937_s27, 2 }
  0x9b   : > { %s292_s29 = sand.u32 1, %s13933_s26   ;;  %p14211_p4 = por %p196_p5, %p40_p1 }
  0x9c   : > { %p14215_p10 = por %p202_p7, %p46_p13  ;;  %s11955_s15 = sshll.u32 %s292_s29, 3 }
  0x9d   : > { %s17399_s22 = scalar_select %p14211_p4, 1, 0 }
  0x9e   : > { %s17400_s12 = scalar_select %p14215_p10, 1, 0 }
  0x9f   : > { %s12136_s16 = sshll.u32 %s13937_s27, 7  ;;  %s296_s20 = scalar_lea.vmem [#allocation6], %s11955_s15 }
  0xa0   : > { %s14223_s14 = scalar_lea.hbm %s17382_s0, %s12136_s16  ;;  %s304_s10 = sshll.u32 %s296_s20, 4  ;;  %s14225_s10 = int_to_ptr.vmem [resolvable:$true] %s304_s10 }
  0xa1   : > { %p14229_p11 = pnand %p13511_p9, %p14198_p0  ;;  %s293_s21 = scalar_lea.sflag [#allocation7], %s292_s29 }
  0xa2   : > { %s13829_s23 = scalar_lea.hbm %s14223_s14, 128  ;;  %s13834_s17 = scalar_lea.hbm %s17382_s0, 256 }
  0xa3   : > { %p13830_p12 = scmp.ne.s32.totalorder %s14223_s14, %s13829_s23  ;;  %p13831_p8 = pneg %p14229_p11 }
  0xa4   : > { %p13835_p13 = scmp.lt.u32.totalorder %s14223_s14, %s17382_s0  ;;  %p13836_p0 = scmp.lt.u32.totalorder %s13834_s17, %s13829_s23 }
  0xa5   : > { %p13832_p1 = pnand %p13831_p8, %p13830_p12  ;;  %p13838_p5 = scmp.lt.u32.totalorder %s13829_s23, %s14223_s14 }
  0xa6   : > { %p13837_p2 = por %p13836_p0, %p13835_p13 }
  0xa7   : > { %p13833_p3 = pneg %p13832_p1 }
  0xa8   : > { %p13839_p7 = por %p13838_p5, %p13837_p2 }
  0xaa   : > { %p13840_p9 = pnand %p13839_p7, %p13833_p3 }
  0xac   : > { %13843 = shalt.err (!%p13840_p9)
}
  0xad   : > { %s13844_s29 = scalar_lea.vmem %s14225_s10, 128  ;;  %s13947_s20 = smov [#allocation6]  }
  0xae   : > { %p13845_p12 = scmp.ne.s32.totalorder %s14225_s10, %s13844_s29  ;;  %s13849_s15 = sshll.u32 %s13947_s20, 4  ;;  %s13850_s15 = int_to_ptr.vmem [resolvable:$false] %s13849_s15 }
  0xaf   : > { %s13851_s16 = scalar_lea.vmem %s13850_s15, 256  ;;  %p13852_p4 = scmp.lt.s32.totalorder %s14225_s10, %s13850_s15 }
  0xb0   : > { %p13847_p1 = pnand %p13845_p12, %p13831_p8  ;;  %p13853_p13 = scmp.lt.s32.totalorder %s13851_s16, %s13844_s29 }
  0xb2   : > { %p13848_p10 = pneg %p13847_p1  ;;  %p13854_p0 = por %p13853_p13, %p13852_p4 }
  0xb4   : > { %p13855_p2 = pnand %p13854_p0, %p13848_p10 }
  0xb6   : > { %13858 = shalt.err (!%p13855_p2)
}
  0xb7   : > { %13500 = dma.hbm_to_vmem [thread:$0]  (!%p14229_p11), %s14223_s14, 128, %s14225_s10, %s293_s21  }
  0xb8   : > { %p17402_p3 = scmp.ne.s32.totalorder %s17393_s8, 0 }
  0xb9   : > { %s14261_s23 = sand.u32 (!%p17402_p3), 1, %s13929_s25  }
  0xba   : > { %313 = sbr.rel (%p17402_p3) target bundleno = 2092 (0x82c), region = 48  ;;  %s11959_s17 = sshll.u32 (!%p17402_p3), %s14261_s23, 3 }
  0xbb   : > { %s316_s9 = scalar_lea.sflag (!%p17402_p3), [#allocation7], %s14261_s23  ;;  %s319_s18 = scalar_lea.vmem (!%p17402_p3), [#allocation6], %s11959_s17 }
  0xc1   : > { %13904 = dma.done.wait (%p14204_p6), %s316_s9, 128  }
  0xc2   : > { %13906 = vsyncadd (%p14204_p6), %s316_s9, 4294967168  ;;  %p17403_p4 = scmp.eq.s32.totalorder %s14024_s30, 0 }
  0xc4   : > { %13908 = dma.done.wait (%p17403_p4), [#allocation10], 768   ;;  %p17404_p10 = pmov %p17403_p4 }
  0xc5   : > { %p17405_p11 = pmov %p17403_p4 }
  0xc6   : > { %13910 = vsyncadd (%p17404_p10), [#allocation10], 4294966528 }
  0xc7   : > { %13912 = dma.done.wait (%p17405_p11), [#allocation13], 192   ;;  %p17406_p8 = pmov %p17403_p4 }
  0xc8   : > { %p17407_p5 = pmov %p17403_p4 }
  0xc9   : > { %13914 = vsyncadd (%p17406_p8), [#allocation13], 4294967104 }
  0xca   : > { %13916 = dma.done.wait (%p17407_p5), [#allocation16], 640   ;;  %p17408_p7 = pmov %p17403_p4 }
  0xcb   : > { %v13948_v0 = vmov 0.0   ;;  %s13949_s8 = smov 1   ;;  %v13950_v2 = vmov 0.0|0.0   ;;  %v374_v3 = vld [vmem:[%s319_s18] sm:$0xff]  ;;  %vm416_vm0 = vcmask 1043456   ;;  %v405_v6 = vld [vmem:[#allocation9] sm:$0xff] }
  0xcc   : > { %13918 = vsyncadd (%p17408_p7), [#allocation16], 4294966656  ;;  %485 = vmatprep.mubr.f32.mxu0 %v13948_v0  ;;  %375 = vst [vmem:[#allocation2] sm:$0xff] %v13948_v0  ;;  %5347 = vrot.lane.b32.xlu0 %v13948_v0, %s13949_s8  ;;  %v5331_v1 = vcombine.high %v13948_v0, %v13948_v0  ;;  %v408_v4 = vcombine.high %v374_v3, %v374_v3  ;;  %vm409_vm1 = vcmask 31744   ;;  %s13951_s13 = smov 127   ;;  %v406_v8 = vld [vmem:[#allocation9 + $0x8] sm:$0xff] }
  0xcd   : > { %376 = vst [vmem:[#allocation2 + $0x88] sm:$0xff] %v13948_v0  ;;  %12778 = vmatprep.subr.bf16.mxu1 %v13950_v2  ;;  %v501_v10 = vld [vmem:[#allocation11 + $0x10] sm:$0xff]  ;;  %v502_v11 = vld [vmem:[#allocation11 + $0x18] sm:$0xff]  ;;  %vm13952_vm2 = vmmov 0   ;;  %vm5413_vm3 = vcmask 7168   ;;  %v498_v20 = vld [vmem:[#allocation11] sm:$0xff] }
  0xce   : > { %5349 = vrot.lane.b32.xlu1 %v5331_v1, %s13949_s8  ;;  %11967 = vmatprep.subr.msk.mxu0 %vm416_vm0, %v408_v4  ;;  %v14303_v12 = vpack.c.bf16 %v502_v11, %v501_v10  ;;  %v499_v21 = vld [vmem:[#allocation11 + $0x8] sm:$0xff]  ;;  %vm506_vm4 = vcmask 130048   ;;  %s13953_s14 = smov 96   ;;  %s13954_s10 = smov 112   ;;  %vm5722_vm5 = vcmask 1039360   ;;  %vm7026_vm6 = vcmask 1044480  }
  0xcf   : > { %11968 = vmatpush1.msk.msra.mxu0 %vm416_vm0, %v374_v3  ;;  %12334 = vmatprep.mubr.msk.f32.mxu1 %vm13952_vm2, %v13948_v0  ;;  %v14324_v23 = vpack.c.bf16 %v499_v21, %v498_v20  ;;  %s13955_s19 = smov 80   ;;  %s13956_s21 = smov 64   ;;  %v14592_v21 = vld [vmem:[#allocation12] sm:$0xf]  ;;  %vm7022_vm7 = vcmask 302080   ;;  %vm10408_vm8 = vcmask 1040384  }
  0xd0   : > { %13574 = vrot.lane.b32.xlu0 %v13948_v0, %s13949_s8  ;;  %11969 = vmatmul.mubr.msk.f32.vlgmr.msra.gmra.mrb[0].mxu0 %vm409_vm1, %v405_v6  ;;  %s13957_s29 = smov 48   ;;  %s13958_s20 = smov 32   ;;  %vm13961_vm9 = vmmov 1   ;;  %vm10404_vm11 = vcmask 596992   ;;  %vm11721_vm12 = vcmask 261120   ;;  %vm11723_vm13 = vcmask 523264  }
  0xd1   : > { %12784 = vmatprep.subr.bf16.mxu0 %v13950_v2  ;;  %491 = vmatprep.mubr.f32.mxu0 %v13948_v0  ;;  %s13959_s15 = smov 16   ;;  %vm16351_vm10 = vmpackc.low %vm10408_vm8, %vm13961_vm9  ;;  %s11966_s16 = sshll.u32 %s14261_s23, 6  ;;  %vm11725_vm14 = vcmask 785408  }
  0xd2   : > { %12780 = vmatpush3.bf16.msra.mxu1 %v14303_v12  ;;  %12786 = vmatpush3.bf16.msra.mxu0 %v14303_v12  ;;  %s17283_s17 = scalar_lea.vmem [#allocation18], %s11966_s16  ;;  %s12137_s9 = sshll.u32 %s14024_s30, 10 }
  0xd3   : > { %12781 = vmatprep.subr.bf16.mxu1 %v13950_v2  ;;  %12790 = vmatprep.subr.bf16.mxu0 %v13950_v2  ;;  %s11819_s18 = sshll.u32 %s17283_s17, 4  ;;  %s11805_s30 = scalar_lea.sflag [#allocation8], %s14261_s23  ;;  %s17338_s18 = int_to_ptr.vmem [resolvable:$true] %s11819_s18 }
  0xd4   : > { %v13584_v5 = vld [vmem:[#allocation2 + $0x88] ss:$0 sps:$4 sm:$0xff]   ;;  %8881 = vrot.lane.b32.xlu0 %v13948_v0, %s13951_s13  ;;  %v6665_v9 = vld [vmem:[#allocation2 + $0x8c] sm:$0xf]  ;;  %11970 = vmatmul.mubr.msk.f32.gmra.mrb[2].mxu0 %vm409_vm1, %v406_v8  ;;  %p17411_p9 = scmp.ne.s32.totalorder %s17399_s22, 0 }
  0xd5   : > { %6243 = vrot.lane.b32.xlu1 %v13584_v5, %s13951_s13  ;;  %v6357_v7 = vld [vmem:[#allocation2 + $0x88] sm:$0xf]  ;;  %12348 = vmatprep.mubr.msk.f32.mxu0 %vm13952_vm2, %v13948_v0 }
  0xd8   : > { %9465 = vrot.lane.b32.xlu0 %v13948_v0, %s13951_s13 }
  0xd9   : > { %6455 = vrot.lane.b32.xlu1 %v6357_v7, %s13949_s8 }
  0xdd   : > { %6763 = vrot.lane.b32.xlu1 %v6665_v9, %s13951_s13 }
  0xe1   : > { %9109 = vrot.lane.b32.xlu1 %v13948_v0, %s13949_s8 }
 0x13e   : > { %v5348_v13 = vpop.permute.xlu0 %5347 }
 0x140   : > { %v14313_v14 = vpop.permute.xlu1 %5349 }
 0x141   : > { %v5414_v15 = vsel %vm5413_vm3, %v5348_v13, %v14313_v14 }
 0x142   : > { %5478 = vst [vmem:[#allocation3] sm:$0xf] %v5414_v15  ;;  %v14317_v16 = vpop.permute.xlu0 %13574 }
 0x143   : > { %v13577_v17 = vunpack.i.h.bf16 %v14317_v16  ;;  %v13576_v18 = vunpack.i.l.bf16 %v14317_v16 }
 0x145   : > { %v8655_v19 = vsel %vm5413_vm3, %v13577_v17, %v13576_v18 }
 0x146   : > { %8719 = vst [vmem:[#allocation5] sm:$0xff] %v8655_v19  ;;  %v14446_v33 = vpop.permute.xlu0 %8881 }
 0x147   : > { %v14430_v31 = vpop.permute.xlu1 %6243 }
 0x14a   : > { %v14458_v35 = vpop.permute.xlu0 %9465 }
 0x14b   : > { %v14440_v32 = vpop.permute.xlu1 %6455 }
 0x14f   : > { %v14448_v34 = vpop.permute.xlu1 %6763 }
 0x153   : > { %v14460_v36 = vpop.permute.xlu1 %9109 }
 0x1a3   : > { %v487_v22 = vpop.f32.mrb[0].mxu0 }
 0x1a4   : > { %v505_v24 = vrot.slane %v487_v22, 4  ;;  %1175 = vrot.lane.b32.xlu1 %v487_v22, %s13953_s14  ;;  %875 = vrot.lane.b32.xlu0 %v487_v22, %s13954_s10  ;;  %v14328_v25 = vpop.f32.mrb[1].mxu0 }
 0x1a5   : > { %v14372_v29 = vrot.slane %v14328_v25, 4 }
 0x1a6   : > { %12335 = vmatmul.mubr.msk.f32.vlgmr.msra.gmra.mrb[0].mxu1 %vm506_vm4, %v505_v24 }
 0x1a7   : > { %12783 = vmatpush3.bf16.msra.mxu1 %v14324_v23  ;;  %12341 = vmatprep.mubr.msk.f32.mxu1 %vm13952_vm2, %v13948_v0  ;;  %v493_v26 = vpop.f32.mrb[2].mxu0 }
 0x1a8   : > { %1475 = vrot.lane.b32.xlu1 %v487_v22, %s13955_s19  ;;  %801 = vrot.lane.b32.xlu0 %v505_v24, %s13954_s10  ;;  %v14336_v27 = vrot.slane %v493_v26, 4  ;;  %v14338_v28 = vpop.f32.mrb[3].mxu0 }
 0x1a9   : > { %12787 = vmatprep.subr.bf16.mxu1 %v13950_v2  ;;  %v14420_v30 = vrot.slane %v14338_v28, 4 }
 0x1aa   : > { %12342 = vmatmul.mubr.msk.f32.vlgmr.msra.gmra.mrb[2].mxu1 %vm506_vm4, %v487_v22  ;;  %12349 = vmatmul.mubr.msk.f32.vlgmr.msra.gmra.mrb[4].mxu0 %vm506_vm4, %v14336_v27 }
 0x1ab   : > { %12789 = vmatpush3.bf16.msra.mxu1 %v14324_v23  ;;  %12355 = vmatprep.mubr.msk.f32.mxu1 %vm13952_vm2, %v13948_v0 }
 0x1ac   : > { %1775 = vrot.lane.b32.xlu1 %v487_v22, %s13956_s21  ;;  %1101 = vrot.lane.b32.xlu0 %v505_v24, %s13953_s14 }
 0x1ad   : > { %12793 = vmatprep.subr.bf16.mxu1 %v13950_v2  ;;  %12792 = vmatpush3.bf16.msra.mxu0 %v14303_v12 }
 0x1ae   : > { %12356 = vmatmul.mubr.msk.f32.vlgmr.msra.gmra.mrb[4].mxu1 %vm506_vm4, %v493_v26  ;;  %12362 = vmatprep.mubr.msk.f32.mxu0 %vm13952_vm2, %v13948_v0 }
 0x1af   : > { %12795 = vmatpush3.bf16.msra.mxu1 %v14324_v23  ;;  %12369 = vmatprep.mubr.msk.f32.mxu1 %vm13952_vm2, %v13948_v0 }
 0x1b0   : > { %2075 = vrot.lane.b32.xlu1 %v487_v22, %s13957_s29  ;;  %1401 = vrot.lane.b32.xlu0 %v505_v24, %s13955_s19 }
 0x1b1   : > { %12799 = vmatprep.subr.bf16.mxu1 %v13950_v2  ;;  %12796 = vmatprep.subr.bf16.mxu0 %v13950_v2 }
 0x1b4   : > { %2375 = vrot.lane.b32.xlu1 %v487_v22, %s13958_s20  ;;  %1701 = vrot.lane.b32.xlu0 %v505_v24, %s13956_s21 }
 0x1b8   : > { %2675 = vrot.lane.b32.xlu1 %v487_v22, %s13959_s15  ;;  %2001 = vrot.lane.b32.xlu0 %v505_v24, %s13957_s29 }
 0x1bc   : > { %2301 = vrot.lane.b32.xlu0 %v505_v24, %s13958_s20  ;;  %3271 = vrot.lane.b32.xlu1 %v14328_v25, %s13954_s10 }
 0x1c0   : > { %2601 = vrot.lane.b32.xlu0 %v505_v24, %s13959_s15  ;;  %3571 = vrot.lane.b32.xlu1 %v14328_v25, %s13953_s14 }
 0x1c4   : > { %3871 = vrot.lane.b32.xlu1 %v14328_v25, %s13955_s19  ;;  %3197 = vrot.lane.b32.xlu0 %v14372_v29, %s13954_s10 }
 0x1c8   : > { %4171 = vrot.lane.b32.xlu1 %v14328_v25, %s13956_s21  ;;  %3497 = vrot.lane.b32.xlu0 %v14372_v29, %s13953_s14 }
 0x1cc   : > { %4471 = vrot.lane.b32.xlu1 %v14328_v25, %s13957_s29  ;;  %3797 = vrot.lane.b32.xlu0 %v14372_v29, %s13955_s19 }
 0x1d0   : > { %4771 = vrot.lane.b32.xlu1 %v14328_v25, %s13958_s20  ;;  %4097 = vrot.lane.b32.xlu0 %v14372_v29, %s13956_s21 }
 0x1d4   : > { %5071 = vrot.lane.b32.xlu1 %v14328_v25, %s13959_s15  ;;  %4397 = vrot.lane.b32.xlu0 %v14372_v29, %s13957_s29 }
 0x1d8   : > { %4697 = vrot.lane.b32.xlu0 %v14372_v29, %s13958_s20  ;;  %1025 = vrot.lane.b32.xlu1 %v493_v26, %s13954_s10 }
 0x1dc   : > { %4997 = vrot.lane.b32.xlu0 %v14372_v29, %s13959_s15  ;;  %1325 = vrot.lane.b32.xlu1 %v493_v26, %s13953_s14 }
 0x1e0   : > { %1625 = vrot.lane.b32.xlu1 %v493_v26, %s13955_s19  ;;  %1251 = vrot.lane.b32.xlu0 %v14336_v27, %s13953_s14 }
 0x1e4   : > { %1925 = vrot.lane.b32.xlu1 %v493_v26, %s13956_s21  ;;  %1551 = vrot.lane.b32.xlu0 %v14336_v27, %s13955_s19 }
 0x1e8   : > { %2225 = vrot.lane.b32.xlu1 %v493_v26, %s13957_s29  ;;  %1851 = vrot.lane.b32.xlu0 %v14336_v27, %s13956_s21 }
 0x1ec   : > { %2525 = vrot.lane.b32.xlu1 %v493_v26, %s13958_s20  ;;  %2151 = vrot.lane.b32.xlu0 %v14336_v27, %s13957_s29 }
 0x1f0   : > { %2825 = vrot.lane.b32.xlu1 %v493_v26, %s13959_s15  ;;  %2451 = vrot.lane.b32.xlu0 %v14336_v27, %s13958_s20 }
 0x1f4   : > { %2751 = vrot.lane.b32.xlu0 %v14336_v27, %s13959_s15  ;;  %3421 = vrot.lane.b32.xlu1 %v14338_v28, %s13954_s10 }
 0x1f8   : > { %3721 = vrot.lane.b32.xlu1 %v14338_v28, %s13953_s14  ;;  %3347 = vrot.lane.b32.xlu0 %v14420_v30, %s13954_s10 }
 0x1fc   : > { %4021 = vrot.lane.b32.xlu1 %v14338_v28, %s13955_s19  ;;  %3647 = vrot.lane.b32.xlu0 %v14420_v30, %s13953_s14 }
 0x200   : > { %4321 = vrot.lane.b32.xlu1 %v14338_v28, %s13956_s21  ;;  %3947 = vrot.lane.b32.xlu0 %v14420_v30, %s13955_s19  ;;  %s13962_s19 = smov [#allocation18]  }
 0x204   : > { %4621 = vrot.lane.b32.xlu1 %v14338_v28, %s13957_s29  ;;  %4247 = vrot.lane.b32.xlu0 %v14420_v30, %s13956_s21 }
 0x208   : > { %4921 = vrot.lane.b32.xlu1 %v14338_v28, %s13958_s20  ;;  %4547 = vrot.lane.b32.xlu0 %v14420_v30, %s13957_s29 }
 0x20c   : > { %5221 = vrot.lane.b32.xlu1 %v14338_v28, %s13959_s15  ;;  %4847 = vrot.lane.b32.xlu0 %v14420_v30, %s13958_s20 }
 0x210   : > { %951 = vrot.lane.b32.xlu1 %v14336_v27, %s13954_s10  ;;  %5147 = vrot.lane.b32.xlu0 %v14420_v30, %s13959_s15  ;;  %s13859_s10 = scalar_lea.vmem %s17338_s18, 1024 }
 0x211   : > { %p13860_p6 = scmp.ne.s32.totalorder %s17338_s18, %s13859_s10 }
 0x213   : > { %p13861_p12 = pnand %p13860_p6, %p17411_p9 }
 0x215   : > { %p13862_p1 = pneg %p13861_p12 }
 0x216   : > { %v1176_v37 = vpop.permute.xlu1 %1175  ;;  %v876_v38 = vpop.permute.xlu0 %875 }
 0x217   : > { %12370 = vmatmul.mubr.msk.f32.vlgmr.msra.gmra.mrb[6].mxu1 %vm506_vm4, %v876_v38 }
 0x218   : > { %12801 = vmatpush3.bf16.msra.mxu1 %v14324_v23  ;;  %12383 = vmatprep.mubr.msk.f32.mxu1 %vm13952_vm2, %v13948_v0 }
 0x219   : > { %12805 = vmatprep.subr.bf16.mxu1 %v13950_v2 }
 0x21a   : > { %v1476_v39 = vpop.permute.xlu1 %1475  ;;  %v802_v40 = vpop.permute.xlu0 %801 }
 0x21b   : > { %12363 = vmatmul.mubr.msk.f32.vlgmr.msra.gmra.mrb[6].mxu0 %vm506_vm4, %v802_v40 }
 0x21c   : > { %12798 = vmatpush3.bf16.msra.mxu0 %v14303_v12  ;;  %12376 = vmatprep.mubr.msk.f32.mxu0 %vm13952_vm2, %v13948_v0 }
 0x21d   : > { %12802 = vmatprep.subr.bf16.mxu0 %v13950_v2 }
 0x21e   : > { %v1776_v41 = vpop.permute.xlu1 %1775  ;;  %v14482_v48 = vpop.permute.xlu0 %1101 }
 0x222   : > { %v2076_v42 = vpop.permute.xlu1 %2075  ;;  %v14488_v51 = vpop.permute.xlu0 %1401 }
 0x226   : > { %v14472_v43 = vpop.permute.xlu1 %2375  ;;  %v14492_v53 = vpop.permute.xlu0 %1701 }
 0x22a   : > { %v14474_v44 = vpop.permute.xlu1 %2675  ;;  %v14497_v56 = vpop.permute.xlu0 %2001 }
 0x22e   : > { %v14476_v45 = vpop.permute.xlu1 %3271  ;;  %v14508_v58 = vpop.permute.xlu0 %2301 }
 0x232   : > { %v14478_v46 = vpop.permute.xlu1 %3571  ;;  %v14516_v61 = vpop.permute.xlu0 %2601 }
 0x236   : > { %v14480_v47 = vpop.permute.xlu1 %3871  ;;  %v14527_v63 = vpop.permute.xlu0 %3197 }
 0x23a   : > { %v14484_v49 = vpop.permute.xlu1 %4171  ;;  %v14535_v4 = vpop.permute.xlu0 %3497 }
 0x23e   : > { %v14486_v50 = vpop.permute.xlu1 %4471  ;;  %v14548_v6 = vpop.permute.xlu0 %3797 }
 0x242   : > { %v14490_v52 = vpop.permute.xlu1 %4771  ;;  %v14561_v9 = vpop.permute.xlu0 %4097 }
 0x246   : > { %v14494_v54 = vpop.permute.xlu1 %5071  ;;  %v14574_v11 = vpop.permute.xlu0 %4397 }
 0x24a   : > { %v1026_v55 = vpop.permute.xlu1 %1025  ;;  %v14587_v20 = vpop.permute.xlu0 %4697 }
 0x24b   : > { %12384 = vmatmul.mubr.msk.f32.vlgmr.msra.gmra.mrb[8].mxu1 %vm506_vm4, %v1026_v55 }
 0x24c   : > { %12807 = vmatpush3.bf16.msra.mxu1 %v14324_v23  ;;  %12397 = vmatprep.mubr.msk.f32.mxu1 %vm13952_vm2, %v13948_v0 }
 0x24d   : > { %12811 = vmatprep.subr.bf16.mxu1 %v13950_v2 }
 0x24e   : > { %v1326_v57 = vpop.permute.xlu1 %1325 }
 0x24f   : > { %12398 = vmatmul.mubr.msk.f32.vlgmr.msra.gmra.mrb[10].mxu1 %vm506_vm4, %v1176_v37 }
 0x250   : > { %12813 = vmatpush3.bf16.msra.mxu1 %v14324_v23  ;;  %12411 = vmatprep.mubr.msk.f32.mxu1 %vm13952_vm2, %v13948_v0 }
 0x251   : > { %12817 = vmatprep.subr.bf16.mxu1 %v13950_v2 }
 0x252   : > { %v1626_v59 = vpop.permute.xlu1 %1625 }
 0x253   : > { %12412 = vmatmul.mubr.msk.f32.vlgmr.msra.gmra.mrb[12].mxu1 %vm506_vm4, %v1326_v57 }
 0x254   : > { %12819 = vmatpush3.bf16.msra.mxu1 %v14324_v23  ;;  %12425 = vmatprep.mubr.msk.f32.mxu1 %vm13952_vm2, %v13948_v0 }
 0x255   : > { %12823 = vmatprep.subr.bf16.mxu1 %v13950_v2 }
 0x256   : > { %v1926_v60 = vpop.permute.xlu1 %1925 }
 0x257   : > { %12426 = vmatmul.mubr.msk.f32.vlgmr.msra.gmra.mrb[14].mxu1 %vm506_vm4, %v1476_v39 }
 0x258   : > { %12825 = vmatpush3.bf16.msra.mxu1 %v14324_v23  ;;  %12439 = vmatprep.mubr.msk.f32.mxu1 %vm13952_vm2, %v13948_v0 }
 0x259   : > { %12829 = vmatprep.subr.bf16.mxu1 %v13950_v2 }
 0x25a   : > { %v2226_v62 = vpop.permute.xlu1 %2225 }
 0x25b   : > { %12440 = vmatmul.mubr.msk.f32.vlgmr.msra.gmra.mrb[16].mxu1 %vm506_vm4, %v1626_v59 }
 0x25c   : > { %12831 = vmatpush3.bf16.msra.mxu1 %v14324_v23  ;;  %12453 = vmatprep.mubr.msk.f32.mxu1 %vm13952_vm2, %v13948_v0 }
 0x25d   : > { %12835 = vmatprep.subr.bf16.mxu1 %v13950_v2 }
 0x25e   : > { %v2526_v1 = vpop.permute.xlu1 %2525 }
 0x25f   : > { %12454 = vmatmul.mubr.msk.f32.vlgmr.msra.gmra.mrb[18].mxu1 %vm506_vm4, %v1776_v41 }
 0x260   : > { %12837 = vmatpush3.bf16.msra.mxu1 %v14324_v23  ;;  %12467 = vmatprep.mubr.msk.f32.mxu1 %vm13952_vm2, %v13948_v0 }
 0x261   : > { %12841 = vmatprep.subr.bf16.mxu1 %v13950_v2 }
 0x262   : > { %v2826_v3 = vpop.permute.xlu1 %2825 }
 0x263   : > { %12468 = vmatmul.mubr.msk.f32.vlgmr.msra.gmra.mrb[20].mxu1 %vm506_vm4, %v1926_v60 }
 0x264   : > { %12843 = vmatpush3.bf16.msra.mxu1 %v14324_v23  ;;  %12481 = vmatprep.mubr.msk.f32.mxu1 %vm13952_vm2, %v13948_v0 }
 0x265   : > { %12847 = vmatprep.subr.bf16.mxu1 %v13950_v2 }
 0x266   : > { %v14541_v5 = vpop.permute.xlu1 %3421 }
 0x267   : > { %12482 = vmatmul.mubr.msk.f32.vlgmr.msra.gmra.mrb[22].mxu1 %vm506_vm4, %v2076_v42 }
 0x268   : > { %12849 = vmatpush3.bf16.msra.mxu1 %v14324_v23  ;;  %12495 = vmatprep.mubr.msk.f32.mxu1 %vm13952_vm2, %v13948_v0 }
 0x269   : > { %12853 = vmatprep.subr.bf16.mxu1 %v13950_v2 }
 0x26a   : > { %v14550_v7 = vpop.permute.xlu1 %3721 }
 0x26b   : > { %12496 = vmatmul.mubr.msk.f32.vlgmr.msra.gmra.mrb[24].mxu1 %vm506_vm4, %v2226_v62 }
 0x26c   : > { %12855 = vmatpush3.bf16.msra.mxu1 %v14324_v23  ;;  %12509 = vmatprep.mubr.msk.f32.mxu1 %vm13952_vm2, %v13948_v0 }
 0x26d   : > { %12859 = vmatprep.subr.bf16.mxu1 %v13950_v2 }
 0x26e   : > { %v14557_v8 = vpop.permute.xlu1 %4021 }
 0x26f   : > { %12510 = vmatmul.mubr.msk.f32.vlgmr.msra.gmra.mrb[26].mxu1 %vm506_vm4, %v14472_v43 }
 0x270   : > { %12861 = vmatpush3.bf16.msra.mxu1 %v14324_v23  ;;  %12523 = vmatprep.mubr.msk.f32.mxu1 %vm13952_vm2, %v13948_v0 }
 0x271   : > { %12865 = vmatprep.subr.bf16.mxu1 %v13950_v2 }
 0x272   : > { %v14567_v10 = vpop.permute.xlu1 %4321 }
 0x273   : > { %12524 = vmatmul.mubr.msk.f32.vlgmr.msra.gmra.mrb[28].mxu1 %vm506_vm4, %v2526_v1 }
 0x274   : > { %12867 = vmatpush3.bf16.msra.mxu1 %v14324_v23  ;;  %12537 = vmatprep.mubr.msk.f32.mxu1 %vm13952_vm2, %v13948_v0 }
 0x275   : > { %12871 = vmatprep.subr.bf16.mxu1 %v13950_v2 }
 0x276   : > { %v14576_v13 = vpop.permute.xlu1 %4621 }
 0x277   : > { %12538 = vmatmul.mubr.msk.f32.vlgmr.msra.gmra.mrb[30].mxu1 %vm506_vm4, %v14474_v44 }
 0x278   : > { %12873 = vmatpush3.bf16.msra.mxu1 %v14324_v23  ;;  %12551 = vmatprep.mubr.msk.f32.mxu1 %vm13952_vm2, %v13948_v0 }
 0x279   : > { %v575_v15 = vpop.f32.mrb[0].mxu1  ;;  %12877 = vmatprep.subr.bf16.mxu1 %v13950_v2 }
 0x27a   : > { %v12336_v17 = vpop.f32.mrb[1].mxu1  ;;  %v14584_v19 = vpop.permute.xlu1 %4921 }
 0x27b   : > { %12552 = vmatmul.mubr.msk.f32.vlgmr.msra.gmra.mrb[32].mxu1 %vm506_vm4, %v2826_v3 }
 0x27c   : > { %12879 = vmatpush3.bf16.msra.mxu1 %v14324_v23  ;;  %12565 = vmatprep.mubr.msk.f32.mxu1 %vm13952_vm2, %v13948_v0 }
 0x27d   : > { %v647_v22 = vpop.f32.mrb[2].mxu1  ;;  %12883 = vmatprep.subr.bf16.mxu1 %v13950_v2  ;;  %v723_v24 = vpop.f32.mrb[4].mxu0 }
 0x27e   : > { %v648_v26 = vadd.f32 %v647_v22, %v575_v15  ;;  %v12343_v27 = vpop.f32.mrb[3].mxu1  ;;  %v14595_v37 = vpop.permute.xlu1 %5221 }
 0x27f   : > { %12566 = vmatmul.mubr.msk.f32.vlgmr.msra.gmra.mrb[34].mxu1 %vm506_vm4, %v14328_v25  ;;  %v12350_v38 = vpop.f32.mrb[5].mxu0  ;;  %v14607_v25 = vpop.permute.xlu0 %4997 }
 0x280   : > { %v651_v39 = vadd.f32 %v648_v26, %v14592_v21  ;;  %12885 = vmatpush3.bf16.msra.mxu1 %v14324_v23  ;;  %12579 = vmatprep.mubr.msk.f32.mxu1 %vm13952_vm2, %v13948_v0 }
 0x281   : > { %v795_v40 = vpop.f32.mrb[4].mxu1  ;;  %12889 = vmatprep.subr.bf16.mxu1 %v13950_v2 }
 0x282   : > { %652 = vst [vmem:[#allocation2 + $0x8] sm:$0xf] %v651_v39  ;;  %v796_v41 = vadd.f32 %v795_v40, %v723_v24  ;;  %v952_v42 = vpop.permute.xlu1 %951  ;;  %v12357_v43 = vpop.f32.mrb[5].mxu1 }
 0x283   : > { %12377 = vmatmul.mubr.msk.f32.vlgmr.msra.gmra.mrb[8].mxu0 %vm506_vm4, %v952_v42  ;;  %12580 = vmatmul.mubr.msk.f32.vlgmr.msra.gmra.mrb[36].mxu1 %vm506_vm4, %v14338_v28  ;;  %v1252_v55 = vpop.permute.xlu0 %1251 }
 0x284   : > { %v799_v44 = vadd.f32 %v796_v41, %v14592_v21  ;;  %12804 = vmatpush3.bf16.msra.mxu0 %v14303_v12  ;;  %12891 = vmatpush3.bf16.msra.mxu1 %v14324_v23 }
 0x285   : > { %12390 = vmatprep.mubr.msk.f32.mxu0 %vm13952_vm2, %v13948_v0  ;;  %12593 = vmatprep.mubr.msk.f32.mxu1 %vm13952_vm2, %v13948_v0 }
 0x286   : > { %800 = vst [vmem:[#allocation2 + $0xc] sm:$0xf] %v799_v44  ;;  %12808 = vmatprep.subr.bf16.mxu0 %v13950_v2  ;;  %12895 = vmatprep.subr.bf16.mxu1 %v13950_v2 }
 0x287   : > { %12391 = vmatmul.mubr.msk.f32.vlgmr.msra.gmra.mrb[10].mxu0 %vm506_vm4, %v14482_v48  ;;  %12594 = vmatmul.mubr.msk.f32.vlgmr.msra.gmra.mrb[38].mxu1 %vm506_vm4, %v14476_v45  ;;  %v1552_v60 = vpop.permute.xlu0 %1551 }
 0x288   : > { %12810 = vmatpush3.bf16.msra.mxu0 %v14303_v12  ;;  %12897 = vmatpush3.bf16.msra.mxu1 %v14324_v23 }
 0x289   : > { %v5510_v28 = vld [vmem:[#allocation2 + $0x4] sm:$0xff]  ;;  %12404 = vmatprep.mubr.msk.f32.mxu0 %vm13952_vm2, %v13948_v0  ;;  %12607 = vmatprep.mubr.msk.f32.mxu1 %vm13952_vm2, %v13948_v0 }
 0x28a   : > { %v5542_v57 = vcombine.low %v5510_v28, %v5510_v28  ;;  %5575 = vst [vmem:[#allocation3 + $0x8] sm:$0xf0] %v5510_v28  ;;  %5872 = vrot.lane.b32.xlu0 %v5510_v28, %s13949_s8  ;;  %12814 = vmatprep.subr.bf16.mxu0 %v13950_v2  ;;  %v5640_v59 = vcombine.high %v5510_v28, %v5510_v28 }
 0x28b   : > { %12405 = vmatmul.mubr.msk.f32.vlgmr.msra.gmra.mrb[12].mxu0 %vm506_vm4, %v1252_v55  ;;  %12608 = vmatmul.mubr.msk.f32.vlgmr.msra.gmra.mrb[40].mxu1 %vm506_vm4, %v14541_v5 }
 0x28c   : > { %5574 = vst [vmem:[#allocation3] sm:$0xf0] %v5542_v57  ;;  %12901 = vmatprep.subr.bf16.mxu1 %v13950_v2  ;;  %5870 = vrot.lane.b32.xlu1 %v5542_v57, %s13949_s8 }
 0x28d   : > { %v6032_v45 = vld [vmem:[#allocation2 + $0x8] sm:$0xff]  ;;  %12816 = vmatpush3.bf16.msra.mxu0 %v14303_v12  ;;  %12903 = vmatpush3.bf16.msra.mxu1 %v14324_v23 }
 0x28e   : > { %v6064_v48 = vcombine.high %v6032_v45, %v6032_v45  ;;  %6096 = vst [vmem:[#allocation3 + $0x200] sm:$0xf] %v6032_v45  ;;  %12418 = vmatprep.mubr.msk.f32.mxu0 %vm13952_vm2, %v13948_v0  ;;  %12621 = vmatprep.mubr.msk.f32.mxu1 %vm13952_vm2, %v13948_v0 }
 0x28f   : > { %5656 = vrot.lane.b32.xlu0 %v5510_v28, %s13951_s13  ;;  %12820 = vmatprep.subr.bf16.mxu0 %v13950_v2 }
 0x290   : > { %6097 = vst [vmem:[#allocation3 + $0x208] sm:$0xf] %v6064_v48  ;;  %12419 = vmatmul.mubr.msk.f32.vlgmr.msra.gmra.mrb[14].mxu0 %vm506_vm4, %v14488_v51  ;;  %12622 = vmatmul.mubr.msk.f32.vlgmr.msra.gmra.mrb[42].mxu1 %vm506_vm4, %v14478_v46  ;;  %v1852_v46 = vpop.permute.xlu0 %1851 }
 0x291   : > { %12907 = vmatprep.subr.bf16.mxu1 %v13950_v2  ;;  %12822 = vmatpush3.bf16.msra.mxu0 %v14303_v12 }
 0x292   : > { %12909 = vmatpush3.bf16.msra.mxu1 %v14324_v23  ;;  %6391 = vrot.lane.b32.xlu1 %v6032_v45, %s13949_s8 }
 0x293   : > { %12432 = vmatprep.mubr.msk.f32.mxu0 %vm13952_vm2, %v13948_v0  ;;  %12635 = vmatprep.mubr.msk.f32.mxu1 %vm13952_vm2, %v13948_v0 }
 0x294   : > { %5658 = vrot.lane.b32.xlu0 %v5640_v59, %s13951_s13  ;;  %12433 = vmatmul.mubr.msk.f32.vlgmr.msra.gmra.mrb[16].mxu0 %vm506_vm4, %v1552_v60  ;;  %v2152_v51 = vpop.permute.xlu0 %2151 }
 0x295   : > { %12826 = vmatprep.subr.bf16.mxu0 %v13950_v2  ;;  %12636 = vmatmul.mubr.msk.f32.vlgmr.msra.gmra.mrb[44].mxu1 %vm506_vm4, %v14550_v7 }
 0x296   : > { %12913 = vmatprep.subr.bf16.mxu1 %v13950_v2  ;;  %12828 = vmatpush3.bf16.msra.mxu0 %v14303_v12 }
 0x297   : > { %12915 = vmatpush3.bf16.msra.mxu1 %v14324_v23  ;;  %5353 = vrot.lane.b32.xlu1 %v6064_v48, %s13949_s8 }
 0x298   : > { %12446 = vmatprep.mubr.msk.f32.mxu0 %vm13952_vm2, %v13948_v0  ;;  %12649 = vmatprep.mubr.msk.f32.mxu1 %vm13952_vm2, %v13948_v0 }
 0x299   : > { %5351 = vrot.lane.b32.xlu0 %v6032_v45, %s13949_s8  ;;  %12447 = vmatmul.mubr.msk.f32.vlgmr.msra.gmra.mrb[18].mxu0 %vm506_vm4, %v14492_v53 }
 0x29a   : > { %12832 = vmatprep.subr.bf16.mxu0 %v13950_v2  ;;  %12650 = vmatmul.mubr.msk.f32.vlgmr.msra.gmra.mrb[46].mxu1 %vm506_vm4, %v14480_v47  ;;  %v6162_v47 = vcombine.low %v6032_v45, %v6032_v45 }
 0x29b   : > { %12919 = vmatprep.subr.bf16.mxu1 %v13950_v2  ;;  %12834 = vmatpush3.bf16.msra.mxu0 %v14303_v12 }
 0x29c   : > { %12921 = vmatpush3.bf16.msra.mxu1 %v14324_v23  ;;  %12460 = vmatprep.mubr.msk.f32.mxu0 %vm13952_vm2, %v13948_v0 }
 0x29d   : > { %12663 = vmatprep.mubr.msk.f32.mxu1 %vm13952_vm2, %v13948_v0  ;;  %6181 = vrot.lane.b32.xlu0 %v6032_v45, %s13951_s13 }
 0x29e   : > { %12461 = vmatmul.mubr.msk.f32.vlgmr.msra.gmra.mrb[20].mxu0 %vm506_vm4, %v1852_v46  ;;  %12838 = vmatprep.subr.bf16.mxu0 %v13950_v2 }
 0x29f   : > { %12664 = vmatmul.mubr.msk.f32.vlgmr.msra.gmra.mrb[48].mxu1 %vm506_vm4, %v14557_v8  ;;  %12925 = vmatprep.subr.bf16.mxu1 %v13950_v2 }
 0x2a0   : > { %12840 = vmatpush3.bf16.msra.mxu0 %v14303_v12  ;;  %12927 = vmatpush3.bf16.msra.mxu1 %v14324_v23 }
 0x2a1   : > { %12474 = vmatprep.mubr.msk.f32.mxu0 %vm13952_vm2, %v13948_v0  ;;  %12677 = vmatprep.mubr.msk.f32.mxu1 %vm13952_vm2, %v13948_v0 }
 0x2a2   : > { %6393 = vrot.lane.b32.xlu0 %v6064_v48, %s13949_s8  ;;  %12844 = vmatprep.subr.bf16.mxu0 %v13950_v2 }
 0x2a3   : > { %12475 = vmatmul.mubr.msk.f32.vlgmr.msra.gmra.mrb[22].mxu0 %vm506_vm4, %v14497_v56  ;;  %12678 = vmatmul.mubr.msk.f32.vlgmr.msra.gmra.mrb[50].mxu1 %vm506_vm4, %v14484_v49  ;;  %v2452_v49 = vpop.permute.xlu0 %2451 }
 0x2a4   : > { %12931 = vmatprep.subr.bf16.mxu1 %v13950_v2  ;;  %12846 = vmatpush3.bf16.msra.mxu0 %v14303_v12 }
 0x2a5   : > { %12933 = vmatpush3.bf16.msra.mxu1 %v14324_v23  ;;  %12488 = vmatprep.mubr.msk.f32.mxu0 %vm13952_vm2, %v13948_v0 }
 0x2a6   : > { %12691 = vmatprep.mubr.msk.f32.mxu1 %vm13952_vm2, %v13948_v0  ;;  %6179 = vrot.lane.b32.xlu0 %v6162_v47, %s13951_s13 }
 0x2a7   : > { %12489 = vmatmul.mubr.msk.f32.vlgmr.msra.gmra.mrb[24].mxu0 %vm506_vm4, %v2152_v51  ;;  %12850 = vmatprep.subr.bf16.mxu0 %v13950_v2 }
 0x2a8   : > { %12692 = vmatmul.mubr.msk.f32.vlgmr.msra.gmra.mrb[52].mxu1 %vm506_vm4, %v14567_v10  ;;  %12937 = vmatprep.subr.bf16.mxu1 %v13950_v2 }
 0x2a9   : > { %12852 = vmatpush3.bf16.msra.mxu0 %v14303_v12  ;;  %12939 = vmatpush3.bf16.msra.mxu1 %v14324_v23 }
 0x2aa   : > { %12502 = vmatprep.mubr.msk.f32.mxu0 %vm13952_vm2, %v13948_v0  ;;  %12705 = vmatprep.mubr.msk.f32.mxu1 %vm13952_vm2, %v13948_v0 }
 0x2ab   : > { %12856 = vmatprep.subr.bf16.mxu0 %v13950_v2  ;;  %12943 = vmatprep.subr.bf16.mxu1 %v13950_v2 }
 0x2ac   : > { %12503 = vmatmul.mubr.msk.f32.vlgmr.msra.gmra.mrb[26].mxu0 %vm506_vm4, %v14508_v58  ;;  %12706 = vmatmul.mubr.msk.f32.vlgmr.msra.gmra.mrb[54].mxu1 %vm506_vm4, %v14486_v50  ;;  %v2752_v50 = vpop.permute.xlu0 %2751 }
 0x2ad   : > { %12858 = vmatpush3.bf16.msra.mxu0 %v14303_v12  ;;  %12945 = vmatpush3.bf16.msra.mxu1 %v14324_v23 }
 0x2ae   : > { %12516 = vmatprep.mubr.msk.f32.mxu0 %vm13952_vm2, %v13948_v0  ;;  %12719 = vmatprep.mubr.msk.f32.mxu1 %vm13952_vm2, %v13948_v0 }
 0x2af   : > { %12862 = vmatprep.subr.bf16.mxu0 %v13950_v2  ;;  %12949 = vmatprep.subr.bf16.mxu1 %v13950_v2 }
 0x2b0   : > { %12517 = vmatmul.mubr.msk.f32.vlgmr.msra.gmra.mrb[28].mxu0 %vm506_vm4, %v2452_v49  ;;  %12720 = vmatmul.mubr.msk.f32.vlgmr.msra.gmra.mrb[56].mxu1 %vm506_vm4, %v14576_v13 }
 0x2b1   : > { %12864 = vmatpush3.bf16.msra.mxu0 %v14303_v12  ;;  %12951 = vmatpush3.bf16.msra.mxu1 %v14324_v23 }
 0x2b2   : > { %12530 = vmatprep.mubr.msk.f32.mxu0 %vm13952_vm2, %v13948_v0  ;;  %12733 = vmatprep.mubr.msk.f32.mxu1 %vm13952_vm2, %v13948_v0 }
 0x2b3   : > { %12868 = vmatprep.subr.bf16.mxu0 %v13950_v2  ;;  %12955 = vmatprep.subr.bf16.mxu1 %v13950_v2 }
 0x2b4   : > { %12531 = vmatmul.mubr.msk.f32.vlgmr.msra.gmra.mrb[30].mxu0 %vm506_vm4, %v14516_v61  ;;  %12734 = vmatmul.mubr.msk.f32.vlgmr.msra.gmra.mrb[58].mxu1 %vm506_vm4, %v14490_v52 }
 0x2b5   : > { %12870 = vmatpush3.bf16.msra.mxu0 %v14303_v12  ;;  %12957 = vmatpush3.bf16.msra.mxu1 %v14324_v23 }
 0x2b6   : > { %12544 = vmatprep.mubr.msk.f32.mxu0 %vm13952_vm2, %v13948_v0  ;;  %12747 = vmatprep.mubr.msk.f32.mxu1 %vm13952_vm2, %v13948_v0 }
 0x2b7   : > { %12874 = vmatprep.subr.bf16.mxu0 %v13950_v2  ;;  %12961 = vmatprep.subr.bf16.mxu1 %v13950_v2 }
 0x2b8   : > { %12545 = vmatmul.mubr.msk.f32.vlgmr.msra.gmra.mrb[32].mxu0 %vm506_vm4, %v2752_v50  ;;  %12748 = vmatmul.mubr.msk.f32.vlgmr.msra.gmra.mrb[60].mxu1 %vm506_vm4, %v14584_v19 }
 0x2b9   : > { %12876 = vmatpush3.bf16.msra.mxu0 %v14303_v12  ;;  %12963 = vmatpush3.bf16.msra.mxu1 %v14324_v23 }
 0x2ba   : > { %12558 = vmatprep.mubr.msk.f32.mxu0 %vm13952_vm2, %v13948_v0  ;;  %12761 = vmatprep.mubr.msk.f32.mxu1 %vm13952_vm2, %v13948_v0 }
 0x2bb   : > { %12880 = vmatprep.subr.bf16.mxu0 %v13950_v2  ;;  %12967 = vmatprep.subr.bf16.mxu1 %v13950_v2 }
 0x2bc   : > { %12559 = vmatmul.mubr.msk.f32.vlgmr.msra.gmra.mrb[34].mxu0 %vm506_vm4, %v14372_v29  ;;  %12762 = vmatmul.mubr.msk.f32.vlgmr.msra.gmra.mrb[62].mxu1 %vm506_vm4, %v14494_v54 }
 0x2bd   : > { %12882 = vmatpush3.bf16.msra.mxu0 %v14303_v12  ;;  %12969 = vmatpush3.bf16.msra.mxu1 %v14324_v23  ;;  %v3348_v23 = vpop.permute.xlu0 %3347 }
 0x2be   : > { %12572 = vmatprep.mubr.msk.f32.mxu0 %vm13952_vm2, %v13948_v0  ;;  %12775 = vmatprep.mubr.msk.f32.mxu1 %vm13952_vm2, %v13948_v0 }
 0x2bf   : > { %12886 = vmatprep.subr.bf16.mxu0 %v13950_v2 }
 0x2c0   : > { %12573 = vmatmul.mubr.msk.f32.vlgmr.msra.gmra.mrb[36].mxu0 %vm506_vm4, %v14420_v30  ;;  %12776 = vmatmul.mubr.msk.f32.vlgmr.msra.gmra.mrb[64].mxu1 %vm506_vm4, %v14595_v37 }
 0x2c1   : > { %12888 = vmatpush3.bf16.msra.mxu0 %v14303_v12  ;;  %12586 = vmatprep.mubr.msk.f32.mxu0 %vm13952_vm2, %v13948_v0  ;;  %v3648_v29 = vpop.permute.xlu0 %3647 }
 0x2c2   : > { %12892 = vmatprep.subr.bf16.mxu0 %v13950_v2  ;;  %7258 = vmatprep.mubr.f32.mxu1 %v13948_v0 }
 0x2c4   : > { %12587 = vmatmul.mubr.msk.f32.vlgmr.msra.gmra.mrb[38].mxu0 %vm506_vm4, %v14527_v63 }
 0x2c5   : > { %12894 = vmatpush3.bf16.msra.mxu0 %v14303_v12  ;;  %12600 = vmatprep.mubr.msk.f32.mxu0 %vm13952_vm2, %v13948_v0  ;;  %v3948_v30 = vpop.permute.xlu0 %3947 }
 0x2c6   : > { %12898 = vmatprep.subr.bf16.mxu0 %v13950_v2 }
 0x2c8   : > { %12601 = vmatmul.mubr.msk.f32.vlgmr.msra.gmra.mrb[40].mxu0 %vm506_vm4, %v3348_v23 }
 0x2c9   : > { %12900 = vmatpush3.bf16.msra.mxu0 %v14303_v12  ;;  %12614 = vmatprep.mubr.msk.f32.mxu0 %vm13952_vm2, %v13948_v0  ;;  %v4248_v52 = vpop.permute.xlu0 %4247 }
 0x2ca   : > { %12904 = vmatprep.subr.bf16.mxu0 %v13950_v2 }
 0x2cc   : > { %12615 = vmatmul.mubr.msk.f32.vlgmr.msra.gmra.mrb[42].mxu0 %vm506_vm4, %v14535_v4 }
 0x2cd   : > { %12906 = vmatpush3.bf16.msra.mxu0 %v14303_v12  ;;  %12628 = vmatprep.mubr.msk.f32.mxu0 %vm13952_vm2, %v13948_v0  ;;  %v4548_v53 = vpop.permute.xlu0 %4547 }
 0x2ce   : > { %12910 = vmatprep.subr.bf16.mxu0 %v13950_v2 }
 0x2d0   : > { %12629 = vmatmul.mubr.msk.f32.vlgmr.msra.gmra.mrb[44].mxu0 %vm506_vm4, %v3648_v29 }
 0x2d1   : > { %12912 = vmatpush3.bf16.msra.mxu0 %v14303_v12  ;;  %12642 = vmatprep.mubr.msk.f32.mxu0 %vm13952_vm2, %v13948_v0  ;;  %v4848_v61 = vpop.permute.xlu0 %4847 }
 0x2d2   : > { %12916 = vmatprep.subr.bf16.mxu0 %v13950_v2 }
 0x2d4   : > { %12643 = vmatmul.mubr.msk.f32.vlgmr.msra.gmra.mrb[46].mxu0 %vm506_vm4, %v14548_v6 }
 0x2d5   : > { %12918 = vmatpush3.bf16.msra.mxu0 %v14303_v12  ;;  %12656 = vmatprep.mubr.msk.f32.mxu0 %vm13952_vm2, %v13948_v0  ;;  %v5148_v3 = vpop.permute.xlu0 %5147 }
 0x2d6   : > { %12922 = vmatprep.subr.bf16.mxu0 %v13950_v2 }
 0x2d8   : > { %12657 = vmatmul.mubr.msk.f32.vlgmr.msra.gmra.mrb[48].mxu0 %vm506_vm4, %v3948_v30 }
 0x2d9   : > { %12924 = vmatpush3.bf16.msra.mxu0 %v14303_v12  ;;  %12670 = vmatprep.mubr.msk.f32.mxu0 %vm13952_vm2, %v13948_v0 }
 0x2da   : > { %12928 = vmatprep.subr.bf16.mxu0 %v13950_v2 }
 0x2dc   : > { %12671 = vmatmul.mubr.msk.f32.vlgmr.msra.gmra.mrb[50].mxu0 %vm506_vm4, %v14561_v9 }
 0x2dd   : > { %12930 = vmatpush3.bf16.msra.mxu0 %v14303_v12  ;;  %12684 = vmatprep.mubr.msk.f32.mxu0 %vm13952_vm2, %v13948_v0 }
 0x2de   : > { %12934 = vmatprep.subr.bf16.mxu0 %v13950_v2 }
 0x2e0   : > { %12685 = vmatmul.mubr.msk.f32.vlgmr.msra.gmra.mrb[52].mxu0 %vm506_vm4, %v4248_v52 }
 0x2e1   : > { %12936 = vmatpush3.bf16.msra.mxu0 %v14303_v12  ;;  %12698 = vmatprep.mubr.msk.f32.mxu0 %vm13952_vm2, %v13948_v0 }
 0x2e2   : > { %12940 = vmatprep.subr.bf16.mxu0 %v13950_v2 }
 0x2e4   : > { %12699 = vmatmul.mubr.msk.f32.vlgmr.msra.gmra.mrb[54].mxu0 %vm506_vm4, %v14574_v11 }
 0x2e5   : > { %12942 = vmatpush3.bf16.msra.mxu0 %v14303_v12  ;;  %12712 = vmatprep.mubr.msk.f32.mxu0 %vm13952_vm2, %v13948_v0 }
 0x2e6   : > { %12946 = vmatprep.subr.bf16.mxu0 %v13950_v2 }
 0x2e8   : > { %12713 = vmatmul.mubr.msk.f32.vlgmr.msra.gmra.mrb[56].mxu0 %vm506_vm4, %v4548_v53 }
 0x2e9   : > { %12948 = vmatpush3.bf16.msra.mxu0 %v14303_v12  ;;  %12726 = vmatprep.mubr.msk.f32.mxu0 %vm13952_vm2, %v13948_v0 }
 0x2ea   : > { %12952 = vmatprep.subr.bf16.mxu0 %v13950_v2  ;;  %v945_v54 = vpop.f32.mrb[6].mxu1 }
 0x2eb   : > { %v12371_v56 = vpop.f32.mrb[7].mxu1 }
 0x2ec   : > { %12727 = vmatmul.mubr.msk.f32.vlgmr.msra.gmra.mrb[58].mxu0 %vm506_vm4, %v14587_v20 }
 0x2ed   : > { %12954 = vmatpush3.bf16.msra.mxu0 %v14303_v12  ;;  %12740 = vmatprep.mubr.msk.f32.mxu0 %vm13952_vm2, %v13948_v0 }
 0x2ee   : > { %12958 = vmatprep.subr.bf16.mxu0 %v13950_v2  ;;  %v871_v58 = vpop.f32.mrb[6].mxu0 }
 0x2ef   : > { %v946_v62 = vadd.f32 %v945_v54, %v871_v58  ;;  %v12364_v63 = vpop.f32.mrb[7].mxu0 }
 0x2f0   : > { %12741 = vmatmul.mubr.msk.f32.vlgmr.msra.gmra.mrb[60].mxu0 %vm506_vm4, %v4848_v61 }
 0x2f1   : > { %12960 = vmatpush3.bf16.msra.mxu0 %v14303_v12  ;;  %v949_v1 = vadd.f32 %v946_v62, %v14592_v21  ;;  %12754 = vmatprep.mubr.msk.f32.mxu0 %vm13952_vm2, %v13948_v0 }
 0x2f2   : > { %12964 = vmatprep.subr.bf16.mxu0 %v13950_v2 }
 0x2f3   : > { %950 = vst [vmem:[#allocation2 + $0x10] sm:$0xf] %v949_v1 }
 0x2f4   : > { %12755 = vmatmul.mubr.msk.f32.vlgmr.msra.gmra.mrb[62].mxu0 %vm506_vm4, %v14607_v25 }
 0x2f5   : > { %12966 = vmatpush3.bf16.msra.mxu0 %v14303_v12  ;;  %12768 = vmatprep.mubr.msk.f32.mxu0 %vm13952_vm2, %v13948_v0 }
 0x2f8   : > { %12769 = vmatmul.mubr.msk.f32.vlgmr.msra.gmra.mrb[64].mxu0 %vm506_vm4, %v5148_v3 }
 0x2f9   : > { %7187 = vmatprep.mubr.f32.mxu0 %v13948_v0  ;;  %v13960_v0 = vmov 1.0  }
 0x2fa   : > { %v5511_v4 = vld [vmem:[#allocation2 + $0xc] sm:$0xff]  ;;  %382 = vst [vmem:[#allocation3 + $0x404] ss:$8 sm:$0xf] %v13960_v0 }
 0x2fb   : > { %v5543_v5 = vcombine.low %v5511_v4, %v5511_v4  ;;  %5577 = vst [vmem:[#allocation3 + $0x18] sm:$0xf0] %v5511_v4  ;;  %6618 = vst [vmem:[#allocation3 + $0x308] sm:$0xf0] %v5511_v4  ;;  %5876 = vrot.lane.b32.xlu0 %v5511_v4, %s13949_s8  ;;  %5660 = vrot.lane.b32.xlu1 %v5511_v4, %s13951_s13  ;;  %v5641_v7 = vcombine.high %v5511_v4, %v5511_v4 }
 0x2fc   : > { %v14862_v2 = vpop.permute.xlu0 %5872  ;;  %383 = vst [vmem:[#allocation3 + $0x404] ss:$8 sm:$0xf0] %v13960_v0  ;;  %385 = vst [vmem:[#allocation3 + $0x444] ss:$8 sm:$0xf] %v13960_v0 }
 0x2fd   : > { %5576 = vst [vmem:[#allocation3 + $0x10] sm:$0xf0] %v5543_v5  ;;  %6617 = vst [vmem:[#allocation3 + $0x300] sm:$0xf0] %v5543_v5 }
 0x2fe   : > { %v5871_v12 = vpop.permute.xlu1 %5870  ;;  %386 = vst [vmem:[#allocation3 + $0x444] ss:$8 sm:$0xf0] %v13960_v0  ;;  %388 = vst [vmem:[#allocation3 + $0x484] ss:$8 sm:$0xf] %v13960_v0 }
 0x2ff   : > { %v5936_v6 = vsel %vm5413_vm3, %v5871_v12, %v14862_v2  ;;  %6699 = vrot.lane.b32.xlu0 %v5511_v4, %s13951_s13  ;;  %5874 = vrot.lane.b32.xlu1 %v5543_v5, %s13949_s8  ;;  %389 = vst [vmem:[#allocation3 + $0x484] ss:$8 sm:$0xf0] %v13960_v0  ;;  %391 = vst [vmem:[#allocation3 + $0x4c4] ss:$8 sm:$0xf] %v13960_v0 }
 0x300   : > { %6000 = vst [vmem:[#allocation3 + $0x100] sm:$0xf0] %v5936_v6  ;;  %392 = vst [vmem:[#allocation3 + $0x4c4] ss:$8 sm:$0xf0] %v13960_v0 }
 0x301   : > { %394 = vst [vmem:[#allocation5 + $0x900] ss:$8 sm:$0xf] %v13960_v0  ;;  %395 = vst [vmem:[#allocation5 + $0x900] ss:$8 sm:$0xf0] %v13960_v0  ;;  %v5657_v8 = vpop.permute.xlu0 %5656 }
 0x302   : > { %397 = vst [vmem:[#allocation5 + $0x940] ss:$8 sm:$0xf] %v13960_v0  ;;  %398 = vst [vmem:[#allocation5 + $0x940] ss:$8 sm:$0xf0] %v13960_v0 }
 0x303   : > { %400 = vst [vmem:[#allocation5 + $0x980] ss:$8 sm:$0xf] %v13960_v0  ;;  %401 = vst [vmem:[#allocation5 + $0x980] ss:$8 sm:$0xf0] %v13960_v0  ;;  %5662 = vrot.lane.b32.xlu0 %v5641_v7, %s13951_s13 }
 0x304   : > { %403 = vst [vmem:[#allocation5 + $0x9c0] ss:$8 sm:$0xf] %v13960_v0  ;;  %404 = vst [vmem:[#allocation5 + $0x9c0] ss:$8 sm:$0xf0] %v13960_v0  ;;  %v6392_v9 = vpop.permute.xlu1 %6391 }
 0x306   : > { %v14869_v10 = vpop.permute.xlu0 %5658 }
 0x307   : > { %v5723_v11 = vsel %vm5722_vm5, %v5657_v8, %v14869_v10  ;;  %6701 = vrot.lane.b32.xlu0 %v5641_v7, %s13951_s13 }
 0x308   : > { %5787 = vst [vmem:[#allocation3 + $0x100] sm:$0xf] %v5723_v11 }
 0x309   : > { %v14874_v13 = vpop.permute.xlu1 %5353 }
 0x30b   : > { %v5352_v15 = vpop.permute.xlu0 %5351 }
 0x30c   : > { %v5415_v17 = vsel %vm5413_vm3, %v14313_v14, %v5352_v15  ;;  %v5416_v19 = vsel %vm5413_vm3, %v5352_v15, %v14874_v13 }
 0x30d   : > { %5479 = vst [vmem:[#allocation3 + $0x8] sm:$0xf] %v5415_v17  ;;  %5480 = vst [vmem:[#allocation3 + $0x10] sm:$0xf] %v5416_v19 }
 0x30f   : > { %v14880_v20 = vpop.permute.xlu0 %6181 }
 0x314   : > { %v14882_v22 = vpop.permute.xlu0 %6393 }
 0x315   : > { %v6457_v24 = vsel %vm5413_vm3, %v6392_v9, %v14882_v22 }
 0x316   : > { %6521 = vst [vmem:[#allocation3 + $0x300] sm:$0xf] %v6457_v24 }
 0x318   : > { %v6180_v26 = vpop.permute.xlu0 %6179 }
 0x319   : > { %v6245_v27 = vsel %vm5722_vm5, %v6180_v26, %v14880_v20 }
 0x31a   : > { %6309 = vst [vmem:[#allocation3 + $0x200] sm:$0xf0] %v6245_v27 }
 0x31e   : > { %v1095_v37 = vpop.f32.mrb[8].mxu1 }
 0x31f   : > { %v12385_v14 = vpop.f32.mrb[9].mxu1 }
 0x322   : > { %v1245_v38 = vpop.f32.mrb[10].mxu1 }
 0x323   : > { %v12399_v39 = vpop.f32.mrb[11].mxu1 }
 0x326   : > { %v1395_v40 = vpop.f32.mrb[12].mxu1 }
 0x327   : > { %v12413_v41 = vpop.f32.mrb[13].mxu1 }
 0x32a   : > { %v1545_v42 = vpop.f32.mrb[14].mxu1 }
 0x32b   : > { %v12427_v43 = vpop.f32.mrb[15].mxu1 }
 0x32e   : > { %v1695_v25 = vpop.f32.mrb[16].mxu1 }
 0x32f   : > { %v12441_v44 = vpop.f32.mrb[17].mxu1 }
 0x332   : > { %v14888_v28 = vpop.f32.mrb[18].mxu1 }
 0x333   : > { %v12455_v55 = vpop.f32.mrb[19].mxu1 }
 0x336   : > { %v14890_v57 = vpop.f32.mrb[20].mxu1 }
 0x337   : > { %v12469_v45 = vpop.f32.mrb[21].mxu1 }
 0x33a   : > { %v14892_v48 = vpop.f32.mrb[22].mxu1 }
 0x33b   : > { %v12483_v59 = vpop.f32.mrb[23].mxu1 }
 0x33e   : > { %v14894_v60 = vpop.f32.mrb[24].mxu1 }
 0x33f   : > { %v12497_v46 = vpop.f32.mrb[25].mxu1 }
 0x342   : > { %v14896_v47 = vpop.f32.mrb[26].mxu1 }
 0x343   : > { %v12511_v51 = vpop.f32.mrb[27].mxu1 }
 0x346   : > { %v14898_v49 = vpop.f32.mrb[28].mxu1 }
 0x347   : > { %v12525_v50 = vpop.f32.mrb[29].mxu1 }
 0x34a   : > { %v14900_v23 = vpop.f32.mrb[30].mxu1 }
 0x34b   : > { %v12539_v29 = vpop.f32.mrb[31].mxu1 }
 0x34e   : > { %v14902_v30 = vpop.f32.mrb[32].mxu1 }
 0x34f   : > { %v12553_v52 = vpop.f32.mrb[33].mxu1 }
 0x352   : > { %v14904_v53 = vpop.f32.mrb[34].mxu1 }
 0x353   : > { %v12567_v54 = vpop.f32.mrb[35].mxu1 }
 0x356   : > { %v1021_v56 = vpop.f32.mrb[8].mxu0  ;;  %v14906_v58 = vpop.f32.mrb[36].mxu1 }
 0x357   : > { %v1096_v61 = vadd.f32 %v1095_v37, %v1021_v56  ;;  %v12378_v62 = vpop.f32.mrb[9].mxu0  ;;  %v12581_v63 = vpop.f32.mrb[37].mxu1 }
 0x359   : > { %v1099_v1 = vadd.f32 %v1096_v61, %v14592_v21 }
 0x35a   : > { %v1171_v3 = vpop.f32.mrb[10].mxu0  ;;  %v14909_v4 = vpop.f32.mrb[38].mxu1 }
 0x35b   : > { %1100 = vst [vmem:[#allocation2 + $0x14] sm:$0xf] %v1099_v1  ;;  %v1246_v5 = vadd.f32 %v1245_v38, %v1171_v3  ;;  %v12392_v12 = vpop.f32.mrb[11].mxu0  ;;  %v12595_v6 = vpop.f32.mrb[39].mxu1 }
 0x35d   : > { %v1249_v0 = vadd.f32 %v1246_v5, %v14592_v21 }
 0x35e   : > { %v1321_v7 = vpop.f32.mrb[12].mxu0  ;;  %v14912_v8 = vpop.f32.mrb[40].mxu1 }
 0x35f   : > { %1250 = vst [vmem:[#allocation2 + $0x18] sm:$0xf] %v1249_v0  ;;  %v1396_v9 = vadd.f32 %v1395_v40, %v1321_v7  ;;  %v12406_v11 = vpop.f32.mrb[13].mxu0  ;;  %v12609_v15 = vpop.f32.mrb[41].mxu1 }
 0x361   : > { %v1399_v17 = vadd.f32 %v1396_v9, %v14592_v21 }
 0x362   : > { %v6033_v19 = vld [vmem:[#allocation2 + $0x10] sm:$0xff] }
 0x363   : > { %v6065_v24 = vcombine.high %v6033_v19, %v6033_v19  ;;  %6098 = vst [vmem:[#allocation3 + $0x210] sm:$0xf] %v6033_v19  ;;  %1400 = vst [vmem:[#allocation2 + $0x1c] sm:$0xf] %v1399_v17  ;;  %v1471_v26 = vpop.f32.mrb[14].mxu0  ;;  %v14915_v27 = vpop.f32.mrb[42].mxu1  ;;  %6395 = vrot.lane.b32.xlu1 %v6033_v19, %s13949_s8  ;;  %5355 = vrot.lane.b32.xlu0 %v6033_v19, %s13949_s8  ;;  %v6163_v59 = vcombine.low %v6033_v19, %v6033_v19 }
 0x364   : > { %v1546_v37 = vadd.f32 %v1545_v42, %v1471_v26  ;;  %v12623_v14 = vpop.f32.mrb[43].mxu1  ;;  %v12420_v38 = vpop.f32.mrb[15].mxu0 }
 0x365   : > { %6099 = vst [vmem:[#allocation3 + $0x218] sm:$0xf] %v6065_v24 }
 0x366   : > { %v5512_v39 = vld [vmem:[#allocation2 + $0x14] sm:$0xff]  ;;  %v1549_v40 = vadd.f32 %v1546_v37, %v14592_v21 }
 0x367   : > { %v14920_v41 = vcombine.low %v5512_v39, %v5512_v39  ;;  %5579 = vst [vmem:[#allocation3 + $0x28] sm:$0xf0] %v5512_v39  ;;  %6620 = vst [vmem:[#allocation3 + $0x318] sm:$0xf0] %v5512_v39  ;;  %v1621_v43 = vpop.f32.mrb[16].mxu0  ;;  %6185 = vrot.lane.b32.xlu0 %v6033_v19, %s13951_s13  ;;  %5357 = vrot.lane.b32.xlu1 %v6065_v24, %s13949_s8  ;;  %v5642_v12 = vcombine.high %v5512_v39, %v5512_v39 }
 0x368   : > { %1550 = vst [vmem:[#allocation2 + $0x20] sm:$0xf] %v1549_v40  ;;  %v1696_v44 = vadd.f32 %v1695_v25, %v1621_v43  ;;  %v14924_v55 = vpop.f32.mrb[44].mxu1  ;;  %v12434_v42 = vpop.f32.mrb[17].mxu0 }
 0x369   : > { %5578 = vst [vmem:[#allocation3 + $0x20] sm:$0xf0] %v14920_v41  ;;  %6619 = vst [vmem:[#allocation3 + $0x310] sm:$0xf0] %v14920_v41  ;;  %v12637_v45 = vpop.f32.mrb[45].mxu1 }
 0x36a   : > { %v14928_v46 = vld [vmem:[#allocation2 + $0x18] sm:$0xff]  ;;  %v1699_v51 = vadd.f32 %v1696_v44, %v14592_v21 }
 0x36b   : > { %v14933_v50 = vcombine.high %v14928_v46, %v14928_v46  ;;  %6100 = vst [vmem:[#allocation3 + $0x220] sm:$0xf] %v14928_v46  ;;  %6397 = vrot.lane.b32.xlu0 %v6065_v24, %s13949_s8  ;;  %6183 = vrot.lane.b32.xlu1 %v6163_v59, %s13951_s13 }
 0x36c   : > { %1700 = vst [vmem:[#allocation2 + $0x24] sm:$0xf] %v1699_v51  ;;  %v1771_v25 = vpop.f32.mrb[18].mxu0 }
 0x36d   : > { %6101 = vst [vmem:[#allocation3 + $0x228] sm:$0xf] %v14933_v50  ;;  %v1846_v29 = vadd.f32 %v14888_v28, %v1771_v25  ;;  %v14940_v52 = vpop.f32.mrb[46].mxu1  ;;  %v12448_v54 = vpop.f32.mrb[19].mxu0 }
 0x36e   : > { %v12651_v56 = vpop.f32.mrb[47].mxu1  ;;  %v14942_v61 = vpop.permute.xlu0 %5876 }
 0x36f   : > { %v14944_v62 = vld [vmem:[#allocation2 + $0x1c] sm:$0xff]  ;;  %v1849_v63 = vadd.f32 %v1846_v29, %v14592_v21  ;;  %v5661_v1 = vpop.permute.xlu1 %5660  ;;  %5880 = vrot.lane.b32.xlu0 %v5512_v39, %s13949_s8  ;;  %5664 = vrot.lane.b32.xlu1 %v5512_v39, %s13951_s13  ;;  %v6894_v29 = vld [vmem:[#allocation3 + $0x100] sm:$0xff] }
 0x370   : > { %v14951_v3 = vcombine.low %v14944_v62, %v14944_v62  ;;  %5581 = vst [vmem:[#allocation3 + $0x38] sm:$0xf0] %v14944_v62  ;;  %6622 = vst [vmem:[#allocation3 + $0x328] sm:$0xf0] %v14944_v62  ;;  %v5724_v28 = vsel %vm5722_vm5, %v14869_v10, %v5661_v1 }
 0x371   : > { %1850 = vst [vmem:[#allocation2 + $0x28] sm:$0xf] %v1849_v63  ;;  %5788 = vst [vmem:[#allocation3 + $0x108] sm:$0xf] %v5724_v28  ;;  %v1921_v5 = vpop.f32.mrb[20].mxu0 }
 0x372   : > { %5580 = vst [vmem:[#allocation3 + $0x30] sm:$0xf0] %v14951_v3  ;;  %6621 = vst [vmem:[#allocation3 + $0x320] sm:$0xf0] %v14951_v3  ;;  %v1996_v6 = vadd.f32 %v14890_v57, %v1921_v5  ;;  %v14960_v0 = vpop.f32.mrb[48].mxu1  ;;  %v12462_v7 = vpop.f32.mrb[21].mxu0 }
 0x373   : > { %v14962_v9 = vld [vmem:[#allocation2 + $0x20] sm:$0xff]  ;;  %v12665_v11 = vpop.f32.mrb[49].mxu1  ;;  %v6700_v15 = vpop.permute.xlu0 %6699  ;;  %6703 = vrot.lane.b32.xlu1 %v5512_v39, %s13951_s13  ;;  %5666 = vrot.lane.b32.xlu0 %v5642_v12, %s13951_s13 }
 0x374   : > { %v14968_v10 = vcombine.high %v14962_v9, %v14962_v9  ;;  %6102 = vst [vmem:[#allocation3 + $0x230] sm:$0xf] %v14962_v9  ;;  %v1999_v17 = vadd.f32 %v1996_v6, %v14592_v21  ;;  %v5875_v57 = vpop.permute.xlu1 %5874 }
 0x375   : > { %v5937_v19 = vsel %vm5413_vm3, %v14862_v2, %v5875_v57  ;;  %v5938_v24 = vsel %vm5413_vm3, %v5875_v57, %v14942_v61 }
 0x376   : > { %6103 = vst [vmem:[#allocation3 + $0x238] sm:$0xf] %v14968_v10  ;;  %2000 = vst [vmem:[#allocation2 + $0x2c] sm:$0xf] %v1999_v17  ;;  %v2071_v26 = vpop.f32.mrb[22].mxu0  ;;  %v14977_v37 = vpop.f32.mrb[50].mxu1 }
 0x377   : > { %6001 = vst [vmem:[#allocation3 + $0x108] sm:$0xf0] %v5937_v19  ;;  %6002 = vst [vmem:[#allocation3 + $0x110] sm:$0xf0] %v5938_v24  ;;  %v2146_v14 = vadd.f32 %v14892_v48, %v2071_v26  ;;  %v12679_v38 = vpop.f32.mrb[51].mxu1  ;;  %v12476_v39 = vpop.f32.mrb[23].mxu0  ;;  %5878 = vrot.lane.b32.xlu1 %v14920_v41, %s13949_s8  ;;  %5359 = vrot.lane.b32.xlu0 %v14928_v46, %s13949_s8 }
 0x378   : > { %v14984_v2 = vld [vmem:[#allocation2 + $0x24] sm:$0xff]  ;;  %v14986_v40 = vpop.permute.xlu0 %5662 }
 0x379   : > { %v14990_v43 = vcombine.low %v14984_v2, %v14984_v2  ;;  %5583 = vst [vmem:[#allocation3 + $0x48] sm:$0xf0] %v14984_v2  ;;  %6624 = vst [vmem:[#allocation3 + $0x338] sm:$0xf0] %v14984_v2  ;;  %v2149_v48 = vadd.f32 %v2146_v14, %v14592_v21  ;;  %v5725_v41 = vsel %vm5722_vm5, %v5661_v1, %v14986_v40 }
 0x37a   : > { %5789 = vst [vmem:[#allocation3 + $0x110] sm:$0xf] %v5725_v41  ;;  %v2221_v44 = vpop.f32.mrb[24].mxu0  ;;  %v6165_v41 = vcombine.low %v14962_v9, %v14962_v9 }
 0x37b   : > { %5582 = vst [vmem:[#allocation3 + $0x40] sm:$0xf0] %v14990_v43  ;;  %6623 = vst [vmem:[#allocation3 + $0x330] sm:$0xf0] %v14990_v43  ;;  %v2296_v42 = vadd.f32 %v14894_v60, %v2221_v44  ;;  %v15000_v45 = vpop.f32.mrb[52].mxu1  ;;  %v12490_v59 = vpop.f32.mrb[25].mxu0  ;;  %6705 = vrot.lane.b32.xlu1 %v5642_v12, %s13951_s13  ;;  %6707 = vrot.lane.b32.xlu0 %v14944_v62, %s13951_s13 }
 0x37c   : > { %2150 = vst [vmem:[#allocation2 + $0x30] sm:$0xf] %v2149_v48  ;;  %v12693_v51 = vpop.f32.mrb[53].mxu1  ;;  %v15005_v25 = vpop.permute.xlu0 %6701  ;;  %v6863_v60 = vld [vmem:[#allocation3 + $0x8] sm:$0xff]  ;;  %v6862_v12 = vld [vmem:[#allocation3] sm:$0xff] }
 0x37d   : > { %v15007_v54 = vld [vmem:[#allocation2 + $0x28] sm:$0xff]  ;;  %v2299_v56 = vadd.f32 %v2296_v42, %v14592_v21  ;;  %v6765_v63 = vsel %vm5722_vm5, %v6700_v15, %v15005_v25  ;;  %v12972_v11 = vpack.c.bf16 %v6894_v29, %v6862_v12 }
 0x37e   : > { %v6895_v1 = vld [vmem:[#allocation3 + $0x108] sm:$0xff]  ;;  %v15014_v28 = vcombine.high %v15007_v54, %v15007_v54  ;;  %6104 = vst [vmem:[#allocation3 + $0x240] sm:$0xf] %v15007_v54  ;;  %6829 = vst [vmem:[#allocation3 + $0x400] sm:$0xf] %v6765_v63 }
 0x37f   : > { %v12970_v5 = vpack.c.bf16 %v6895_v1, %v6863_v60  ;;  %2300 = vst [vmem:[#allocation2 + $0x34] sm:$0xf] %v2299_v56  ;;  %v2371_v6 = vpop.f32.mrb[26].mxu0  ;;  %v15017_v7 = vpop.f32.mrb[54].mxu1  ;;  %6399 = vrot.lane.b32.xlu1 %v14928_v46, %s13949_s8  ;;  %5363 = vrot.lane.b32.xlu0 %v14962_v9, %s13949_s8  ;;  %v6164_v60 = vcombine.low %v14928_v46, %v14928_v46 }
 0x380   : > { %6105 = vst [vmem:[#allocation3 + $0x248] sm:$0xf] %v15014_v28  ;;  %v2446_v15 = vadd.f32 %v14896_v47, %v2371_v6  ;;  %v12707_v17 = vpop.f32.mrb[55].mxu1  ;;  %v12504_v57 = vpop.f32.mrb[27].mxu0 }
 0x381   : > { %12971 = vmatprep.subr.bf16.mxu0 %v12970_v5 }
 0x382   : > { %12973 = vmatpush1.bf16.msra.mxu0 %v12972_v11  ;;  %v2449_v24 = vadd.f32 %v2446_v15, %v14592_v21 }
 0x383   : > { %v15025_v19 = vld [vmem:[#allocation2 + $0x2c] sm:$0xff]  ;;  %v2521_v14 = vpop.f32.mrb[28].mxu0  ;;  %v15034_v38 = vpop.f32.mrb[56].mxu1  ;;  %6189 = vrot.lane.b32.xlu1 %v14928_v46, %s13951_s13  ;;  %6403 = vrot.lane.b32.xlu0 %v14962_v9, %s13949_s8 }
 0x384   : > { %v15030_v26 = vcombine.low %v15025_v19, %v15025_v19  ;;  %5585 = vst [vmem:[#allocation3 + $0x58] sm:$0xf0] %v15025_v19  ;;  %6626 = vst [vmem:[#allocation3 + $0x348] sm:$0xf0] %v15025_v19  ;;  %v2596_v47 = vadd.f32 %v14898_v49, %v2521_v14  ;;  %v12721_v39 = vpop.f32.mrb[57].mxu1  ;;  %v12518_v48 = vpop.f32.mrb[29].mxu0 }
 0x385   : > { %2450 = vst [vmem:[#allocation2 + $0x38] sm:$0xf] %v2449_v24  ;;  %v15095_v48 = vld [vmem:[#allocation12] sm:$0xf] }
 0x386   : > { %5584 = vst [vmem:[#allocation3 + $0x50] sm:$0xf0] %v15030_v26  ;;  %6625 = vst [vmem:[#allocation3 + $0x340] sm:$0xf0] %v15030_v26  ;;  %v15045_v44 = vld [vmem:[#allocation2 + $0x30] sm:$0xff]  ;;  %v2599_v42 = vadd.f32 %v2596_v47, %v14592_v21 }
 0x387   : > { %v15050_v59 = vcombine.high %v15045_v44, %v15045_v44  ;;  %6106 = vst [vmem:[#allocation3 + $0x250] sm:$0xf] %v15045_v44  ;;  %v2671_v49 = vpop.f32.mrb[30].mxu0  ;;  %v15053_v51 = vpop.f32.mrb[58].mxu1  ;;  %5361 = vrot.lane.b32.xlu1 %v14933_v50, %s13949_s8  ;;  %6191 = vrot.lane.b32.xlu0 %v6165_v41, %s13951_s13 }
 0x388   : > { %2600 = vst [vmem:[#allocation2 + $0x3c] sm:$0xf] %v2599_v42  ;;  %v2746_v29 = vadd.f32 %v14900_v23, %v2671_v49  ;;  %v12735_v56 = vpop.f32.mrb[59].mxu1  ;;  %v12532_v63 = vpop.f32.mrb[31].mxu0 }
 0x389   : > { %6107 = vst [vmem:[#allocation3 + $0x258] sm:$0xf] %v15050_v59 }
 0x38a   : > { %v2749_v1 = vadd.f32 %v2746_v29, %v14592_v21 }
 0x38b   : > { %v2821_v12 = vpop.f32.mrb[32].mxu0  ;;  %v15065_v6 = vpop.f32.mrb[60].mxu1  ;;  %6187 = vrot.lane.b32.xlu1 %v6164_v60, %s13951_s13  ;;  %6711 = vrot.lane.b32.xlu0 %v14984_v2, %s13951_s13 }
 0x38c   : > { %v15063_v5 = vld [vmem:[#allocation2 + $0x34] sm:$0xff]  ;;  %2750 = vst [vmem:[#allocation2 + $0x40] sm:$0xf] %v2749_v1  ;;  %v2896_v46 = vadd.f32 %v14902_v30, %v2821_v12  ;;  %v12749_v11 = vpop.f32.mrb[61].mxu1  ;;  %v12546_v15 = vpop.f32.mrb[33].mxu0 }
 0x38d   : > { %v15072_v23 = vcombine.low %v15063_v5, %v15063_v5  ;;  %5587 = vst [vmem:[#allocation3 + $0x68] sm:$0xf0] %v15063_v5  ;;  %6628 = vst [vmem:[#allocation3 + $0x358] sm:$0xf0] %v15063_v5 }
 0x38e   : > { %v2899_v17 = vadd.f32 %v2896_v46, %v14592_v21 }
 0x38f   : > { %5586 = vst [vmem:[#allocation3 + $0x60] sm:$0xf0] %v15072_v23  ;;  %6627 = vst [vmem:[#allocation3 + $0x350] sm:$0xf0] %v15072_v23  ;;  %v15080_v57 = vld [vmem:[#allocation2 + $0x38] sm:$0xff]  ;;  %v2971_v24 = vpop.f32.mrb[34].mxu0  ;;  %6401 = vrot.lane.b32.xlu1 %v14933_v50, %s13949_s8  ;;  %5672 = vrot.lane.b32.xlu0 %v14984_v2, %s13951_s13 }
 0x390   : > { %v15082_v14 = vpop.f32.mrb[62].mxu1  ;;  %v15090_v30 = vcombine.high %v15080_v57, %v15080_v57  ;;  %6108 = vst [vmem:[#allocation3 + $0x260] sm:$0xf] %v15080_v57  ;;  %2900 = vst [vmem:[#allocation2 + $0x44] sm:$0xf] %v2899_v17  ;;  %v3044_v21 = vadd.f32 %v14904_v53, %v2971_v24  ;;  %v12560_v39 = vpop.f32.mrb[35].mxu0 }
 0x391   : > { %v12763_v47 = vpop.f32.mrb[63].mxu1 }
 0x392   : > { %6109 = vst [vmem:[#allocation3 + $0x268] sm:$0xf] %v15090_v30  ;;  %v3047_v50 = vadd.f32 %v15095_v48, %v3044_v21  ;;  %v6685_v47 = vcombine.high %v14944_v62, %v14944_v62 }
 0x393   : > { %v15098_v41 = vld [vmem:[#allocation2 + $0x3c] sm:$0xff]  ;;  %v3119_v42 = vpop.f32.mrb[36].mxu0  ;;  %v15100_v49 = vpop.f32.mrb[64].mxu1  ;;  %5668 = vrot.lane.b32.xlu1 %v14944_v62, %s13951_s13  ;;  %5886 = vrot.lane.b32.xlu0 %v14990_v43, %s13949_s8 }
 0x394   : > { %v15108_v53 = vcombine.low %v15098_v41, %v15098_v41  ;;  %5589 = vst [vmem:[#allocation3 + $0x78] sm:$0xf0] %v15098_v41  ;;  %6630 = vst [vmem:[#allocation3 + $0x368] sm:$0xf0] %v15098_v41  ;;  %v3192_v29 = vadd.f32 %v14906_v58, %v3119_v42  ;;  %v12777_v56 = vpop.f32.mrb[65].mxu1  ;;  %v12574_v63 = vpop.f32.mrb[37].mxu0 }
 0x395   : > { %3048 = vst [vmem:[#allocation2 + $0x48] sm:$0xf] %v3047_v50 }
 0x396   : > { %5588 = vst [vmem:[#allocation3 + $0x70] sm:$0xf0] %v15108_v53  ;;  %6629 = vst [vmem:[#allocation3 + $0x360] sm:$0xf0] %v15108_v53  ;;  %v3195_v60 = vadd.f32 %v15095_v48, %v3192_v29 }
 0x397   : > { %v15116_v43 = vld [vmem:[#allocation2 + $0x40] sm:$0xff]  ;;  %v3267_v1 = vpop.f32.mrb[38].mxu0  ;;  %5884 = vrot.lane.b32.xlu1 %v14944_v62, %s13949_s8  ;;  %5367 = vrot.lane.b32.xlu0 %v15007_v54, %s13949_s8 }
 0x398   : > { %v15124_v58 = vcombine.high %v15116_v43, %v15116_v43  ;;  %6110 = vst [vmem:[#allocation3 + $0x270] sm:$0xf] %v15116_v43  ;;  %3196 = vst [vmem:[#allocation2 + $0x4c] sm:$0xf] %v3195_v60  ;;  %v3342_v12 = vadd.f32 %v14909_v4, %v3267_v1  ;;  %v12588_v46 = vpop.f32.mrb[39].mxu0 }
 0x39a   : > { %6111 = vst [vmem:[#allocation3 + $0x278] sm:$0xf] %v15124_v58  ;;  %v3345_v11 = vadd.f32 %v15095_v48, %v3342_v12 }
 0x39b   : > { %v3417_v17 = vpop.f32.mrb[40].mxu0  ;;  %5882 = vrot.lane.b32.xlu1 %v14951_v3, %s13949_s8  ;;  %6407 = vrot.lane.b32.xlu0 %v15007_v54, %s13949_s8  ;;  %v6166_v3 = vcombine.low %v15007_v54, %v15007_v54 }
 0x39c   : > { %v15130_v15 = vld [vmem:[#allocation2 + $0x44] sm:$0xff]  ;;  %3346 = vst [vmem:[#allocation2 + $0x50] sm:$0xf] %v3345_v11  ;;  %v3492_v4 = vadd.f32 %v14912_v8, %v3417_v17  ;;  %v12602_v21 = vpop.f32.mrb[41].mxu0 }
 0x39d   : > { %v15138_v24 = vcombine.low %v15130_v15, %v15130_v15  ;;  %5591 = vst [vmem:[#allocation3 + $0x88] sm:$0xf0] %v15130_v15  ;;  %6632 = vst [vmem:[#allocation3 + $0x378] sm:$0xf0] %v15130_v15 }
 0x39e   : > { %v3495_v39 = vadd.f32 %v15095_v48, %v3492_v4 }
 0x39f   : > { %5590 = vst [vmem:[#allocation3 + $0x80] sm:$0xf0] %v15138_v24  ;;  %6631 = vst [vmem:[#allocation3 + $0x370] sm:$0xf0] %v15138_v24  ;;  %v15150_v50 = vld [vmem:[#allocation2 + $0x48] sm:$0xff]  ;;  %v3567_v42 = vpop.f32.mrb[42].mxu0  ;;  %6709 = vrot.lane.b32.xlu1 %v6685_v47, %s13951_s13  ;;  %6195 = vrot.lane.b32.xlu0 %v6166_v3, %s13951_s13 }
 0x3a0   : > { %v15156_v8 = vcombine.high %v15150_v50, %v15150_v50  ;;  %6112 = vst [vmem:[#allocation3 + $0x280] sm:$0xf] %v15150_v50  ;;  %3496 = vst [vmem:[#allocation2 + $0x54] sm:$0xf] %v3495_v39  ;;  %v3642_v62 = vadd.f32 %v14915_v27, %v3567_v42  ;;  %v12616_v29 = vpop.f32.mrb[43].mxu0 }
 0x3a2   : > { %6113 = vst [vmem:[#allocation3 + $0x288] sm:$0xf] %v15156_v8  ;;  %v3645_v56 = vadd.f32 %v15095_v48, %v3642_v62 }
 0x3a3   : > { %v15162_v63 = vld [vmem:[#allocation2 + $0x4c] sm:$0xff]  ;;  %v3717_v60 = vpop.f32.mrb[44].mxu0  ;;  %5670 = vrot.lane.b32.xlu1 %v6685_v47, %s13951_s13  ;;  %5676 = vrot.lane.b32.xlu0 %v15025_v19, %s13951_s13 }
 0x3a4   : > { %v15169_v1 = vcombine.low %v15162_v63, %v15162_v63  ;;  %5593 = vst [vmem:[#allocation3 + $0x98] sm:$0xf0] %v15162_v63  ;;  %6634 = vst [vmem:[#allocation3 + $0x388] sm:$0xf0] %v15162_v63  ;;  %v3792_v27 = vadd.f32 %v14924_v55, %v3717_v60  ;;  %v12630_v12 = vpop.f32.mrb[45].mxu0 }
 0x3a5   : > { %3646 = vst [vmem:[#allocation2 + $0x58] sm:$0xf] %v3645_v56 }
 0x3a6   : > { %5592 = vst [vmem:[#allocation3 + $0x90] sm:$0xf0] %v15169_v1  ;;  %6633 = vst [vmem:[#allocation3 + $0x380] sm:$0xf0] %v15169_v1  ;;  %v3795_v46 = vadd.f32 %v15095_v48, %v3792_v27 }
 0x3a7   : > { %v15177_v11 = vld [vmem:[#allocation2 + $0x50] sm:$0xff]  ;;  %v3867_v17 = vpop.f32.mrb[46].mxu0  ;;  %6193 = vrot.lane.b32.xlu1 %v14962_v9, %s13951_s13  ;;  %6715 = vrot.lane.b32.xlu0 %v15025_v19, %s13951_s13 }
 0x3a8   : > { %v15185_v4 = vcombine.high %v15177_v11, %v15177_v11  ;;  %6114 = vst [vmem:[#allocation3 + $0x290] sm:$0xf] %v15177_v11  ;;  %3796 = vst [vmem:[#allocation2 + $0x5c] sm:$0xf] %v3795_v46  ;;  %v3942_v55 = vadd.f32 %v14940_v52, %v3867_v17  ;;  %v12644_v21 = vpop.f32.mrb[47].mxu0 }
 0x3a9   : > { %v6167_v21 = vcombine.low %v15045_v44, %v15045_v44 }
 0x3aa   : > { %6115 = vst [vmem:[#allocation3 + $0x298] sm:$0xf] %v15185_v4  ;;  %v3945_v47 = vadd.f32 %v15095_v48, %v3942_v55 }
 0x3ab   : > { %v4017_v9 = vpop.f32.mrb[48].mxu0  ;;  %5365 = vrot.lane.b32.xlu1 %v14968_v10, %s13949_s8  ;;  %5890 = vrot.lane.b32.xlu0 %v15030_v26, %s13949_s8 }
 0x3ac   : > { %v15191_v3 = vld [vmem:[#allocation2 + $0x54] sm:$0xff]  ;;  %3946 = vst [vmem:[#allocation2 + $0x60] sm:$0xf] %v3945_v47  ;;  %v4092_v52 = vadd.f32 %v14960_v0, %v4017_v9  ;;  %v12658_v42 = vpop.f32.mrb[49].mxu0 }
 0x3ad   : > { %v15199_v39 = vcombine.low %v15191_v3, %v15191_v3  ;;  %5595 = vst [vmem:[#allocation3 + $0xa8] sm:$0xf0] %v15191_v3  ;;  %6636 = vst [vmem:[#allocation3 + $0x398] sm:$0xf0] %v15191_v3 }
 0x3ae   : > { %v4095_v62 = vadd.f32 %v15095_v48, %v4092_v52 }
 0x3af   : > { %5594 = vst [vmem:[#allocation3 + $0xa0] sm:$0xf0] %v15199_v39  ;;  %6635 = vst [vmem:[#allocation3 + $0x390] sm:$0xf0] %v15199_v39  ;;  %v6042_v29 = vld [vmem:[#allocation2 + $0x58] sm:$0xff]  ;;  %v4167_v26 = vpop.f32.mrb[50].mxu0  ;;  %6405 = vrot.lane.b32.xlu1 %v14968_v10, %s13949_s8  ;;  %5371 = vrot.lane.b32.xlu0 %v15045_v44, %s13949_s8 }
 0x3b0   : > { %v6074_v56 = vcombine.high %v6042_v29, %v6042_v29  ;;  %6116 = vst [vmem:[#allocation3 + $0x2a0] sm:$0xf] %v6042_v29  ;;  %4096 = vst [vmem:[#allocation2 + $0x64] sm:$0xf] %v4095_v62  ;;  %v4242_v0 = vadd.f32 %v14977_v37, %v4167_v26  ;;  %v12672_v60 = vpop.f32.mrb[51].mxu0  ;;  %v6686_v37 = vcombine.high %v14984_v2, %v14984_v2 }
 0x3b2   : > { %6117 = vst [vmem:[#allocation3 + $0x2a8] sm:$0xf] %v6074_v56  ;;  %v4245_v27 = vadd.f32 %v15095_v48, %v4242_v0 }
 0x3b3   : > { %v5521_v12 = vld [vmem:[#allocation2 + $0x5c] sm:$0xff]  ;;  %v4317_v46 = vpop.f32.mrb[52].mxu0  ;;  %5888 = vrot.lane.b32.xlu1 %v14984_v2, %s13949_s8  ;;  %6411 = vrot.lane.b32.xlu0 %v15045_v44, %s13949_s8 }
 0x3b4   : > { %v5553_v10 = vcombine.low %v5521_v12, %v5521_v12  ;;  %5597 = vst [vmem:[#allocation3 + $0xb8] sm:$0xf0] %v5521_v12  ;;  %6638 = vst [vmem:[#allocation3 + $0x3a8] sm:$0xf0] %v5521_v12  ;;  %v4392_v17 = vadd.f32 %v15000_v45, %v4317_v46  ;;  %v12686_v55 = vpop.f32.mrb[53].mxu0 }
 0x3b5   : > { %4246 = vst [vmem:[#allocation2 + $0x68] sm:$0xf] %v4245_v27 }
 0x3b6   : > { %5596 = vst [vmem:[#allocation3 + $0xb0] sm:$0xf0] %v5553_v10  ;;  %6637 = vst [vmem:[#allocation3 + $0x3a0] sm:$0xf0] %v5553_v10  ;;  %v4395_v47 = vadd.f32 %v15095_v48, %v4392_v17 }
 0x3b7   : > { %v6043_v9 = vld [vmem:[#allocation2 + $0x60] sm:$0xff]  ;;  %v4467_v52 = vpop.f32.mrb[54].mxu0  ;;  %5674 = vrot.lane.b32.xlu1 %v6686_v37, %s13951_s13  ;;  %6199 = vrot.lane.b32.xlu0 %v6167_v21, %s13951_s13 }
 0x3b8   : > { %v6075_v42 = vcombine.high %v6043_v9, %v6043_v9  ;;  %6118 = vst [vmem:[#allocation3 + $0x2b0] sm:$0xf] %v6043_v9  ;;  %4396 = vst [vmem:[#allocation2 + $0x6c] sm:$0xf] %v4395_v47  ;;  %v4542_v45 = vadd.f32 %v15017_v7, %v4467_v52  ;;  %v12700_v62 = vpop.f32.mrb[55].mxu0 }
 0x3ba   : > { %6119 = vst [vmem:[#allocation3 + $0x2b8] sm:$0xf] %v6075_v42  ;;  %v4545_v2 = vadd.f32 %v15095_v48, %v4542_v45 }
 0x3bb   : > { %v4617_v26 = vpop.f32.mrb[56].mxu0  ;;  %6713 = vrot.lane.b32.xlu1 %v6686_v37, %s13951_s13  ;;  %6719 = vrot.lane.b32.xlu0 %v15063_v5, %s13951_s13 }
 0x3bc   : > { %v5522_v29 = vld [vmem:[#allocation2 + $0x64] sm:$0xff]  ;;  %4546 = vst [vmem:[#allocation2 + $0x70] sm:$0xf] %v4545_v2  ;;  %v4692_v0 = vadd.f32 %v15034_v38, %v4617_v26  ;;  %v12714_v60 = vpop.f32.mrb[57].mxu0 }
 0x3bd   : > { %v5554_v56 = vcombine.low %v5522_v29, %v5522_v29  ;;  %5599 = vst [vmem:[#allocation3 + $0xc8] sm:$0xf0] %v5522_v29  ;;  %6640 = vst [vmem:[#allocation3 + $0x3b8] sm:$0xf0] %v5522_v29 }
 0x3be   : > { %v4695_v7 = vadd.f32 %v15095_v48, %v4692_v0 }
 0x3bf   : > { %5598 = vst [vmem:[#allocation3 + $0xc0] sm:$0xf0] %v5554_v56  ;;  %6639 = vst [vmem:[#allocation3 + $0x3b0] sm:$0xf0] %v5554_v56  ;;  %v6044_v27 = vld [vmem:[#allocation2 + $0x68] sm:$0xff]  ;;  %v4767_v12 = vpop.f32.mrb[58].mxu0  ;;  %6197 = vrot.lane.b32.xlu1 %v15007_v54, %s13951_s13  ;;  %5680 = vrot.lane.b32.xlu0 %v15063_v5, %s13951_s13  ;;  %v6168_v56 = vcombine.low %v15080_v57, %v15080_v57 }
 0x3c0   : > { %v6076_v46 = vcombine.high %v6044_v27, %v6044_v27  ;;  %6120 = vst [vmem:[#allocation3 + $0x2c0] sm:$0xf] %v6044_v27  ;;  %4696 = vst [vmem:[#allocation2 + $0x74] sm:$0xf] %v4695_v7  ;;  %v4842_v10 = vadd.f32 %v15053_v51, %v4767_v12  ;;  %v12728_v17 = vpop.f32.mrb[59].mxu0 }
 0x3c2   : > { %6121 = vst [vmem:[#allocation3 + $0x2c8] sm:$0xf] %v6076_v46  ;;  %v4845_v38 = vadd.f32 %v15095_v48, %v4842_v10 }
 0x3c3   : > { %v5523_v55 = vld [vmem:[#allocation2 + $0x6c] sm:$0xff]  ;;  %v4917_v37 = vpop.f32.mrb[60].mxu0  ;;  %5369 = vrot.lane.b32.xlu1 %v15014_v28, %s13949_s8  ;;  %5894 = vrot.lane.b32.xlu0 %v15072_v23, %s13949_s8 }
 0x3c4   : > { %v5555_v54 = vcombine.low %v5523_v55, %v5523_v55  ;;  %5601 = vst [vmem:[#allocation3 + $0xd8] sm:$0xf0] %v5523_v55  ;;  %6642 = vst [vmem:[#allocation3 + $0x3c8] sm:$0xf0] %v5523_v55  ;;  %v4992_v21 = vadd.f32 %v15065_v6, %v4917_v37  ;;  %v12742_v47 = vpop.f32.mrb[61].mxu0 }
 0x3c5   : > { %4846 = vst [vmem:[#allocation2 + $0x78] sm:$0xf] %v4845_v38 }
 0x3c6   : > { %5600 = vst [vmem:[#allocation3 + $0xd0] sm:$0xf0] %v5555_v54  ;;  %6641 = vst [vmem:[#allocation3 + $0x3c0] sm:$0xf0] %v5555_v54  ;;  %v4995_v51 = vadd.f32 %v15095_v48, %v4992_v21 }
 0x3c7   : > { %v6045_v9 = vld [vmem:[#allocation2 + $0x70] sm:$0xff]  ;;  %v5067_v52 = vpop.f32.mrb[62].mxu0  ;;  %6409 = vrot.lane.b32.xlu1 %v15014_v28, %s13949_s8  ;;  %5375 = vrot.lane.b32.xlu0 %v15080_v57, %s13949_s8 }
 0x3c8   : > { %v6077_v23 = vcombine.high %v6045_v9, %v6045_v9  ;;  %6122 = vst [vmem:[#allocation3 + $0x2d0] sm:$0xf] %v6045_v9  ;;  %4996 = vst [vmem:[#allocation2 + $0x7c] sm:$0xf] %v4995_v51  ;;  %v5142_v42 = vadd.f32 %v15082_v14, %v5067_v52  ;;  %v12756_v45 = vpop.f32.mrb[63].mxu0  ;;  %v5645_v14 = vcombine.high %v15025_v19, %v15025_v19 }
 0x3c9   : > { %v6926_v45 = vld [vmem:[#allocation3 + $0x200] sm:$0xff] }
 0x3ca   : > { %6123 = vst [vmem:[#allocation3 + $0x2d8] sm:$0xf] %v6077_v23  ;;  %v5145_v6 = vadd.f32 %v15095_v48, %v5142_v42  ;;  %v6169_v42 = vcombine.low %v15116_v43, %v15116_v43 }
 0x3cb   : > { %v5217_v2 = vpop.f32.mrb[64].mxu0  ;;  %5892 = vrot.lane.b32.xlu1 %v15025_v19, %s13949_s8  ;;  %6415 = vrot.lane.b32.xlu0 %v15080_v57, %s13949_s8 }
 0x3cc   : > { %v5524_v62 = vld [vmem:[#allocation2 + $0x74] sm:$0xff]  ;;  %5146 = vst [vmem:[#allocation2 + $0x80] sm:$0xf] %v5145_v6  ;;  %v5292_v29 = vadd.f32 %v15100_v49, %v5217_v2  ;;  %v12770_v26 = vpop.f32.mrb[65].mxu0 }
 0x3cd   : > { %v5556_v28 = vcombine.low %v5524_v62, %v5524_v62  ;;  %5603 = vst [vmem:[#allocation3 + $0xe8] sm:$0xf0] %v5524_v62  ;;  %6644 = vst [vmem:[#allocation3 + $0x3d8] sm:$0xf0] %v5524_v62 }
 0x3ce   : > { %v5295_v0 = vadd.f32 %v15095_v48, %v5292_v29 }
 0x3cf   : > { %5602 = vst [vmem:[#allocation3 + $0xe0] sm:$0xf0] %v5556_v28  ;;  %6643 = vst [vmem:[#allocation3 + $0x3d0] sm:$0xf0] %v5556_v28  ;;  %v6046_v60 = vld [vmem:[#allocation2 + $0x78] sm:$0xff]  ;;  %6717 = vrot.lane.b32.xlu1 %v5645_v14, %s13951_s13  ;;  %6203 = vrot.lane.b32.xlu0 %v6168_v56, %s13951_s13  ;;  %v6958_v28 = vld [vmem:[#allocation3 + $0x300] sm:$0xff] }
 0x3d0   : > { %v6078_v7 = vcombine.high %v6046_v60, %v6046_v60  ;;  %6124 = vst [vmem:[#allocation3 + $0x2e0] sm:$0xf] %v6046_v60  ;;  %5296 = vst [vmem:[#allocation2 + $0x84] sm:$0xf] %v5295_v0  ;;  %v12976_v29 = vpack.c.bf16 %v6958_v28, %v6926_v45 }
 0x3d2   : > { %6125 = vst [vmem:[#allocation3 + $0x2e8] sm:$0xf] %v6078_v7 }
 0x3d3   : > { %v5525_v49 = vld [vmem:[#allocation2 + $0x7c] sm:$0xff]  ;;  %5678 = vrot.lane.b32.xlu1 %v5645_v14, %s13951_s13  ;;  %5684 = vrot.lane.b32.xlu0 %v15098_v41, %s13951_s13 }
 0x3d4   : > { %v5557_v19 = vcombine.low %v5525_v49, %v5525_v49  ;;  %5605 = vst [vmem:[#allocation3 + $0xf8] sm:$0xf0] %v5525_v49  ;;  %6646 = vst [vmem:[#allocation3 + $0x3e8] sm:$0xf0] %v5525_v49 }
 0x3d5   : > { %v6396_v27 = vpop.permute.xlu1 %6395  ;;  %v5356_v48 = vpop.permute.xlu0 %5355 }
 0x3d6   : > { %5604 = vst [vmem:[#allocation3 + $0xf0] sm:$0xf0] %v5557_v19  ;;  %6645 = vst [vmem:[#allocation3 + $0x3e0] sm:$0xf0] %v5557_v19  ;;  %v6458_v12 = vsel %vm5413_vm3, %v14882_v22, %v6396_v27  ;;  %v5417_v46 = vsel %vm5413_vm3, %v14874_v13, %v5356_v48 }
 0x3d7   : > { %v6047_v10 = vld [vmem:[#allocation2 + $0x80] sm:$0xff]  ;;  %6522 = vst [vmem:[#allocation3 + $0x308] sm:$0xf] %v6458_v12  ;;  %5481 = vst [vmem:[#allocation3 + $0x18] sm:$0xf] %v5417_v46  ;;  %6201 = vrot.lane.b32.xlu1 %v15045_v44, %s13951_s13  ;;  %6723 = vrot.lane.b32.xlu0 %v15098_v41, %s13951_s13 }
 0x3d8   : > { %v6568_v17 = vld [vmem:[#allocation2 + $0x84] sm:$0xff]  ;;  %v6079_v38 = vcombine.high %v6047_v10, %v6047_v10  ;;  %6126 = vst [vmem:[#allocation3 + $0x2f0] sm:$0xf] %v6047_v10 }
 0x3d9   : > { %v6600_v55 = vcombine.low %v6568_v17, %v6568_v17  ;;  %6648 = vst [vmem:[#allocation3 + $0x3f8] sm:$0xf0] %v6568_v17  ;;  %v15273_v37 = vpop.permute.xlu0 %6185  ;;  %v5358_v22 = vpop.permute.xlu1 %5357  ;;  %v6896_v10 = vld [vmem:[#allocation3 + $0x110] sm:$0xff] }
 0x3da   : > { %6127 = vst [vmem:[#allocation3 + $0x2f8] sm:$0xf] %v6079_v38  ;;  %v5418_v13 = vsel %vm5413_vm3, %v5356_v48, %v5358_v22  ;;  %v6990_v48 = vld [vmem:[#allocation3 + $0x400] sm:$0x1f] }
 0x3db   : > { %6647 = vst [vmem:[#allocation3 + $0x3f0] sm:$0xf0] %v6600_v55  ;;  %5482 = vst [vmem:[#allocation3 + $0x20] sm:$0xf] %v5418_v13  ;;  %5373 = vrot.lane.b32.xlu1 %v15050_v59, %s13949_s8  ;;  %5898 = vrot.lane.b32.xlu0 %v15108_v53, %s13949_s8  ;;  %v6864_v13 = vld [vmem:[#allocation3 + $0x10] sm:$0xff] }
 0x3dd   : > { %v15280_v44 = vpop.permute.xlu0 %6397  ;;  %v6184_v54 = vpop.permute.xlu1 %6183 }
 0x3de   : > { %v6459_v21 = vsel %vm5413_vm3, %v6396_v27, %v15280_v44  ;;  %v6246_v47 = vsel %vm5722_vm5, %v14880_v20, %v6184_v54  ;;  %v6247_v51 = vsel %vm5722_vm5, %v6184_v54, %v15273_v37  ;;  %v6688_v20 = vcombine.high %v15063_v5, %v15063_v5  ;;  %v6959_v2 = vld [vmem:[#allocation3 + $0x308] sm:$0xff]  ;;  %v6865_v38 = vld [vmem:[#allocation3 + $0x18] sm:$0xff] }
 0x3df   : > { %6523 = vst [vmem:[#allocation3 + $0x310] sm:$0xf] %v6459_v21  ;;  %6310 = vst [vmem:[#allocation3 + $0x208] sm:$0xf0] %v6246_v47  ;;  %6413 = vrot.lane.b32.xlu1 %v15050_v59, %s13949_s8  ;;  %5379 = vrot.lane.b32.xlu0 %v15116_v43, %s13949_s8  ;;  %v15325_v27 = vld [vmem:[#allocation14] sm:$0xff]  ;;  %v12980_v54 = vpack.c.bf16 %v6896_v10, %v6864_v13 }
 0x3e0   : > { %6311 = vst [vmem:[#allocation3 + $0x210] sm:$0xf0] %v6247_v51 }
 0x3e1   : > { %v15292_v53 = vpop.permute.xlu0 %5880  ;;  %v5665_v9 = vpop.permute.xlu1 %5664 }
 0x3e2   : > { %v5726_v52 = vsel %vm5722_vm5, %v14986_v40, %v5665_v9 }
 0x3e3   : > { %5790 = vst [vmem:[#allocation3 + $0x118] sm:$0xf] %v5726_v52  ;;  %5896 = vrot.lane.b32.xlu1 %v15063_v5, %s13949_s8  ;;  %6419 = vrot.lane.b32.xlu0 %v15116_v43, %s13949_s8 }
 0x3e5   : > { %v6704_v59 = vpop.permute.xlu1 %6703  ;;  %v15302_v23 = vpop.permute.xlu0 %5666 }
 0x3e6   : > { %v6766_v40 = vsel %vm5722_vm5, %v15005_v25, %v6704_v59  ;;  %v5727_v6 = vsel %vm5722_vm5, %v5665_v9, %v15302_v23  ;;  %v6927_v62 = vld [vmem:[#allocation3 + $0x208] sm:$0xff] }
 0x3e7   : > { %6830 = vst [vmem:[#allocation3 + $0x408] sm:$0xf] %v6766_v40  ;;  %5791 = vst [vmem:[#allocation3 + $0x120] sm:$0xf] %v5727_v6  ;;  %5682 = vrot.lane.b32.xlu1 %v6688_v20, %s13951_s13  ;;  %6207 = vrot.lane.b32.xlu0 %v6169_v42, %s13951_s13  ;;  %v12974_v5 = vpack.c.bf16 %v6959_v2, %v6927_v62  ;;  %v6170_v40 = vcombine.low %v15150_v50, %v15150_v50  ;;  %v6928_v28 = vld [vmem:[#allocation3 + $0x210] sm:$0xff] }
 0x3e9   : > { %12975 = vmatprep.subr.bf16.mxu0 %v12974_v5  ;;  %v5879_v26 = vpop.permute.xlu1 %5878  ;;  %v5360_v14 = vpop.permute.xlu0 %5359 }
 0x3ea   : > { %v5939_v25 = vsel %vm5413_vm3, %v14942_v61, %v5879_v26  ;;  %v5940_v56 = vsel %vm5413_vm3, %v5879_v26, %v15292_v53  ;;  %v5419_v0 = vsel %vm5413_vm3, %v5358_v22, %v5360_v14  ;;  %12977 = vmatpush1.bf16.msra.mxu0 %v12976_v29  ;;  %v15339_v22 = vld [vmem:[#allocation2] sm:$0xff] }
 0x3eb   : > { %6003 = vst [vmem:[#allocation3 + $0x118] sm:$0xf0] %v5939_v25  ;;  %6004 = vst [vmem:[#allocation3 + $0x120] sm:$0xf0] %v5940_v56  ;;  %6721 = vrot.lane.b32.xlu1 %v6688_v20, %s13951_s13  ;;  %6727 = vrot.lane.b32.xlu0 %v15130_v15, %s13951_s13  ;;  %v6960_v29 = vld [vmem:[#allocation3 + $0x310] sm:$0xff] }
 0x3ec   : > { %5483 = vst [vmem:[#allocation3 + $0x28] sm:$0xf] %v5419_v0  ;;  %v12984_v0 = vpack.c.bf16 %v6960_v29, %v6928_v28 }
 0x3ed   : > { %v6706_v60 = vpop.permute.xlu1 %6705  ;;  %v15320_v7 = vpop.permute.xlu0 %6707 }
 0x3ee   : > { %v6767_v61 = vsel %vm5722_vm5, %v6704_v59, %v6706_v60  ;;  %v6768_v49 = vsel %vm5722_vm5, %v6706_v60, %v15320_v7  ;;  %v6991_v19 = vld [vmem:[#allocation3 + $0x408] sm:$0x1f] }
 0x3ef   : > { %6831 = vst [vmem:[#allocation3 + $0x410] sm:$0xf] %v6767_v61  ;;  %6832 = vst [vmem:[#allocation3 + $0x418] sm:$0xf] %v6768_v49  ;;  %12035 = vmatprep.subr.msk.mxu0 %vm7026_vm6, %v6991_v19  ;;  %6205 = vrot.lane.b32.xlu1 %v15080_v57, %s13951_s13 }
 0x3f0   : > { %5688 = vrot.lane.b32.xlu0 %v15130_v15, %s13951_s13  ;;  %12036 = vmatpush1.msk.msra.mxu0 %vm7026_vm6, %v6990_v48 }
 0x3f1   : > { %12037 = vmatmul.mubr.msk.f32.vlgmr.msra.gmra.mrb[66].mxu0 %vm7022_vm7, %v15325_v27  ;;  %v6400_v12 = vpop.permute.xlu1 %6399  ;;  %v15335_v46 = vpop.permute.xlu0 %5363 }
 0x3f2   : > { %v6460_v17 = vsel %vm5413_vm3, %v15280_v44, %v6400_v12  ;;  %v6897_v55 = vld [vmem:[#allocation3 + $0x118] sm:$0xff]  ;;  %7329 = vmatprep.mubr.f32.mxu0 %v15339_v22  ;;  %v6898_v13 = vld [vmem:[#allocation3 + $0x120] sm:$0xff] }
 0x3f3   : > { %6524 = vst [vmem:[#allocation3 + $0x318] sm:$0xf] %v6460_v17  ;;  %5377 = vrot.lane.b32.xlu1 %v15090_v30, %s13949_s8  ;;  %v12978_v57 = vpack.c.bf16 %v6897_v55, %v6865_v38 }
 0x3f4   : > { %5902 = vrot.lane.b32.xlu0 %v15138_v24, %s13949_s8 }
 0x3f5   : > { %12979 = vmatprep.subr.bf16.mxu1 %v12978_v57  ;;  %v6190_v21 = vpop.permute.xlu1 %6189  ;;  %v15346_v47 = vpop.permute.xlu0 %6403 }
 0x3f6   : > { %12981 = vmatpush1.bf16.msra.mxu1 %v12980_v54  ;;  %v6992_v48 = vld [vmem:[#allocation3 + $0x410] sm:$0x1f] }
 0x3f7   : > { %6417 = vrot.lane.b32.xlu1 %v15090_v30, %s13949_s8  ;;  %v5647_v30 = vcombine.high %v15098_v41, %v15098_v41 }
 0x3f8   : > { %5383 = vrot.lane.b32.xlu0 %v15150_v50, %s13949_s8 }
 0x3f9   : > { %v5362_v44 = vpop.permute.xlu1 %5361  ;;  %v15352_v51 = vpop.permute.xlu0 %6191 }
 0x3fa   : > { %v5420_v9 = vsel %vm5413_vm3, %v5360_v14, %v5362_v44  ;;  %v5421_v24 = vsel %vm5413_vm3, %v5362_v44, %v15335_v46  ;;  %v6250_v52 = vsel %vm5722_vm5, %v6190_v21, %v15352_v51  ;;  %v6961_v25 = vld [vmem:[#allocation3 + $0x318] sm:$0xff] }
 0x3fb   : > { %5484 = vst [vmem:[#allocation3 + $0x30] sm:$0xf] %v5420_v9  ;;  %5485 = vst [vmem:[#allocation3 + $0x38] sm:$0xf] %v5421_v24  ;;  %5900 = vrot.lane.b32.xlu1 %v15098_v41, %s13949_s8 }
 0x3fc   : > { %6314 = vst [vmem:[#allocation3 + $0x228] sm:$0xf0] %v6250_v52  ;;  %6423 = vrot.lane.b32.xlu0 %v15150_v50, %s13949_s8  ;;  %v6866_v52 = vld [vmem:[#allocation3 + $0x20] sm:$0xff] }
 0x3fd   : > { %v6188_v20 = vpop.permute.xlu1 %6187  ;;  %v15365_v59 = vpop.permute.xlu0 %6711 }
 0x3fe   : > { %v6248_v42 = vsel %vm5722_vm5, %v15273_v37, %v6188_v20  ;;  %v6249_v45 = vsel %vm5722_vm5, %v6188_v20, %v6190_v21  ;;  %v6867_v21 = vld [vmem:[#allocation3 + $0x28] sm:$0xff] }
 0x3ff   : > { %6312 = vst [vmem:[#allocation3 + $0x218] sm:$0xf0] %v6248_v42  ;;  %6313 = vst [vmem:[#allocation3 + $0x220] sm:$0xf0] %v6249_v45  ;;  %6725 = vrot.lane.b32.xlu1 %v5647_v30, %s13951_s13 }
 0x400   : > { %6211 = vrot.lane.b32.xlu0 %v6170_v40, %s13951_s13 }
 0x401   : > { %v6402_v6 = vpop.permute.xlu1 %6401  ;;  %v15374_v62 = vpop.permute.xlu0 %5672 }
 0x402   : > { %v6461_v41 = vsel %vm5413_vm3, %v6400_v12, %v6402_v6  ;;  %v6462_v2 = vsel %vm5413_vm3, %v6402_v6, %v15346_v47 }
 0x403   : > { %6525 = vst [vmem:[#allocation3 + $0x320] sm:$0xf] %v6461_v41  ;;  %6526 = vst [vmem:[#allocation3 + $0x328] sm:$0xf] %v6462_v2  ;;  %5686 = vrot.lane.b32.xlu1 %v5647_v30, %s13951_s13  ;;  %v6931_v30 = vld [vmem:[#allocation3 + $0x228] sm:$0xff] }
 0x404   : > { %5692 = vrot.lane.b32.xlu0 %v15162_v63, %s13951_s13 }
 0x405   : > { %v5669_v37 = vpop.permute.xlu1 %5668  ;;  %v15382_v5 = vpop.permute.xlu0 %5886 }
 0x406   : > { %v5728_v26 = vsel %vm5722_vm5, %v15302_v23, %v5669_v37  ;;  %v6929_v14 = vld [vmem:[#allocation3 + $0x218] sm:$0xff]  ;;  %v6930_v2 = vld [vmem:[#allocation3 + $0x220] sm:$0xff] }
 0x407   : > { %5792 = vst [vmem:[#allocation3 + $0x128] sm:$0xf] %v5728_v26  ;;  %6209 = vrot.lane.b32.xlu1 %v15116_v43, %s13951_s13  ;;  %v12982_v56 = vpack.c.bf16 %v6961_v25, %v6929_v14  ;;  %v6993_v23 = vld [vmem:[#allocation3 + $0x418] sm:$0x1f]  ;;  %v6868_v14 = vld [vmem:[#allocation3 + $0x30] sm:$0xff] }
 0x408   : > { %6731 = vrot.lane.b32.xlu0 %v15162_v63, %s13951_s13  ;;  %v6869_v26 = vld [vmem:[#allocation3 + $0x38] sm:$0xff] }
 0x409   : > { %12983 = vmatprep.subr.bf16.mxu1 %v12982_v56  ;;  %v5885_v60 = vpop.permute.xlu1 %5884  ;;  %v15390_v61 = vpop.permute.xlu0 %5367 }
 0x40a   : > { %v5943_v49 = vsel %vm5413_vm3, %v5885_v60, %v15382_v5  ;;  %12985 = vmatpush1.bf16.msra.mxu1 %v12984_v0  ;;  %v6963_v9 = vld [vmem:[#allocation3 + $0x328] sm:$0xff]  ;;  %v6962_v40 = vld [vmem:[#allocation3 + $0x320] sm:$0xff] }
 0x40b   : > { %6007 = vst [vmem:[#allocation3 + $0x138] sm:$0xf0] %v5943_v49  ;;  %12038 = vmatprep.subr.msk.mxu1 %vm7026_vm6, %v6993_v23  ;;  %5381 = vrot.lane.b32.xlu1 %v15124_v58, %s13949_s8  ;;  %v12990_v45 = vpack.c.bf16 %v6963_v9, %v6931_v30 }
 0x40c   : > { %5908 = vrot.lane.b32.xlu0 %v15162_v63, %s13949_s8 }
 0x40d   : > { %v5883_v43 = vpop.permute.xlu1 %5882  ;;  %v15399_v19 = vpop.permute.xlu0 %6407 }
 0x40e   : > { %v5941_v12 = vsel %vm5413_vm3, %v15292_v53, %v5883_v43  ;;  %v5942_v10 = vsel %vm5413_vm3, %v5883_v43, %v5885_v60  ;;  %12039 = vmatpush1.msk.msra.mxu1 %vm7026_vm6, %v6992_v48  ;;  %v15416_v53 = vcombine.high %v15162_v63, %v15162_v63 }
 0x40f   : > { %6005 = vst [vmem:[#allocation3 + $0x128] sm:$0xf0] %v5941_v12  ;;  %6006 = vst [vmem:[#allocation3 + $0x130] sm:$0xf0] %v5942_v10  ;;  %12040 = vmatmul.mubr.msk.f32.vlgmr.msra.gmra.mrb[66].mxu1 %vm7022_vm7, %v15325_v27  ;;  %6421 = vrot.lane.b32.xlu1 %v15124_v58, %s13949_s8  ;;  %v6690_v58 = vcombine.high %v15130_v15, %v15130_v15 }
 0x410   : > { %5906 = vrot.lane.b32.xlu0 %v15169_v1, %s13949_s8  ;;  %7400 = vmatprep.mubr.f32.mxu1 %v15339_v22 }
 0x411   : > { %v6710_v17 = vpop.permute.xlu1 %6709  ;;  %v15412_v38 = vpop.permute.xlu0 %6195 }
 0x412   : > { %v6769_v55 = vsel %vm5722_vm5, %v15320_v7, %v6710_v17  ;;  %v6770_v57 = vsel %vm5722_vm5, %v6710_v17, %v15365_v59 }
 0x413   : > { %6833 = vst [vmem:[#allocation3 + $0x420] sm:$0xf] %v6769_v55  ;;  %6834 = vst [vmem:[#allocation3 + $0x428] sm:$0xf] %v6770_v57  ;;  %5904 = vrot.lane.b32.xlu1 %v15130_v15, %s13949_s8  ;;  %v12988_v15 = vpack.c.bf16 %v6898_v13, %v6866_v52 }
 0x414   : > { %5694 = vrot.lane.b32.xlu0 %v15416_v53, %s13951_s13 }
 0x415   : > { %v5671_v1 = vpop.permute.xlu1 %5670  ;;  %v15428_v63 = vpop.permute.xlu0 %5676 }
 0x416   : > { %v5729_v7 = vsel %vm5722_vm5, %v5669_v37, %v5671_v1  ;;  %v5730_v54 = vsel %vm5722_vm5, %v5671_v1, %v15374_v62  ;;  %v6899_v44 = vld [vmem:[#allocation3 + $0x128] sm:$0xff]  ;;  %v12992_v37 = vpack.c.bf16 %v6962_v40, %v6930_v2 }
 0x417   : > { %5793 = vst [vmem:[#allocation3 + $0x130] sm:$0xf] %v5729_v7  ;;  %5794 = vst [vmem:[#allocation3 + $0x138] sm:$0xf] %v5730_v54  ;;  %5690 = vrot.lane.b32.xlu1 %v6690_v58, %s13951_s13  ;;  %v12986_v24 = vpack.c.bf16 %v6899_v44, %v6867_v21 }
 0x418   : > { %6427 = vrot.lane.b32.xlu0 %v15177_v11, %s13949_s8 }
 0x419   : > { %12987 = vmatprep.subr.bf16.mxu0 %v12986_v24  ;;  %v6194_v20 = vpop.permute.xlu1 %6193  ;;  %v15436_v42 = vpop.permute.xlu0 %6715 }
 0x41a   : > { %v6251_v6 = vsel %vm5722_vm5, %v15352_v51, %v6194_v20  ;;  %v6252_v41 = vsel %vm5722_vm5, %v6194_v20, %v15412_v38  ;;  %12989 = vmatpush1.bf16.msra.mxu0 %v12988_v15  ;;  %v6171_v51 = vcombine.low %v15177_v11, %v15177_v11  ;;  %v6995_v0 = vld [vmem:[#allocation3 + $0x428] sm:$0x1f]  ;;  %v6994_v12 = vld [vmem:[#allocation3 + $0x420] sm:$0x1f]  ;;  %v6692_v20 = vcombine.high %v15191_v3, %v15191_v3 }
 0x41b   : > { %6315 = vst [vmem:[#allocation3 + $0x230] sm:$0xf0] %v6251_v6  ;;  %6316 = vst [vmem:[#allocation3 + $0x238] sm:$0xf0] %v6252_v41  ;;  %12991 = vmatprep.subr.bf16.mxu0 %v12990_v45  ;;  %6729 = vrot.lane.b32.xlu1 %v6690_v58, %s13951_s13 }
 0x41c   : > { %6217 = vrot.lane.b32.xlu0 %v15177_v11, %s13951_s13 }
 0x41d   : > { %v5366_v28 = vpop.permute.xlu1 %5365  ;;  %v15445_v29 = vpop.permute.xlu0 %5890 }
 0x41e   : > { %v5422_v25 = vsel %vm5413_vm3, %v15335_v46, %v5366_v28  ;;  %v5423_v56 = vsel %vm5413_vm3, %v5366_v28, %v15390_v61  ;;  %12993 = vmatpush1.bf16.msra.mxu0 %v12992_v37  ;;  %v6901_v60 = vld [vmem:[#allocation3 + $0x138] sm:$0xff]  ;;  %v6900_v49 = vld [vmem:[#allocation3 + $0x130] sm:$0xff] }
 0x41f   : > { %5486 = vst [vmem:[#allocation3 + $0x40] sm:$0xf] %v5422_v25  ;;  %5487 = vst [vmem:[#allocation3 + $0x48] sm:$0xf] %v5423_v56  ;;  %12041 = vmatprep.subr.msk.mxu0 %vm7026_vm6, %v6995_v0  ;;  %6213 = vrot.lane.b32.xlu1 %v15150_v50, %s13951_s13  ;;  %v12994_v23 = vpack.c.bf16 %v6901_v60, %v6869_v26  ;;  %v12996_v43 = vpack.c.bf16 %v6900_v49, %v6868_v14  ;;  %v6351_v0 = vld [vmem:[#allocation2 + $0x58] sm:$0xff] }
 0x420   : > { %6215 = vrot.lane.b32.xlu0 %v6171_v51, %s13951_s13  ;;  %v6385_v49 = vcombine.high %v6351_v0, %v6351_v0 }
 0x421   : > { %v6406_v48 = vpop.permute.xlu1 %6405  ;;  %12995 = vmatprep.subr.bf16.mxu1 %v12994_v23  ;;  %v15457_v46 = vpop.permute.xlu0 %5371 }
 0x422   : > { %v6463_v10 = vsel %vm5413_vm3, %v15346_v47, %v6406_v48  ;;  %v6464_v17 = vsel %vm5413_vm3, %v6406_v48, %v15399_v19  ;;  %12042 = vmatpush1.msk.msra.mxu0 %vm7026_vm6, %v6994_v12  ;;  %12997 = vmatpush1.bf16.msra.mxu1 %v12996_v43  ;;  %v6933_v13 = vld [vmem:[#allocation3 + $0x238] sm:$0xff]  ;;  %v6932_v21 = vld [vmem:[#allocation3 + $0x230] sm:$0xff]  ;;  %v6172_v43 = vcombine.low %v6351_v0, %v6351_v0 }
 0x423   : > { %6527 = vst [vmem:[#allocation3 + $0x330] sm:$0xf] %v6463_v10  ;;  %6528 = vst [vmem:[#allocation3 + $0x338] sm:$0xf] %v6464_v17  ;;  %12043 = vmatmul.mubr.msk.f32.vlgmr.msra.gmra.mrb[68].mxu0 %vm7022_vm7, %v15325_v27  ;;  %5385 = vrot.lane.b32.xlu1 %v15156_v8, %s13949_s8 }
 0x424   : > { %6429 = vrot.lane.b32.xlu0 %v15185_v4, %s13949_s8  ;;  %7471 = vmatprep.mubr.f32.mxu0 %v15339_v22 }
 0x425   : > { %v5889_v50 = vpop.permute.xlu1 %5888  ;;  %v15471_v47 = vpop.permute.xlu0 %6411 }
 0x426   : > { %v5944_v55 = vsel %vm5413_vm3, %v15382_v5, %v5889_v50  ;;  %v5945_v57 = vsel %vm5413_vm3, %v5889_v50, %v15445_v29  ;;  %v6871_v30 = vld [vmem:[#allocation3 + $0x48] sm:$0xff]  ;;  %v6870_v6 = vld [vmem:[#allocation3 + $0x40] sm:$0xff] }
 0x427   : > { %6008 = vst [vmem:[#allocation3 + $0x140] sm:$0xf0] %v5944_v55  ;;  %6009 = vst [vmem:[#allocation3 + $0x148] sm:$0xf0] %v5945_v57  ;;  %6425 = vrot.lane.b32.xlu1 %v15156_v8, %s13949_s8 }
 0x428   : > { %5389 = vrot.lane.b32.xlu0 %v15185_v4, %s13949_s8 }
 0x429   : > { %v5675_v58 = vpop.permute.xlu1 %5674  ;;  %v15481_v1 = vpop.permute.xlu0 %6199 }
 0x42a   : > { %v5731_v7 = vsel %vm5722_vm5, %v15374_v62, %v5675_v58  ;;  %v5732_v5 = vsel %vm5722_vm5, %v5675_v58, %v15428_v63  ;;  %v6965_v54 = vld [vmem:[#allocation3 + $0x338] sm:$0xff]  ;;  %v6964_v44 = vld [vmem:[#allocation3 + $0x330] sm:$0xff] }
 0x42b   : > { %5795 = vst [vmem:[#allocation3 + $0x140] sm:$0xf] %v5731_v7  ;;  %5796 = vst [vmem:[#allocation3 + $0x148] sm:$0xf] %v5732_v5  ;;  %6733 = vrot.lane.b32.xlu1 %v15416_v53, %s13951_s13  ;;  %v12998_v8 = vpack.c.bf16 %v6965_v54, %v6933_v13  ;;  %v13000_v4 = vpack.c.bf16 %v6964_v44, %v6932_v21  ;;  %v5830_v21 = vld [vmem:[#allocation2 + $0x5c] sm:$0xff] }
 0x42c   : > { %6735 = vrot.lane.b32.xlu0 %v15191_v3, %s13951_s13 }
 0x42d   : > { %v6714_v9 = vpop.permute.xlu1 %6713  ;;  %12999 = vmatprep.subr.bf16.mxu1 %v12998_v8  ;;  %v15491_v24 = vpop.permute.xlu0 %6719 }
 0x42e   : > { %v6771_v62 = vsel %vm5722_vm5, %v15365_v59, %v6714_v9  ;;  %v6772_v52 = vsel %vm5722_vm5, %v6714_v9, %v15436_v42  ;;  %13001 = vmatpush1.bf16.msra.mxu1 %v13000_v4  ;;  %v5651_v4 = vcombine.high %v5830_v21, %v5830_v21 }
 0x42f   : > { %6835 = vst [vmem:[#allocation3 + $0x430] sm:$0xf] %v6771_v62  ;;  %6836 = vst [vmem:[#allocation3 + $0x438] sm:$0xf] %v6772_v52  ;;  %5387 = vrot.lane.b32.xlu1 %v15177_v11, %s13949_s8 }
 0x430   : > { %5912 = vrot.lane.b32.xlu0 %v15191_v3, %s13949_s8 }
 0x431   : > { %v6198_v53 = vpop.permute.xlu1 %6197  ;;  %v15501_v15 = vpop.permute.xlu0 %5680 }
 0x432   : > { %v6253_v59 = vsel %vm5722_vm5, %v15412_v38, %v6198_v53  ;;  %v6254_v45 = vsel %vm5722_vm5, %v6198_v53, %v15481_v1  ;;  %v6903_v40 = vld [vmem:[#allocation3 + $0x148] sm:$0xff]  ;;  %v6902_v41 = vld [vmem:[#allocation3 + $0x140] sm:$0xff]  ;;  %v5864_v53 = vcombine.low %v5830_v21, %v5830_v21 }
 0x433   : > { %6317 = vst [vmem:[#allocation3 + $0x240] sm:$0xf0] %v6253_v59  ;;  %6318 = vst [vmem:[#allocation3 + $0x248] sm:$0xf0] %v6254_v45  ;;  %5696 = vrot.lane.b32.xlu1 %v15191_v3, %s13951_s13  ;;  %v13002_v11 = vpack.c.bf16 %v6903_v40, %v6871_v30  ;;  %v13004_v2 = vpack.c.bf16 %v6902_v41, %v6870_v6 }
 0x434   : > { %5698 = vrot.lane.b32.xlu0 %v6692_v20, %s13951_s13 }
 0x435   : > { %v5370_v37 = vpop.permute.xlu1 %5369  ;;  %13003 = vmatprep.subr.bf16.mxu0 %v13002_v11  ;;  %v15512_v28 = vpop.permute.xlu0 %5894 }
 0x436   : > { %v5424_v38 = vsel %vm5413_vm3, %v15390_v61, %v5370_v37  ;;  %v5425_v26 = vsel %vm5413_vm3, %v5370_v37, %v15457_v46  ;;  %13005 = vmatpush1.bf16.msra.mxu0 %v13004_v2  ;;  %v6997_v14 = vld [vmem:[#allocation3 + $0x438] sm:$0x1f]  ;;  %v6996_v51 = vld [vmem:[#allocation3 + $0x430] sm:$0x1f] }
 0x437   : > { %5488 = vst [vmem:[#allocation3 + $0x50] sm:$0xf] %v5424_v38  ;;  %5489 = vst [vmem:[#allocation3 + $0x58] sm:$0xf] %v5425_v26  ;;  %12044 = vmatprep.subr.msk.mxu1 %vm7026_vm6, %v6997_v14  ;;  %5910 = vrot.lane.b32.xlu1 %v15199_v39, %s13949_s8  ;;  %v6352_v14 = vld [vmem:[#allocation2 + $0x60] sm:$0xff] }
 0x438   : > { %6737 = vrot.lane.b32.xlu0 %v6692_v20, %s13951_s13  ;;  %12045 = vmatpush1.msk.msra.mxu1 %vm7026_vm6, %v6996_v51 }
 0x439   : > { %v6410_v3 = vpop.permute.xlu1 %6409  ;;  %12046 = vmatmul.mubr.msk.f32.vlgmr.msra.gmra.mrb[68].mxu1 %vm7022_vm7, %v15325_v27  ;;  %v15525_v61 = vpop.permute.xlu0 %5375 }
 0x43a   : > { %v6465_v25 = vsel %vm5413_vm3, %v15399_v19, %v6410_v3  ;;  %v6466_v56 = vsel %vm5413_vm3, %v6410_v3, %v15471_v47  ;;  %7542 = vmatprep.mubr.f32.mxu1 %v15339_v22  ;;  %v6935_v10 = vld [vmem:[#allocation3 + $0x248] sm:$0xff]  ;;  %v6934_v55 = vld [vmem:[#allocation3 + $0x240] sm:$0xff] }
 0x43b   : > { %6529 = vst [vmem:[#allocation3 + $0x340] sm:$0xf] %v6465_v25  ;;  %6530 = vst [vmem:[#allocation3 + $0x348] sm:$0xf] %v6466_v56  ;;  %6431 = vrot.lane.b32.xlu1 %v6351_v0, %s13949_s8  ;;  %v6386_v25 = vcombine.high %v6352_v14, %v6352_v14 }
 0x43c   : > { %6221 = vrot.lane.b32.xlu0 %v6351_v0, %s13951_s13 }
 0x43d   : > { %v5893_v39 = vpop.permute.xlu1 %5892  ;;  %v15534_v60 = vpop.permute.xlu0 %6415 }
 0x43e   : > { %v5946_v23 = vsel %vm5413_vm3, %v15445_v29, %v5893_v39  ;;  %v5947_v19 = vsel %vm5413_vm3, %v5893_v39, %v15512_v28  ;;  %v6872_v6 = vld [vmem:[#allocation3 + $0x50] sm:$0xff] }
 0x43f   : > { %6010 = vst [vmem:[#allocation3 + $0x150] sm:$0xf0] %v5946_v23  ;;  %6011 = vst [vmem:[#allocation3 + $0x158] sm:$0xf0] %v5947_v19  ;;  %5391 = vrot.lane.b32.xlu1 %v6351_v0, %s13949_s8  ;;  %v6173_v0 = vcombine.low %v6352_v14, %v6352_v14 }
 0x440   : > { %6433 = vrot.lane.b32.xlu0 %v6385_v49, %s13949_s8 }
 0x441   : > { %v6718_v48 = vpop.permute.xlu1 %6717  ;;  %v15542_v12 = vpop.permute.xlu0 %6203 }
 0x442   : > { %v6773_v17 = vsel %vm5722_vm5, %v15436_v42, %v6718_v48  ;;  %v6774_v29 = vsel %vm5722_vm5, %v6718_v48, %v15491_v24  ;;  %v6967_v50 = vld [vmem:[#allocation3 + $0x348] sm:$0xff]  ;;  %v6966_v57 = vld [vmem:[#allocation3 + $0x340] sm:$0xff] }
 0x443   : > { %6837 = vst [vmem:[#allocation3 + $0x440] sm:$0xf] %v6773_v17  ;;  %6838 = vst [vmem:[#allocation3 + $0x448] sm:$0xf] %v6774_v29  ;;  %6219 = vrot.lane.b32.xlu1 %v6172_v43, %s13951_s13  ;;  %v13006_v58 = vpack.c.bf16 %v6967_v50, %v6935_v10  ;;  %v13008_v13 = vpack.c.bf16 %v6966_v57, %v6934_v55 }
 0x444   : > { %5393 = vrot.lane.b32.xlu0 %v6385_v49, %s13949_s8 }
 0x445   : > { %v5679_v7 = vpop.permute.xlu1 %5678  ;;  %13007 = vmatprep.subr.bf16.mxu0 %v13006_v58  ;;  %v15550_v5 = vpop.permute.xlu0 %5684  ;;  %v6660_v58 = vld [vmem:[#allocation2 + $0x64] sm:$0xff] }
 0x446   : > { %v5733_v42 = vsel %vm5722_vm5, %v15428_v63, %v5679_v7  ;;  %v5734_v54 = vsel %vm5722_vm5, %v5679_v7, %v15501_v15  ;;  %13009 = vmatpush1.bf16.msra.mxu0 %v13008_v13 }
 0x447   : > { %5797 = vst [vmem:[#allocation3 + $0x150] sm:$0xf] %v5733_v42  ;;  %5798 = vst [vmem:[#allocation3 + $0x158] sm:$0xf] %v5734_v54  ;;  %5700 = vrot.lane.b32.xlu1 %v5830_v21, %s13951_s13  ;;  %v6694_v42 = vcombine.high %v6660_v58, %v6660_v58 }
 0x448   : > { %5916 = vrot.lane.b32.xlu0 %v5830_v21, %s13949_s8 }
 0x449   : > { %v6202_v44 = vpop.permute.xlu1 %6201  ;;  %v15558_v8 = vpop.permute.xlu0 %6723 }
 0x44a   : > { %v6255_v9 = vsel %vm5722_vm5, %v15481_v1, %v6202_v44  ;;  %v6256_v63 = vsel %vm5722_vm5, %v6202_v44, %v15542_v12  ;;  %v6999_v62 = vld [vmem:[#allocation3 + $0x448] sm:$0x1f]  ;;  %v6998_v52 = vld [vmem:[#allocation3 + $0x440] sm:$0x1f]  ;;  %v6873_v1 = vld [vmem:[#allocation3 + $0x58] sm:$0xff] }
 0x44b   : > { %6319 = vst [vmem:[#allocation3 + $0x250] sm:$0xf0] %v6255_v9  ;;  %6320 = vst [vmem:[#allocation3 + $0x258] sm:$0xf0] %v6256_v63  ;;  %12047 = vmatprep.subr.msk.mxu0 %vm7026_vm6, %v6999_v62  ;;  %6739 = vrot.lane.b32.xlu1 %v5830_v21, %s13951_s13 }
 0x44c   : > { %6741 = vrot.lane.b32.xlu0 %v5651_v4, %s13951_s13  ;;  %12048 = vmatpush1.msk.msra.mxu0 %vm7026_vm6, %v6998_v52  ;;  %v5865_v52 = vcombine.low %v6660_v58, %v6660_v58 }
 0x44d   : > { %v5374_v30 = vpop.permute.xlu1 %5373  ;;  %v15568_v20 = vpop.permute.xlu0 %5898  ;;  %12049 = vmatmul.mubr.msk.f32.vlgmr.msra.gmra.mrb[70].mxu0 %vm7022_vm7, %v15325_v27 }
 0x44e   : > { %v5426_v59 = vsel %vm5413_vm3, %v15457_v46, %v5374_v30  ;;  %v5427_v45 = vsel %vm5413_vm3, %v5374_v30, %v15525_v61  ;;  %v6905_v40 = vld [vmem:[#allocation3 + $0x158] sm:$0xff]  ;;  %v6904_v41 = vld [vmem:[#allocation3 + $0x150] sm:$0xff]  ;;  %7613 = vmatprep.mubr.f32.mxu0 %v15339_v22 }
 0x44f   : > { %5490 = vst [vmem:[#allocation3 + $0x60] sm:$0xf] %v5426_v59  ;;  %5491 = vst [vmem:[#allocation3 + $0x68] sm:$0xf] %v5427_v45  ;;  %5914 = vrot.lane.b32.xlu1 %v5864_v53, %s13949_s8  ;;  %v13010_v11 = vpack.c.bf16 %v6905_v40, %v6873_v1  ;;  %v13012_v2 = vpack.c.bf16 %v6904_v41, %v6872_v6 }
 0x450   : > { %5702 = vrot.lane.b32.xlu0 %v5651_v4, %s13951_s13 }
 0x451   : > { %v6414_v37 = vpop.permute.xlu1 %6413  ;;  %13011 = vmatprep.subr.bf16.mxu1 %v13010_v11  ;;  %v15579_v38 = vpop.permute.xlu0 %5379  ;;  %v6353_v11 = vld [vmem:[#allocation2 + $0x68] sm:$0xff] }
 0x452   : > { %v6467_v46 = vsel %vm5413_vm3, %v15471_v47, %v6414_v37  ;;  %v6468_v26 = vsel %vm5413_vm3, %v6414_v37, %v15534_v60  ;;  %13013 = vmatpush1.bf16.msra.mxu1 %v13012_v2  ;;  %v6937_v23 = vld [vmem:[#allocation3 + $0x258] sm:$0xff]  ;;  %v6936_v48 = vld [vmem:[#allocation3 + $0x250] sm:$0xff]  ;;  %v6387_v37 = vcombine.high %v6353_v11, %v6353_v11 }
 0x453   : > { %6531 = vst [vmem:[#allocation3 + $0x350] sm:$0xf] %v6467_v46  ;;  %6532 = vst [vmem:[#allocation3 + $0x358] sm:$0xf] %v6468_v26  ;;  %6435 = vrot.lane.b32.xlu1 %v6352_v14, %s13949_s8 }
 0x454   : > { %6225 = vrot.lane.b32.xlu0 %v6352_v14, %s13951_s13 }
 0x455   : > { %v5897_v51 = vpop.permute.xlu1 %5896  ;;  %v15587_v3 = vpop.permute.xlu0 %6419 }
 0x456   : > { %v5948_v56 = vsel %vm5413_vm3, %v15512_v28, %v5897_v51  ;;  %v5949_v47 = vsel %vm5413_vm3, %v5897_v51, %v15568_v20  ;;  %v6875_v7 = vld [vmem:[#allocation3 + $0x68] sm:$0xff]  ;;  %v6874_v4 = vld [vmem:[#allocation3 + $0x60] sm:$0xff] }
 0x457   : > { %6012 = vst [vmem:[#allocation3 + $0x160] sm:$0xf0] %v5948_v56  ;;  %6013 = vst [vmem:[#allocation3 + $0x168] sm:$0xf0] %v5949_v47  ;;  %5395 = vrot.lane.b32.xlu1 %v6352_v14, %s13949_s8  ;;  %v6174_v14 = vcombine.low %v6353_v11, %v6353_v11 }
 0x458   : > { %6437 = vrot.lane.b32.xlu0 %v6386_v25, %s13949_s8 }
 0x459   : > { %v5683_v39 = vpop.permute.xlu1 %5682  ;;  %v15595_v49 = vpop.permute.xlu0 %6207 }
 0x45a   : > { %v5735_v19 = vsel %vm5722_vm5, %v15501_v15, %v5683_v39  ;;  %v5736_v28 = vsel %vm5722_vm5, %v5683_v39, %v15550_v5  ;;  %v6969_v43 = vld [vmem:[#allocation3 + $0x358] sm:$0xff]  ;;  %v6968_v10 = vld [vmem:[#allocation3 + $0x350] sm:$0xff] }
 0x45b   : > { %5799 = vst [vmem:[#allocation3 + $0x160] sm:$0xf] %v5735_v19  ;;  %5800 = vst [vmem:[#allocation3 + $0x168] sm:$0xf] %v5736_v28  ;;  %6223 = vrot.lane.b32.xlu1 %v6173_v0, %s13951_s13  ;;  %v13014_v17 = vpack.c.bf16 %v6969_v43, %v6937_v23  ;;  %v13016_v29 = vpack.c.bf16 %v6968_v10, %v6936_v48 }
 0x45c   : > { %5397 = vrot.lane.b32.xlu0 %v6386_v25, %s13949_s8 }
 0x45d   : > { %v6722_v50 = vpop.permute.xlu1 %6721  ;;  %13015 = vmatprep.subr.bf16.mxu1 %v13014_v17  ;;  %v15603_v55 = vpop.permute.xlu0 %6727  ;;  %v5832_v17 = vld [vmem:[#allocation2 + $0x6c] sm:$0xff] }
 0x45e   : > { %v6775_v15 = vsel %vm5722_vm5, %v15491_v24, %v6722_v50  ;;  %v6776_v57 = vsel %vm5722_vm5, %v6722_v50, %v15558_v8  ;;  %13017 = vmatpush1.bf16.msra.mxu1 %v13016_v29  ;;  %v5653_v50 = vcombine.high %v5832_v17, %v5832_v17 }
 0x45f   : > { %6839 = vst [vmem:[#allocation3 + $0x450] sm:$0xf] %v6775_v15  ;;  %6840 = vst [vmem:[#allocation3 + $0x458] sm:$0xf] %v6776_v57  ;;  %6743 = vrot.lane.b32.xlu1 %v6660_v58, %s13951_s13 }
 0x460   : > { %5920 = vrot.lane.b32.xlu0 %v6660_v58, %s13949_s8 }
 0x461   : > { %v6206_v13 = vpop.permute.xlu1 %6205 }
 0x462   : > { %v6257_v54 = vsel %vm5722_vm5, %v15542_v12, %v6206_v13  ;;  %v6258_v24 = vsel %vm5722_vm5, %v6206_v13, %v15595_v49  ;;  %v15615_v21 = vpop.permute.xlu0 %5688  ;;  %v6907_v44 = vld [vmem:[#allocation3 + $0x168] sm:$0xff]  ;;  %v6906_v9 = vld [vmem:[#allocation3 + $0x160] sm:$0xff] }
 0x463   : > { %6321 = vst [vmem:[#allocation3 + $0x260] sm:$0xf0] %v6257_v54  ;;  %6322 = vst [vmem:[#allocation3 + $0x268] sm:$0xf0] %v6258_v24  ;;  %5704 = vrot.lane.b32.xlu1 %v6660_v58, %s13951_s13  ;;  %v13018_v63 = vpack.c.bf16 %v6907_v44, %v6875_v7  ;;  %v13020_v62 = vpack.c.bf16 %v6906_v9, %v6874_v4  ;;  %v5866_v7 = vcombine.low %v5832_v17, %v5832_v17 }
 0x464   : > { %5706 = vrot.lane.b32.xlu0 %v6694_v42, %s13951_s13 }
 0x465   : > { %v5378_v53 = vpop.permute.xlu1 %5377  ;;  %13019 = vmatprep.subr.bf16.mxu0 %v13018_v63 }
 0x466   : > { %v5428_v12 = vsel %vm5413_vm3, %v15525_v61, %v5378_v53  ;;  %v5429_v30 = vsel %vm5413_vm3, %v5378_v53, %v15579_v38  ;;  %v15623_v1 = vpop.permute.xlu0 %5902  ;;  %13021 = vmatpush1.bf16.msra.mxu0 %v13020_v62  ;;  %v7001_v59 = vld [vmem:[#allocation3 + $0x458] sm:$0x1f]  ;;  %v7000_v45 = vld [vmem:[#allocation3 + $0x450] sm:$0x1f] }
 0x467   : > { %5492 = vst [vmem:[#allocation3 + $0x70] sm:$0xf] %v5428_v12  ;;  %5493 = vst [vmem:[#allocation3 + $0x78] sm:$0xf] %v5429_v30  ;;  %12050 = vmatprep.subr.msk.mxu1 %vm7026_vm6, %v7001_v59  ;;  %5918 = vrot.lane.b32.xlu1 %v5865_v52, %s13949_s8  ;;  %v6354_v30 = vld [vmem:[#allocation2 + $0x70] sm:$0xff] }
 0x468   : > { %6745 = vrot.lane.b32.xlu0 %v6694_v42, %s13951_s13  ;;  %12051 = vmatpush1.msk.msra.mxu1 %vm7026_vm6, %v7000_v45  ;;  %v6388_v45 = vcombine.high %v6354_v30, %v6354_v30 }
 0x469   : > { %v6418_v40 = vpop.permute.xlu1 %6417  ;;  %12052 = vmatmul.mubr.msk.f32.vlgmr.msra.gmra.mrb[70].mxu1 %vm7022_vm7, %v15325_v27 }
 0x46a   : > { %v6469_v61 = vsel %vm5413_vm3, %v15534_v60, %v6418_v40  ;;  %v6470_v6 = vsel %vm5413_vm3, %v6418_v40, %v15587_v3  ;;  %v15635_v41 = vpop.permute.xlu0 %5383  ;;  %7684 = vmatprep.mubr.f32.mxu1 %v15339_v22  ;;  %v6939_v25 = vld [vmem:[#allocation3 + $0x268] sm:$0xff]  ;;  %v6938_v39 = vld [vmem:[#allocation3 + $0x260] sm:$0xff] }
 0x46b   : > { %6533 = vst [vmem:[#allocation3 + $0x360] sm:$0xf] %v6469_v61  ;;  %6534 = vst [vmem:[#allocation3 + $0x368] sm:$0xf] %v6470_v6  ;;  %6439 = vrot.lane.b32.xlu1 %v6353_v11, %s13949_s8 }
 0x46c   : > { %6229 = vrot.lane.b32.xlu0 %v6353_v11, %s13951_s13 }
 0x46d   : > { %v5901_v2 = vpop.permute.xlu1 %5900 }
 0x46e   : > { %v5950_v46 = vsel %vm5413_vm3, %v15568_v20, %v5901_v2  ;;  %v5951_v60 = vsel %vm5413_vm3, %v5901_v2, %v15623_v1  ;;  %v15644_v26 = vpop.permute.xlu0 %6423  ;;  %v6876_v9 = vld [vmem:[#allocation3 + $0x70] sm:$0xff] }
 0x46f   : > { %6014 = vst [vmem:[#allocation3 + $0x170] sm:$0xf0] %v5950_v46  ;;  %6015 = vst [vmem:[#allocation3 + $0x178] sm:$0xf0] %v5951_v60  ;;  %5399 = vrot.lane.b32.xlu1 %v6353_v11, %s13949_s8  ;;  %v6175_v11 = vcombine.low %v6354_v30, %v6354_v30 }
 0x470   : > { %6441 = vrot.lane.b32.xlu0 %v6387_v37, %s13949_s8 }
 0x471   : > { %v6726_v51 = vpop.permute.xlu1 %6725 }
 0x472   : > { %v6777_v56 = vsel %vm5722_vm5, %v15558_v8, %v6726_v51  ;;  %v6778_v20 = vsel %vm5722_vm5, %v6726_v51, %v15603_v55  ;;  %v15652_v47 = vpop.permute.xlu0 %6211  ;;  %v6971_v0 = vld [vmem:[#allocation3 + $0x368] sm:$0xff]  ;;  %v6970_v23 = vld [vmem:[#allocation3 + $0x360] sm:$0xff] }
 0x473   : > { %6841 = vst [vmem:[#allocation3 + $0x460] sm:$0xf] %v6777_v56  ;;  %6842 = vst [vmem:[#allocation3 + $0x468] sm:$0xf] %v6778_v20  ;;  %6227 = vrot.lane.b32.xlu1 %v6174_v14, %s13951_s13  ;;  %v13022_v19 = vpack.c.bf16 %v6971_v0, %v6939_v25  ;;  %v13024_v28 = vpack.c.bf16 %v6970_v23, %v6938_v39 }
 0x474   : > { %5401 = vrot.lane.b32.xlu0 %v6387_v37, %s13949_s8 }
 0x475   : > { %v5687_v43 = vpop.permute.xlu1 %5686  ;;  %13023 = vmatprep.subr.bf16.mxu0 %v13022_v19  ;;  %v6662_v19 = vld [vmem:[#allocation2 + $0x74] sm:$0xff] }
 0x476   : > { %v5737_v8 = vsel %vm5722_vm5, %v15550_v5, %v5687_v43  ;;  %v5738_v48 = vsel %vm5722_vm5, %v5687_v43, %v15615_v21  ;;  %v15660_v10 = vpop.permute.xlu0 %5692  ;;  %13025 = vmatpush1.bf16.msra.mxu0 %v13024_v28 }
 0x477   : > { %5801 = vst [vmem:[#allocation3 + $0x170] sm:$0xf] %v5737_v8  ;;  %5802 = vst [vmem:[#allocation3 + $0x178] sm:$0xf] %v5738_v48  ;;  %5708 = vrot.lane.b32.xlu1 %v5832_v17, %s13951_s13  ;;  %v6696_v8 = vcombine.high %v6662_v19, %v6662_v19 }
 0x478   : > { %5924 = vrot.lane.b32.xlu0 %v5832_v17, %s13949_s8 }
 0x479   : > { %v6210_v29 = vpop.permute.xlu1 %6209 }
 0x47a   : > { %v6259_v15 = vsel %vm5722_vm5, %v15595_v49, %v6210_v29  ;;  %v6260_v5 = vsel %vm5722_vm5, %v6210_v29, %v15652_v47  ;;  %v15668_v57 = vpop.permute.xlu0 %6731  ;;  %v7003_v58 = vld [vmem:[#allocation3 + $0x468] sm:$0x1f]  ;;  %v7002_v13 = vld [vmem:[#allocation3 + $0x460] sm:$0x1f]  ;;  %v6877_v49 = vld [vmem:[#allocation3 + $0x78] sm:$0xff] }
 0x47b   : > { %6323 = vst [vmem:[#allocation3 + $0x270] sm:$0xf0] %v6259_v15  ;;  %6324 = vst [vmem:[#allocation3 + $0x278] sm:$0xf0] %v6260_v5  ;;  %12053 = vmatprep.subr.msk.mxu0 %vm7026_vm6, %v7003_v58  ;;  %6747 = vrot.lane.b32.xlu1 %v5832_v17, %s13951_s13 }
 0x47c   : > { %6749 = vrot.lane.b32.xlu0 %v5653_v50, %s13951_s13  ;;  %12054 = vmatpush1.msk.msra.mxu0 %vm7026_vm6, %v7002_v13  ;;  %v5867_v13 = vcombine.low %v6662_v19, %v6662_v19 }
 0x47d   : > { %v5382_v42 = vpop.permute.xlu1 %5381  ;;  %12055 = vmatmul.mubr.msk.f32.vlgmr.msra.gmra.mrb[72].mxu0 %vm7022_vm7, %v15325_v27 }
 0x47e   : > { %v5430_v54 = vsel %vm5413_vm3, %v15579_v38, %v5382_v42  ;;  %v5431_v24 = vsel %vm5413_vm3, %v5382_v42, %v15635_v41  ;;  %v15680_v44 = vpop.permute.xlu0 %5908  ;;  %v6909_v4 = vld [vmem:[#allocation3 + $0x178] sm:$0xff]  ;;  %v6908_v63 = vld [vmem:[#allocation3 + $0x170] sm:$0xff]  ;;  %7755 = vmatprep.mubr.f32.mxu0 %v15339_v22 }
 0x47f   : > { %5494 = vst [vmem:[#allocation3 + $0x80] sm:$0xf] %v5430_v54  ;;  %5495 = vst [vmem:[#allocation3 + $0x88] sm:$0xf] %v5431_v24  ;;  %5922 = vrot.lane.b32.xlu1 %v5866_v7, %s13949_s8  ;;  %v13026_v62 = vpack.c.bf16 %v6909_v4, %v6877_v49  ;;  %v13028_v27 = vpack.c.bf16 %v6908_v63, %v6876_v9 }
 0x480   : > { %5710 = vrot.lane.b32.xlu0 %v5653_v50, %s13951_s13 }
 0x481   : > { %v6422_v52 = vpop.permute.xlu1 %6421  ;;  %13027 = vmatprep.subr.bf16.mxu1 %v13026_v62 }
 0x482   : > { %v6471_v38 = vsel %vm5413_vm3, %v15587_v3, %v6422_v52  ;;  %v6472_v53 = vsel %vm5413_vm3, %v6422_v52, %v15644_v26  ;;  %v5907_v12 = vpop.permute.xlu0 %5906  ;;  %13029 = vmatpush1.bf16.msra.mxu1 %v13028_v27  ;;  %v6941_v37 = vld [vmem:[#allocation3 + $0x278] sm:$0xff]  ;;  %v6940_v51 = vld [vmem:[#allocation3 + $0x270] sm:$0xff]  ;;  %v6355_v27 = vld [vmem:[#allocation2 + $0x78] sm:$0xff] }
 0x483   : > { %6535 = vst [vmem:[#allocation3 + $0x370] sm:$0xf] %v6471_v38  ;;  %6536 = vst [vmem:[#allocation3 + $0x378] sm:$0xf] %v6472_v53  ;;  %v5954_v22 = vsel %vm5413_vm3, %v5907_v12, %v15680_v44  ;;  %6443 = vrot.lane.b32.xlu1 %v6354_v30, %s13949_s8  ;;  %v15743_v52 = vld [vmem:[#allocation2] sm:$0xff]  ;;  %v6389_v53 = vcombine.high %v6355_v27, %v6355_v27 }
 0x484   : > { %6018 = vst [vmem:[#allocation3 + $0x190] sm:$0xf0] %v5954_v22  ;;  %6233 = vrot.lane.b32.xlu0 %v6354_v30, %s13951_s13  ;;  %v6176_v22 = vcombine.low %v6355_v27, %v6355_v27 }
 0x485   : > { %v5905_v59 = vpop.permute.xlu1 %5904 }
 0x486   : > { %v5952_v3 = vsel %vm5413_vm3, %v15623_v1, %v5905_v59  ;;  %v5953_v40 = vsel %vm5413_vm3, %v5905_v59, %v5907_v12  ;;  %v15696_v61 = vpop.permute.xlu0 %5694  ;;  %v6879_v43 = vld [vmem:[#allocation3 + $0x88] sm:$0xff]  ;;  %v6878_v17 = vld [vmem:[#allocation3 + $0x80] sm:$0xff] }
 0x487   : > { %6016 = vst [vmem:[#allocation3 + $0x180] sm:$0xf0] %v5952_v3  ;;  %6017 = vst [vmem:[#allocation3 + $0x188] sm:$0xf0] %v5953_v40  ;;  %v5741_v6 = vsel %vm5722_vm5, %v15660_v10, %v15696_v61  ;;  %5403 = vrot.lane.b32.xlu1 %v6354_v30, %s13949_s8 }
 0x488   : > { %5805 = vst [vmem:[#allocation3 + $0x190] sm:$0xf] %v5741_v6  ;;  %6445 = vrot.lane.b32.xlu0 %v6388_v45, %s13949_s8 }
 0x489   : > { %v5691_v2 = vpop.permute.xlu1 %5690 }
 0x48a   : > { %v5739_v1 = vsel %vm5722_vm5, %v15615_v21, %v5691_v2  ;;  %v5740_v46 = vsel %vm5722_vm5, %v5691_v2, %v15660_v10  ;;  %v6428_v60 = vpop.permute.xlu0 %6427  ;;  %v6973_v14 = vld [vmem:[#allocation3 + $0x378] sm:$0xff]  ;;  %v6972_v25 = vld [vmem:[#allocation3 + $0x370] sm:$0xff] }
 0x48b   : > { %5803 = vst [vmem:[#allocation3 + $0x180] sm:$0xf] %v5739_v1  ;;  %5804 = vst [vmem:[#allocation3 + $0x188] sm:$0xf] %v5740_v46  ;;  %6231 = vrot.lane.b32.xlu1 %v6175_v11, %s13951_s13  ;;  %v13030_v56 = vpack.c.bf16 %v6973_v14, %v6941_v37  ;;  %v13032_v20 = vpack.c.bf16 %v6972_v25, %v6940_v51  ;;  %v5834_v51 = vld [vmem:[#allocation2 + $0x7c] sm:$0xff] }
 0x48c   : > { %5405 = vrot.lane.b32.xlu0 %v6388_v45, %s13949_s8 }
 0x48d   : > { %v6730_v0 = vpop.permute.xlu1 %6729  ;;  %13031 = vmatprep.subr.bf16.mxu1 %v13030_v56 }
 0x48e   : > { %v6779_v21 = vsel %vm5722_vm5, %v15603_v55, %v6730_v0  ;;  %v6780_v39 = vsel %vm5722_vm5, %v6730_v0, %v15668_v57  ;;  %v15713_v23 = vpop.permute.xlu0 %6217  ;;  %13033 = vmatpush1.bf16.msra.mxu1 %v13032_v20 }
 0x48f   : > { %6843 = vst [vmem:[#allocation3 + $0x470] sm:$0xf] %v6779_v21  ;;  %6844 = vst [vmem:[#allocation3 + $0x478] sm:$0xf] %v6780_v39  ;;  %6751 = vrot.lane.b32.xlu1 %v6662_v19, %s13951_s13  ;;  %v5655_v21 = vcombine.high %v5834_v51, %v5834_v51 }
 0x490   : > { %5928 = vrot.lane.b32.xlu0 %v6662_v19, %s13949_s8 }
 0x491   : > { %v6214_v28 = vpop.permute.xlu1 %6213 }
 0x492   : > { %v6261_v48 = vsel %vm5722_vm5, %v15652_v47, %v6214_v28  ;;  %v6216_v55 = vpop.permute.xlu0 %6215  ;;  %v6911_v10 = vld [vmem:[#allocation3 + $0x188] sm:$0xff]  ;;  %v6910_v29 = vld [vmem:[#allocation3 + $0x180] sm:$0xff] }
 0x493   : > { %6325 = vst [vmem:[#allocation3 + $0x280] sm:$0xf0] %v6261_v48  ;;  %v6262_v50 = vsel %vm5722_vm5, %v6214_v28, %v6216_v55  ;;  %v6263_v15 = vsel %vm5722_vm5, %v6216_v55, %v15713_v23  ;;  %5712 = vrot.lane.b32.xlu1 %v6662_v19, %s13951_s13  ;;  %v13034_v5 = vpack.c.bf16 %v6911_v10, %v6879_v43  ;;  %v5313_v48 = vld [vmem:[#allocation2 + $0x80] sm:$0xf] }
 0x494   : > { %v13036_v58 = vpack.c.bf16 %v6910_v29, %v6878_v17  ;;  %6326 = vst [vmem:[#allocation3 + $0x288] sm:$0xf0] %v6262_v50  ;;  %6327 = vst [vmem:[#allocation3 + $0x290] sm:$0xf0] %v6263_v15  ;;  %5714 = vrot.lane.b32.xlu0 %v6696_v8, %s13951_s13  ;;  %v5868_v55 = vcombine.low %v5834_v51, %v5834_v51 }
 0x495   : > { %v5386_v47 = vpop.permute.xlu1 %5385  ;;  %13035 = vmatprep.subr.bf16.mxu0 %v13034_v5 }
 0x496   : > { %v5432_v7 = vsel %vm5413_vm3, %v15635_v41, %v5386_v47  ;;  %v15726_v42 = vpop.permute.xlu0 %6429  ;;  %13037 = vmatpush1.bf16.msra.mxu0 %v13036_v58  ;;  %v7005_v49 = vld [vmem:[#allocation3 + $0x478] sm:$0x1f]  ;;  %v7004_v54 = vld [vmem:[#allocation3 + $0x470] sm:$0x1f]  ;;  %v15734_v41 = vld [vmem:[#allocation14] sm:$0xff] }
 0x497   : > { %5496 = vst [vmem:[#allocation3 + $0x90] sm:$0xf] %v5432_v7  ;;  %v6475_v24 = vsel %vm5413_vm3, %v6428_v60, %v15726_v42  ;;  %12056 = vmatprep.subr.msk.mxu1 %vm7026_vm6, %v7005_v49  ;;  %5926 = vrot.lane.b32.xlu1 %v5867_v13, %s13949_s8  ;;  %v6143_v13 = vld [vmem:[#allocation2 + $0x80] sm:$0xff] }
 0x498   : > { %6539 = vst [vmem:[#allocation3 + $0x390] sm:$0xf] %v6475_v24  ;;  %6753 = vrot.lane.b32.xlu0 %v6696_v8, %s13951_s13  ;;  %12057 = vmatpush1.msk.msra.mxu1 %vm7026_vm6, %v7004_v54  ;;  %v6912_v7 = vld [vmem:[#allocation3 + $0x190] sm:$0xff] }
 0x499   : > { %v6426_v4 = vpop.permute.xlu1 %6425  ;;  %12058 = vmatmul.mubr.msk.f32.vlgmr.msra.gmra.mrb[72].mxu1 %vm7022_vm7, %v15734_v41 }
 0x49a   : > { %v6473_v9 = vsel %vm5413_vm3, %v15644_v26, %v6426_v4  ;;  %v6474_v63 = vsel %vm5413_vm3, %v6426_v4, %v6428_v60  ;;  %v15741_v62 = vpop.permute.xlu0 %5389  ;;  %7826 = vmatprep.mubr.f32.mxu1 %v15743_v52  ;;  %v6942_v45 = vld [vmem:[#allocation3 + $0x280] sm:$0xff] }
 0x49b   : > { %6537 = vst [vmem:[#allocation3 + $0x380] sm:$0xf] %v6473_v9  ;;  %6538 = vst [vmem:[#allocation3 + $0x388] sm:$0xf] %v6474_v63  ;;  %6447 = vrot.lane.b32.xlu1 %v6355_v27, %s13949_s8  ;;  %v6390_v9 = vcombine.high %v6143_v13, %v6143_v13 }
 0x49c   : > { %6237 = vrot.lane.b32.xlu0 %v6355_v27, %s13951_s13 }
 0x49d   : > { %v6734_v38 = vpop.permute.xlu1 %6733 }
 0x49e   : > { %v6781_v26 = vsel %vm5722_vm5, %v15668_v57, %v6734_v38  ;;  %v6736_v12 = vpop.permute.xlu0 %6735  ;;  %v6943_v57 = vld [vmem:[#allocation3 + $0x288] sm:$0xff]  ;;  %v6880_v17 = vld [vmem:[#allocation3 + $0x90] sm:$0xff] }
 0x49f   : > { %6845 = vst [vmem:[#allocation3 + $0x480] sm:$0xf] %v6781_v26  ;;  %v6782_v30 = vsel %vm5722_vm5, %v6734_v38, %v6736_v12  ;;  %5407 = vrot.lane.b32.xlu1 %v6355_v27, %s13949_s8  ;;  %v8299_v27 = vlaneseq }
 0x4a0   : > { %6846 = vst [vmem:[#allocation3 + $0x488] sm:$0xf] %v6782_v30  ;;  %6449 = vrot.lane.b32.xlu0 %v6389_v53, %s13949_s8 }
 0x4a1   : > { %v5388_v59 = vpop.permute.xlu1 %5387 }
 0x4a2   : > { %v5433_v3 = vsel %vm5413_vm3, %v5386_v47, %v5388_v59  ;;  %v5434_v40 = vsel %vm5413_vm3, %v5388_v59, %v15741_v62  ;;  %v15756_v6 = vpop.permute.xlu0 %5912  ;;  %v6975_v11 = vld [vmem:[#allocation3 + $0x388] sm:$0xff]  ;;  %v6974_v2 = vld [vmem:[#allocation3 + $0x380] sm:$0xff] }
 0x4a3   : > { %5497 = vst [vmem:[#allocation3 + $0x98] sm:$0xf] %v5433_v3  ;;  %5498 = vst [vmem:[#allocation3 + $0xa0] sm:$0xf] %v5434_v40  ;;  %6235 = vrot.lane.b32.xlu1 %v6176_v22, %s13951_s13  ;;  %v13038_v37 = vpack.c.bf16 %v6975_v11, %v6943_v57  ;;  %v13040_v1 = vpack.c.bf16 %v6974_v2, %v6942_v45  ;;  %v6976_v22 = vld [vmem:[#allocation3 + $0x390] sm:$0xff] }
 0x4a4   : > { %5409 = vrot.lane.b32.xlu0 %v6389_v53, %s13949_s8  ;;  %v5622_v3 = vld [vmem:[#allocation2 + $0x84] sm:$0xf] }
 0x4a5   : > { %13039 = vmatprep.subr.bf16.mxu0 %v13038_v37  ;;  %v5697_v46 = vpop.permute.xlu1 %5696  ;;  %v6944_v37 = vld [vmem:[#allocation3 + $0x290] sm:$0xff] }
 0x4a6   : > { %v5742_v60 = vsel %vm5722_vm5, %v15696_v61, %v5697_v46  ;;  %v15762_v14 = vpop.permute.xlu0 %5698  ;;  %13041 = vmatpush1.bf16.msra.mxu0 %v13040_v1  ;;  %v7006_v0 = vld [vmem:[#allocation3 + $0x480] sm:$0x1f] }
 0x4a7   : > { %5806 = vst [vmem:[#allocation3 + $0x198] sm:$0xf] %v5742_v60  ;;  %v5743_v25 = vsel %vm5722_vm5, %v5697_v46, %v15762_v14  ;;  %v7007_v56 = vld [vmem:[#allocation3 + $0x488] sm:$0x1f]  ;;  %5716 = vrot.lane.b32.xlu1 %v5834_v51, %s13951_s13  ;;  %v13048_v46 = vpack.c.bf16 %v6976_v22, %v6944_v37 }
 0x4a8   : > { %5807 = vst [vmem:[#allocation3 + $0x1a0] sm:$0xf] %v5743_v25  ;;  %12059 = vmatprep.subr.msk.mxu0 %vm7026_vm6, %v7007_v56  ;;  %5932 = vrot.lane.b32.xlu0 %v5834_v51, %s13949_s8  ;;  %v15821_v60 = vld [vmem:[#allocation15] sm:$0xff] }
 0x4a9   : > { %v5911_v20 = vpop.permute.xlu1 %5910 }
 0x4aa   : > { %v5955_v61 = vsel %vm5413_vm3, %v15680_v44, %v5911_v20  ;;  %v5956_v39 = vsel %vm5413_vm3, %v5911_v20, %v15756_v6  ;;  %v6738_v19 = vpop.permute.xlu0 %6737  ;;  %12060 = vmatpush1.msk.msra.mxu0 %vm7026_vm6, %v7006_v0  ;;  %v6881_v15 = vld [vmem:[#allocation3 + $0x98] sm:$0xff] }
 0x4ab   : > { %6019 = vst [vmem:[#allocation3 + $0x198] sm:$0xf0] %v5955_v61  ;;  %6020 = vst [vmem:[#allocation3 + $0x1a0] sm:$0xf0] %v5956_v39  ;;  %v6783_v28 = vsel %vm5722_vm5, %v6736_v12, %v6738_v19  ;;  %6755 = vrot.lane.b32.xlu1 %v5834_v51, %s13951_s13  ;;  %12061 = vmatmul.mubr.msk.f32.vlgmr.msra.gmra.mrb[74].mxu0 %vm7022_vm7, %v15734_v41  ;;  %v15809_v12 = vshrl.u32 %v8299_v27, 7  ;;  %v6177_v51 = vcombine.low %v6143_v13, %v6143_v13 }
 0x4ac   : > { %6847 = vst [vmem:[#allocation3 + $0x490] sm:$0xf] %v6783_v28  ;;  %6757 = vrot.lane.b32.xlu0 %v5655_v21, %s13951_s13  ;;  %7897 = vmatprep.mubr.f32.mxu0 %v15743_v52 }
 0x4ad   : > { %v6432_v44 = vpop.permute.xlu1 %6431  ;;  %v15819_v1 = vsub.s32 0, %v15809_v12 }
 0x4ae   : > { %v6476_v43 = vsel %vm5413_vm3, %v15726_v42, %v6432_v44  ;;  %v15782_v8 = vpop.permute.xlu0 %6221  ;;  %v13044_v42 = vpack.c.bf16 %v6912_v7, %v6880_v17 }
 0x4af   : > { %6540 = vst [vmem:[#allocation3 + $0x398] sm:$0xf] %v6476_v43  ;;  %5411 = vrot.lane.b32.xlu1 %v5313_v48, %s13949_s8  ;;  %v8302_v61 = vrot.slane %v15821_v60, %v15819_v1 }
 0x4b0   : > { %5718 = vrot.lane.b32.xlu0 %v5655_v21, %s13951_s13 }
 0x4b1   : > { %v5392_v10 = vpop.permute.xlu1 %5391 }
 0x4b2   : > { %v15786_v29 = vpop.permute.xlu0 %6433  ;;  %v5435_v50 = vsel %vm5413_vm3, %v15741_v62, %v5392_v10  ;;  %v6913_v5 = vld [vmem:[#allocation3 + $0x198] sm:$0xff] }
 0x4b3   : > { %v6477_v58 = vsel %vm5413_vm3, %v6432_v44, %v15786_v29  ;;  %5499 = vst [vmem:[#allocation3 + $0xa8] sm:$0xf] %v5435_v50  ;;  %5930 = vrot.lane.b32.xlu1 %v5868_v55, %s13949_s8  ;;  %v13042_v47 = vpack.c.bf16 %v6913_v5, %v6881_v15  ;;  %v6664_v62 = vld [vmem:[#allocation2 + $0x84] sm:$0xff] }
 0x4b4   : > { %6541 = vst [vmem:[#allocation3 + $0x3a0] sm:$0xf] %v6477_v58  ;;  %6241 = vrot.lane.b32.xlu0 %v6143_v13, %s13951_s13  ;;  %v6698_v26 = vcombine.high %v6664_v62, %v6664_v62  ;;  %v13650_v44 = vld [vmem:[#allocation2 + $0x84] ss:$0 sps:$4 sm:$0xff]   ;;  %v6914_v58 = vld [vmem:[#allocation3 + $0x1a0] sm:$0xff] }
 0x4b5   : > { %13043 = vmatprep.subr.bf16.mxu1 %v13042_v47  ;;  %v6220_v49 = vpop.permute.xlu1 %6219  ;;  %v7008_v15 = vld [vmem:[#allocation3 + $0x490] sm:$0x1f] }
 0x4b6   : > { %v6264_v54 = vsel %vm5722_vm5, %v15713_v23, %v6220_v49  ;;  %v6265_v24 = vsel %vm5722_vm5, %v6220_v49, %v15782_v8  ;;  %v15798_v4 = vpop.permute.xlu0 %5393  ;;  %13045 = vmatpush1.bf16.msra.mxu1 %v13044_v42  ;;  %v6977_v57 = vld [vmem:[#allocation3 + $0x398] sm:$0xff] }
 0x4b7   : > { %6328 = vst [vmem:[#allocation3 + $0x298] sm:$0xf0] %v6264_v54  ;;  %6329 = vst [vmem:[#allocation3 + $0x2a0] sm:$0xf0] %v6265_v24  ;;  %v5436_v63 = vsel %vm5413_vm3, %v5392_v10, %v15798_v4  ;;  %6451 = vrot.lane.b32.xlu1 %v6143_v13, %s13949_s8  ;;  %v6882_v24 = vld [vmem:[#allocation3 + $0xa0] sm:$0xff] }
 0x4b8   : > { %5500 = vst [vmem:[#allocation3 + $0xb0] sm:$0xf] %v5436_v63  ;;  %6453 = vrot.lane.b32.xlu0 %v6390_v9, %s13949_s8 }
 0x4b9   : > { %v5701_v23 = vpop.permute.xlu1 %5700 }
 0x4ba   : > { %v15804_v38 = vpop.permute.xlu0 %5916  ;;  %v5744_v53 = vsel %vm5722_vm5, %v15762_v14, %v5701_v23  ;;  %v15824_v14 = vsub.s32 1, %v15809_v12  ;;  %v6883_v7 = vld [vmem:[#allocation3 + $0xa8] sm:$0xff] }
 0x4bb   : > { %5808 = vst [vmem:[#allocation3 + $0x1a8] sm:$0xf] %v5744_v53  ;;  %6759 = vrot.lane.b32.xlu1 %v6664_v62, %s13951_s13 }
 0x4bc   : > { %6761 = vrot.lane.b32.xlu0 %v6698_v26, %s13951_s13 }
 0x4bd   : > { %v6740_v30 = vpop.permute.xlu1 %6739 }
 0x4be   : > { %v15812_v59 = vpop.permute.xlu0 %6741  ;;  %v6784_v45 = vsel %vm5722_vm5, %v6738_v19, %v6740_v30  ;;  %v6945_v40 = vld [vmem:[#allocation3 + $0x298] sm:$0xff]  ;;  %v6946_v22 = vld [vmem:[#allocation3 + $0x2a0] sm:$0xff] }
 0x4bf   : > { %v6785_v11 = vsel %vm5722_vm5, %v6740_v30, %v15812_v59  ;;  %6848 = vst [vmem:[#allocation3 + $0x498] sm:$0xf] %v6784_v45  ;;  %5720 = vrot.lane.b32.xlu1 %v5622_v3, %s13951_s13  ;;  %v13046_v2 = vpack.c.bf16 %v6977_v57, %v6945_v40 }
 0x4c0   : > { %6849 = vst [vmem:[#allocation3 + $0x4a0] sm:$0xf] %v6785_v11 }
 0x4c1   : > { %13047 = vmatprep.subr.bf16.mxu1 %v13046_v2  ;;  %v5915_v25 = vpop.permute.xlu1 %5914  ;;  %v6978_v2 = vld [vmem:[#allocation3 + $0x3a0] sm:$0xff] }
 0x4c2   : > { %v5957_v56 = vsel %vm5413_vm3, %v15756_v6, %v5915_v25  ;;  %v5958_v20 = vsel %vm5413_vm3, %v5915_v25, %v15804_v38  ;;  %v15830_v0 = vpop.permute.xlu0 %5702  ;;  %13049 = vmatpush1.bf16.msra.mxu1 %v13048_v46  ;;  %v8306_v6 = vrot.slane %v15821_v60, %v15824_v14  ;;  %v13056_v37 = vpack.c.bf16 %v6978_v2, %v6946_v22 }
 0x4c3   : > { %6021 = vst [vmem:[#allocation3 + $0x1a8] sm:$0xf0] %v5957_v56  ;;  %6022 = vst [vmem:[#allocation3 + $0x1b0] sm:$0xf0] %v5958_v20  ;;  %v5745_v21 = vsel %vm5722_vm5, %v5701_v23, %v15830_v0  ;;  %6239 = vrot.lane.b32.xlu1 %v6177_v51, %s13951_s13 }
 0x4c4   : > { %5809 = vst [vmem:[#allocation3 + $0x1b0] sm:$0xf] %v5745_v21  ;;  %v7189_v39 = vpop.f32.mrb[66].mxu0 }
 0x4c5   : > { %v8259_v19 = vmax.f32 %v7189_v39, 0.0  ;;  %v6436_v28 = vpop.permute.xlu1 %6435  ;;  %v7191_v43 = vpop.f32.mrb[67].mxu0 }
 0x4c6   : > { %v6478_v48 = vsel %vm5413_vm3, %v15786_v29, %v6436_v28  ;;  %v15841_v55 = vpop.permute.xlu0 %6225  ;;  %v7009_v10 = vld [vmem:[#allocation3 + $0x498] sm:$0x1f]  ;;  %v8260_v17 = vmax.f32 %v7191_v43, 0.0 }
 0x4c7   : > { %v15843_v50 = vmul.f32 %v8302_v61, %v8259_v19  ;;  %6542 = vst [vmem:[#allocation3 + $0x3a8] sm:$0xf] %v6478_v48  ;;  %12062 = vmatprep.subr.msk.mxu1 %vm7026_vm6, %v7009_v10  ;;  %5934 = vrot.lane.b32.xlu1 %v13650_v44, %s13949_s8  ;;  %v15910_v61 = vsub.s32 2, %v15809_v12  ;;  %v15918_v19 = vsub.s32 3, %v15809_v12 }
 0x4c8   : > { %12063 = vmatpush1.msk.msra.mxu1 %vm7026_vm6, %v7008_v15  ;;  %v15848_v5 = vmul.f32 %v8306_v6, %v8260_v17 }
 0x4c9   : > { %9303 = vst [vmem:[#allocation5 + $0x400] sm:$0xff] %v15843_v50  ;;  %12064 = vmatmul.mubr.msk.f32.vlgmr.msra.gmra.mrb[74].mxu1 %vm7022_vm7, %v15734_v41  ;;  %v5396_v29 = vpop.permute.xlu1 %5395  ;;  %8883 = vrot.lane.b32.xlu0 %v15843_v50, %s13951_s13  ;;  %v8310_v44 = vrot.slane %v15821_v60, %v15910_v61  ;;  %v8314_v15 = vrot.slane %v15821_v60, %v15918_v19 }
 0x4ca   : > { %v15855_v13 = vpop.permute.xlu0 %6437  ;;  %v5437_v47 = vsel %vm5413_vm3, %v15798_v4, %v5396_v29  ;;  %v6915_v42 = vld [vmem:[#allocation3 + $0x1a8] sm:$0xff]  ;;  %8785 = vst [vmem:[#allocation5 + $0x110] sm:$0xff] %v15848_v5  ;;  %9304 = vst [vmem:[#allocation5 + $0x408] sm:$0xff] %v15848_v5  ;;  %7968 = vmatprep.mubr.f32.mxu1 %v15743_v52  ;;  %v13052_v4 = vpack.c.bf16 %v6914_v58, %v6882_v24 }
 0x4cb   : > { %9823 = vst [vmem:[#allocation5 + $0x700] sm:$0xff] %v15848_v5  ;;  %v6479_v49 = vsel %vm5413_vm3, %v6436_v28, %v15855_v13  ;;  %5501 = vst [vmem:[#allocation3 + $0xb8] sm:$0xf] %v5437_v47  ;;  %8593 = vrot.lane.b32.xlu1 %v15843_v50, %s13949_s8  ;;  %v13050_v54 = vpack.c.bf16 %v6915_v42, %v6883_v7  ;;  %v6916_v43 = vld [vmem:[#allocation3 + $0x1b0] sm:$0xff] }
 0x4cc   : > { %6543 = vst [vmem:[#allocation3 + $0x3b0] sm:$0xf] %v6479_v49  ;;  %v6884_v42 = vld [vmem:[#allocation3 + $0xb0] sm:$0xff] }
 0x4cd   : > { %13051 = vmatprep.subr.bf16.mxu0 %v13050_v54  ;;  %v6224_v9 = vpop.permute.xlu1 %6223  ;;  %9111 = vrot.lane.b32.xlu0 %v15843_v50, %s13949_s8  ;;  %v13060_v54 = vpack.c.bf16 %v6916_v43, %v6884_v42 }
 0x4ce   : > { %v6266_v63 = vsel %vm5722_vm5, %v15782_v8, %v6224_v9  ;;  %v6267_v62 = vsel %vm5722_vm5, %v6224_v9, %v15841_v55  ;;  %v5398_v27 = vpop.permute.xlu0 %5397  ;;  %13053 = vmatpush1.bf16.msra.mxu0 %v13052_v4  ;;  %v6979_v57 = vld [vmem:[#allocation3 + $0x3a8] sm:$0xff] }
 0x4cf   : > { %6330 = vst [vmem:[#allocation3 + $0x2a8] sm:$0xf0] %v6266_v63  ;;  %6331 = vst [vmem:[#allocation3 + $0x2b0] sm:$0xf0] %v6267_v62  ;;  %v5438_v23 = vsel %vm5413_vm3, %v5396_v29, %v5398_v27  ;;  %9629 = vrot.lane.b32.xlu1 %v15843_v50, %s13949_s8 }
 0x4d0   : > { %5502 = vst [vmem:[#allocation3 + $0xc0] sm:$0xf] %v5438_v23 }
 0x4d1   : > { %v6744_v53 = vpop.permute.xlu1 %6743  ;;  %9401 = vrot.lane.b32.xlu0 %v15843_v50, %s13951_s13 }
 0x4d2   : > { %v6786_v8 = vsel %vm5722_vm5, %v15812_v59, %v6744_v53  ;;  %v15880_v26 = vpop.permute.xlu0 %5920 }
 0x4d3   : > { %6850 = vst [vmem:[#allocation3 + $0x4a8] sm:$0xf] %v6786_v8  ;;  %8885 = vrot.lane.b32.xlu1 %v15848_v5, %s13951_s13  ;;  %v6980_v2 = vld [vmem:[#allocation3 + $0x3b0] sm:$0xff] }
 0x4d5   : > { %v5705_v30 = vpop.permute.xlu1 %5704  ;;  %8595 = vrot.lane.b32.xlu0 %v15848_v5, %s13949_s8 }
 0x4d6   : > { %v5746_v45 = vsel %vm5722_vm5, %v15830_v0, %v5705_v30  ;;  %v15888_v3 = vpop.permute.xlu0 %5706  ;;  %v6947_v40 = vld [vmem:[#allocation3 + $0x2a8] sm:$0xff]  ;;  %v6948_v22 = vld [vmem:[#allocation3 + $0x2b0] sm:$0xff] }
 0x4d7   : > { %5810 = vst [vmem:[#allocation3 + $0x1b8] sm:$0xf] %v5746_v45  ;;  %v5747_v59 = vsel %vm5722_vm5, %v5705_v30, %v15888_v3  ;;  %9113 = vrot.lane.b32.xlu1 %v15848_v5, %s13949_s8  ;;  %v13054_v11 = vpack.c.bf16 %v6979_v57, %v6947_v40 }
 0x4d8   : > { %5811 = vst [vmem:[#allocation3 + $0x1c0] sm:$0xf] %v5747_v59 }
 0x4d9   : > { %13055 = vmatprep.subr.bf16.mxu0 %v13054_v11  ;;  %v5919_v46 = vpop.permute.xlu1 %5918  ;;  %9403 = vrot.lane.b32.xlu0 %v15848_v5, %s13951_s13 }
 0x4da   : > { %v5959_v51 = vsel %vm5413_vm3, %v15804_v38, %v5919_v46  ;;  %v5960_v25 = vsel %vm5413_vm3, %v5919_v46, %v15880_v26  ;;  %v15900_v56 = vpop.permute.xlu0 %6745  ;;  %13057 = vmatpush1.bf16.msra.mxu0 %v13056_v37  ;;  %v7011_v20 = vld [vmem:[#allocation3 + $0x4a8] sm:$0x1f]  ;;  %v7010_v38 = vld [vmem:[#allocation3 + $0x4a0] sm:$0x1f]  ;;  %v13064_v37 = vpack.c.bf16 %v6980_v2, %v6948_v22 }
 0x4db   : > { %6023 = vst [vmem:[#allocation3 + $0x1b8] sm:$0xf0] %v5959_v51  ;;  %6024 = vst [vmem:[#allocation3 + $0x1c0] sm:$0xf0] %v5960_v25  ;;  %v6787_v0 = vsel %vm5722_vm5, %v6744_v53, %v15900_v56  ;;  %12065 = vmatprep.subr.msk.mxu0 %vm7026_vm6, %v7011_v20  ;;  %9631 = vrot.lane.b32.xlu1 %v15848_v5, %s13949_s8  ;;  %v15971_v51 = vsub.s32 4, %v15809_v12 }
 0x4dc   : > { %6851 = vst [vmem:[#allocation3 + $0x4b0] sm:$0xf] %v6787_v0  ;;  %v15980_v0 = vsub.s32 5, %v15809_v12 }
 0x4dd   : > { %v6440_v21 = vpop.permute.xlu1 %6439  ;;  %9921 = vrot.lane.b32.xlu0 %v15848_v5, %s13951_s13  ;;  %v6885_v5 = vld [vmem:[#allocation3 + $0xb8] sm:$0xff] }
 0x4de   : > { %v6480_v39 = vsel %vm5413_vm3, %v15855_v13, %v6440_v21  ;;  %v15914_v6 = vpop.permute.xlu0 %6229  ;;  %12066 = vmatpush1.msk.msra.mxu0 %vm7026_vm6, %v7010_v38  ;;  %v8318_v38 = vrot.slane %v15821_v60, %v15971_v51 }
 0x4df   : > { %6544 = vst [vmem:[#allocation3 + $0x3b8] sm:$0xf] %v6480_v39  ;;  %12067 = vmatmul.mubr.msk.f32.vlgmr.msra.gmra.mrb[76].mxu0 %vm7022_vm7, %v15734_v41 }
 0x4e0   : > { %8039 = vmatprep.mubr.f32.mxu0 %v15743_v52 }
 0x4e1   : > { %v5400_v28 = vpop.permute.xlu1 %5399 }
 0x4e2   : > { %v15925_v48 = vpop.permute.xlu0 %6441  ;;  %v5439_v10 = vsel %vm5413_vm3, %v5398_v27, %v5400_v28  ;;  %v7260_v17 = vpop.f32.mrb[66].mxu1  ;;  %v6917_v29 = vld [vmem:[#allocation3 + $0x1b8] sm:$0xff] }
 0x4e3   : > { %v6481_v58 = vsel %vm5413_vm3, %v6440_v21, %v15925_v48  ;;  %5503 = vst [vmem:[#allocation3 + $0xc8] sm:$0xf] %v5439_v10  ;;  %v8261_v13 = vmax.f32 %v7260_v17, 0.0  ;;  %v7262_v47 = vpop.f32.mrb[67].mxu1  ;;  %v13058_v7 = vpack.c.bf16 %v6917_v29, %v6885_v5  ;;  %v8322_v10 = vrot.slane %v15821_v60, %v15980_v0 }
 0x4e4   : > { %6545 = vst [vmem:[#allocation3 + $0x3c0] sm:$0xf] %v6481_v58  ;;  %v8262_v49 = vmax.f32 %v7262_v47, 0.0 }
 0x4e5   : > { %v15932_v24 = vmul.f32 %v8310_v44, %v8261_v13  ;;  %13059 = vmatprep.subr.bf16.mxu1 %v13058_v7  ;;  %v6228_v4 = vpop.permute.xlu1 %6227  ;;  %v6918_v13 = vld [vmem:[#allocation3 + $0x1c0] sm:$0xff] }
 0x4e6   : > { %v15934_v9 = vmul.f32 %v8314_v15, %v8262_v49  ;;  %v6268_v63 = vsel %vm5722_vm5, %v15841_v55, %v6228_v4  ;;  %v6269_v62 = vsel %vm5722_vm5, %v6228_v4, %v15914_v6  ;;  %v15940_v27 = vpop.permute.xlu0 %5401  ;;  %13061 = vmatpush1.bf16.msra.mxu1 %v13060_v54  ;;  %v6981_v59 = vld [vmem:[#allocation3 + $0x3b8] sm:$0xff]  ;;  %v7012_v15 = vld [vmem:[#allocation3 + $0x4b0] sm:$0x1f] }
 0x4e7   : > { %9305 = vst [vmem:[#allocation5 + $0x410] sm:$0xff] %v15932_v24  ;;  %6332 = vst [vmem:[#allocation3 + $0x2b8] sm:$0xf0] %v6268_v63  ;;  %v5440_v23 = vsel %vm5413_vm3, %v5400_v28, %v15940_v27  ;;  %8597 = vrot.lane.b32.xlu1 %v15932_v24, %s13949_s8  ;;  %8887 = vrot.lane.b32.xlu0 %v15932_v24, %s13951_s13 }
 0x4e8   : > { %6333 = vst [vmem:[#allocation3 + $0x2c0] sm:$0xf0] %v6269_v62  ;;  %8787 = vst [vmem:[#allocation5 + $0x120] sm:$0xff] %v15934_v9  ;;  %v6886_v62 = vld [vmem:[#allocation3 + $0xc0] sm:$0xff] }
 0x4e9   : > { %9306 = vst [vmem:[#allocation5 + $0x418] sm:$0xff] %v15934_v9  ;;  %9825 = vst [vmem:[#allocation5 + $0x710] sm:$0xff] %v15934_v9  ;;  %v5709_v55 = vpop.permute.xlu1 %5708 }
 0x4ea   : > { %5504 = vst [vmem:[#allocation3 + $0xd0] sm:$0xf] %v5440_v23  ;;  %v15952_v53 = vpop.permute.xlu0 %5924  ;;  %v5748_v8 = vsel %vm5722_vm5, %v15888_v3, %v5709_v55  ;;  %v6887_v42 = vld [vmem:[#allocation3 + $0xc8] sm:$0xff] }
 0x4eb   : > { %5812 = vst [vmem:[#allocation3 + $0x1c8] sm:$0xf] %v5748_v8  ;;  %9405 = vrot.lane.b32.xlu1 %v15932_v24, %s13951_s13  ;;  %9115 = vrot.lane.b32.xlu0 %v15932_v24, %s13949_s8 }
 0x4ed   : > { %v6748_v30 = vpop.permute.xlu1 %6747 }
 0x4ee   : > { %v15960_v45 = vpop.permute.xlu0 %6749  ;;  %v6788_v40 = vsel %vm5722_vm5, %v15900_v56, %v6748_v30  ;;  %v6949_v57 = vld [vmem:[#allocation3 + $0x2b8] sm:$0xff] }
 0x4ef   : > { %v6789_v11 = vsel %vm5722_vm5, %v6748_v30, %v15960_v45  ;;  %6852 = vst [vmem:[#allocation3 + $0x4b8] sm:$0xf] %v6788_v40  ;;  %8889 = vrot.lane.b32.xlu1 %v15934_v9, %s13951_s13  ;;  %9633 = vrot.lane.b32.xlu0 %v15932_v24, %s13949_s8  ;;  %v13062_v3 = vpack.c.bf16 %v6981_v59, %v6949_v57 }
 0x4f0   : > { %6853 = vst [vmem:[#allocation3 + $0x4c0] sm:$0xf] %v6789_v11  ;;  %v6950_v11 = vld [vmem:[#allocation3 + $0x2c0] sm:$0xff] }
 0x4f1   : > { %13063 = vmatprep.subr.bf16.mxu1 %v13062_v3  ;;  %v5923_v46 = vpop.permute.xlu1 %5922 }
 0x4f2   : > { %v5961_v25 = vsel %vm5413_vm3, %v15880_v26, %v5923_v46  ;;  %v5962_v56 = vsel %vm5413_vm3, %v5923_v46, %v15952_v53  ;;  %v15977_v20 = vpop.permute.xlu0 %5710  ;;  %13065 = vmatpush1.bf16.msra.mxu1 %v13064_v37 }
 0x4f3   : > { %6025 = vst [vmem:[#allocation3 + $0x1c8] sm:$0xf0] %v5961_v25  ;;  %6026 = vst [vmem:[#allocation3 + $0x1d0] sm:$0xf0] %v5962_v56  ;;  %v5749_v21 = vsel %vm5722_vm5, %v5709_v55, %v15977_v20  ;;  %9117 = vrot.lane.b32.xlu1 %v15934_v9, %s13949_s8  ;;  %9923 = vrot.lane.b32.xlu0 %v15932_v24, %s13951_s13  ;;  %v6982_v25 = vld [vmem:[#allocation3 + $0x3c0] sm:$0xff]  ;;  %v16053_v56 = vsub.s32 6, %v15809_v12 }
 0x4f4   : > { %5813 = vst [vmem:[#allocation3 + $0x1d0] sm:$0xf] %v5749_v21  ;;  %v16058_v21 = vsub.s32 7, %v15809_v12 }
 0x4f5   : > { %v6444_v26 = vpop.permute.xlu1 %6443  ;;  %v8326_v12 = vrot.slane %v15821_v60, %v16053_v56 }
 0x4f6   : > { %v6482_v39 = vsel %vm5413_vm3, %v15925_v48, %v6444_v26  ;;  %v15992_v28 = vpop.permute.xlu0 %6233  ;;  %v7331_v44 = vpop.f32.mrb[68].mxu0  ;;  %v7013_v43 = vld [vmem:[#allocation3 + $0x4b8] sm:$0x1f] }
 0x4f7   : > { %6546 = vst [vmem:[#allocation3 + $0x3c8] sm:$0xf] %v6482_v39  ;;  %v8263_v17 = vmax.f32 %v7331_v44, 0.0  ;;  %12068 = vmatprep.subr.msk.mxu1 %vm7026_vm6, %v7013_v43  ;;  %9407 = vrot.lane.b32.xlu1 %v15934_v9, %s13951_s13  ;;  %v7333_v5 = vpop.f32.mrb[69].mxu0 }
 0x4f8   : > { %9635 = vrot.lane.b32.xlu0 %v15934_v9, %s13949_s8  ;;  %12069 = vmatpush1.msk.msra.mxu1 %vm7026_vm6, %v7012_v15  ;;  %v8264_v48 = vmax.f32 %v7333_v5, 0.0 }
 0x4f9   : > { %v16002_v29 = vmul.f32 %v8318_v38, %v8263_v17  ;;  %12070 = vmatmul.mubr.msk.f32.vlgmr.msra.gmra.mrb[76].mxu1 %vm7022_vm7, %v15734_v41  ;;  %v5404_v58 = vpop.permute.xlu1 %5403  ;;  %v8330_v17 = vrot.slane %v15821_v60, %v16058_v21 }
 0x4fa   : > { %v16006_v47 = vpop.permute.xlu0 %6445  ;;  %v5441_v7 = vsel %vm5413_vm3, %v15940_v27, %v5404_v58  ;;  %v6919_v49 = vld [vmem:[#allocation3 + $0x1c8] sm:$0xff]  ;;  %v16010_v54 = vmul.f32 %v8322_v10, %v8264_v48  ;;  %8110 = vmatprep.mubr.f32.mxu1 %v15743_v52  ;;  %v13068_v27 = vpack.c.bf16 %v6918_v13, %v6886_v62  ;;  %v7014_v48 = vld [vmem:[#allocation3 + $0x4c0] sm:$0x1f] }
 0x4fb   : > { %9307 = vst [vmem:[#allocation5 + $0x420] sm:$0xff] %v16002_v29  ;;  %9826 = vst [vmem:[#allocation5 + $0x718] sm:$0xff] %v16002_v29  ;;  %v6483_v4 = vsel %vm5413_vm3, %v6444_v26, %v16006_v47  ;;  %9925 = vrot.lane.b32.xlu1 %v15934_v9, %s13951_s13  ;;  %v13066_v63 = vpack.c.bf16 %v6919_v49, %v6887_v42 }
 0x4fc   : > { %5505 = vst [vmem:[#allocation3 + $0xd8] sm:$0xf] %v5441_v7  ;;  %6547 = vst [vmem:[#allocation3 + $0x3d0] sm:$0xf] %v6483_v4  ;;  %9409 = vrot.lane.b32.xlu0 %v16002_v29, %s13951_s13  ;;  %v6920_v4 = vld [vmem:[#allocation3 + $0x1d0] sm:$0xff] }
 0x4fd   : > { %8789 = vst [vmem:[#allocation5 + $0x130] sm:$0xff] %v16010_v54  ;;  %9308 = vst [vmem:[#allocation5 + $0x428] sm:$0xff] %v16010_v54  ;;  %13067 = vmatprep.subr.bf16.mxu0 %v13066_v63  ;;  %v6232_v23 = vpop.permute.xlu1 %6231 }
 0x4fe   : > { %9827 = vst [vmem:[#allocation5 + $0x720] sm:$0xff] %v16010_v54  ;;  %v6270_v55 = vsel %vm5722_vm5, %v15914_v6, %v6232_v23  ;;  %v6271_v8 = vsel %vm5722_vm5, %v6232_v23, %v15992_v28  ;;  %v16028_v30 = vpop.permute.xlu0 %5405  ;;  %13069 = vmatpush1.bf16.msra.mxu0 %v13068_v27  ;;  %v6983_v37 = vld [vmem:[#allocation3 + $0x3c8] sm:$0xff] }
 0x4ff   : > { %6334 = vst [vmem:[#allocation3 + $0x2c8] sm:$0xf0] %v6270_v55  ;;  %6335 = vst [vmem:[#allocation3 + $0x2d0] sm:$0xf0] %v6271_v8  ;;  %v5442_v22 = vsel %vm5413_vm3, %v5404_v58, %v16028_v30  ;;  %8599 = vrot.lane.b32.xlu1 %v15934_v9, %s13949_s8 }
 0x500   : > { %5506 = vst [vmem:[#allocation3 + $0xe0] sm:$0xf] %v5442_v22  ;;  %8601 = vrot.lane.b32.xlu0 %v16002_v29, %s13949_s8  ;;  %v6888_v22 = vld [vmem:[#allocation3 + $0xd0] sm:$0xff] }
 0x501   : > { %v6752_v40 = vpop.permute.xlu1 %6751 }
 0x502   : > { %v6790_v6 = vsel %vm5722_vm5, %v15960_v45, %v6752_v40  ;;  %v16038_v57 = vpop.permute.xlu0 %5928 }
 0x503   : > { %6854 = vst [vmem:[#allocation3 + $0x4c8] sm:$0xf] %v6790_v6  ;;  %9637 = vrot.lane.b32.xlu1 %v16002_v29, %s13949_s8  ;;  %v6889_v27 = vld [vmem:[#allocation3 + $0xd8] sm:$0xff] }
 0x504   : > { %9929 = vrot.lane.b32.xlu0 %v16010_v54, %s13951_s13 }
 0x505   : > { %v5713_v59 = vpop.permute.xlu1 %5712 }
 0x506   : > { %v5750_v9 = vsel %vm5722_vm5, %v15977_v20, %v5713_v59  ;;  %v16046_v3 = vpop.permute.xlu0 %5714  ;;  %v6951_v2 = vld [vmem:[#allocation3 + $0x2c8] sm:$0xff]  ;;  %v13072_v20 = vpack.c.bf16 %v6982_v25, %v6950_v11  ;;  %v6952_v25 = vld [vmem:[#allocation3 + $0x2d0] sm:$0xff] }
 0x507   : > { %5814 = vst [vmem:[#allocation3 + $0x1d8] sm:$0xf] %v5750_v9  ;;  %v5751_v45 = vsel %vm5722_vm5, %v5713_v59, %v16046_v3  ;;  %9927 = vrot.lane.b32.xlu1 %v16002_v29, %s13951_s13  ;;  %v13070_v46 = vpack.c.bf16 %v6983_v37, %v6951_v2 }
 0x508   : > { %5815 = vst [vmem:[#allocation3 + $0x1e0] sm:$0xf] %v5751_v45  ;;  %8893 = vrot.lane.b32.xlu0 %v16010_v54, %s13951_s13  ;;  %v16123_v45 = vld [vmem:[#allocation15 + $0x8] sm:$0xff] }
 0x509   : > { %13071 = vmatprep.subr.bf16.mxu0 %v13070_v46  ;;  %v5927_v26 = vpop.permute.xlu1 %5926 }
 0x50a   : > { %v5963_v38 = vsel %vm5413_vm3, %v15952_v53, %v5927_v26  ;;  %v5964_v39 = vsel %vm5413_vm3, %v5927_v26, %v16038_v57  ;;  %v16064_v44 = vpop.permute.xlu0 %6753  ;;  %13073 = vmatpush1.bf16.msra.mxu0 %v13072_v20  ;;  %v7015_v43 = vld [vmem:[#allocation3 + $0x4c8] sm:$0x1f] }
 0x50b   : > { %6027 = vst [vmem:[#allocation3 + $0x1d8] sm:$0xf0] %v5963_v38  ;;  %6028 = vst [vmem:[#allocation3 + $0x1e0] sm:$0xf0] %v5964_v39  ;;  %v6791_v10 = vsel %vm5722_vm5, %v6752_v40, %v16064_v44  ;;  %12071 = vmatprep.subr.msk.mxu0 %vm7026_vm6, %v7015_v43  ;;  %8891 = vrot.lane.b32.xlu1 %v16002_v29, %s13951_s13  ;;  %v13076_v40 = vpack.c.bf16 %v6920_v4, %v6888_v22  ;;  %v6984_v43 = vld [vmem:[#allocation3 + $0x3d0] sm:$0xff] }
 0x50c   : > { %6855 = vst [vmem:[#allocation3 + $0x4d0] sm:$0xf] %v6791_v10  ;;  %9121 = vrot.lane.b32.xlu0 %v16010_v54, %s13949_s8  ;;  %v7402_v53 = vpop.f32.mrb[68].mxu1  ;;  %v8334_v10 = vrot.slane %v16123_v45, %v15819_v1 }
 0x50d   : > { %v8265_v15 = vmax.f32 %v7402_v53, 0.0  ;;  %v6448_v5 = vpop.permute.xlu1 %6447  ;;  %v7404_v58 = vpop.f32.mrb[69].mxu1 }
 0x50e   : > { %v6484_v13 = vsel %vm5413_vm3, %v16006_v47, %v6448_v5  ;;  %v16079_v7 = vpop.permute.xlu0 %6237  ;;  %12072 = vmatpush1.msk.msra.mxu0 %vm7026_vm6, %v7014_v48  ;;  %v8266_v42 = vmax.f32 %v7404_v58, 0.0 }
 0x50f   : > { %v16082_v49 = vmul.f32 %v8326_v12, %v8265_v15  ;;  %6548 = vst [vmem:[#allocation3 + $0x3d8] sm:$0xf] %v6484_v13  ;;  %9119 = vrot.lane.b32.xlu1 %v16002_v29, %s13949_s8  ;;  %12073 = vmatmul.mubr.msk.f32.vlgmr.msra.gmra.mrb[78].mxu0 %vm7022_vm7, %v15734_v41  ;;  %v13080_v12 = vpack.c.bf16 %v6984_v43, %v6952_v25  ;;  %v6890_v25 = vld [vmem:[#allocation3 + $0xe0] sm:$0xff] }
 0x510   : > { %v16088_v60 = vmul.f32 %v8330_v17, %v8266_v42  ;;  %8181 = vmatprep.mubr.f32.mxu0 %v15743_v52 }
 0x511   : > { %9309 = vst [vmem:[#allocation5 + $0x430] sm:$0xff] %v16082_v49  ;;  %9828 = vst [vmem:[#allocation5 + $0x728] sm:$0xff] %v16082_v49  ;;  %v5408_v47 = vpop.permute.xlu1 %5407  ;;  %8605 = vrot.lane.b32.xlu0 %v16082_v49, %s13949_s8 }
 0x512   : > { %v16095_v63 = vpop.permute.xlu0 %6449  ;;  %v5443_v62 = vsel %vm5413_vm3, %v16028_v30, %v5408_v47  ;;  %8791 = vst [vmem:[#allocation5 + $0x140] sm:$0xff] %v16088_v60  ;;  %9310 = vst [vmem:[#allocation5 + $0x438] sm:$0xff] %v16088_v60  ;;  %v6921_v23 = vld [vmem:[#allocation3 + $0x1d8] sm:$0xff] }
 0x513   : > { %9829 = vst [vmem:[#allocation5 + $0x730] sm:$0xff] %v16088_v60  ;;  %v6485_v55 = vsel %vm5413_vm3, %v6448_v5, %v16095_v63  ;;  %5507 = vst [vmem:[#allocation3 + $0xe8] sm:$0xf] %v5443_v62  ;;  %8603 = vrot.lane.b32.xlu1 %v16010_v54, %s13949_s8  ;;  %v13074_v8 = vpack.c.bf16 %v6921_v23, %v6889_v27 }
 0x514   : > { %6549 = vst [vmem:[#allocation3 + $0x3e0] sm:$0xf] %v6485_v55 }
 0x515   : > { %13075 = vmatprep.subr.bf16.mxu1 %v13074_v8  ;;  %v6236_v30 = vpop.permute.xlu1 %6235  ;;  %9413 = vrot.lane.b32.xlu0 %v16082_v49, %s13951_s13 }
 0x516   : > { %v6272_v6 = vsel %vm5722_vm5, %v15992_v28, %v6236_v30  ;;  %v6273_v59 = vsel %vm5722_vm5, %v6236_v30, %v16079_v7  ;;  %v5410_v11 = vpop.permute.xlu0 %5409  ;;  %13077 = vmatpush1.bf16.msra.mxu1 %v13076_v40  ;;  %v6985_v39 = vld [vmem:[#allocation3 + $0x3d8] sm:$0xff] }
 0x517   : > { %6336 = vst [vmem:[#allocation3 + $0x2d8] sm:$0xf0] %v6272_v6  ;;  %6337 = vst [vmem:[#allocation3 + $0x2e0] sm:$0xf0] %v6273_v59  ;;  %v5444_v9 = vsel %vm5413_vm3, %v5408_v47, %v5410_v11  ;;  %9411 = vrot.lane.b32.xlu1 %v16010_v54, %s13951_s13 }
 0x518   : > { %5508 = vst [vmem:[#allocation3 + $0xf0] sm:$0xf] %v5444_v9 }
 0x519   : > { %v5717_v2 = vpop.permute.xlu1 %5716  ;;  %9641 = vrot.lane.b32.xlu0 %v16082_v49, %s13949_s8 }
 0x51a   : > { %v16117_v37 = vpop.permute.xlu0 %5932  ;;  %v5752_v28 = vsel %vm5722_vm5, %v16046_v3, %v5717_v2  ;;  %v6891_v9 = vld [vmem:[#allocation3 + $0xe8] sm:$0xff] }
 0x51b   : > { %5816 = vst [vmem:[#allocation3 + $0x1e8] sm:$0xf] %v5752_v28  ;;  %9639 = vrot.lane.b32.xlu1 %v16010_v54, %s13949_s8 }
 0x51d   : > { %v6756_v46 = vpop.permute.xlu1 %6755  ;;  %8897 = vrot.lane.b32.xlu0 %v16088_v60, %s13951_s13 }
 0x51e   : > { %v16127_v20 = vpop.permute.xlu0 %6757  ;;  %v6792_v26 = vsel %vm5722_vm5, %v16064_v44, %v6756_v46  ;;  %v6953_v38 = vld [vmem:[#allocation3 + $0x2d8] sm:$0xff]  ;;  %v8338_v44 = vrot.slane %v16123_v45, %v15824_v14 }
 0x51f   : > { %v6793_v3 = vsel %vm5722_vm5, %v6756_v46, %v16127_v20  ;;  %6856 = vst [vmem:[#allocation3 + $0x4d8] sm:$0xf] %v6792_v26  ;;  %8895 = vrot.lane.b32.xlu1 %v16082_v49, %s13951_s13  ;;  %v13078_v54 = vpack.c.bf16 %v6985_v39, %v6953_v38 }
 0x520   : > { %6857 = vst [vmem:[#allocation3 + $0x4e0] sm:$0xf] %v6793_v3  ;;  %v7473_v53 = vpop.f32.mrb[70].mxu0 }
 0x521   : > { %13079 = vmatprep.subr.bf16.mxu1 %v13078_v54  ;;  %v5412_v17 = vpop.permute.xlu1 %5411  ;;  %9125 = vrot.lane.b32.xlu0 %v16088_v60, %s13949_s8  ;;  %v8267_v15 = vmax.f32 %v7473_v53, 0.0  ;;  %v7475_v5 = vpop.f32.mrb[71].mxu0  ;;  %v8346_v53 = vrot.slane %v16123_v45, %v15918_v19 }
 0x522   : > { %v5719_v48 = vpop.permute.xlu0 %5718  ;;  %v5445_v58 = vsel %vm5413_vm3, %v5410_v11, %v5412_v17  ;;  %13081 = vmatpush1.bf16.msra.mxu1 %v13080_v12  ;;  %v8268_v13 = vmax.f32 %v7475_v5, 0.0  ;;  %v6922_v11 = vld [vmem:[#allocation3 + $0x1e0] sm:$0xff] }
 0x523   : > { %v5753_v42 = vsel %vm5722_vm5, %v5717_v2, %v5719_v48  ;;  %5509 = vst [vmem:[#allocation3 + $0xf8] sm:$0xf] %v5445_v58  ;;  %9123 = vrot.lane.b32.xlu1 %v16082_v49, %s13949_s8  ;;  %v16145_v47 = vmul.f32 %v8334_v10, %v8267_v15  ;;  %v13084_v26 = vpack.c.bf16 %v6922_v11, %v6890_v25 }
 0x524   : > { %5817 = vst [vmem:[#allocation3 + $0x1f0] sm:$0xf] %v5753_v42  ;;  %v16147_v4 = vmul.f32 %v8338_v44, %v8268_v13 }
 0x525   : > { %8792 = vst [vmem:[#allocation5 + $0x148] sm:$0xff] %v16145_v47  ;;  %9311 = vst [vmem:[#allocation5 + $0x440] sm:$0xff] %v16145_v47  ;;  %v5931_v62 = vpop.permute.xlu1 %5930  ;;  %9933 = vrot.lane.b32.xlu0 %v16088_v60, %s13951_s13 }
 0x526   : > { %9830 = vst [vmem:[#allocation5 + $0x738] sm:$0xff] %v16145_v47  ;;  %v5965_v27 = vsel %vm5413_vm3, %v16038_v57, %v5931_v62  ;;  %v5966_v23 = vsel %vm5413_vm3, %v5931_v62, %v16117_v37  ;;  %v6242_v55 = vpop.permute.xlu0 %6241  ;;  %v7017_v8 = vld [vmem:[#allocation3 + $0x4d8] sm:$0x1f]  ;;  %8793 = vst [vmem:[#allocation5 + $0x150] sm:$0xff] %v16147_v4  ;;  %v7016_v57 = vld [vmem:[#allocation3 + $0x4d0] sm:$0x1f] }
 0x527   : > { %9312 = vst [vmem:[#allocation5 + $0x448] sm:$0xff] %v16147_v4  ;;  %9831 = vst [vmem:[#allocation5 + $0x740] sm:$0xff] %v16147_v4  ;;  %v6276_v22 = vsel %vm5722_vm5, %v6242_v55, %v14430_v31  ;;  %12074 = vmatprep.subr.msk.mxu1 %vm7026_vm6, %v7017_v8  ;;  %9931 = vrot.lane.b32.xlu1 %v16082_v49, %s13951_s13 }
 0x528   : > { %6029 = vst [vmem:[#allocation3 + $0x1e8] sm:$0xf0] %v5965_v27  ;;  %6030 = vst [vmem:[#allocation3 + $0x1f0] sm:$0xf0] %v5966_v23  ;;  %12075 = vmatpush1.msk.msra.mxu1 %vm7026_vm6, %v7016_v57  ;;  %v6986_v27 = vld [vmem:[#allocation3 + $0x3e0] sm:$0xff] }
 0x529   : > { %6340 = vst [vmem:[#allocation3 + $0x2f8] sm:$0xf0] %v6276_v22  ;;  %12076 = vmatmul.mubr.msk.f32.vlgmr.msra.gmra.mrb[78].mxu1 %vm7022_vm7, %v15734_v41  ;;  %v6452_v40 = vpop.permute.xlu1 %6451  ;;  %9417 = vrot.lane.b32.xlu0 %v16145_v47, %s13951_s13 }
 0x52a   : > { %v6486_v30 = vsel %vm5413_vm3, %v16095_v63, %v6452_v40  ;;  %v6454_v31 = vpop.permute.xlu0 %6453  ;;  %8252 = vmatprep.mubr.f32.mxu1 %v15743_v52 }
 0x52b   : > { %6550 = vst [vmem:[#allocation3 + $0x3e8] sm:$0xf] %v6486_v30  ;;  %v6487_v6 = vsel %vm5413_vm3, %v6452_v40, %v6454_v31  ;;  %v6488_v59 = vsel %vm5413_vm3, %v6454_v31, %v14440_v32  ;;  %9415 = vrot.lane.b32.xlu1 %v16088_v60, %s13951_s13  ;;  %v6892_v31 = vld [vmem:[#allocation3 + $0xf0] sm:$0xff] }
 0x52c   : > { %6551 = vst [vmem:[#allocation3 + $0x3f0] sm:$0xf] %v6487_v6  ;;  %6552 = vst [vmem:[#allocation3 + $0x3f8] sm:$0xf] %v6488_v59 }
 0x52d   : > { %v6760_v41 = vpop.permute.xlu1 %6759  ;;  %9645 = vrot.lane.b32.xlu0 %v16145_v47, %s13949_s8 }
 0x52e   : > { %v6794_v63 = vsel %vm5722_vm5, %v16127_v20, %v6760_v41  ;;  %v6762_v52 = vpop.permute.xlu0 %6761 }
 0x52f   : > { %v6923_v2 = vld [vmem:[#allocation3 + $0x1e8] sm:$0xff]  ;;  %6858 = vst [vmem:[#allocation3 + $0x4e8] sm:$0xf] %v6794_v63  ;;  %v6795_v28 = vsel %vm5722_vm5, %v6760_v41, %v6762_v52  ;;  %v6796_v32 = vsel %vm5722_vm5, %v6762_v52, %v14448_v34  ;;  %9643 = vrot.lane.b32.xlu1 %v16088_v60, %s13949_s8  ;;  %v10084_v41 = vld [vmem:[#allocation5] sm:$0xff] }
 0x530   : > { %v13082_v46 = vpack.c.bf16 %v6923_v2, %v6891_v9  ;;  %6859 = vst [vmem:[#allocation3 + $0x4f0] sm:$0xf] %v6795_v28  ;;  %6860 = vst [vmem:[#allocation3 + $0x4f8] sm:$0xf] %v6796_v32  ;;  %v6957_v59 = vld [vmem:[#allocation3 + $0x2f8] sm:$0xff]  ;;  %v13655_v32 = vld [vmem:[#allocation14] sm:$0xff] }
 0x531   : > { %v5721_v38 = vpop.permute.xlu1 %5720  ;;  %8609 = vrot.lane.b32.xlu0 %v16145_v47, %s13949_s8  ;;  %v7018_v63 = vld [vmem:[#allocation3 + $0x4e0] sm:$0x1f] }
 0x532   : > { %13083 = vmatprep.subr.bf16.mxu0 %v13082_v46  ;;  %v5754_v20 = vsel %vm5722_vm5, %v5719_v48, %v5721_v38  ;;  %v6987_v58 = vld [vmem:[#allocation3 + $0x3e8] sm:$0xff] }
 0x533   : > { %13085 = vmatpush1.bf16.msra.mxu0 %v13084_v26  ;;  %5818 = vst [vmem:[#allocation3 + $0x1f8] sm:$0xf] %v5754_v20  ;;  %8607 = vrot.lane.b32.xlu1 %v16088_v60, %s13949_s8  ;;  %v6989_v57 = vld [vmem:[#allocation3 + $0x3f8] sm:$0xff]  ;;  %v6988_v25 = vld [vmem:[#allocation3 + $0x3f0] sm:$0xff] }
 0x534   : > { %v13094_v52 = vpack.c.bf16 %v6989_v57, %v6957_v59  ;;  %v16249_v26 = vld [vmem:[#allocation2] sm:$0xff]  ;;  %v10213_v57 = vld [vmem:[#allocation5 + $0x408] sm:$0xff] }
 0x535   : > { %v6240_v34 = vpop.permute.xlu1 %6239  ;;  %9937 = vrot.lane.b32.xlu0 %v16147_v4, %s13951_s13  ;;  %v13100_v38 = vpack.c.bf16 %v16249_v26, %v10084_v41 }
 0x536   : > { %v6274_v39 = vsel %vm5722_vm5, %v16079_v7, %v6240_v34  ;;  %v6275_v3 = vsel %vm5722_vm5, %v6240_v34, %v6242_v55  ;;  %v8342_v7 = vrot.slane %v16123_v45, %v15910_v61 }
 0x537   : > { %6338 = vst [vmem:[#allocation3 + $0x2e8] sm:$0xf0] %v6274_v39  ;;  %6339 = vst [vmem:[#allocation3 + $0x2f0] sm:$0xf0] %v6275_v3  ;;  %9935 = vrot.lane.b32.xlu1 %v16145_v47, %s13951_s13  ;;  %v7021_v3 = vld [vmem:[#allocation3 + $0x4f8] sm:$0x1f] }
 0x539   : > { %v5935_v54 = vpop.permute.xlu1 %5934  ;;  %8901 = vrot.lane.b32.xlu0 %v16147_v4, %s13951_s13 }
 0x53a   : > { %v5967_v60 = vsel %vm5413_vm3, %v16117_v37, %v5935_v54  ;;  %v6954_v37 = vld [vmem:[#allocation3 + $0x2e0] sm:$0xff] }
 0x53b   : > { %6031 = vst [vmem:[#allocation3 + $0x1f8] sm:$0xf0] %v5967_v60  ;;  %v8884_v43 = vpop.permute.xlu0 %8883  ;;  %8899 = vrot.lane.b32.xlu1 %v16145_v47, %s13951_s13  ;;  %v13088_v55 = vpack.c.bf16 %v6986_v27, %v6954_v37 }
 0x53c   : > { %v16210_v10 = vsel %vm5722_vm5, %v14446_v33, %v8884_v43  ;;  %v7544_v12 = vpop.f32.mrb[70].mxu1 }
 0x53d   : > { %v8269_v44 = vmax.f32 %v7544_v12, 0.0  ;;  %v8594_v17 = vpop.permute.xlu1 %8593  ;;  %9129 = vrot.lane.b32.xlu0 %v16147_v4, %s13949_s8  ;;  %v7546_v15 = vpop.f32.mrb[71].mxu1 }
 0x53e   : > { %v8656_v5 = vsel %vm5413_vm3, %v13576_v18, %v8594_v17  ;;  %v6955_v48 = vld [vmem:[#allocation3 + $0x2e8] sm:$0xff]  ;;  %v8270_v13 = vmax.f32 %v7546_v15, 0.0  ;;  %v6893_v18 = vld [vmem:[#allocation3 + $0xf8] sm:$0xff]  ;;  %v6956_v9 = vld [vmem:[#allocation3 + $0x2f0] sm:$0xff] }
 0x53f   : > { %v16219_v33 = vmul.f32 %v8342_v7, %v8269_v44  ;;  %v9112_v42 = vpop.permute.xlu0 %9111  ;;  %9127 = vrot.lane.b32.xlu1 %v16145_v47, %s13949_s8  ;;  %v13086_v62 = vpack.c.bf16 %v6987_v58, %v6955_v48  ;;  %v6924_v47 = vld [vmem:[#allocation3 + $0x1f0] sm:$0xff]  ;;  %v13098_v28 = vpack.c.bf16 %v15843_v50, %v8656_v5  ;;  %v13096_v34 = vpack.c.bf16 %v6988_v25, %v6956_v9 }
 0x540   : > { %v16225_v23 = vsel %vm5413_vm3, %v14460_v36, %v9112_v42  ;;  %v16227_v8 = vmul.f32 %v8346_v53, %v8270_v13  ;;  %v7019_v36 = vld [vmem:[#allocation3 + $0x4e8] sm:$0x1f]  ;;  %v13092_v6 = vpack.c.bf16 %v6924_v47, %v6892_v31  ;;  %v7020_v53 = vld [vmem:[#allocation3 + $0x4f0] sm:$0x1f] }
 0x541   : > { %8794 = vst [vmem:[#allocation5 + $0x158] sm:$0xff] %v16219_v33  ;;  %9313 = vst [vmem:[#allocation5 + $0x450] sm:$0xff] %v16219_v33  ;;  %13087 = vmatprep.subr.bf16.mxu0 %v13086_v62  ;;  %v9630_v16 = vpop.permute.xlu1 %9629  ;;  %8613 = vrot.lane.b32.xlu0 %v16219_v33, %s13949_s8  ;;  %v13104_v7 = vpack.c.bf16 %v16225_v23, %v16210_v10  ;;  %v8354_v10 = vrot.slane %v16123_v45, %v15980_v0 }
 0x542   : > { %9832 = vst [vmem:[#allocation5 + $0x748] sm:$0xff] %v16219_v33  ;;  %13089 = vmatpush1.bf16.msra.mxu0 %v13088_v55  ;;  %8795 = vst [vmem:[#allocation5 + $0x160] sm:$0xff] %v16227_v8  ;;  %v6925_v22 = vld [vmem:[#allocation3 + $0x1f8] sm:$0xff] }
 0x543   : > { %9314 = vst [vmem:[#allocation5 + $0x458] sm:$0xff] %v16227_v8  ;;  %9833 = vst [vmem:[#allocation5 + $0x750] sm:$0xff] %v16227_v8  ;;  %12077 = vmatprep.subr.msk.mxu0 %vm7026_vm6, %v7019_v36  ;;  %v9402_v40 = vpop.permute.xlu0 %9401  ;;  %8611 = vrot.lane.b32.xlu1 %v16147_v4, %s13949_s8  ;;  %v13090_v30 = vpack.c.bf16 %v6925_v22, %v6893_v18 }
 0x545   : > { %13091 = vmatprep.subr.bf16.mxu1 %v13090_v30  ;;  %v16240_v11 = vpop.permute.xlu1 %8885  ;;  %9421 = vrot.lane.b32.xlu0 %v16219_v33, %s13951_s13  ;;  %v10212_v30 = vld [vmem:[#allocation5 + $0x400] sm:$0xff] }
 0x546   : > { %v8948_v2 = vsel %vm5722_vm5, %v8884_v43, %v16240_v11  ;;  %12078 = vmatpush1.msk.msra.mxu0 %vm7026_vm6, %v7018_v63  ;;  %13093 = vmatpush1.bf16.msra.mxu1 %v13092_v6 }
 0x547   : > { %12079 = vmatmul.mubr.msk.f32.vlgmr.msra.gmra.mrb[80].mxu0 %vm7022_vm7, %v13655_v32  ;;  %13095 = vmatprep.subr.bf16.mxu1 %v13094_v52  ;;  %v8596_v46 = vpop.permute.xlu0 %8595  ;;  %v10308_v52 = vld [vmem:[#allocation5 + $0x700] sm:$0xff] }
 0x548   : > { %v8657_v20 = vsel %vm5413_vm3, %v8594_v17, %v8596_v46  ;;  %9419 = vrot.lane.b32.xlu1 %v16147_v4, %s13951_s13  ;;  %13099 = vmatprep.subr.bf16.mxu0 %v13098_v28  ;;  %v8350_v17 = vrot.slane %v16123_v45, %v15971_v51 }
 0x549   : > { %v9114_v39 = vpop.permute.xlu1 %9113  ;;  %9649 = vrot.lane.b32.xlu0 %v16219_v33, %s13949_s8  ;;  %13101 = vmatpush1.bf16.msra.mxu0 %v13100_v38 }
 0x54a   : > { %v9176_v50 = vsel %vm5413_vm3, %v9112_v42, %v9114_v39  ;;  %13097 = vmatpush1.bf16.msra.mxu1 %v13096_v34  ;;  %10569 = vmatprep.mubr.f32.mxu0 %v16249_v26 }
 0x54b   : > { %12080 = vmatprep.subr.msk.mxu1 %vm7026_vm6, %v7021_v3  ;;  %v9404_v54 = vpop.permute.xlu0 %9403  ;;  %v13102_v60 = vpack.c.bf16 %v9176_v50, %v8948_v2  ;;  %v8362_v3 = vrot.slane %v16123_v45, %v16058_v21 }
 0x54c   : > { %v9467_v43 = vsel %vm5722_vm5, %v9402_v40, %v9404_v54  ;;  %9647 = vrot.lane.b32.xlu1 %v16147_v4, %s13949_s8 }
 0x54d   : > { %v9632_v12 = vpop.permute.xlu1 %9631  ;;  %8905 = vrot.lane.b32.xlu0 %v16227_v8, %s13951_s13  ;;  %13103 = vmatprep.subr.bf16.mxu0 %v13102_v60  ;;  %v13108_v31 = vpack.c.bf16 %v9467_v43, %v10212_v30  ;;  %v10311_v30 = vld [vmem:[#allocation5 + $0x718] sm:$0xff] }
 0x54e   : > { %v16268_v44 = vsel %vm5413_vm3, %v9630_v16, %v9632_v12  ;;  %12081 = vmatpush1.msk.msra.mxu1 %vm7026_vm6, %v7020_v53  ;;  %13105 = vmatpush1.bf16.msra.mxu0 %v13104_v7  ;;  %v10118_v16 = vld [vmem:[#allocation5 + $0x110] sm:$0xff] }
 0x54f   : > { %12082 = vmatmul.mubr.msk.f32.vlgmr.msra.gmra.mrb[80].mxu1 %vm7022_vm7, %v13655_v32  ;;  %v9922_v13 = vpop.permute.xlu0 %9921  ;;  %v13122_v18 = vpack.c.bf16 %v10118_v16, %v8657_v20  ;;  %v13112_v9 = vpack.c.bf16 %v10308_v52, %v16268_v44 }
 0x550   : > { %8903 = vrot.lane.b32.xlu1 %v16219_v33, %s13951_s13  ;;  %v7615_v4 = vpop.f32.mrb[72].mxu0  ;;  %10640 = vmatprep.mubr.f32.mxu1 %v16249_v26 }
 0x551   : > { %9133 = vrot.lane.b32.xlu0 %v16227_v8, %s13949_s8  ;;  %v8271_v37 = vmax.f32 %v7615_v4, 0.0  ;;  %v7617_v15 = vpop.f32.mrb[73].mxu0 }
 0x552   : > { %v8272_v5 = vmax.f32 %v7617_v15, 0.0  ;;  %v10215_v15 = vld [vmem:[#allocation5 + $0x418] sm:$0xff] }
 0x553   : > { %v16281_v48 = vmul.f32 %v8350_v17, %v8271_v37 }
 0x554   : > { %9131 = vrot.lane.b32.xlu1 %v16219_v33, %s13949_s8  ;;  %v16285_v58 = vmul.f32 %v8354_v10, %v8272_v5 }
 0x555   : > { %8796 = vst [vmem:[#allocation5 + $0x168] sm:$0xff] %v16281_v48  ;;  %9315 = vst [vmem:[#allocation5 + $0x460] sm:$0xff] %v16281_v48  ;;  %9941 = vrot.lane.b32.xlu0 %v16227_v8, %s13951_s13 }
 0x556   : > { %9834 = vst [vmem:[#allocation5 + $0x758] sm:$0xff] %v16281_v48  ;;  %8797 = vst [vmem:[#allocation5 + $0x170] sm:$0xff] %v16285_v58 }
 0x557   : > { %9316 = vst [vmem:[#allocation5 + $0x468] sm:$0xff] %v16285_v58  ;;  %9835 = vst [vmem:[#allocation5 + $0x760] sm:$0xff] %v16285_v58 }
 0x558   : > { %9939 = vrot.lane.b32.xlu1 %v16219_v33, %s13951_s13 }
 0x559   : > { %v16297_v42 = vpop.permute.xlu1 %8597  ;;  %v8888_v62 = vpop.permute.xlu0 %8887  ;;  %9425 = vrot.lane.b32.xlu0 %v16281_v48, %s13951_s13 }
 0x55a   : > { %v8658_v27 = vsel %vm5413_vm3, %v8596_v46, %v16297_v42  ;;  %v8949_v23 = vsel %vm5722_vm5, %v16240_v11, %v8888_v62 }
 0x55b   : > { %v13120_v55 = vpack.c.bf16 %v15932_v24, %v8658_v27  ;;  %v10214_v27 = vld [vmem:[#allocation5 + $0x410] sm:$0xff] }
 0x55c   : > { %9423 = vrot.lane.b32.xlu1 %v16227_v8, %s13951_s13 }
 0x55d   : > { %v9406_v33 = vpop.permute.xlu1 %9405  ;;  %v9116_v47 = vpop.permute.xlu0 %9115  ;;  %9653 = vrot.lane.b32.xlu0 %v16281_v48, %s13949_s8  ;;  %13121 = vmatprep.subr.bf16.mxu1 %v13120_v55 }
 0x55e   : > { %v9468_v36 = vsel %vm5722_vm5, %v9404_v54, %v9406_v33  ;;  %v9177_v22 = vsel %vm5413_vm3, %v9114_v39, %v9116_v47  ;;  %13123 = vmatpush1.bf16.msra.mxu1 %v13122_v18  ;;  %v8358_v39 = vrot.slane %v16123_v45, %v16053_v56  ;;  %v10373_v54 = vld [vmem:[#allocation5 + $0x908] sm:$0x1]  ;;  %v16379_v18 = vld [vmem:[#allocation17] sm:$0xff] }
 0x55f   : > { %v13106_v40 = vpack.c.bf16 %v9468_v36, %v10213_v57 }
 0x560   : > { %9651 = vrot.lane.b32.xlu1 %v16227_v8, %s13949_s8 }
 0x561   : > { %v16314_v6 = vpop.permute.xlu1 %8889  ;;  %v9634_v59 = vpop.permute.xlu0 %9633  ;;  %8617 = vrot.lane.b32.xlu0 %v16281_v48, %s13949_s8  ;;  %13107 = vmatprep.subr.bf16.mxu0 %v13106_v40 }
 0x562   : > { %v8950_v41 = vsel %vm5722_vm5, %v8888_v62, %v16314_v6  ;;  %v9696_v11 = vsel %vm5413_vm3, %v9632_v12, %v9634_v59  ;;  %13109 = vmatpush1.bf16.msra.mxu0 %v13108_v31  ;;  %v10372_v12 = vld [vmem:[#allocation5 + $0x900] sm:$0x1] }
 0x563   : > { %v13110_v63 = vpack.c.bf16 %v15932_v24, %v9696_v11  ;;  %v10374_v11 = vld [vmem:[#allocation5 + $0x910] sm:$0x1] }
 0x564   : > { %8615 = vrot.lane.b32.xlu1 %v16227_v8, %s13949_s8  ;;  %v13126_v8 = vpack.c.bf16 %v9177_v22, %v8949_v23 }
 0x565   : > { %v16325_v2 = vpop.permute.xlu1 %9117  ;;  %v9924_v28 = vpop.permute.xlu0 %9923  ;;  %9945 = vrot.lane.b32.xlu0 %v16285_v58, %s13951_s13  ;;  %13111 = vmatprep.subr.bf16.mxu0 %v13110_v63 }
 0x566   : > { %v9178_v32 = vsel %vm5413_vm3, %v9116_v47, %v16325_v2  ;;  %v9987_v46 = vsel %vm5722_vm5, %v9922_v13, %v9924_v28  ;;  %13113 = vmatpush1.bf16.msra.mxu0 %v13112_v9 }
 0x567   : > { %v13124_v24 = vpack.c.bf16 %v9178_v32, %v8950_v41  ;;  %v13117_v62 = vpack.c.bf16 %v10372_v12, %v9987_v46  ;;  %v10375_v41 = vld [vmem:[#allocation5 + $0x918] sm:$0x1]  ;;  %v16407_v32 = vld [vmem:[#allocation15 + $0x10] sm:$0xff] }
 0x568   : > { %9943 = vrot.lane.b32.xlu1 %v16281_v48, %s13951_s13 }
 0x569   : > { %v9408_v25 = vpop.permute.xlu1 %9407  ;;  %8909 = vrot.lane.b32.xlu0 %v16285_v58, %s13951_s13  ;;  %13125 = vmatprep.subr.bf16.mxu1 %v13124_v24 }
 0x56a   : > { %v9469_v38 = vsel %vm5722_vm5, %v9406_v33, %v9408_v25  ;;  %v9636_v20 = vpop.permute.xlu0 %9635  ;;  %13127 = vmatpush1.bf16.msra.mxu1 %v13126_v8  ;;  %v10120_v33 = vld [vmem:[#allocation5 + $0x120] sm:$0xff] }
 0x56b   : > { %v16338_v34 = vsel %vm5413_vm3, %v9634_v59, %v9636_v20  ;;  %v13130_v55 = vpack.c.bf16 %v9469_v38, %v10214_v27 }
 0x56c   : > { %8907 = vrot.lane.b32.xlu1 %v16281_v48, %s13951_s13  ;;  %v7686_v50 = vpop.f32.mrb[72].mxu1 }
 0x56d   : > { %v8273_v60 = vmax.f32 %v7686_v50, 0.0  ;;  %v9926_v43 = vpop.permute.xlu1 %9925  ;;  %9137 = vrot.lane.b32.xlu0 %v16285_v58, %s13949_s8  ;;  %v7688_v7 = vpop.f32.mrb[73].mxu1 }
 0x56e   : > { %v9988_v53 = vsel %vm5722_vm5, %v9924_v28, %v9926_v43  ;;  %v16349_v44 = vpop.permute.xlu0 %9409  ;;  %v8274_v17 = vmax.f32 %v7688_v7, 0.0 }
 0x56f   : > { %v16355_v10 = vmul.f32 %v8358_v39, %v8273_v60  ;;  %v9470_v45 = vsel %vm5722_vm5, %v9408_v25, %v16349_v44  ;;  %v13114_v37 = vpack.c.bf16 %v10373_v54, %v9988_v53  ;;  %v8366_v25 = vrot.slane %v16407_v32, %v15819_v1 }
 0x570   : > { %9135 = vrot.lane.b32.xlu1 %v16281_v48, %s13949_s8  ;;  %v16361_v5 = vmul.f32 %v8362_v3, %v8274_v17  ;;  %v13128_v13 = vpack.c.bf16 %v9470_v45, %v10215_v15 }
 0x571   : > { %8798 = vst [vmem:[#allocation5 + $0x178] sm:$0xff] %v16355_v10  ;;  %9317 = vst [vmem:[#allocation5 + $0x470] sm:$0xff] %v16355_v10  ;;  %v8600_v23 = vpop.permute.xlu1 %8599  ;;  %8621 = vrot.lane.b32.xlu0 %v16355_v10, %s13949_s8  ;;  %13116 = vmatprep.subr.msk.bf16.mxu0 %vm16351_vm10, %v13114_v37 }
 0x572   : > { %9836 = vst [vmem:[#allocation5 + $0x768] sm:$0xff] %v16355_v10  ;;  %v8659_v48 = vsel %vm5413_vm3, %v16297_v42, %v8600_v23  ;;  %v16372_v16 = vpop.permute.xlu0 %8601  ;;  %8799 = vst [vmem:[#allocation5 + $0x180] sm:$0xff] %v16361_v5  ;;  %13129 = vmatprep.subr.bf16.mxu1 %v13128_v13  ;;  %13119 = vmatpush1.bf16.msk.msra.mxu0 %vm16351_vm10, %v13117_v62  ;;  %v10122_v13 = vld [vmem:[#allocation5 + $0x130] sm:$0xff] }
 0x573   : > { %9318 = vst [vmem:[#allocation5 + $0x478] sm:$0xff] %v16361_v5  ;;  %9837 = vst [vmem:[#allocation5 + $0x770] sm:$0xff] %v16361_v5  ;;  %v8660_v47 = vsel %vm5413_vm3, %v8600_v23, %v16372_v16  ;;  %13131 = vmatpush1.bf16.msra.mxu1 %v13130_v55  ;;  %v13144_v42 = vpack.c.bf16 %v10120_v33, %v8659_v48  ;;  %v10217_v33 = vld [vmem:[#allocation5 + $0x428] sm:$0xff] }
 0x574   : > { %8619 = vrot.lane.b32.xlu1 %v16285_v58, %s13949_s8  ;;  %v13142_v36 = vpack.c.bf16 %v16002_v29, %v8660_v47  ;;  %v10310_v29 = vld [vmem:[#allocation5 + $0x710] sm:$0xff]  ;;  %v10216_v47 = vld [vmem:[#allocation5 + $0x420] sm:$0xff] }
 0x575   : > { %v16386_v22 = vpop.permute.xlu1 %9637  ;;  %9429 = vrot.lane.b32.xlu0 %v16355_v10, %s13951_s13  ;;  %12085 = vmatmul.mubr.msk.f32.vlgmr.msra.gmra.mrb[82].mxu0 %vm10404_vm11, %v16379_v18  ;;  %v13134_v59 = vpack.c.bf16 %v10310_v29, %v16338_v34 }
 0x576   : > { %v9698_v57 = vsel %vm5413_vm3, %v9636_v20, %v16386_v22  ;;  %v16394_v40 = vpop.permute.xlu0 %9929  ;;  %13143 = vmatprep.subr.bf16.mxu0 %v13142_v36  ;;  %10711 = vmatprep.mubr.f32.mxu0 %v16249_v26 }
 0x577   : > { %13145 = vmatpush1.bf16.msra.mxu0 %v13144_v42  ;;  %v13132_v31 = vpack.c.bf16 %v10311_v30, %v9698_v57  ;;  %v10313_v30 = vld [vmem:[#allocation5 + $0x728] sm:$0xff] }
 0x578   : > { %9427 = vrot.lane.b32.xlu1 %v16285_v58, %s13951_s13 }
 0x579   : > { %v9928_v63 = vpop.permute.xlu1 %9927  ;;  %9657 = vrot.lane.b32.xlu0 %v16355_v10, %s13949_s8  ;;  %13133 = vmatprep.subr.bf16.mxu1 %v13132_v31  ;;  %v10312_v31 = vld [vmem:[#allocation5 + $0x720] sm:$0xff] }
 0x57a   : > { %v9989_v52 = vsel %vm5722_vm5, %v9926_v43, %v9928_v63  ;;  %v9990_v9 = vsel %vm5722_vm5, %v9928_v63, %v16394_v40  ;;  %v16405_v28 = vpop.permute.xlu0 %8893  ;;  %13135 = vmatpush1.bf16.msra.mxu1 %v13134_v59 }
 0x57b   : > { %v13136_v46 = vpack.c.bf16 %v10375_v41, %v9990_v9  ;;  %v13139_v24 = vpack.c.bf16 %v10374_v11, %v9989_v52 }
 0x57c   : > { %9655 = vrot.lane.b32.xlu1 %v16285_v58, %s13949_s8  ;;  %v8370_v58 = vrot.slane %v16407_v32, %v15824_v14 }
 0x57d   : > { %v8892_v8 = vpop.permute.xlu1 %8891  ;;  %8913 = vrot.lane.b32.xlu0 %v16361_v5, %s13951_s13  ;;  %13138 = vmatprep.subr.msk.bf16.mxu1 %vm16351_vm10, %v13136_v46 }
 0x57e   : > { %v8951_v38 = vsel %vm5722_vm5, %v16314_v6, %v8892_v8  ;;  %v8952_v20 = vsel %vm5722_vm5, %v8892_v8, %v16405_v28  ;;  %v7757_v34 = vpop.f32.mrb[74].mxu0  ;;  %13141 = vmatpush1.bf16.msk.msra.mxu1 %vm16351_vm10, %v13139_v24  ;;  %v16425_v39 = vpop.permute.xlu0 %9121 }
 0x57f   : > { %v8275_v50 = vmax.f32 %v7757_v34, 0.0  ;;  %v7759_v3 = vpop.f32.mrb[75].mxu0 }
 0x580   : > { %8911 = vrot.lane.b32.xlu1 %v16355_v10, %s13951_s13  ;;  %v8276_v54 = vmax.f32 %v7759_v3, 0.0 }
 0x581   : > { %v9120_v60 = vpop.permute.xlu1 %9119  ;;  %9141 = vrot.lane.b32.xlu0 %v16361_v5, %s13949_s8  ;;  %v16431_v6 = vmul.f32 %v8366_v25, %v8275_v50  ;;  %12088 = vmatmul.mubr.msk.f32.vlgmr.msra.gmra.mrb[82].mxu1 %vm10404_vm11, %v16379_v18  ;;  %v8374_v50 = vrot.slane %v16407_v32, %v15910_v61 }
 0x582   : > { %v9179_v43 = vsel %vm5413_vm3, %v16325_v2, %v9120_v60  ;;  %v9180_v7 = vsel %vm5413_vm3, %v9120_v60, %v16425_v39  ;;  %v16439_v12 = vmul.f32 %v8370_v58, %v8276_v54  ;;  %10782 = vmatprep.mubr.f32.mxu1 %v16249_v26 }
 0x583   : > { %v16442_v53 = vpop.permute.xlu0 %8605  ;;  %8800 = vst [vmem:[#allocation5 + $0x188] sm:$0xff] %v16431_v6  ;;  %9319 = vst [vmem:[#allocation5 + $0x480] sm:$0xff] %v16431_v6  ;;  %v13146_v17 = vpack.c.bf16 %v9180_v7, %v8952_v20  ;;  %v13148_v45 = vpack.c.bf16 %v9179_v43, %v8951_v38  ;;  %v10377_v38 = vld [vmem:[#allocation5 + $0x928] sm:$0x1]  ;;  %v10376_v20 = vld [vmem:[#allocation5 + $0x920] sm:$0x1]  ;;  %v8378_v43 = vrot.slane %v16407_v32, %v15918_v19 }
 0x584   : > { %9838 = vst [vmem:[#allocation5 + $0x778] sm:$0xff] %v16431_v6  ;;  %9139 = vrot.lane.b32.xlu1 %v16355_v10, %s13949_s8  ;;  %8801 = vst [vmem:[#allocation5 + $0x190] sm:$0xff] %v16439_v12 }
 0x585   : > { %9320 = vst [vmem:[#allocation5 + $0x488] sm:$0xff] %v16439_v12  ;;  %9839 = vst [vmem:[#allocation5 + $0x780] sm:$0xff] %v16439_v12  ;;  %v8604_v2 = vpop.permute.xlu1 %8603  ;;  %9949 = vrot.lane.b32.xlu0 %v16361_v5, %s13951_s13  ;;  %13147 = vmatprep.subr.bf16.mxu0 %v13146_v17 }
 0x586   : > { %v8661_v37 = vsel %vm5413_vm3, %v16372_v16, %v8604_v2  ;;  %v8662_v15 = vsel %vm5413_vm3, %v8604_v2, %v16442_v53  ;;  %13149 = vmatpush1.bf16.msra.mxu0 %v13148_v45 }
 0x587   : > { %v16458_v62 = vpop.permute.xlu0 %9413  ;;  %v13164_v27 = vpack.c.bf16 %v16082_v49, %v8662_v15  ;;  %v13166_v23 = vpack.c.bf16 %v10122_v13, %v8661_v37  ;;  %v10219_v15 = vld [vmem:[#allocation5 + $0x438] sm:$0xff]  ;;  %v10218_v13 = vld [vmem:[#allocation5 + $0x430] sm:$0xff] }
 0x588   : > { %9947 = vrot.lane.b32.xlu1 %v16355_v10, %s13951_s13 }
 0x589   : > { %v9412_v55 = vpop.permute.xlu1 %9411  ;;  %9433 = vrot.lane.b32.xlu0 %v16431_v6, %s13951_s13  ;;  %13165 = vmatprep.subr.bf16.mxu1 %v13164_v27 }
 0x58a   : > { %v9471_v48 = vsel %vm5722_vm5, %v16349_v44, %v9412_v55  ;;  %v9472_v16 = vsel %vm5722_vm5, %v9412_v55, %v16458_v62  ;;  %13167 = vmatpush1.bf16.msra.mxu1 %v13166_v23 }
 0x58b   : > { %v16469_v42 = vpop.permute.xlu0 %9641  ;;  %v13150_v49 = vpack.c.bf16 %v9472_v16, %v10217_v33  ;;  %v13152_v36 = vpack.c.bf16 %v9471_v48, %v10216_v47 }
 0x58c   : > { %9431 = vrot.lane.b32.xlu1 %v16361_v5, %s13951_s13 }
 0x58d   : > { %v9640_v10 = vpop.permute.xlu1 %9639  ;;  %9661 = vrot.lane.b32.xlu0 %v16431_v6, %s13949_s8  ;;  %13151 = vmatprep.subr.bf16.mxu0 %v13150_v49  ;;  %v10314_v49 = vld [vmem:[#allocation5 + $0x730] sm:$0xff] }
 0x58e   : > { %v9699_v44 = vsel %vm5413_vm3, %v16386_v22, %v9640_v10  ;;  %v9700_v57 = vsel %vm5413_vm3, %v9640_v10, %v16469_v42  ;;  %13153 = vmatpush1.bf16.msra.mxu0 %v13152_v36 }
 0x58f   : > { %v16479_v29 = vpop.permute.xlu0 %8897  ;;  %v13154_v59 = vpack.c.bf16 %v10313_v30, %v9700_v57  ;;  %v13156_v41 = vpack.c.bf16 %v10312_v31, %v9699_v44  ;;  %v10125_v31 = vld [vmem:[#allocation5 + $0x148] sm:$0xff] }
 0x590   : > { %9659 = vrot.lane.b32.xlu1 %v16361_v5, %s13949_s8 }
 0x591   : > { %v8896_v11 = vpop.permute.xlu1 %8895  ;;  %8625 = vrot.lane.b32.xlu0 %v16431_v6, %s13949_s8  ;;  %13155 = vmatprep.subr.bf16.mxu0 %v13154_v59  ;;  %v10124_v59 = vld [vmem:[#allocation5 + $0x140] sm:$0xff] }
 0x592   : > { %v8953_v22 = vsel %vm5722_vm5, %v16405_v28, %v8896_v11  ;;  %v8954_v63 = vsel %vm5722_vm5, %v8896_v11, %v16479_v29  ;;  %13157 = vmatpush1.bf16.msra.mxu0 %v13156_v41 }
 0x593   : > { %v16489_v52 = vpop.permute.xlu0 %9125 }
 0x594   : > { %8623 = vrot.lane.b32.xlu1 %v16361_v5, %s13949_s8 }
 0x595   : > { %v9124_v9 = vpop.permute.xlu1 %9123  ;;  %9953 = vrot.lane.b32.xlu0 %v16439_v12, %s13951_s13 }
 0x596   : > { %v9181_v46 = vsel %vm5413_vm3, %v16425_v39, %v9124_v9  ;;  %v9182_v24 = vsel %vm5413_vm3, %v9124_v9, %v16489_v52  ;;  %v10378_v9 = vld [vmem:[#allocation5 + $0x930] sm:$0x1] }
 0x597   : > { %v16499_v28 = vpop.permute.xlu0 %9933  ;;  %v13168_v8 = vpack.c.bf16 %v9182_v24, %v8954_v63  ;;  %v13170_v25 = vpack.c.bf16 %v9181_v46, %v8953_v22  ;;  %v10379_v63 = vld [vmem:[#allocation5 + $0x938] sm:$0x1] }
 0x598   : > { %9951 = vrot.lane.b32.xlu1 %v16431_v6, %s13951_s13 }
 0x599   : > { %v9932_v5 = vpop.permute.xlu1 %9931  ;;  %8917 = vrot.lane.b32.xlu0 %v16439_v12, %s13951_s13  ;;  %13169 = vmatprep.subr.bf16.mxu1 %v13168_v8 }
 0x59a   : > { %v9991_v34 = vsel %vm5722_vm5, %v16394_v40, %v9932_v5  ;;  %v9992_v58 = vsel %vm5722_vm5, %v9932_v5, %v16499_v28  ;;  %13171 = vmatpush1.bf16.msra.mxu1 %v13170_v25 }
 0x59b   : > { %v16509_v39 = vpop.permute.xlu0 %9417  ;;  %v13158_v3 = vpack.c.bf16 %v10377_v38, %v9992_v58  ;;  %v13161_v54 = vpack.c.bf16 %v10376_v20, %v9991_v34  ;;  %v8382_v58 = vrot.slane %v16407_v32, %v15971_v51 }
 0x59c   : > { %8915 = vrot.lane.b32.xlu1 %v16431_v6, %s13951_s13  ;;  %v7828_v60 = vpop.f32.mrb[74].mxu1 }
 0x59d   : > { %v8277_v7 = vmax.f32 %v7828_v60, 0.0  ;;  %v9416_v40 = vpop.permute.xlu1 %9415  ;;  %9145 = vrot.lane.b32.xlu0 %v16439_v12, %s13949_s8  ;;  %v7830_v17 = vpop.f32.mrb[75].mxu1  ;;  %13160 = vmatprep.subr.msk.bf16.mxu0 %vm16351_vm10, %v13158_v3 }
 0x59e   : > { %v9473_v45 = vsel %vm5722_vm5, %v16458_v62, %v9416_v40  ;;  %v9474_v2 = vsel %vm5722_vm5, %v9416_v40, %v16509_v39  ;;  %v8278_v37 = vmax.f32 %v7830_v17, 0.0  ;;  %13163 = vmatpush1.bf16.msk.msra.mxu0 %vm16351_vm10, %v13161_v54  ;;  %v8386_v54 = vrot.slane %v16407_v32, %v15980_v0 }
 0x59f   : > { %v16527_v27 = vmul.f32 %v8374_v50, %v8277_v7  ;;  %v16529_v23 = vpop.permute.xlu0 %9645  ;;  %v13172_v55 = vpack.c.bf16 %v9474_v2, %v10219_v15  ;;  %v13174_v48 = vpack.c.bf16 %v9473_v45, %v10218_v13  ;;  %v10127_v13 = vld [vmem:[#allocation5 + $0x158] sm:$0xff] }
 0x5a0   : > { %9143 = vrot.lane.b32.xlu1 %v16431_v6, %s13949_s8  ;;  %v16533_v16 = vmul.f32 %v8378_v43, %v8278_v37  ;;  %v10315_v6 = vld [vmem:[#allocation5 + $0x738] sm:$0xff] }
 0x5a1   : > { %8802 = vst [vmem:[#allocation5 + $0x198] sm:$0xff] %v16527_v27  ;;  %9321 = vst [vmem:[#allocation5 + $0x490] sm:$0xff] %v16527_v27  ;;  %v9644_v62 = vpop.permute.xlu1 %9643  ;;  %8629 = vrot.lane.b32.xlu0 %v16527_v27, %s13949_s8  ;;  %13173 = vmatprep.subr.bf16.mxu1 %v13172_v55  ;;  %v10126_v55 = vld [vmem:[#allocation5 + $0x150] sm:$0xff] }
 0x5a2   : > { %9840 = vst [vmem:[#allocation5 + $0x788] sm:$0xff] %v16527_v27  ;;  %v9701_v33 = vsel %vm5413_vm3, %v16469_v42, %v9644_v62  ;;  %v9702_v47 = vsel %vm5413_vm3, %v9644_v62, %v16529_v23  ;;  %8803 = vst [vmem:[#allocation5 + $0x1a0] sm:$0xff] %v16533_v16  ;;  %13175 = vmatpush1.bf16.msra.mxu1 %v13174_v48  ;;  %12091 = vmatmul.mubr.msk.f32.vlgmr.msra.gmra.mrb[84].mxu0 %vm10404_vm11, %v16379_v18 }
 0x5a3   : > { %9322 = vst [vmem:[#allocation5 + $0x498] sm:$0xff] %v16533_v16  ;;  %9841 = vst [vmem:[#allocation5 + $0x790] sm:$0xff] %v16533_v16  ;;  %v8610_v36 = vpop.permute.xlu0 %8609  ;;  %v13176_v10 = vpack.c.bf16 %v10315_v6, %v9702_v47  ;;  %v13178_v44 = vpack.c.bf16 %v10314_v49, %v9701_v33  ;;  %10853 = vmatprep.mubr.f32.mxu0 %v16249_v26 }
 0x5a4   : > { %8627 = vrot.lane.b32.xlu1 %v16439_v12, %s13949_s8 }
 0x5a5   : > { %v8608_v42 = vpop.permute.xlu1 %8607  ;;  %9437 = vrot.lane.b32.xlu0 %v16527_v27, %s13951_s13  ;;  %13177 = vmatprep.subr.bf16.mxu1 %v13176_v10  ;;  %v10220_v10 = vld [vmem:[#allocation5 + $0x440] sm:$0xff] }
 0x5a6   : > { %v8663_v57 = vsel %vm5413_vm3, %v16442_v53, %v8608_v42  ;;  %v8664_v30 = vsel %vm5413_vm3, %v8608_v42, %v8610_v36  ;;  %13179 = vmatpush1.bf16.msra.mxu1 %v13178_v44 }
 0x5a7   : > { %v16557_v41 = vpop.permute.xlu0 %9937  ;;  %v13186_v11 = vpack.c.bf16 %v10125_v31, %v8664_v30  ;;  %v13188_v22 = vpack.c.bf16 %v10124_v59, %v8663_v57  ;;  %v10317_v59 = vld [vmem:[#allocation5 + $0x748] sm:$0xff] }
 0x5a8   : > { %9435 = vrot.lane.b32.xlu1 %v16439_v12, %s13951_s13 }
 0x5a9   : > { %v9936_v46 = vpop.permute.xlu1 %9935  ;;  %9665 = vrot.lane.b32.xlu0 %v16527_v27, %s13949_s8  ;;  %13187 = vmatprep.subr.bf16.mxu0 %v13186_v11  ;;  %v10316_v11 = vld [vmem:[#allocation5 + $0x740] sm:$0xff] }
 0x5aa   : > { %v9993_v53 = vsel %vm5722_vm5, %v16499_v28, %v9936_v46  ;;  %v9994_v24 = vsel %vm5722_vm5, %v9936_v46, %v16557_v41  ;;  %13189 = vmatpush1.bf16.msra.mxu0 %v13188_v22 }
 0x5ab   : > { %v16567_v8 = vpop.permute.xlu0 %8901  ;;  %v13180_v25 = vpack.c.bf16 %v10379_v63, %v9994_v24  ;;  %v13183_v38 = vpack.c.bf16 %v10378_v9, %v9993_v53 }
 0x5ac   : > { %9663 = vrot.lane.b32.xlu1 %v16439_v12, %s13949_s8 }
 0x5ad   : > { %v8900_v20 = vpop.permute.xlu1 %8899  ;;  %8921 = vrot.lane.b32.xlu0 %v16533_v16, %s13951_s13  ;;  %13182 = vmatprep.subr.msk.bf16.mxu1 %vm16351_vm10, %v13180_v25 }
 0x5ae   : > { %v8955_v28 = vsel %vm5722_vm5, %v16479_v29, %v8900_v20  ;;  %v8956_v5 = vsel %vm5722_vm5, %v8900_v20, %v16567_v8  ;;  %13185 = vmatpush1.bf16.msk.msra.mxu1 %vm16351_vm10, %v13183_v38 }
 0x5af   : > { %v16581_v34 = vpop.permute.xlu0 %9129 }
 0x5b0   : > { %8919 = vrot.lane.b32.xlu1 %v16527_v27, %s13951_s13 }
 0x5b1   : > { %v9128_v12 = vpop.permute.xlu1 %9127  ;;  %9149 = vrot.lane.b32.xlu0 %v16533_v16, %s13949_s8  ;;  %12094 = vmatmul.mubr.msk.f32.vlgmr.msra.gmra.mrb[84].mxu1 %vm10404_vm11, %v16379_v18 }
 0x5b2   : > { %v9183_v29 = vsel %vm5413_vm3, %v16489_v52, %v9128_v12  ;;  %v9184_v50 = vsel %vm5413_vm3, %v9128_v12, %v16581_v34  ;;  %v7899_v3 = vpop.f32.mrb[76].mxu0  ;;  %10924 = vmatprep.mubr.f32.mxu1 %v16249_v26 }
 0x5b3   : > { %v16598_v60 = vpop.permute.xlu0 %8613  ;;  %v8279_v43 = vmax.f32 %v7899_v3, 0.0  ;;  %v7901_v7 = vpop.f32.mrb[77].mxu0  ;;  %v13190_v40 = vpack.c.bf16 %v9184_v50, %v8956_v5  ;;  %v13192_v17 = vpack.c.bf16 %v9183_v29, %v8955_v28  ;;  %v10380_v5 = vld [vmem:[#allocation5 + $0x940] sm:$0x1]  ;;  %v8390_v50 = vrot.slane %v16407_v32, %v16053_v56 }
 0x5b4   : > { %9147 = vrot.lane.b32.xlu1 %v16527_v27, %s13949_s8  ;;  %v8280_v45 = vmax.f32 %v7901_v7, 0.0 }
 0x5b5   : > { %v16602_v52 = vmul.f32 %v8382_v58, %v8279_v43  ;;  %v8612_v2 = vpop.permute.xlu1 %8611  ;;  %9957 = vrot.lane.b32.xlu0 %v16533_v16, %s13951_s13  ;;  %13191 = vmatprep.subr.bf16.mxu0 %v13190_v40 }
 0x5b6   : > { %v8665_v37 = vsel %vm5413_vm3, %v8610_v36, %v8612_v2  ;;  %v8666_v26 = vsel %vm5413_vm3, %v8612_v2, %v16598_v60  ;;  %v16609_v15 = vmul.f32 %v8386_v54, %v8280_v45  ;;  %13193 = vmatpush1.bf16.msra.mxu0 %v13192_v17  ;;  %v8394_v54 = vrot.slane %v16407_v32, %v16058_v21 }
 0x5b7   : > { %8804 = vst [vmem:[#allocation5 + $0x1a8] sm:$0xff] %v16602_v52  ;;  %9323 = vst [vmem:[#allocation5 + $0x4a0] sm:$0xff] %v16602_v52  ;;  %v16614_v48 = vpop.permute.xlu0 %9421  ;;  %v13208_v62 = vpack.c.bf16 %v10127_v13, %v8666_v26  ;;  %v13210_v33 = vpack.c.bf16 %v10126_v55, %v8665_v37  ;;  %v10223_v13 = vld [vmem:[#allocation5 + $0x458] sm:$0xff]  ;;  %v10222_v55 = vld [vmem:[#allocation5 + $0x450] sm:$0xff] }
 0x5b8   : > { %9842 = vst [vmem:[#allocation5 + $0x798] sm:$0xff] %v16602_v52  ;;  %9955 = vrot.lane.b32.xlu1 %v16527_v27, %s13951_s13  ;;  %8805 = vst [vmem:[#allocation5 + $0x1b0] sm:$0xff] %v16609_v15  ;;  %v10221_v27 = vld [vmem:[#allocation5 + $0x448] sm:$0xff] }
 0x5b9   : > { %9324 = vst [vmem:[#allocation5 + $0x4a8] sm:$0xff] %v16609_v15  ;;  %9843 = vst [vmem:[#allocation5 + $0x7a0] sm:$0xff] %v16609_v15  ;;  %9441 = vrot.lane.b32.xlu0 %v16602_v52, %s13951_s13  ;;  %13209 = vmatprep.subr.bf16.mxu1 %v13208_v62 }
 0x5ba   : > { %v9420_v47 = vpop.permute.xlu1 %9419  ;;  %13211 = vmatpush1.bf16.msra.mxu1 %v13210_v33 }
 0x5bb   : > { %v9475_v6 = vsel %vm5722_vm5, %v16509_v39, %v9420_v47  ;;  %v9476_v49 = vsel %vm5722_vm5, %v9420_v47, %v16614_v48  ;;  %v16627_v36 = vpop.permute.xlu0 %9649 }
 0x5bc   : > { %9439 = vrot.lane.b32.xlu1 %v16533_v16, %s13951_s13  ;;  %v13194_v44 = vpack.c.bf16 %v9476_v49, %v10221_v27  ;;  %v13196_v42 = vpack.c.bf16 %v9475_v6, %v10220_v10  ;;  %v10319_v27 = vld [vmem:[#allocation5 + $0x758] sm:$0xff]  ;;  %v10318_v10 = vld [vmem:[#allocation5 + $0x750] sm:$0xff] }
 0x5bd   : > { %9669 = vrot.lane.b32.xlu0 %v16602_v52, %s13949_s8 }
 0x5be   : > { %v9648_v57 = vpop.permute.xlu1 %9647  ;;  %13195 = vmatprep.subr.bf16.mxu0 %v13194_v44  ;;  %v16709_v44 = vld [vmem:[#allocation2] sm:$0xff] }
 0x5bf   : > { %v9703_v39 = vsel %vm5413_vm3, %v16529_v23, %v9648_v57  ;;  %v9704_v30 = vsel %vm5413_vm3, %v9648_v57, %v16627_v36  ;;  %v16637_v31 = vpop.permute.xlu0 %8905  ;;  %13197 = vmatpush1.bf16.msra.mxu0 %v13196_v42 }
 0x5c0   : > { %9667 = vrot.lane.b32.xlu1 %v16533_v16, %s13949_s8  ;;  %v13198_v22 = vpack.c.bf16 %v10317_v59, %v9704_v30  ;;  %v13200_v63 = vpack.c.bf16 %v10316_v11, %v9703_v39  ;;  %v10129_v11 = vld [vmem:[#allocation5 + $0x168] sm:$0xff] }
 0x5c1   : > { %8633 = vrot.lane.b32.xlu0 %v16602_v52, %s13949_s8 }
 0x5c2   : > { %v8904_v9 = vpop.permute.xlu1 %8903  ;;  %13199 = vmatprep.subr.bf16.mxu0 %v13198_v22  ;;  %v10128_v22 = vld [vmem:[#allocation5 + $0x160] sm:$0xff] }
 0x5c3   : > { %v8957_v23 = vsel %vm5722_vm5, %v16567_v8, %v8904_v9  ;;  %v8958_v46 = vsel %vm5722_vm5, %v8904_v9, %v16637_v31  ;;  %v16647_v53 = vpop.permute.xlu0 %9133  ;;  %13201 = vmatpush1.bf16.msra.mxu0 %v13200_v63 }
 0x5c4   : > { %8631 = vrot.lane.b32.xlu1 %v16533_v16, %s13949_s8  ;;  %v10381_v16 = vld [vmem:[#allocation5 + $0x948] sm:$0x1] }
 0x5c5   : > { %9961 = vrot.lane.b32.xlu0 %v16609_v15, %s13951_s13 }
 0x5c6   : > { %v9132_v24 = vpop.permute.xlu1 %9131 }
 0x5c7   : > { %v9185_v25 = vsel %vm5413_vm3, %v16581_v34, %v9132_v24  ;;  %v9186_v38 = vsel %vm5413_vm3, %v9132_v24, %v16647_v53  ;;  %v16657_v8 = vpop.permute.xlu0 %9941 }
 0x5c8   : > { %9959 = vrot.lane.b32.xlu1 %v16602_v52, %s13951_s13  ;;  %v13212_v20 = vpack.c.bf16 %v9186_v38, %v8958_v46  ;;  %v13214_v28 = vpack.c.bf16 %v9185_v25, %v8957_v23  ;;  %v10383_v23 = vld [vmem:[#allocation5 + $0x958] sm:$0x1]  ;;  %v10382_v46 = vld [vmem:[#allocation5 + $0x950] sm:$0x1] }
 0x5c9   : > { %8925 = vrot.lane.b32.xlu0 %v16609_v15, %s13951_s13 }
 0x5ca   : > { %v9940_v12 = vpop.permute.xlu1 %9939  ;;  %13213 = vmatprep.subr.bf16.mxu1 %v13212_v20 }
 0x5cb   : > { %v9995_v34 = vsel %vm5722_vm5, %v16557_v41, %v9940_v12  ;;  %v9996_v58 = vsel %vm5722_vm5, %v9940_v12, %v16657_v8  ;;  %v16667_v29 = vpop.permute.xlu0 %9425  ;;  %13215 = vmatpush1.bf16.msra.mxu1 %v13214_v28 }
 0x5cc   : > { %8923 = vrot.lane.b32.xlu1 %v16602_v52, %s13951_s13  ;;  %v7970_v3 = vpop.f32.mrb[76].mxu1  ;;  %v13202_v43 = vpack.c.bf16 %v10381_v16, %v9996_v58  ;;  %v13205_v7 = vpack.c.bf16 %v10380_v5, %v9995_v34  ;;  %v16736_v5 = vld [vmem:[#allocation15 + $0x18] sm:$0xff] }
 0x5cd   : > { %v8281_v40 = vmax.f32 %v7970_v3, 0.0  ;;  %9153 = vrot.lane.b32.xlu0 %v16609_v15, %s13949_s8  ;;  %v7972_v41 = vpop.f32.mrb[77].mxu1 }
 0x5ce   : > { %v9424_v17 = vpop.permute.xlu1 %9423  ;;  %v8282_v45 = vmax.f32 %v7972_v41, 0.0  ;;  %13204 = vmatprep.subr.msk.bf16.mxu0 %vm16351_vm10, %v13202_v43 }
 0x5cf   : > { %v16679_v2 = vmul.f32 %v8390_v50, %v8281_v40  ;;  %v9477_v37 = vsel %vm5722_vm5, %v16614_v48, %v9424_v17  ;;  %v9478_v32 = vsel %vm5722_vm5, %v9424_v17, %v16667_v29  ;;  %v16685_v26 = vpop.permute.xlu0 %9653  ;;  %13207 = vmatpush1.bf16.msk.msra.mxu0 %vm16351_vm10, %v13205_v7 }
 0x5d0   : > { %9151 = vrot.lane.b32.xlu1 %v16602_v52, %s13949_s8  ;;  %v16691_v62 = vmul.f32 %v8394_v54, %v8282_v45  ;;  %v13216_v33 = vpack.c.bf16 %v9478_v32, %v10223_v13  ;;  %v13218_v47 = vpack.c.bf16 %v9477_v37, %v10222_v55  ;;  %v10131_v13 = vld [vmem:[#allocation5 + $0x178] sm:$0xff]  ;;  %v10130_v55 = vld [vmem:[#allocation5 + $0x170] sm:$0xff] }
 0x5d1   : > { %8806 = vst [vmem:[#allocation5 + $0x1b8] sm:$0xff] %v16679_v2  ;;  %9325 = vst [vmem:[#allocation5 + $0x4b0] sm:$0xff] %v16679_v2  ;;  %8637 = vrot.lane.b32.xlu0 %v16679_v2, %s13949_s8 }
 0x5d2   : > { %9844 = vst [vmem:[#allocation5 + $0x7a8] sm:$0xff] %v16679_v2  ;;  %v9652_v48 = vpop.permute.xlu1 %9651  ;;  %8807 = vst [vmem:[#allocation5 + $0x1c0] sm:$0xff] %v16691_v62  ;;  %13217 = vmatprep.subr.bf16.mxu1 %v13216_v33  ;;  %12097 = vmatmul.mubr.msk.f32.vlgmr.msra.gmra.mrb[86].mxu0 %vm10404_vm11, %v16379_v18 }
 0x5d3   : > { %9326 = vst [vmem:[#allocation5 + $0x4b8] sm:$0xff] %v16691_v62  ;;  %9845 = vst [vmem:[#allocation5 + $0x7b0] sm:$0xff] %v16691_v62  ;;  %v9705_v52 = vsel %vm5413_vm3, %v16627_v36, %v9652_v48  ;;  %v9706_v6 = vsel %vm5413_vm3, %v9652_v48, %v16685_v26  ;;  %v16707_v49 = vpop.permute.xlu0 %8617  ;;  %13219 = vmatpush1.bf16.msra.mxu1 %v13218_v47  ;;  %10995 = vmatprep.mubr.f32.mxu0 %v16709_v44 }
 0x5d4   : > { %8635 = vrot.lane.b32.xlu1 %v16609_v15, %s13949_s8  ;;  %v13220_v42 = vpack.c.bf16 %v10319_v27, %v9706_v6  ;;  %v13222_v57 = vpack.c.bf16 %v10318_v10, %v9705_v52  ;;  %v10224_v27 = vld [vmem:[#allocation5 + $0x460] sm:$0xff] }
 0x5d5   : > { %9445 = vrot.lane.b32.xlu0 %v16679_v2, %s13951_s13 }
 0x5d6   : > { %v8616_v36 = vpop.permute.xlu1 %8615  ;;  %13221 = vmatprep.subr.bf16.mxu1 %v13220_v42 }
 0x5d7   : > { %v8667_v39 = vsel %vm5413_vm3, %v16598_v60, %v8616_v36  ;;  %v8668_v30 = vsel %vm5413_vm3, %v8616_v36, %v16707_v49  ;;  %v16720_v59 = vpop.permute.xlu0 %9945  ;;  %13223 = vmatpush1.bf16.msra.mxu1 %v13222_v57 }
 0x5d8   : > { %9443 = vrot.lane.b32.xlu1 %v16609_v15, %s13951_s13  ;;  %v13230_v63 = vpack.c.bf16 %v10129_v11, %v8668_v30  ;;  %v13232_v9 = vpack.c.bf16 %v10128_v22, %v8667_v39  ;;  %v10321_v30 = vld [vmem:[#allocation5 + $0x768] sm:$0xff]  ;;  %v10320_v11 = vld [vmem:[#allocation5 + $0x760] sm:$0xff] }
 0x5d9   : > { %9673 = vrot.lane.b32.xlu0 %v16679_v2, %s13949_s8 }
 0x5da   : > { %v9944_v24 = vpop.permute.xlu1 %9943  ;;  %13231 = vmatprep.subr.bf16.mxu0 %v13230_v63 }
 0x5db   : > { %v9997_v60 = vsel %vm5722_vm5, %v16657_v8, %v9944_v24  ;;  %v9998_v25 = vsel %vm5722_vm5, %v9944_v24, %v16720_v59  ;;  %v16730_v38 = vpop.permute.xlu0 %8909  ;;  %13233 = vmatpush1.bf16.msra.mxu0 %v13232_v9 }
 0x5dc   : > { %9671 = vrot.lane.b32.xlu1 %v16609_v15, %s13949_s8  ;;  %v13224_v20 = vpack.c.bf16 %v10383_v23, %v9998_v25  ;;  %v13227_v28 = vpack.c.bf16 %v10382_v46, %v9997_v60  ;;  %v8398_v15 = vrot.slane %v16736_v5, %v15819_v1 }
 0x5dd   : > { %8929 = vrot.lane.b32.xlu0 %v16691_v62, %s13951_s13 }
 0x5de   : > { %v8908_v16 = vpop.permute.xlu1 %8907  ;;  %13226 = vmatprep.subr.msk.bf16.mxu1 %vm16351_vm10, %v13224_v20 }
 0x5df   : > { %v8959_v8 = vsel %vm5722_vm5, %v16637_v31, %v8908_v16  ;;  %v8960_v12 = vsel %vm5722_vm5, %v8908_v16, %v16730_v38  ;;  %v16744_v34 = vpop.permute.xlu0 %9137  ;;  %13229 = vmatpush1.bf16.msk.msra.mxu1 %vm16351_vm10, %v13227_v28  ;;  %v8402_v31 = vrot.slane %v16736_v5, %v15824_v14  ;;  %v10384_v16 = vld [vmem:[#allocation5 + $0x960] sm:$0x1] }
 0x5e0   : > { %8927 = vrot.lane.b32.xlu1 %v16679_v2, %s13951_s13 }
 0x5e1   : > { %9157 = vrot.lane.b32.xlu0 %v16691_v62, %s13949_s8 }
 0x5e2   : > { %v9136_v58 = vpop.permute.xlu1 %9135  ;;  %v8041_v50 = vpop.f32.mrb[78].mxu0  ;;  %12100 = vmatmul.mubr.msk.f32.vlgmr.msra.gmra.mrb[86].mxu1 %vm10404_vm11, %v16379_v18 }
 0x5e3   : > { %v9187_v3 = vsel %vm5413_vm3, %v16647_v53, %v9136_v58  ;;  %v9188_v54 = vsel %vm5413_vm3, %v9136_v58, %v16744_v34  ;;  %v16762_v43 = vpop.permute.xlu0 %8621  ;;  %v8283_v7 = vmax.f32 %v8041_v50, 0.0  ;;  %v8043_v40 = vpop.f32.mrb[79].mxu0  ;;  %11066 = vmatprep.mubr.f32.mxu1 %v16709_v44  ;;  %v8406_v58 = vrot.slane %v16736_v5, %v15910_v61 }
 0x5e4   : > { %9155 = vrot.lane.b32.xlu1 %v16679_v2, %s13949_s8  ;;  %v8284_v1 = vmax.f32 %v8043_v40, 0.0  ;;  %v13234_v14 = vpack.c.bf16 %v9188_v54, %v8960_v12  ;;  %v13236_v41 = vpack.c.bf16 %v9187_v3, %v8959_v8 }
 0x5e5   : > { %v16767_v17 = vmul.f32 %v8398_v15, %v8283_v7  ;;  %9965 = vrot.lane.b32.xlu0 %v16691_v62, %s13951_s13 }
 0x5e6   : > { %v8620_v18 = vpop.permute.xlu1 %8619  ;;  %v16771_v53 = vmul.f32 %v8402_v31, %v8284_v1  ;;  %13235 = vmatprep.subr.bf16.mxu0 %v13234_v14  ;;  %v8410_v31 = vrot.slane %v16736_v5, %v15918_v19 }
 0x5e7   : > { %8808 = vst [vmem:[#allocation5 + $0x1c8] sm:$0xff] %v16767_v17  ;;  %9327 = vst [vmem:[#allocation5 + $0x4c0] sm:$0xff] %v16767_v17  ;;  %v8669_v45 = vsel %vm5413_vm3, %v16707_v49, %v8620_v18  ;;  %v8670_v37 = vsel %vm5413_vm3, %v8620_v18, %v16762_v43  ;;  %v16780_v32 = vpop.permute.xlu0 %9429  ;;  %13237 = vmatpush1.bf16.msra.mxu0 %v13236_v41  ;;  %v10225_v49 = vld [vmem:[#allocation5 + $0x468] sm:$0xff]  ;;  %v10227_v18 = vld [vmem:[#allocation5 + $0x478] sm:$0xff] }
 0x5e8   : > { %9846 = vst [vmem:[#allocation5 + $0x7b8] sm:$0xff] %v16767_v17  ;;  %9963 = vrot.lane.b32.xlu1 %v16679_v2, %s13951_s13  ;;  %8809 = vst [vmem:[#allocation5 + $0x1d0] sm:$0xff] %v16771_v53  ;;  %v13252_v33 = vpack.c.bf16 %v10131_v13, %v8670_v37  ;;  %v13254_v47 = vpack.c.bf16 %v10130_v55, %v8669_v45  ;;  %v10226_v45 = vld [vmem:[#allocation5 + $0x470] sm:$0xff] }
 0x5e9   : > { %9328 = vst [vmem:[#allocation5 + $0x4c8] sm:$0xff] %v16771_v53  ;;  %9847 = vst [vmem:[#allocation5 + $0x7c0] sm:$0xff] %v16771_v53  ;;  %9449 = vrot.lane.b32.xlu0 %v16767_v17, %s13951_s13 }
 0x5ea   : > { %v9428_v48 = vpop.permute.xlu1 %9427  ;;  %13253 = vmatprep.subr.bf16.mxu1 %v13252_v33 }
 0x5eb   : > { %v9479_v52 = vsel %vm5722_vm5, %v16667_v29, %v9428_v48  ;;  %v9480_v6 = vsel %vm5722_vm5, %v9428_v48, %v16780_v32  ;;  %v16793_v2 = vpop.permute.xlu0 %9657  ;;  %13255 = vmatpush1.bf16.msra.mxu1 %v13254_v47 }
 0x5ec   : > { %9447 = vrot.lane.b32.xlu1 %v16691_v62, %s13951_s13  ;;  %v13238_v10 = vpack.c.bf16 %v9480_v6, %v10225_v49  ;;  %v13240_v42 = vpack.c.bf16 %v9479_v52, %v10224_v27  ;;  %v10323_v52 = vld [vmem:[#allocation5 + $0x778] sm:$0xff]  ;;  %v10322_v6 = vld [vmem:[#allocation5 + $0x770] sm:$0xff] }
 0x5ed   : > { %9677 = vrot.lane.b32.xlu0 %v16767_v17, %s13949_s8 }
 0x5ee   : > { %v9656_v57 = vpop.permute.xlu1 %9655  ;;  %13239 = vmatprep.subr.bf16.mxu0 %v13238_v10 }
 0x5ef   : > { %v9707_v29 = vsel %vm5413_vm3, %v16685_v26, %v9656_v57  ;;  %v9708_v36 = vsel %vm5413_vm3, %v9656_v57, %v16793_v2  ;;  %v16803_v39 = vpop.permute.xlu0 %8913  ;;  %13241 = vmatpush1.bf16.msra.mxu0 %v13240_v42 }
 0x5f0   : > { %9675 = vrot.lane.b32.xlu1 %v16691_v62, %s13949_s8  ;;  %v13242_v22 = vpack.c.bf16 %v10321_v30, %v9708_v36  ;;  %v13244_v63 = vpack.c.bf16 %v10320_v11, %v9707_v29  ;;  %v10133_v29 = vld [vmem:[#allocation5 + $0x188] sm:$0xff]  ;;  %v10132_v36 = vld [vmem:[#allocation5 + $0x180] sm:$0xff] }
 0x5f1   : > { %8641 = vrot.lane.b32.xlu0 %v16767_v17, %s13949_s8 }
 0x5f2   : > { %v8912_v9 = vpop.permute.xlu1 %8911  ;;  %13243 = vmatprep.subr.bf16.mxu0 %v13242_v22  ;;  %v10387_v22 = vld [vmem:[#allocation5 + $0x978] sm:$0x1] }
 0x5f3   : > { %v8961_v26 = vsel %vm5722_vm5, %v16730_v38, %v8912_v9  ;;  %v8962_v23 = vsel %vm5722_vm5, %v8912_v9, %v16803_v39  ;;  %v16813_v46 = vpop.permute.xlu0 %9141  ;;  %13245 = vmatpush1.bf16.msra.mxu0 %v13244_v63  ;;  %v10386_v63 = vld [vmem:[#allocation5 + $0x970] sm:$0x1] }
 0x5f4   : > { %8639 = vrot.lane.b32.xlu1 %v16691_v62, %s13949_s8  ;;  %v10385_v62 = vld [vmem:[#allocation5 + $0x968] sm:$0x1] }
 0x5f5   : > { %9969 = vrot.lane.b32.xlu0 %v16771_v53, %s13951_s13 }
 0x5f6   : > { %v9140_v24 = vpop.permute.xlu1 %9139 }
 0x5f7   : > { %v9189_v60 = vsel %vm5413_vm3, %v16744_v34, %v9140_v24  ;;  %v9190_v25 = vsel %vm5413_vm3, %v9140_v24, %v16813_v46  ;;  %v16823_v38 = vpop.permute.xlu0 %9949 }
 0x5f8   : > { %9967 = vrot.lane.b32.xlu1 %v16767_v17, %s13951_s13  ;;  %v13256_v20 = vpack.c.bf16 %v9190_v25, %v8962_v23  ;;  %v13258_v28 = vpack.c.bf16 %v9189_v60, %v8961_v26 }
 0x5f9   : > { %8933 = vrot.lane.b32.xlu0 %v16771_v53, %s13951_s13 }
 0x5fa   : > { %v9948_v8 = vpop.permute.xlu1 %9947  ;;  %13257 = vmatprep.subr.bf16.mxu1 %v13256_v20 }
 0x5fb   : > { %v9999_v12 = vsel %vm5722_vm5, %v16720_v59, %v9948_v8  ;;  %v10000_v34 = vsel %vm5722_vm5, %v9948_v8, %v16823_v38  ;;  %v16833_v15 = vpop.permute.xlu0 %9433  ;;  %13259 = vmatpush1.bf16.msra.mxu1 %v13258_v28 }
 0x5fc   : > { %8931 = vrot.lane.b32.xlu1 %v16767_v17, %s13951_s13  ;;  %v8112_v50 = vpop.f32.mrb[78].mxu1  ;;  %v13246_v3 = vpack.c.bf16 %v10385_v62, %v10000_v34  ;;  %v13249_v54 = vpack.c.bf16 %v10384_v16, %v9999_v12 }
 0x5fd   : > { %v8285_v7 = vmax.f32 %v8112_v50, 0.0  ;;  %9161 = vrot.lane.b32.xlu0 %v16771_v53, %s13949_s8  ;;  %v8114_v59 = vpop.f32.mrb[79].mxu1 }
 0x5fe   : > { %v9432_v40 = vpop.permute.xlu1 %9431  ;;  %v8286_v1 = vmax.f32 %v8114_v59, 0.0  ;;  %13248 = vmatprep.subr.msk.bf16.mxu0 %vm16351_vm10, %v13246_v3  ;;  %v10134_v3 = vld [vmem:[#allocation5 + $0x190] sm:$0xff]  ;;  %v8414_v59 = vrot.slane %v16736_v5, %v15971_v51 }
 0x5ff   : > { %v16845_v61 = vmul.f32 %v8406_v58, %v8285_v7  ;;  %v9481_v14 = vsel %vm5722_vm5, %v16780_v32, %v9432_v40  ;;  %v9482_v19 = vsel %vm5722_vm5, %v9432_v40, %v16833_v15  ;;  %v16851_v41 = vpop.permute.xlu0 %9661  ;;  %13251 = vmatpush1.bf16.msk.msra.mxu0 %vm16351_vm10, %v13249_v54 }
 0x600   : > { %9159 = vrot.lane.b32.xlu1 %v16767_v17, %s13949_s8  ;;  %v16857_v37 = vmul.f32 %v8410_v31, %v8286_v1  ;;  %v13260_v13 = vpack.c.bf16 %v9482_v19, %v10227_v18  ;;  %v13262_v55 = vpack.c.bf16 %v9481_v14, %v10226_v45  ;;  %v16866_v17 = vld [vmem:[#allocation17] sm:$0xff]  ;;  %v10135_v31 = vld [vmem:[#allocation5 + $0x198] sm:$0xff]  ;;  %v8418_v14 = vrot.slane %v16736_v5, %v15980_v0 }
 0x601   : > { %9329 = vst [vmem:[#allocation5 + $0x4d0] sm:$0xff] %v16845_v61  ;;  %9848 = vst [vmem:[#allocation5 + $0x7c8] sm:$0xff] %v16845_v61  ;;  %8645 = vrot.lane.b32.xlu0 %v16845_v61, %s13949_s8 }
 0x602   : > { %v9660_v32 = vpop.permute.xlu1 %9659  ;;  %8811 = vst [vmem:[#allocation5 + $0x1e0] sm:$0xff] %v16857_v37  ;;  %9330 = vst [vmem:[#allocation5 + $0x4d8] sm:$0xff] %v16857_v37  ;;  %13261 = vmatprep.subr.bf16.mxu1 %v13260_v13  ;;  %12103 = vmatmul.mubr.msk.f32.vlgmr.msra.gmra.mrb[88].mxu0 %vm10404_vm11, %v16866_v17 }
 0x603   : > { %9849 = vst [vmem:[#allocation5 + $0x7d0] sm:$0xff] %v16857_v37  ;;  %v9709_v33 = vsel %vm5413_vm3, %v16793_v2, %v9660_v32  ;;  %v9710_v47 = vsel %vm5413_vm3, %v9660_v32, %v16851_v41  ;;  %v8626_v48 = vpop.permute.xlu0 %8625  ;;  %13263 = vmatpush1.bf16.msra.mxu1 %v13262_v55  ;;  %11137 = vmatprep.mubr.f32.mxu0 %v16709_v44  ;;  %v10229_v32 = vld [vmem:[#allocation5 + $0x488] sm:$0xff] }
 0x604   : > { %8643 = vrot.lane.b32.xlu1 %v16771_v53, %s13949_s8  ;;  %v13264_v49 = vpack.c.bf16 %v10323_v52, %v9710_v47  ;;  %v13266_v27 = vpack.c.bf16 %v10322_v6, %v9709_v33  ;;  %v10228_v33 = vld [vmem:[#allocation5 + $0x480] sm:$0xff] }
 0x605   : > { %9453 = vrot.lane.b32.xlu0 %v16845_v61, %s13951_s13 }
 0x606   : > { %v8624_v10 = vpop.permute.xlu1 %8623  ;;  %13265 = vmatprep.subr.bf16.mxu1 %v13264_v49 }
 0x607   : > { %v8671_v2 = vsel %vm5413_vm3, %v16762_v43, %v8624_v10  ;;  %v8672_v42 = vsel %vm5413_vm3, %v8624_v10, %v8626_v48  ;;  %v16882_v57 = vpop.permute.xlu0 %9953  ;;  %13267 = vmatpush1.bf16.msra.mxu1 %v13266_v27  ;;  %v10325_v10 = vld [vmem:[#allocation5 + $0x788] sm:$0xff] }
 0x608   : > { %9451 = vrot.lane.b32.xlu1 %v16771_v53, %s13951_s13  ;;  %v13274_v30 = vpack.c.bf16 %v10133_v29, %v8672_v42  ;;  %v13276_v11 = vpack.c.bf16 %v10132_v36, %v8671_v2  ;;  %v10324_v2 = vld [vmem:[#allocation5 + $0x780] sm:$0xff]  ;;  %v8422_v29 = vrot.slane %v16736_v5, %v16053_v56 }
 0x609   : > { %9681 = vrot.lane.b32.xlu0 %v16845_v61, %s13949_s8 }
 0x60a   : > { %v9952_v9 = vpop.permute.xlu1 %9951  ;;  %13275 = vmatprep.subr.bf16.mxu0 %v13274_v30 }
 0x60b   : > { %v10001_v43 = vsel %vm5722_vm5, %v16823_v38, %v9952_v9  ;;  %v10002_v26 = vsel %vm5722_vm5, %v9952_v9, %v16882_v57  ;;  %v16892_v23 = vpop.permute.xlu0 %8917  ;;  %13277 = vmatpush1.bf16.msra.mxu0 %v13276_v11  ;;  %v8426_v11 = vrot.slane %v16736_v5, %v16058_v21 }
 0x60c   : > { %9679 = vrot.lane.b32.xlu1 %v16771_v53, %s13949_s8  ;;  %v13268_v24 = vpack.c.bf16 %v10387_v22, %v10002_v26  ;;  %v13271_v60 = vpack.c.bf16 %v10386_v63, %v10001_v43 }
 0x60d   : > { %8937 = vrot.lane.b32.xlu0 %v16857_v37, %s13951_s13 }
 0x60e   : > { %v8916_v25 = vpop.permute.xlu1 %8915  ;;  %13270 = vmatprep.subr.msk.bf16.mxu1 %vm16351_vm10, %v13268_v24 }
 0x60f   : > { %v8963_v38 = vsel %vm5722_vm5, %v16803_v39, %v8916_v25  ;;  %v8964_v20 = vsel %vm5722_vm5, %v8916_v25, %v16892_v23  ;;  %v16904_v28 = vpop.permute.xlu0 %9145  ;;  %13273 = vmatpush1.bf16.msk.msra.mxu1 %vm16351_vm10, %v13271_v60 }
 0x610   : > { %8935 = vrot.lane.b32.xlu1 %v16845_v61, %s13951_s13 }
 0x611   : > { %9165 = vrot.lane.b32.xlu0 %v16857_v37, %s13949_s8 }
 0x612   : > { %v9144_v53 = vpop.permute.xlu1 %9143  ;;  %12106 = vmatmul.mubr.msk.f32.vlgmr.msra.gmra.mrb[88].mxu1 %vm10404_vm11, %v16866_v17 }
 0x613   : > { %v9191_v39 = vsel %vm5413_vm3, %v16813_v46, %v9144_v53  ;;  %v9192_v62 = vsel %vm5413_vm3, %v9144_v53, %v16904_v28  ;;  %v16918_v16 = vpop.permute.xlu0 %8629  ;;  %11208 = vmatprep.mubr.f32.mxu1 %v16709_v44 }
 0x614   : > { %9163 = vrot.lane.b32.xlu1 %v16845_v61, %s13949_s8  ;;  %v13278_v8 = vpack.c.bf16 %v9192_v62, %v8964_v20  ;;  %v13280_v12 = vpack.c.bf16 %v9191_v39, %v8963_v38  ;;  %v10389_v20 = vld [vmem:[#allocation5 + $0x988] sm:$0x1] }
 0x615   : > { %9973 = vrot.lane.b32.xlu0 %v16857_v37, %s13951_s13 }
 0x616   : > { %v8628_v34 = vpop.permute.xlu1 %8627  ;;  %13279 = vmatprep.subr.bf16.mxu0 %v13278_v8 }
 0x617   : > { %v8673_v58 = vsel %vm5413_vm3, %v8626_v48, %v8628_v34  ;;  %v8674_v46 = vsel %vm5413_vm3, %v8628_v34, %v16918_v16  ;;  %v16928_v50 = vpop.permute.xlu0 %9437  ;;  %13281 = vmatpush1.bf16.msra.mxu0 %v13280_v12 }
 0x618   : > { %9971 = vrot.lane.b32.xlu1 %v16845_v61, %s13951_s13  ;;  %v13296_v54 = vpack.c.bf16 %v10135_v31, %v8674_v46  ;;  %v13298_v7 = vpack.c.bf16 %v10134_v3, %v8673_v58  ;;  %v10231_v3 = vld [vmem:[#allocation5 + $0x498] sm:$0xff] }
 0x61a   : > { %v9436_v40 = vpop.permute.xlu1 %9435  ;;  %v8183_v1 = vpop.f32.mrb[80].mxu0  ;;  %13297 = vmatprep.subr.bf16.mxu1 %v13296_v54  ;;  %v10230_v54 = vld [vmem:[#allocation5 + $0x490] sm:$0xff] }
 0x61b   : > { %v9483_v19 = vsel %vm5722_vm5, %v16833_v15, %v9436_v40  ;;  %v9484_v18 = vsel %vm5722_vm5, %v9436_v40, %v16928_v50  ;;  %v8287_v45 = vmax.f32 %v8183_v1, 0.0  ;;  %v16940_v13 = vpop.permute.xlu0 %9665  ;;  %v8185_v55 = vpop.f32.mrb[81].mxu0  ;;  %13299 = vmatpush1.bf16.msra.mxu1 %v13298_v7 }
 0x61c   : > { %9455 = vrot.lane.b32.xlu1 %v16857_v37, %s13951_s13  ;;  %v8288_v51 = vmax.f32 %v8185_v55, 0.0  ;;  %v13282_v47 = vpack.c.bf16 %v9484_v18, %v10229_v32  ;;  %v13284_v0 = vpack.c.bf16 %v9483_v19, %v10228_v33  ;;  %v10327_v19 = vld [vmem:[#allocation5 + $0x798] sm:$0xff]  ;;  %v10326_v18 = vld [vmem:[#allocation5 + $0x790] sm:$0xff] }
 0x61d   : > { %v16944_v48 = vmul.f32 %v8414_v59, %v8287_v45 }
 0x61e   : > { %v16946_v52 = vmul.f32 %v8418_v14, %v8288_v51  ;;  %v9664_v15 = vpop.permute.xlu1 %9663  ;;  %13283 = vmatprep.subr.bf16.mxu0 %v13282_v47  ;;  %v10137_v47 = vld [vmem:[#allocation5 + $0x1a8] sm:$0xff] }
 0x61f   : > { %9331 = vst [vmem:[#allocation5 + $0x4e0] sm:$0xff] %v16944_v48  ;;  %v9711_v6 = vsel %vm5413_vm3, %v16851_v41, %v9664_v15  ;;  %v9712_v49 = vsel %vm5413_vm3, %v9664_v15, %v16940_v13  ;;  %v16953_v27 = vpop.permute.xlu0 %8921  ;;  %9457 = vrot.lane.b32.xlu0 %v16944_v48, %s13951_s13  ;;  %13285 = vmatpush1.bf16.msra.mxu0 %v13284_v0  ;;  %v10136_v0 = vld [vmem:[#allocation5 + $0x1a0] sm:$0xff] }
 0x620   : > { %8813 = vst [vmem:[#allocation5 + $0x1f0] sm:$0xff] %v16946_v52  ;;  %9332 = vst [vmem:[#allocation5 + $0x4e8] sm:$0xff] %v16946_v52  ;;  %9683 = vrot.lane.b32.xlu1 %v16857_v37, %s13949_s8  ;;  %v13286_v41 = vpack.c.bf16 %v10325_v10, %v9712_v49  ;;  %v13288_v42 = vpack.c.bf16 %v10324_v2, %v9711_v6  ;;  %v10391_v49 = vld [vmem:[#allocation5 + $0x998] sm:$0x1]  ;;  %v10390_v10 = vld [vmem:[#allocation5 + $0x990] sm:$0x1] }
 0x621   : > { %9851 = vst [vmem:[#allocation5 + $0x7e0] sm:$0xff] %v16946_v52 }
 0x622   : > { %v8920_v36 = vpop.permute.xlu1 %8919  ;;  %13287 = vmatprep.subr.bf16.mxu0 %v13286_v41  ;;  %v8254_v30 = vpop.f32.mrb[80].mxu1 }
 0x623   : > { %v8965_v22 = vsel %vm5722_vm5, %v16892_v23, %v8920_v36  ;;  %v8966_v63 = vsel %vm5722_vm5, %v8920_v36, %v16953_v27  ;;  %v16970_v9 = vpop.permute.xlu0 %9149  ;;  %9685 = vrot.lane.b32.xlu0 %v16944_v48, %s13949_s8  ;;  %13289 = vmatpush1.bf16.msra.mxu0 %v13288_v42  ;;  %v8289_v43 = vmax.f32 %v8254_v30, 0.0  ;;  %v8256_v56 = vpop.f32.mrb[81].mxu1 }
 0x624   : > { %8647 = vrot.lane.b32.xlu1 %v16857_v37, %s13949_s8  ;;  %v8290_v26 = vmax.f32 %v8256_v56, 0.0 }
 0x625   : > { %v16976_v24 = vmul.f32 %v8422_v29, %v8289_v43 }
 0x626   : > { %v9148_v21 = vpop.permute.xlu1 %9147  ;;  %v16978_v5 = vmul.f32 %v8426_v11, %v8290_v26 }
 0x627   : > { %v9193_v23 = vsel %vm5413_vm3, %v16904_v28, %v9148_v21  ;;  %v9194_v60 = vsel %vm5413_vm3, %v9148_v21, %v16970_v9  ;;  %v16984_v25 = vpop.permute.xlu0 %9957  ;;  %8649 = vrot.lane.b32.xlu0 %v16944_v48, %s13949_s8  ;;  %9333 = vst [vmem:[#allocation5 + $0x4f0] sm:$0xff] %v16976_v24  ;;  %9852 = vst [vmem:[#allocation5 + $0x7e8] sm:$0xff] %v16976_v24  ;;  %v10388_v28 = vld [vmem:[#allocation5 + $0x980] sm:$0x1] }
 0x628   : > { %9975 = vrot.lane.b32.xlu1 %v16944_v48, %s13951_s13  ;;  %v13300_v37 = vpack.c.bf16 %v9194_v60, %v8966_v63  ;;  %v13302_v38 = vpack.c.bf16 %v9193_v23, %v8965_v22  ;;  %9334 = vst [vmem:[#allocation5 + $0x4f8] sm:$0xff] %v16978_v5  ;;  %9853 = vst [vmem:[#allocation5 + $0x7f0] sm:$0xff] %v16978_v5 }
 0x62a   : > { %v9956_v53 = vpop.permute.xlu1 %9955  ;;  %13301 = vmatprep.subr.bf16.mxu1 %v13300_v37  ;;  %v10139_v37 = vld [vmem:[#allocation5 + $0x1b8] sm:$0xff] }
 0x62b   : > { %v10003_v39 = vsel %vm5722_vm5, %v16882_v57, %v9956_v53  ;;  %v10004_v62 = vsel %vm5722_vm5, %v9956_v53, %v16984_v25  ;;  %v16998_v8 = vpop.permute.xlu0 %9441  ;;  %9977 = vrot.lane.b32.xlu0 %v16946_v52, %s13951_s13  ;;  %13303 = vmatpush1.bf16.msra.mxu1 %v13302_v38  ;;  %v10138_v38 = vld [vmem:[#allocation5 + $0x1b0] sm:$0xff] }
 0x62c   : > { %8939 = vrot.lane.b32.xlu1 %v16944_v48, %s13951_s13  ;;  %v13290_v12 = vpack.c.bf16 %v10389_v20, %v10004_v62  ;;  %v13293_v34 = vpack.c.bf16 %v10388_v28, %v10003_v39 }
 0x62e   : > { %v9440_v58 = vpop.permute.xlu1 %9439  ;;  %13292 = vmatprep.subr.msk.bf16.mxu0 %vm16351_vm10, %v13290_v12 }
 0x62f   : > { %v9485_v57 = vsel %vm5722_vm5, %v16928_v50, %v9440_v58  ;;  %v9486_v46 = vsel %vm5722_vm5, %v9440_v58, %v16998_v8  ;;  %v17010_v31 = vpop.permute.xlu0 %9669  ;;  %8941 = vrot.lane.b32.xlu0 %v16946_v52, %s13951_s13  ;;  %13295 = vmatpush1.bf16.msk.msra.mxu0 %vm16351_vm10, %v13293_v34 }
 0x630   : > { %9167 = vrot.lane.b32.xlu1 %v16944_v48, %s13949_s8  ;;  %v13304_v7 = vpack.c.bf16 %v9486_v46, %v10231_v3  ;;  %v13306_v59 = vpack.c.bf16 %v9485_v57, %v10230_v54  ;;  %v10233_v57 = vld [vmem:[#allocation5 + $0x4a8] sm:$0xff]  ;;  %v10232_v46 = vld [vmem:[#allocation5 + $0x4a0] sm:$0xff] }
 0x632   : > { %v9668_v40 = vpop.permute.xlu1 %9667  ;;  %12109 = vmatmul.mubr.msk.f32.vlgmr.msra.gmra.mrb[90].mxu0 %vm10404_vm11, %v16866_v17  ;;  %13305 = vmatprep.subr.bf16.mxu1 %v13304_v7 }
 0x633   : > { %v9713_v50 = vsel %vm5413_vm3, %v16940_v13, %v9668_v40  ;;  %v9714_v1 = vsel %vm5413_vm3, %v9668_v40, %v17010_v31  ;;  %v8634_v14 = vpop.permute.xlu0 %8633  ;;  %9169 = vrot.lane.b32.xlu0 %v16946_v52, %s13949_s8  ;;  %13307 = vmatpush1.bf16.msra.mxu1 %v13306_v59 }
 0x634   : > { %8651 = vrot.lane.b32.xlu1 %v16946_v52, %s13949_s8  ;;  %v13308_v45 = vpack.c.bf16 %v10327_v19, %v9714_v1  ;;  %v13310_v55 = vpack.c.bf16 %v10326_v18, %v9713_v50  ;;  %11279 = vmatprep.mubr.f32.mxu0 %v16709_v44  ;;  %v10329_v50 = vld [vmem:[#allocation5 + $0x7a8] sm:$0xff]  ;;  %v10328_v1 = vld [vmem:[#allocation5 + $0x7a0] sm:$0xff]  ;;  %v13578_v19 = vpack.i.bf16 %v16709_v44, %v16709_v44 }
 0x636   : > { %v8632_v32 = vpop.permute.xlu1 %8631  ;;  %13309 = vmatprep.subr.bf16.mxu1 %v13308_v45 }
 0x637   : > { %v8675_v13 = vsel %vm5413_vm3, %v16918_v16, %v8632_v32  ;;  %v8676_v33 = vsel %vm5413_vm3, %v8632_v32, %v8634_v14  ;;  %v17032_v51 = vpop.permute.xlu0 %9961  ;;  %8653 = vrot.lane.b32.xlu0 %v16976_v24, %s13949_s8  ;;  %13311 = vmatpush1.bf16.msra.mxu1 %v13310_v55 }
 0x638   : > { %9459 = vrot.lane.b32.xlu1 %v16946_v52, %s13951_s13  ;;  %v13318_v15 = vpack.c.bf16 %v10137_v47, %v8676_v33  ;;  %v13320_v6 = vpack.c.bf16 %v10136_v0, %v8675_v13 }
 0x63a   : > { %v9960_v2 = vpop.permute.xlu1 %9959  ;;  %13319 = vmatprep.subr.bf16.mxu0 %v13318_v15 }
 0x63b   : > { %v10005_v16 = vsel %vm5722_vm5, %v16984_v25, %v9960_v2  ;;  %v10006_v41 = vsel %vm5722_vm5, %v9960_v2, %v17032_v51  ;;  %v17042_v42 = vpop.permute.xlu0 %8925  ;;  %9461 = vrot.lane.b32.xlu0 %v16976_v24, %s13951_s13  ;;  %13321 = vmatpush1.bf16.msra.mxu0 %v13320_v6 }
 0x63c   : > { %9687 = vrot.lane.b32.xlu1 %v16946_v52, %s13949_s8  ;;  %v13312_v29 = vpack.c.bf16 %v10391_v49, %v10006_v41  ;;  %v13315_v36 = vpack.c.bf16 %v10390_v10, %v10005_v16  ;;  %v10393_v16 = vld [vmem:[#allocation5 + $0x9a8] sm:$0x1]  ;;  %v10392_v41 = vld [vmem:[#allocation5 + $0x9a0] sm:$0x1] }
 0x63e   : > { %v8924_v30 = vpop.permute.xlu1 %8923  ;;  %13314 = vmatprep.subr.msk.bf16.mxu1 %vm16351_vm10, %v13312_v29 }
 0x63f   : > { %v8967_v11 = vsel %vm5722_vm5, %v16953_v27, %v8924_v30  ;;  %v8968_v22 = vsel %vm5722_vm5, %v8924_v30, %v17042_v42  ;;  %v17054_v63 = vpop.permute.xlu0 %9153  ;;  %8945 = vrot.lane.b32.xlu0 %v16978_v5, %s13951_s13  ;;  %13317 = vmatpush1.bf16.msk.msra.mxu1 %vm16351_vm10, %v13315_v36 }
 0x640   : > { %8943 = vrot.lane.b32.xlu1 %v16976_v24, %s13951_s13 }
 0x642   : > { %v9152_v52 = vpop.permute.xlu1 %9151  ;;  %12112 = vmatmul.mubr.msk.f32.vlgmr.msra.gmra.mrb[90].mxu1 %vm10404_vm11, %v16866_v17 }
 0x643   : > { %v9195_v27 = vsel %vm5413_vm3, %v16970_v9, %v9152_v52  ;;  %v9196_v43 = vsel %vm5413_vm3, %v9152_v52, %v17054_v63  ;;  %v17068_v56 = vpop.permute.xlu0 %8637  ;;  %9173 = vrot.lane.b32.xlu0 %v16978_v5, %s13949_s8  ;;  %11350 = vmatprep.mubr.f32.mxu1 %v16709_v44 }
 0x644   : > { %9171 = vrot.lane.b32.xlu1 %v16976_v24, %s13949_s8  ;;  %v13322_v26 = vpack.c.bf16 %v9196_v43, %v8968_v22  ;;  %v13324_v21 = vpack.c.bf16 %v9195_v27, %v8967_v11  ;;  %v10235_v43 = vld [vmem:[#allocation5 + $0x4b8] sm:$0xff] }
 0x646   : > { %v8636_v23 = vpop.permute.xlu1 %8635  ;;  %13323 = vmatprep.subr.bf16.mxu0 %v13322_v26  ;;  %v10234_v26 = vld [vmem:[#allocation5 + $0x4b0] sm:$0xff] }
 0x647   : > { %v8677_v60 = vsel %vm5413_vm3, %v8634_v14, %v8636_v23  ;;  %v8678_v9 = vsel %vm5413_vm3, %v8636_v23, %v17068_v56  ;;  %v17078_v25 = vpop.permute.xlu0 %9445  ;;  %9689 = vrot.lane.b32.xlu0 %v16976_v24, %s13949_s8  ;;  %13325 = vmatpush1.bf16.msra.mxu0 %v13324_v21 }
 0x648   : > { %9979 = vrot.lane.b32.xlu1 %v16976_v24, %s13951_s13  ;;  %v13340_v20 = vpack.c.bf16 %v10139_v37, %v8678_v9  ;;  %v13342_v28 = vpack.c.bf16 %v10138_v38, %v8677_v60  ;;  %v17084_v53 = vpop.f32.mrb[82].mxu0  ;;  %v10331_v38 = vld [vmem:[#allocation5 + $0x7b8] sm:$0xff] }
 0x649   : > { %v10573_v39 = vpop.f32.mrb[83].mxu0 }
 0x64a   : > { %v9444_v62 = vpop.permute.xlu1 %9443  ;;  %13341 = vmatprep.subr.bf16.mxu1 %v13340_v20  ;;  %v11642_v14 = vmax.f32 %v10573_v39, 0.0  ;;  %v10330_v20 = vld [vmem:[#allocation5 + $0x7b0] sm:$0xff] }
 0x64b   : > { %v9487_v12 = vsel %vm5722_vm5, %v16998_v8, %v9444_v62  ;;  %v9488_v34 = vsel %vm5722_vm5, %v9444_v62, %v17078_v25  ;;  %v17090_v58 = vpop.permute.xlu0 %9673  ;;  %9693 = vrot.lane.b32.xlu0 %v16709_v44, %s13949_s8  ;;  %13343 = vmatpush1.bf16.msra.mxu1 %v13342_v28  ;;  %v17143_v28 = vld [vmem:[#allocation2] sm:$0xff] }
 0x64c   : > { %9463 = vrot.lane.b32.xlu1 %v16978_v5, %s13951_s13  ;;  %v13326_v3 = vpack.c.bf16 %v9488_v34, %v10233_v57  ;;  %v13328_v54 = vpack.c.bf16 %v9487_v12, %v10232_v46  ;;  %v10141_v46 = vld [vmem:[#allocation5 + $0x1c8] sm:$0xff] }
 0x64e   : > { %v9672_v7 = vpop.permute.xlu1 %9671  ;;  %13327 = vmatprep.subr.bf16.mxu0 %v13326_v3  ;;  %v10140_v3 = vld [vmem:[#allocation5 + $0x1c0] sm:$0xff] }
 0x64f   : > { %v9715_v8 = vsel %vm5413_vm3, %v17010_v31, %v9672_v7  ;;  %v9716_v59 = vsel %vm5413_vm3, %v9672_v7, %v17090_v58  ;;  %v17100_v40 = vpop.permute.xlu0 %8929  ;;  %9981 = vrot.lane.b32.xlu0 %v16978_v5, %s13951_s13  ;;  %13329 = vmatpush1.bf16.msra.mxu0 %v13328_v54 }
 0x650   : > { %9691 = vrot.lane.b32.xlu1 %v16978_v5, %s13949_s8  ;;  %v13330_v18 = vpack.c.bf16 %v10329_v50, %v9716_v59  ;;  %v13332_v31 = vpack.c.bf16 %v10328_v1, %v9715_v8  ;;  %v10395_v8 = vld [vmem:[#allocation5 + $0x9b8] sm:$0x1]  ;;  %v10394_v59 = vld [vmem:[#allocation5 + $0x9b0] sm:$0x1] }
 0x652   : > { %v8928_v45 = vpop.permute.xlu1 %8927  ;;  %13331 = vmatprep.subr.bf16.mxu0 %v13330_v18 }
 0x653   : > { %v8969_v55 = vsel %vm5722_vm5, %v17042_v42, %v8928_v45  ;;  %v8970_v32 = vsel %vm5722_vm5, %v8928_v45, %v17100_v40  ;;  %v17112_v13 = vpop.permute.xlu0 %9157  ;;  %13333 = vmatpush1.bf16.msra.mxu0 %v13332_v31  ;;  %11674 = vrot.lane.b32.xlu0 %v11642_v14, %s13958_s20 }
 0x654   : > { %13579 = vrot.lane.b32.xlu1 %v13578_v19, %s13951_s13  ;;  %v10642_v5 = vpop.f32.mrb[82].mxu1 }
 0x655   : > { %v11643_v33 = vmax.f32 %v10642_v5, 0.0  ;;  %v10644_v44 = vpop.f32.mrb[83].mxu1 }
 0x656   : > { %v9156_v47 = vpop.permute.xlu1 %9155  ;;  %v11644_v49 = vmax.f32 %v10644_v44, 0.0 }
 0x657   : > { %v9197_v0 = vsel %vm5413_vm3, %v17054_v63, %v9156_v47  ;;  %v9198_v15 = vsel %vm5413_vm3, %v9156_v47, %v17112_v13  ;;  %v9966_v6 = vpop.permute.xlu0 %9965  ;;  %11678 = vrot.lane.b32.xlu0 %v11643_v33, %s13956_s21 }
 0x658   : > { %v13344_v10 = vpack.c.bf16 %v9198_v15, %v8970_v32  ;;  %v13346_v2 = vpack.c.bf16 %v9197_v0, %v8969_v55 }
 0x65a   : > { %v9964_v42 = vpop.permute.xlu1 %9963  ;;  %13345 = vmatprep.subr.bf16.mxu1 %v13344_v10 }
 0x65b   : > { %v10007_v29 = vsel %vm5722_vm5, %v17032_v51, %v9964_v42  ;;  %v10008_v36 = vsel %vm5722_vm5, %v9964_v42, %v9966_v6  ;;  %v17124_v30 = vpop.permute.xlu0 %9449  ;;  %13347 = vmatpush1.bf16.msra.mxu1 %v13346_v2  ;;  %11682 = vrot.lane.b32.xlu0 %v11644_v49, %s13953_s14 }
 0x65c   : > { %v13334_v11 = vpack.c.bf16 %v10393_v16, %v10008_v36  ;;  %v13337_v22 = vpack.c.bf16 %v10392_v41, %v10007_v29 }
 0x65e   : > { %v9448_v63 = vpop.permute.xlu1 %9447  ;;  %13336 = vmatprep.subr.msk.bf16.mxu0 %vm16351_vm10, %v13334_v11 }
 0x65f   : > { %v9489_v52 = vsel %vm5722_vm5, %v17078_v25, %v9448_v63  ;;  %v9490_v27 = vsel %vm5722_vm5, %v9448_v63, %v17124_v30  ;;  %v17133_v51 = vpop.permute.xlu0 %9677  ;;  %13339 = vmatpush1.bf16.msk.msra.mxu0 %vm16351_vm10, %v13337_v22 }
 0x660   : > { %v13348_v21 = vpack.c.bf16 %v9490_v27, %v10235_v43  ;;  %v13350_v23 = vpack.c.bf16 %v9489_v52, %v10234_v26  ;;  %v10237_v52 = vld [vmem:[#allocation5 + $0x4c8] sm:$0xff]  ;;  %v10236_v27 = vld [vmem:[#allocation5 + $0x4c0] sm:$0xff] }
 0x662   : > { %v9676_v60 = vpop.permute.xlu1 %9675  ;;  %12115 = vmatmul.mubr.msk.f32.vlgmr.msra.gmra.mrb[92].mxu0 %vm10404_vm11, %v16866_v17  ;;  %13349 = vmatprep.subr.bf16.mxu1 %v13348_v21 }
 0x663   : > { %v9717_v9 = vsel %vm5413_vm3, %v17090_v58, %v9676_v60  ;;  %v9718_v25 = vsel %vm5413_vm3, %v9676_v60, %v17133_v51  ;;  %v8642_v37 = vpop.permute.xlu0 %8641  ;;  %13351 = vmatpush1.bf16.msra.mxu1 %v13350_v23  ;;  %11421 = vmatprep.mubr.f32.mxu0 %v17143_v28 }
 0x664   : > { %v13352_v39 = vpack.c.bf16 %v10331_v38, %v9718_v25  ;;  %v13354_v62 = vpack.c.bf16 %v10330_v20, %v9717_v9  ;;  %v10333_v9 = vld [vmem:[#allocation5 + $0x7c8] sm:$0xff] }
 0x666   : > { %v8640_v12 = vpop.permute.xlu1 %8639  ;;  %13353 = vmatprep.subr.bf16.mxu1 %v13352_v39 }
 0x667   : > { %v8679_v34 = vsel %vm5413_vm3, %v17068_v56, %v8640_v12  ;;  %v8680_v58 = vsel %vm5413_vm3, %v8640_v12, %v8642_v37  ;;  %v17149_v57 = vpop.permute.xlu0 %9969  ;;  %13355 = vmatpush1.bf16.msra.mxu1 %v13354_v62 }
 0x668   : > { %v13362_v54 = vpack.c.bf16 %v10141_v46, %v8680_v58  ;;  %v13364_v7 = vpack.c.bf16 %v10140_v3, %v8679_v34 }
 0x66a   : > { %v9968_v50 = vpop.permute.xlu1 %9967  ;;  %13363 = vmatprep.subr.bf16.mxu0 %v13362_v54 }
 0x66b   : > { %v10009_v1 = vsel %vm5722_vm5, %v9966_v6, %v9968_v50  ;;  %v10010_v14 = vsel %vm5722_vm5, %v9968_v50, %v17149_v57  ;;  %v8934_v19 = vpop.permute.xlu0 %8933  ;;  %13365 = vmatpush1.bf16.msra.mxu0 %v13364_v7  ;;  %v10396_v50 = vld [vmem:[#allocation5 + $0x9c0] sm:$0x1] }
 0x66c   : > { %v13356_v56 = vpack.c.bf16 %v10395_v8, %v10010_v14  ;;  %v13359_v18 = vpack.c.bf16 %v10394_v59, %v10009_v1  ;;  %v10397_v59 = vld [vmem:[#allocation5 + $0x9c8] sm:$0x1] }
 0x66e   : > { %v8932_v31 = vpop.permute.xlu1 %8931  ;;  %13358 = vmatprep.subr.msk.bf16.mxu1 %vm16351_vm10, %v13356_v56 }
 0x66f   : > { %v8971_v45 = vsel %vm5722_vm5, %v17100_v40, %v8932_v31  ;;  %v8972_v55 = vsel %vm5722_vm5, %v8932_v31, %v8934_v19  ;;  %v9162_v32 = vpop.permute.xlu0 %9161  ;;  %13361 = vmatpush1.bf16.msk.msra.mxu1 %vm16351_vm10, %v13359_v18 }
 0x672   : > { %v9160_v5 = vpop.permute.xlu1 %9159  ;;  %12118 = vmatmul.mubr.msk.f32.vlgmr.msra.gmra.mrb[92].mxu1 %vm10404_vm11, %v16866_v17 }
 0x673   : > { %v9199_v33 = vsel %vm5413_vm3, %v17112_v13, %v9160_v5  ;;  %v9200_v44 = vsel %vm5413_vm3, %v9160_v5, %v9162_v32  ;;  %v17166_v47 = vpop.permute.xlu0 %8645  ;;  %11492 = vmatprep.mubr.f32.mxu1 %v17143_v28  ;;  %v10142_v13 = vld [vmem:[#allocation5 + $0x1d0] sm:$0xff] }
 0x674   : > { %v13366_v40 = vpack.c.bf16 %v9200_v44, %v8972_v55  ;;  %v13368_v0 = vpack.c.bf16 %v9199_v33, %v8971_v45  ;;  %v10239_v33 = vld [vmem:[#allocation5 + $0x4d8] sm:$0xff] }
 0x675   : > { %v17169_v15 = vpop.f32.mrb[84].mxu0 }
 0x676   : > { %v8644_v6 = vpop.permute.xlu1 %8643  ;;  %13367 = vmatprep.subr.bf16.mxu0 %v13366_v40  ;;  %v10715_v49 = vpop.f32.mrb[85].mxu0 }
 0x677   : > { %v8681_v10 = vsel %vm5413_vm3, %v8642_v37, %v8644_v6  ;;  %v8682_v2 = vsel %vm5413_vm3, %v8644_v6, %v17166_v47  ;;  %v9454_v16 = vpop.permute.xlu0 %9453  ;;  %13369 = vmatpush1.bf16.msra.mxu0 %v13368_v0  ;;  %v11646_v41 = vmax.f32 %v10715_v49, 0.0  ;;  %v10238_v0 = vld [vmem:[#allocation5 + $0x4d0] sm:$0xff] }
 0x678   : > { %v13384_v42 = vpack.c.bf16 %v16845_v61, %v8682_v2  ;;  %v13386_v29 = vpack.c.bf16 %v10142_v13, %v8681_v10  ;;  %v10334_v13 = vld [vmem:[#allocation5 + $0x7d0] sm:$0xff] }
 0x679   : > { %11686 = vrot.lane.b32.xlu1 %v11646_v41, %s13958_s20 }
 0x67a   : > { %v9452_v36 = vpop.permute.xlu1 %9451  ;;  %13385 = vmatprep.subr.bf16.mxu1 %v13384_v42 }
 0x67b   : > { %v9491_v11 = vsel %vm5722_vm5, %v17124_v30, %v9452_v36  ;;  %v9492_v22 = vsel %vm5722_vm5, %v9452_v36, %v9454_v16  ;;  %v9682_v63 = vpop.permute.xlu0 %9681  ;;  %13387 = vmatpush1.bf16.msra.mxu1 %v13386_v29  ;;  %v10332_v30 = vld [vmem:[#allocation5 + $0x7c0] sm:$0xff] }
 0x67c   : > { %v13370_v43 = vpack.c.bf16 %v9492_v22, %v10237_v52  ;;  %v13372_v26 = vpack.c.bf16 %v9491_v11, %v10236_v27  ;;  %v10399_v27 = vld [vmem:[#allocation5 + $0x9d8] sm:$0x1] }
 0x67e   : > { %v9680_v21 = vpop.permute.xlu1 %9679  ;;  %13371 = vmatprep.subr.bf16.mxu0 %v13370_v43 }
 0x67f   : > { %v9719_v61 = vsel %vm5413_vm3, %v17133_v51, %v9680_v21  ;;  %v9720_v23 = vsel %vm5413_vm3, %v9680_v21, %v9682_v63  ;;  %v17182_v60 = vpop.permute.xlu0 %8937  ;;  %13373 = vmatpush1.bf16.msra.mxu0 %v13372_v26 }
 0x680   : > { %v13374_v25 = vpack.c.bf16 %v10333_v9, %v9720_v23  ;;  %v13376_v37 = vpack.c.bf16 %v10332_v30, %v9719_v61 }
 0x682   : > { %v8936_v38 = vpop.permute.xlu1 %8935  ;;  %13375 = vmatprep.subr.bf16.mxu0 %v13374_v25 }
 0x683   : > { %v8973_v20 = vsel %vm5722_vm5, %v8934_v19, %v8936_v38  ;;  %v8974_v39 = vsel %vm5722_vm5, %v8936_v38, %v17182_v60  ;;  %13377 = vmatpush1.bf16.msra.mxu0 %v13376_v37  ;;  %v17187_v62 = vpop.permute.xlu0 %9165 }
 0x684   : > { %v10784_v51 = vpop.f32.mrb[84].mxu1 }
 0x685   : > { %v11647_v12 = vmax.f32 %v10784_v51, 0.0  ;;  %v10786_v34 = vpop.f32.mrb[85].mxu1 }
 0x686   : > { %v9164_v58 = vpop.permute.xlu1 %9163  ;;  %v11648_v54 = vmax.f32 %v10786_v34, 0.0 }
 0x687   : > { %v9201_v46 = vsel %vm5413_vm3, %v9162_v32, %v9164_v58  ;;  %v9202_v3 = vsel %vm5413_vm3, %v9164_v58, %v17187_v62  ;;  %11690 = vrot.lane.b32.xlu1 %v11647_v12, %s13956_s21  ;;  %v9974_v1 = vpop.permute.xlu0 %9973 }
 0x688   : > { %v13388_v7 = vpack.c.bf16 %v9202_v3, %v8974_v39  ;;  %v13390_v8 = vpack.c.bf16 %v9201_v46, %v8973_v20  ;;  %v17233_v20 = vld [vmem:[#allocation17] sm:$0xff] }
 0x68a   : > { %v9972_v14 = vpop.permute.xlu1 %9971  ;;  %13389 = vmatprep.subr.bf16.mxu1 %v13388_v7 }
 0x68b   : > { %v10011_v19 = vsel %vm5722_vm5, %v17149_v57, %v9972_v14  ;;  %v10012_v56 = vsel %vm5722_vm5, %v9972_v14, %v9974_v1  ;;  %13391 = vmatpush1.bf16.msra.mxu1 %v13390_v8  ;;  %11694 = vrot.lane.b32.xlu1 %v11648_v54, %s13953_s14 }
 0x68c   : > { %v13378_v18 = vpack.c.bf16 %v10397_v59, %v10012_v56  ;;  %v13381_v31 = vpack.c.bf16 %v10396_v50, %v10011_v19  ;;  %v10146_v50 = vld [vmem:[#allocation5 + $0x1f0] sm:$0xff] }
 0x68e   : > { %v9456_v45 = vpop.permute.xlu1 %9455  ;;  %13380 = vmatprep.subr.msk.bf16.mxu0 %vm16351_vm10, %v13378_v18  ;;  %v10241_v18 = vld [vmem:[#allocation5 + $0x4e8] sm:$0xff] }
 0x68f   : > { %v9493_v55 = vsel %vm5722_vm5, %v9454_v16, %v9456_v45  ;;  %13383 = vmatpush1.bf16.msk.msra.mxu0 %vm16351_vm10, %v13381_v31 }
 0x690   : > { %v13394_v6 = vpack.c.bf16 %v9493_v55, %v10238_v0  ;;  %v10240_v55 = vld [vmem:[#allocation5 + $0x4e0] sm:$0xff] }
 0x691   : > { %v17202_v32 = vpop.permute.xlu0 %9457 }
 0x692   : > { %v9684_v5 = vpop.permute.xlu1 %9683  ;;  %v9494_v57 = vsel %vm5722_vm5, %v9456_v45, %v17202_v32  ;;  %12121 = vmatmul.mubr.msk.f32.vlgmr.msra.gmra.mrb[94].mxu0 %vm10404_vm11, %v16866_v17 }
 0x693   : > { %v9721_v44 = vsel %vm5413_vm3, %v9682_v63, %v9684_v5  ;;  %v13392_v40 = vpack.c.bf16 %v9494_v57, %v10239_v33  ;;  %11563 = vmatprep.mubr.f32.mxu0 %v17143_v28  ;;  %v10144_v63 = vld [vmem:[#allocation5 + $0x1e0] sm:$0xff] }
 0x694   : > { %v13398_v41 = vpack.c.bf16 %v10334_v13, %v9721_v44 }
 0x695   : > { %v17210_v49 = vpop.permute.xlu0 %9685  ;;  %13393 = vmatprep.subr.bf16.mxu1 %v13392_v40 }
 0x696   : > { %v8648_v10 = vpop.permute.xlu1 %8647  ;;  %v9722_v2 = vsel %vm5413_vm3, %v9684_v5, %v17210_v49  ;;  %13395 = vmatpush1.bf16.msra.mxu1 %v13394_v6 }
 0x697   : > { %v8683_v16 = vsel %vm5413_vm3, %v17166_v47, %v8648_v10  ;;  %v13396_v17 = vpack.c.bf16 %v16944_v48, %v9722_v2  ;;  %v10398_v47 = vld [vmem:[#allocation5 + $0x9d0] sm:$0x1] }
 0x698   : > { %v13408_v52 = vpack.c.bf16 %v10144_v63, %v8683_v16  ;;  %v10336_v63 = vld [vmem:[#allocation5 + $0x7e0] sm:$0xff] }
 0x699   : > { %v8650_v42 = vpop.permute.xlu0 %8649  ;;  %13397 = vmatprep.subr.bf16.mxu1 %v13396_v17 }
 0x69a   : > { %v9976_v29 = vpop.permute.xlu1 %9975  ;;  %v8684_v36 = vsel %vm5413_vm3, %v8648_v10, %v8650_v42  ;;  %13399 = vmatpush1.bf16.msra.mxu1 %v13398_v41 }
 0x69b   : > { %v10013_v11 = vsel %vm5722_vm5, %v9974_v1, %v9976_v29  ;;  %v13406_v22 = vpack.c.bf16 %v16944_v48, %v8684_v36  ;;  %v10337_v36 = vld [vmem:[#allocation5 + $0x7e8] sm:$0xff] }
 0x69c   : > { %v13403_v9 = vpack.c.bf16 %v10398_v47, %v10013_v11 }
 0x69d   : > { %v17220_v43 = vpop.permute.xlu0 %9977  ;;  %13407 = vmatprep.subr.bf16.mxu0 %v13406_v22 }
 0x69e   : > { %v8940_v26 = vpop.permute.xlu1 %8939  ;;  %v10014_v21 = vsel %vm5722_vm5, %v9976_v29, %v17220_v43  ;;  %13409 = vmatpush1.bf16.msra.mxu0 %v13408_v52 }
 0x69f   : > { %v8975_v61 = vsel %vm5722_vm5, %v17182_v60, %v8940_v26  ;;  %v13400_v23 = vpack.c.bf16 %v10399_v27, %v10014_v21 }
 0x6a1   : > { %v8942_v30 = vpop.permute.xlu0 %8941  ;;  %13402 = vmatprep.subr.msk.bf16.mxu1 %vm16351_vm10, %v13400_v23  ;;  %v10242_v23 = vld [vmem:[#allocation5 + $0x4f0] sm:$0xff] }
 0x6a2   : > { %v9168_v48 = vpop.permute.xlu1 %9167  ;;  %v8976_v25 = vsel %vm5722_vm5, %v8940_v26, %v8942_v30  ;;  %13405 = vmatpush1.bf16.msk.msra.mxu1 %vm16351_vm10, %v13403_v9 }
 0x6a3   : > { %v9203_v37 = vsel %vm5413_vm3, %v17187_v62, %v9168_v48 }
 0x6a4   : > { %v13412_v3 = vpack.c.bf16 %v9203_v37, %v8975_v61  ;;  %v10243_v61 = vld [vmem:[#allocation5 + $0x4f8] sm:$0xff] }
 0x6a5   : > { %v9170_v38 = vpop.permute.xlu0 %9169  ;;  %12124 = vmatmul.mubr.msk.f32.vlgmr.msra.gmra.mrb[94].mxu1 %vm10404_vm11, %v17233_v20  ;;  %v17237_v60 = vpop.f32.mrb[86].mxu0 }
 0x6a6   : > { %v8652_v39 = vpop.permute.xlu1 %8651  ;;  %v9204_v51 = vsel %vm5413_vm3, %v9168_v48, %v9170_v38  ;;  %v10857_v12 = vpop.f32.mrb[87].mxu0  ;;  %11634 = vmatprep.mubr.f32.mxu1 %v17143_v28 }
 0x6a7   : > { %v8685_v34 = vsel %vm5413_vm3, %v8650_v42, %v8652_v39  ;;  %v13410_v58 = vpack.c.bf16 %v9204_v51, %v8976_v25  ;;  %v11650_v46 = vmax.f32 %v10857_v12, 0.0  ;;  %v10400_v25 = vld [vmem:[#allocation5 + $0x9e0] sm:$0x1] }
 0x6a8   : > { %v13430_v1 = vpack.c.bf16 %v10146_v50, %v8685_v34  ;;  %v10338_v34 = vld [vmem:[#allocation5 + $0x7f0] sm:$0xff] }
 0x6a9   : > { %v8654_v62 = vpop.permute.xlu0 %8653  ;;  %13411 = vmatprep.subr.bf16.mxu0 %v13410_v58  ;;  %11698 = vrot.lane.b32.xlu0 %v11650_v46, %s13958_s20 }
 0x6aa   : > { %v9460_v54 = vpop.permute.xlu1 %9459  ;;  %v8686_v7 = vsel %vm5413_vm3, %v8652_v39, %v8654_v62  ;;  %13413 = vmatpush1.bf16.msra.mxu0 %v13412_v3 }
 0x6ab   : > { %v9495_v8 = vsel %vm5722_vm5, %v17202_v32, %v9460_v54  ;;  %v13428_v59 = vpack.c.bf16 %v16976_v24, %v8686_v7 }
 0x6ac   : > { %v13416_v5 = vpack.c.bf16 %v9495_v8, %v10240_v55 }
 0x6ad   : > { %v9462_v14 = vpop.permute.xlu0 %9461  ;;  %13429 = vmatprep.subr.bf16.mxu1 %v13428_v59  ;;  %v10403_v59 = vld [vmem:[#allocation5 + $0x9f8] sm:$0x1] }
 0x6ae   : > { %v9688_v19 = vpop.permute.xlu1 %9687  ;;  %v9496_v56 = vsel %vm5722_vm5, %v9460_v54, %v9462_v14  ;;  %13431 = vmatpush1.bf16.msra.mxu1 %v13430_v1 }
 0x6af   : > { %v9723_v31 = vsel %vm5413_vm3, %v17210_v49, %v9688_v19  ;;  %v13414_v45 = vpack.c.bf16 %v9496_v56, %v10241_v18 }
 0x6b0   : > { %v13420_v52 = vpack.c.bf16 %v10336_v63, %v9723_v31 }
 0x6b1   : > { %v8946_v57 = vpop.permute.xlu0 %8945  ;;  %13415 = vmatprep.subr.bf16.mxu0 %v13414_v45 }
 0x6b2   : > { %v8944_v32 = vpop.permute.xlu1 %8943  ;;  %13417 = vmatpush1.bf16.msra.mxu0 %v13416_v5 }
 0x6b3   : > { %v8977_v24 = vsel %vm5722_vm5, %v8942_v30, %v8944_v32  ;;  %v8978_v33 = vsel %vm5722_vm5, %v8944_v32, %v8946_v57 }
 0x6b5   : > { %v9174_v44 = vpop.permute.xlu0 %9173  ;;  %v10926_v40 = vpop.f32.mrb[86].mxu1 }
 0x6b6   : > { %v9172_v0 = vpop.permute.xlu1 %9171  ;;  %v11651_v6 = vmax.f32 %v10926_v40, 0.0  ;;  %v10928_v10 = vpop.f32.mrb[87].mxu1  ;;  %v11645_v40 = vmax.f32 %v17169_v15, 0.0 }
 0x6b7   : > { %v9205_v2 = vsel %vm5413_vm3, %v9170_v38, %v9172_v0  ;;  %v9206_v49 = vsel %vm5413_vm3, %v9172_v0, %v9174_v44  ;;  %v11652_v13 = vmax.f32 %v10928_v10, 0.0 }
 0x6b8   : > { %v13432_v16 = vpack.c.bf16 %v9206_v49, %v8978_v33  ;;  %v13434_v17 = vpack.c.bf16 %v9205_v2, %v8977_v24  ;;  %11702 = vrot.lane.b32.xlu0 %v11651_v6, %s13956_s21 }
 0x6b9   : > { %v9690_v41 = vpop.permute.xlu0 %9689 }
 0x6ba   : > { %v9980_v42 = vpop.permute.xlu1 %9979  ;;  %v9724_v29 = vsel %vm5413_vm3, %v9688_v19, %v9690_v41  ;;  %13433 = vmatprep.subr.bf16.mxu1 %v13432_v16 }
 0x6bb   : > { %v10015_v11 = vsel %vm5722_vm5, %v17220_v43, %v9980_v42  ;;  %13435 = vmatpush1.bf16.msra.mxu1 %v13434_v17  ;;  %v13418_v22 = vpack.c.bf16 %v10337_v36, %v9724_v29  ;;  %v10401_v43 = vld [vmem:[#allocation5 + $0x9e8] sm:$0x1]  ;;  %v11649_v36 = vmax.f32 %v17237_v60, 0.0 }
 0x6bc   : > { %11706 = vrot.lane.b32.xlu0 %v11652_v13, %s13953_s14  ;;  %v13425_v46 = vpack.c.bf16 %v10400_v25, %v10015_v11 }
 0x6bd   : > { %v9694_v27 = vpop.permute.xlu0 %9693  ;;  %13419 = vmatprep.subr.bf16.mxu0 %v13418_v22 }
 0x6be   : > { %v9464_v47 = vpop.permute.xlu1 %9463  ;;  %13421 = vmatpush1.bf16.msra.mxu0 %v13420_v52 }
 0x6bf   : > { %v9497_v26 = vsel %vm5722_vm5, %v9462_v14, %v9464_v47  ;;  %v9498_v21 = vsel %vm5722_vm5, %v9464_v47, %v14458_v35  ;;  %v11641_v35 = vmax.f32 %v17084_v53, 0.0  ;;  %v10402_v53 = vld [vmem:[#allocation5 + $0x9f0] sm:$0x1] }
 0x6c0   : > { %v13436_v9 = vpack.c.bf16 %v9498_v21, %v10243_v61  ;;  %v13438_v30 = vpack.c.bf16 %v9497_v26, %v10242_v23 }
 0x6c1   : > { %v9982_v48 = vpop.permute.xlu0 %9981 }
 0x6c2   : > { %v9692_v37 = vpop.permute.xlu1 %9691  ;;  %v10016_v38 = vsel %vm5722_vm5, %v9980_v42, %v9982_v48  ;;  %13437 = vmatprep.subr.bf16.mxu1 %v13436_v9 }
 0x6c3   : > { %v9725_v39 = vsel %vm5413_vm3, %v9690_v41, %v9692_v37  ;;  %v9726_v51 = vsel %vm5413_vm3, %v9692_v37, %v9694_v27  ;;  %13439 = vmatpush1.bf16.msra.mxu1 %v13438_v30  ;;  %v13422_v12 = vpack.c.bf16 %v10401_v43, %v10016_v38 }
 0x6c4   : > { %v13440_v58 = vpack.c.bf16 %v17143_v28, %v9726_v51  ;;  %v13442_v3 = vpack.c.bf16 %v10338_v34, %v9725_v39 }
 0x6c5   : > { %13424 = vmatprep.subr.msk.bf16.mxu0 %vm16351_vm10, %v13422_v12  ;;  %v11675_v62 = vpop.permute.xlu0 %11674 }
 0x6c6   : > { %v13580_v54 = vpop.permute.xlu1 %13579  ;;  %13441 = vmatprep.subr.bf16.mxu1 %v13440_v58  ;;  %13427 = vmatpush1.bf16.msk.msra.mxu0 %vm16351_vm10, %v13425_v46  ;;  %v11722_v28 = vsel %vm11721_vm12, %v11641_v35, %v11675_v62 }
 0x6c7   : > { %v13582_v7 = vunpack.i.h.bf16 %v13580_v54  ;;  %v13581_v8 = vunpack.i.l.bf16 %v13580_v54  ;;  %13443 = vmatpush1.bf16.msra.mxu1 %v13442_v3 }
 0x6c9   : > { %v10017_v50 = vsel %vm5722_vm5, %v9982_v48, %v13581_v8  ;;  %v10018_v1 = vsel %vm5722_vm5, %v13581_v8, %v13582_v7  ;;  %12127 = vmatmul.mubr.msk.f32.vlgmr.msra.gmra.mrb[96].mxu0 %vm10404_vm11, %v17233_v20  ;;  %v11679_v14 = vpop.permute.xlu0 %11678 }
 0x6ca   : > { %v13444_v19 = vpack.c.bf16 %v10403_v59, %v10018_v1  ;;  %v13447_v56 = vpack.c.bf16 %v10402_v53, %v10017_v50  ;;  %v11724_v18 = vsel %vm11723_vm13, %v11722_v28, %v11679_v14 }
 0x6cc   : > { %13446 = vmatprep.subr.msk.bf16.mxu1 %vm16351_vm10, %v13444_v19 }
 0x6cd   : > { %13449 = vmatpush1.bf16.msk.msra.mxu1 %vm16351_vm10, %v13447_v56  ;;  %v11683_v31 = vpop.permute.xlu0 %11682 }
 0x6ce   : > { %v11726_v45 = vsel %vm11725_vm14, %v11724_v18, %v11683_v31 }
 0x6cf   : > { %11796 = vst [vmem:[%s17283_s17] sm:$0xff] %v11726_v45 }
 0x6d0   : > { %12130 = vmatmul.mubr.msk.f32.vlgmr.msra.gmra.mrb[96].mxu1 %vm10404_vm11, %v17233_v20 }
 0x6d5   : > { %v10997_v55 = vpop.f32.mrb[88].mxu0 }
 0x6d6   : > { %v10999_v5 = vpop.f32.mrb[89].mxu0  ;;  %v11653_v43 = vmax.f32 %v10997_v55, 0.0 }
 0x6d7   : > { %v11654_v57 = vmax.f32 %v10999_v5, 0.0 }
 0x6d9   : > { %11710 = vrot.lane.b32.xlu1 %v11654_v57, %s13958_s20 }
 0x6e5   : > { %v11068_v32 = vpop.f32.mrb[88].mxu1 }
 0x6e6   : > { %v11655_v24 = vmax.f32 %v11068_v32, 0.0  ;;  %v11070_v4 = vpop.f32.mrb[89].mxu1 }
 0x6e7   : > { %v11656_v33 = vmax.f32 %v11070_v4, 0.0 }
 0x6e8   : > { %11714 = vrot.lane.b32.xlu1 %v11655_v24, %s13956_s21 }
 0x6eb   : > { %v11687_v44 = vpop.permute.xlu1 %11686 }
 0x6ec   : > { %11718 = vrot.lane.b32.xlu1 %v11656_v33, %s13953_s14  ;;  %v11727_v0 = vsel %vm11721_vm12, %v11645_v40, %v11687_v44 }
 0x6f9   : > { %v11691_v20 = vpop.permute.xlu1 %11690 }
 0x6fa   : > { %v11728_v6 = vsel %vm11723_vm13, %v11727_v0, %v11691_v20 }
 0x6fd   : > { %v11695_v10 = vpop.permute.xlu1 %11694 }
 0x6fe   : > { %v11729_v2 = vsel %vm11725_vm14, %v11728_v6, %v11695_v10 }
 0x6ff   : > { %11797 = vst [vmem:[%s17283_s17 + $0x8] sm:$0xff] %v11729_v2 }
 0x705   : > { %v11139_v49 = vpop.f32.mrb[90].mxu0 }
 0x706   : > { %v11141_v16 = vpop.f32.mrb[91].mxu0  ;;  %v11657_v7 = vmax.f32 %v11139_v49, 0.0 }
 0x707   : > { %v11658_v17 = vmax.f32 %v11141_v16, 0.0 }
 0x709   : > { %11737 = vrot.lane.b32.xlu0 %v11658_v17, %s13958_s20 }
 0x715   : > { %v11210_v13 = vpop.f32.mrb[90].mxu1 }
 0x716   : > { %v11659_v41 = vmax.f32 %v11210_v13, 0.0  ;;  %v11212_v42 = vpop.f32.mrb[91].mxu1 }
 0x717   : > { %v11660_v15 = vmax.f32 %v11212_v42, 0.0 }
 0x718   : > { %11741 = vrot.lane.b32.xlu0 %v11659_v41, %s13956_s21 }
 0x71b   : > { %v11699_v29 = vpop.permute.xlu0 %11698 }
 0x71c   : > { %11745 = vrot.lane.b32.xlu0 %v11660_v15, %s13953_s14  ;;  %v11730_v11 = vsel %vm11721_vm12, %v11649_v36, %v11699_v29 }
 0x72a   : > { %v11703_v22 = vpop.permute.xlu0 %11702 }
 0x72b   : > { %v11731_v63 = vsel %vm11723_vm13, %v11730_v11, %v11703_v22 }
 0x72e   : > { %v11707_v52 = vpop.permute.xlu0 %11706 }
 0x72f   : > { %v11732_v27 = vsel %vm11725_vm14, %v11731_v63, %v11707_v52 }
 0x730   : > { %11798 = vst [vmem:[%s17283_s17 + $0x10] sm:$0xff] %v11732_v27 }
 0x735   : > { %v11281_v47 = vpop.f32.mrb[92].mxu0 }
 0x736   : > { %v11283_v26 = vpop.f32.mrb[93].mxu0  ;;  %v11661_v5 = vmax.f32 %v11281_v47, 0.0 }
 0x737   : > { %v11662_v21 = vmax.f32 %v11283_v26, 0.0 }
 0x739   : > { %11749 = vrot.lane.b32.xlu1 %v11662_v21, %s13958_s20 }
 0x745   : > { %v11352_v61 = vpop.f32.mrb[92].mxu1 }
 0x746   : > { %v11663_v23 = vmax.f32 %v11352_v61, 0.0  ;;  %v11354_v9 = vpop.f32.mrb[93].mxu1 }
 0x747   : > { %v11664_v60 = vmax.f32 %v11354_v9, 0.0 }
 0x748   : > { %11753 = vrot.lane.b32.xlu1 %v11663_v23, %s13956_s21 }
 0x74b   : > { %v11711_v30 = vpop.permute.xlu1 %11710 }
 0x74c   : > { %11757 = vrot.lane.b32.xlu1 %v11664_v60, %s13953_s14  ;;  %v11733_v25 = vsel %vm11721_vm12, %v11653_v43, %v11711_v30 }
 0x75a   : > { %v11715_v48 = vpop.permute.xlu1 %11714 }
 0x75b   : > { %v11734_v37 = vsel %vm11723_vm13, %v11733_v25, %v11715_v48 }
 0x75e   : > { %v11719_v38 = vpop.permute.xlu1 %11718 }
 0x75f   : > { %v11735_v39 = vsel %vm11725_vm14, %v11734_v37, %v11719_v38 }
 0x760   : > { %11799 = vst [vmem:[%s17283_s17 + $0x18] sm:$0xff] %v11735_v39 }
 0x765   : > { %v11423_v51 = vpop.f32.mrb[94].mxu0 }
 0x766   : > { %v11425_v12 = vpop.f32.mrb[95].mxu0  ;;  %v11665_v40 = vmax.f32 %v11423_v51, 0.0 }
 0x767   : > { %v11666_v34 = vmax.f32 %v11425_v12, 0.0 }
 0x769   : > { %11761 = vrot.lane.b32.xlu0 %v11666_v34, %s13958_s20 }
 0x778   : > { %v11494_v35 = vpop.f32.mrb[94].mxu1 }
 0x779   : > { %v11667_v58 = vmax.f32 %v11494_v35, 0.0  ;;  %v11496_v46 = vpop.f32.mrb[95].mxu1 }
 0x77a   : > { %v11668_v3 = vmax.f32 %v11496_v46, 0.0 }
 0x77b   : > { %11765 = vrot.lane.b32.xlu0 %v11667_v58, %s13956_s21  ;;  %v11738_v62 = vpop.permute.xlu0 %11737 }
 0x77c   : > { %v11784_v8 = vsel %vm11721_vm12, %v11657_v7, %v11738_v62 }
 0x77f   : > { %11769 = vrot.lane.b32.xlu0 %v11668_v3, %s13953_s14 }
 0x78a   : > { %v11742_v54 = vpop.permute.xlu0 %11741 }
 0x78b   : > { %v11785_v59 = vsel %vm11723_vm13, %v11784_v8, %v11742_v54 }
 0x78e   : > { %v11746_v53 = vpop.permute.xlu0 %11745 }
 0x78f   : > { %v11786_v28 = vsel %vm11725_vm14, %v11785_v59, %v11746_v53 }
 0x790   : > { %11800 = vst [vmem:[%s17283_s17 + $0x20] sm:$0xff] %v11786_v28 }
 0x79c   : > { %v11565_v50 = vpop.f32.mrb[96].mxu0 }
 0x79d   : > { %v11567_v1 = vpop.f32.mrb[97].mxu0  ;;  %v11669_v16 = vmax.f32 %v11565_v50, 0.0 }
 0x79e   : > { %v11670_v14 = vmax.f32 %v11567_v1, 0.0 }
 0x7a0   : > { %11773 = vrot.lane.b32.xlu1 %v11670_v14, %s13958_s20 }
 0x7a3   : > { %v11636_v19 = vpop.f32.mrb[96].mxu1 }
 0x7a4   : > { %v11671_v56 = vmax.f32 %v11636_v19, 0.0  ;;  %v11638_v18 = vpop.f32.mrb[97].mxu1 }
 0x7a5   : > { %v11672_v31 = vmax.f32 %v11638_v18, 0.0 }
 0x7a6   : > { %11777 = vrot.lane.b32.xlu1 %v11671_v56, %s13956_s21  ;;  %s13863_s21 = sshll.u32 %s13962_s19, 4  ;;  %s13864_s21 = int_to_ptr.vmem [resolvable:$false] %s13863_s21 }
 0x7a7   : > { %s13865_s29 = scalar_lea.vmem %s13864_s21, 2048  ;;  %p13866_p13 = scmp.lt.s32.totalorder %s17338_s18, %s13864_s21 }
 0x7a8   : > { %p13867_p0 = scmp.lt.s32.totalorder %s13865_s29, %s13859_s10 }
 0x7aa   : > { %11781 = vrot.lane.b32.xlu1 %v11672_v31, %s13953_s14  ;;  %s17336_s14 = scalar_lea.hbm %s17389_s7, %s12137_s9  ;;  %p13868_p2 = por %p13867_p0, %p13866_p13 }
 0x7ab   : > { %v11750_v45 = vpop.permute.xlu1 %11749 }
 0x7ac   : > { %v11787_v57 = vsel %vm11721_vm12, %v11661_v5, %v11750_v45  ;;  %p13869_p3 = pnand %p13868_p2, %p13862_p1 }
 0x7ba   : > { %v11754_v55 = vpop.permute.xlu1 %11753 }
 0x7bb   : > { %v11788_v32 = vsel %vm11723_vm13, %v11787_v57, %v11754_v55 }
 0x7be   : > { %v11758_v24 = vpop.permute.xlu1 %11757 }
 0x7bf   : > { %v11789_v4 = vsel %vm11725_vm14, %v11788_v32, %v11758_v24 }
 0x7c0   : > { %11801 = vst [vmem:[%s17283_s17 + $0x28] sm:$0xff] %v11789_v4 }
 0x7db   : > { %v11762_v33 = vpop.permute.xlu0 %11761 }
 0x7dc   : > { %v11790_v0 = vsel %vm11721_vm12, %v11665_v40, %v11762_v33 }
 0x7ed   : > { %v11766_v44 = vpop.permute.xlu0 %11765 }
 0x7ee   : > { %v11791_v20 = vsel %vm11723_vm13, %v11790_v0, %v11766_v44 }
 0x7f1   : > { %v11770_v6 = vpop.permute.xlu0 %11769 }
 0x7f2   : > { %v11792_v10 = vsel %vm11725_vm14, %v11791_v20, %v11770_v6 }
 0x7f3   : > { %11802 = vst [vmem:[%s17283_s17 + $0x30] sm:$0xff] %v11792_v10 }
 0x812   : > { %v11774_v2 = vpop.permute.xlu1 %11773 }
 0x813   : > { %v11793_v17 = vsel %vm11721_vm12, %v11669_v16, %v11774_v2 }
 0x818   : > { %v11778_v49 = vpop.permute.xlu1 %11777 }
 0x819   : > { %v11794_v13 = vsel %vm11723_vm13, %v11793_v17, %v11778_v49 }
 0x81c   : > { %v11782_v41 = vpop.permute.xlu1 %11781 }
 0x81d   : > { %v11795_v42 = vsel %vm11725_vm14, %v11794_v13, %v11782_v41 }
 0x81e   : > { %11803 = vst [vmem:[%s17283_s17 + $0x38] sm:$0xff] %v11795_v42 }
 0x81f   : > { %13872 = shalt.err (!%p13869_p3)
}
 0x820   : > { %s13873_s23 = scalar_lea.hbm %s17336_s14, 1024  ;;  %s13877_s16 = scalar_lea.hbm %s17389_s7, 2048 }
 0x821   : > { %p13874_p4 = scmp.ne.s32.totalorder %s17336_s14, %s13873_s23  ;;  %p13878_p8 = scmp.lt.u32.totalorder %s17336_s14, %s17389_s7 }
 0x822   : > { %p13879_p5 = scmp.lt.u32.totalorder %s13877_s16, %s13873_s23  ;;  %p13881_p6 = scmp.lt.u32.totalorder %s13873_s23, %s17336_s14 }
 0x823   : > { %p13875_p10 = pnand %p13874_p4, %p17411_p9 }
 0x824   : > { %p13880_p7 = por %p13879_p5, %p13878_p8 }
 0x825   : > { %p13876_p11 = pneg %p13875_p10 }
 0x826   : > { %p13882_p12 = por %p13881_p6, %p13880_p7 }
 0x828   : > { %p13883_p1 = pnand %p13882_p12, %p13876_p11 }
 0x82a   : > { %13886 = shalt.err (!%p13883_p1)
}
 0x82b   : > { %13476 = dma.vmem_to_hbm [thread:$0]  (%p17411_p9), %s17338_s18, 1024, %s17336_s14, %s11805_s30  }
 0x82c PF: > { %s11831_s8 = sand.u32 1, %s13925_s24   ;;  %p17412_p13 = scmp.ne.s32.totalorder %s17400_s12, 0 }
 0x82d   : > { %p17413_p0 = scmp.ge.s32.totalorder %s13937_s27, 2  ;;  %s11832_s13 = scalar_lea.sflag [#allocation8], %s11831_s8 }
 0x82f   : > { %p13502_p2 = pnand %p17413_p0, %p17412_p13 }
 0x831   : > { %13920 = dma.done.wait (!%p13502_p2), %s11832_s13, 1024  }
 0x832   : > { %13922 = vsyncadd (!%p13502_p2), %s11832_s13, 4294966272  ;;  %p23_p3 = scmp.ge.s32.totalorder %s14185_s11, 4   ;;  %s17414_s24 = smov %s13929_s25 }
 0x833   : > { %s17415_s25 = smov %s13933_s26  ;;  %s17416_s26 = smov %s14196_s28 }
 0x834   : > { %s17417_s27 = smov %s14185_s11  ;;  %25 = sbr.rel (!%p23_p3) target bundleno = 8 (0x8), region = 126 }
 0x83b   :  { %11837 = vsyncpa [#allocation7], 1 }
 0x83c   :  { %11839 = vsyncpa [#allocation7 + $0x1], 1 }
 0x83d   :  { %11840 = vsyncpa [#allocation10], 1 }
 0x83e   :  { %11841 = vsyncpa [#allocation13], 1 }
 0x83f   :  { %11842 = vsyncpa [#allocation16], 1 }
 0x840   :  { %11843 = vsyncpa [#allocation8], 1 }
 0x841   :  { %11845 = vsyncpa [#allocation8 + $0x1], 1 }

</bundles_post_ra>
